<compile_context>
chip_gen: v7x
topology: tpu7x:2x2x1
jax: 0.10.0
libtpu: 0.0.40
codegen_flags: <defaults>
</compile_context>

<pallas_src>
import numpy as np
import jax
import jax.numpy as jnp
from jax import lax
from jax.experimental import pallas as pl
from jax.experimental.pallas import tpu as pltpu

LEAKY_SLOPE = 0.01   # nn.LeakyReLU default negative_slope
IN_EPS = 1e-5        # nn.InstanceNorm2d default eps (affine=False)
KSIZE = 4            # every conv in Critic is 4x4
NTAPS = KSIZE * KSIZE


# ---------------- trace-time constants (numpy) ----------------

def _conv_out(n, k, s, p):
    return (n + 2 * p - k) // s + 1


def _make_gather(h_in, w_in, k, stride, pad):
    """One-hot gather matrices G[t]: (Ho*Wo, Hi*Wi); zero padding folded in."""
    h_out = _conv_out(h_in, k, stride, pad)
    w_out = _conv_out(w_in, k, stride, pad)
    g = np.zeros((k * k, h_out * w_out, h_in * w_in), np.float32)
    for i in range(k):
        for j in range(k):
            t = i * k + j
            for ho in range(h_out):
                hi = stride * ho + i - pad
                if hi < 0 or hi >= h_in:
                    continue
                for wo in range(w_out):
                    wi = stride * wo + j - pad
                    if 0 <= wi < w_in:
                        g[t, ho * w_out + wo, hi * w_in + wi] = 1.0
    return g, h_out, w_out


# ---------------- in-kernel helpers ----------------

def _tree_sum(xs):
    """Balanced-tree accumulation (shorter dependency chain than a fold)."""
    while len(xs) > 1:
        nxt = [xs[i] + xs[i + 1] for i in range(0, len(xs) - 1, 2)]
        if len(xs) % 2:
            nxt.append(xs[-1])
        xs = nxt
    return xs[0]


def _inorm_leaky(a):
    # InstanceNorm2d(affine=False) over spatial rows (axis 0), one-pass stats,
    # variance clamped at 0 for safety, fused LeakyReLU.
    n = a.shape[0]
    s1 = jnp.sum(a, axis=0, keepdims=True)
    s2 = jnp.sum(a * a, axis=0, keepdims=True)
    mean = s1 * (1.0 / n)
    var = jnp.maximum(s2 * (1.0 / n) - mean * mean, 0.0)
    y = (a - mean) * lax.rsqrt(var + IN_EPS)
    return jnp.where(y > 0, y, LEAKY_SLOPE * y)


def _conv_fused(a, g_ref, wcat_ref):
    """conv(a) = sum_t G_t @ (a @ W_t); weights pre-concatenated to (Cin,16*Cout)."""
    cout = wcat_ref.shape[1] // NTAPS
    m = jnp.dot(a, wcat_ref[...], preferred_element_type=jnp.float32)  # (S_in, 16*Cout)
    terms = [
        jnp.dot(g_ref[t], m[:, t * cout:(t + 1) * cout],
                preferred_element_type=jnp.float32)
        for t in range(NTAPS)
    ]
    return _tree_sum(terms)


# ---------------- fused Pallas kernel ----------------

def _critic_kernel(p1_ref, w1_ref, g2_ref, w2_ref, g3_ref, w3_ref,
                   g4_ref, w4_ref, q5_ref, b5_ref, o_ref):
    # ---- conv1 (im2col'd on host) + InstanceNorm + LeakyReLU ----
    a = jnp.dot(p1_ref[0], w1_ref[...], preferred_element_type=jnp.float32)
    a = _inorm_leaky(a)                                   # (256, 32)

    # ---- conv2..conv4, reassociated + fused, fully in VMEM ----
    a = _inorm_leaky(_conv_fused(a, g2_ref, w2_ref))      # (64, 64)
    a = _inorm_leaky(_conv_fused(a, g3_ref, w3_ref))      # (16, 128)
    a = _inorm_leaky(_conv_fused(a, g4_ref, w4_ref))      # (4, 256)

    # ---- conv5 (Cout=1, bias, no norm/activation) ----
    # Gather + weights folded into Q[p] (256, 25) at trace time:
    #   out_row = sum_p a[p,:] @ Q[p] + b   -> lane-dense (1, 25) row.
    outs = [
        jnp.dot(a[p:p + 1, :], q5_ref[p], preferred_element_type=jnp.float32)
        for p in range(q5_ref.shape[0])
    ]
    o_ref[0] = _tree_sum(outs) + b5_ref[0]


# ---------------- wrappers ----------------

def _im2col_k4s2p1(x_nhwc):
    """Host-side im2col for conv1 only (input is tiny and crosses HBM anyway)."""
    B, H, W, C = x_nhwc.shape
    ho, wo = H // 2, W // 2
    xp = jnp.pad(x_nhwc, ((0, 0), (1, 1), (1, 1), (0, 0)))
    cols = []
    for i in range(KSIZE):
        for j in range(KSIZE):
            cols.append(xp[:, i:i + 2 * ho:2, j:j + 2 * wo:2, :])
    p = jnp.stack(cols, axis=3)                        # (B, ho, wo, 16, C)
    return p.reshape(B, ho * wo, KSIZE * KSIZE * C)    # K-order matches HWIO reshape


def _wcat(w):
    """HWIO (4,4,Cin,Cout) -> (Cin, 16*Cout); column block t holds W_t."""
    kh, kw, cin, cout = w.shape
    return jnp.transpose(w.reshape(kh * kw, cin, cout), (1, 0, 2)).reshape(
        cin, kh * kw * cout)


@jax.jit
def critic_forward(params, x_nchw):
    """Matches Critic.forward: conv(3->32->64->128->256, k4 s2 p1, InstanceNorm,
    LeakyReLU) then conv(256->1, k4 s1 p3, bias, no norm/activation), squeeze."""
    B, _, H, W = x_nchw.shape
    x = jnp.transpose(x_nchw, (0, 2, 3, 1)).astype(jnp.float32)   # NCHW -> NHWC
    p1 = _im2col_k4s2p1(x)                                        # (B, 256, 48)

    # Gather constants, kept f32 (no in-kernel casts).
    oh, ow = H // 2, W // 2
    g2, oh, ow = _make_gather(oh, ow, KSIZE, 2, 1)    # (16, 64, 256)
    g3, oh, ow = _make_gather(oh, ow, KSIZE, 2, 1)    # (16, 16, 64)
    g4, oh, ow = _make_gather(oh, ow, KSIZE, 2, 1)    # (16, 4, 16)
    g5, oh, ow = _make_gather(oh, ow, KSIZE, 1, 3)    # (16, 25, 4)
    g2, g3, g4 = (jnp.asarray(g, jnp.float32) for g in (g2, g3, g4))

    # Weights, reorganized at trace time for the reassociated matmuls.
    w1m = params["w1"].reshape(KSIZE * KSIZE * 3, 32)   # (48, 32)
    wc2 = _wcat(params["w2"])                           # (32, 1024)
    wc3 = _wcat(params["w3"])                           # (64, 2048)
    wc4 = _wcat(params["w4"])                           # (128, 4096)
    # conv5: fold gather + weights into Q[p][c,m] = sum_t w5[t,c] * G5_t[m,p]
    w5flat = params["w5"].reshape(KSIZE * KSIZE, 256)
    q5 = jnp.einsum("tmp,tc->pcm", jnp.asarray(g5, jnp.float32), w5flat)  # (4, 256, 25)
    b5 = params["b5"].reshape(1)

    n_out = oh * ow

    def full(shape):
        zeros = (0,) * len(shape)
        return pl.BlockSpec(shape, lambda b, _z=zeros: _z)

    out = pl.pallas_call(
        _critic_kernel,
        out_shape=jax.ShapeDtypeStruct((B, 1, n_out), jnp.float32),
        grid=(B,),
        in_specs=[
            pl.BlockSpec((1,) + p1.shape[1:], lambda b: (b, 0, 0)),
            full(w1m.shape),
            full(g2.shape), full(wc2.shape),
            full(g3.shape), full(wc3.shape),
            full(g4.shape), full(wc4.shape),
            full(q5.shape),
            pl.BlockSpec(memory_space=pltpu.MemorySpace.SMEM),   # conv5 bias scalar
        ],
        out_specs=pl.BlockSpec((1, 1, n_out), lambda b: (b, 0, 0)),  # lane-dense row
        compiler_params=pltpu.CompilerParams(
            dimension_semantics=("parallel",),        # grid=(B,) -> both v7x TCs
            vmem_limit_bytes=32 * 1024 * 1024),
    )(p1, w1m, g2, wc2, g3, wc3, g4, wc4, q5, b5)

    # (B, 1, 25) -> (B, 1, 5, 5) -> .squeeze(), same as the PyTorch module.
    return jnp.squeeze(out.reshape(B, 1, oh, ow))


# ---------------- params & pure-JAX reference ----------------

def init_params(key):
    def conv_w(k, kh, kw, cin, cout, scale=0.05):
        return scale * jax.random.normal(k, (kh, kw, cin, cout), jnp.float32)  # HWIO
    ks = jax.random.split(key, 6)
    return {
        "w1": conv_w(ks[0], 4, 4, 3, 32),
        "w2": conv_w(ks[1], 4, 4, 32, 64),
        "w3": conv_w(ks[2], 4, 4, 64, 128),
        "w4": conv_w(ks[3], 4, 4, 128, 256),
        "w5": conv_w(ks[4], 4, 4, 256, 1),
        "b5": 0.01 * jax.random.normal(ks[5], (1,), jnp.float32),  # conv5 bias (norm=None)
    }


def critic_reference(params, x_nchw):
    x = jnp.transpose(x_nchw, (0, 2, 3, 1)).astype(jnp.float32)

    def conv(x, w, stride, pad, b=None):
        y = lax.conv_general_dilated(
            x, w, (stride, stride), [(pad, pad), (pad, pad)],
            dimension_numbers=("NHWC", "HWIO", "NHWC"))
        return y if b is None else y + b

    def inorm_leaky(x):
        mean = jnp.mean(x, axis=(1, 2), keepdims=True)
        var = jnp.mean((x - mean) ** 2, axis=(1, 2), keepdims=True)
        y = (x - mean) * lax.rsqrt(var + IN_EPS)
        return jnp.where(y > 0, y, LEAKY_SLOPE * y)

    x = inorm_leaky(conv(x, params["w1"], 2, 1))
    x = inorm_leaky(conv(x, params["w2"], 2, 1))
    x = inorm_leaky(conv(x, params["w3"], 2, 1))
    x = inorm_leaky(conv(x, params["w4"], 2, 1))
    x = conv(x, params["w5"], 1, 3, params["b5"])
    return jnp.squeeze(jnp.transpose(x, (0, 3, 1, 2)))


if __name__ == "__main__":
    key = jax.random.PRNGKey(0)
    kp, kx = jax.random.split(key)
    params = init_params(kp)

    # Input: (B, C, H, W) = (2, 3, 32, 32) -> output (2, 5, 5) after squeeze
    x = jax.random.normal(kx, (2, 3, 32, 32), jnp.float32)

    out = jax.block_until_ready(critic_forward(params, x))
    ref = jax.block_until_ready(critic_reference(params, x))

    assert out.shape == ref.shape == (2, 5, 5), (out.shape, ref.shape)
    err = float(jnp.max(jnp.abs(out - ref)))
    assert err < 2e-3, err
    print("KERNEL_OK")
</pallas_src>

<mosaic_0001>
module attributes {stable_mosaic.version = 11 : i64} {
  func.func @_critic_kernel(%arg0: i32, %arg1: memref<1x256x48xf32, #tpu.memory_space<vmem>>, %arg2: memref<48x32xf32, #tpu.memory_space<vmem>>, %arg3: memref<16x64x256xf32, #tpu.memory_space<vmem>>, %arg4: memref<32x1024xf32, #tpu.memory_space<vmem>>, %arg5: memref<16x16x64xf32, #tpu.memory_space<vmem>>, %arg6: memref<64x2048xf32, #tpu.memory_space<vmem>>, %arg7: memref<16x4x16xf32, #tpu.memory_space<vmem>>, %arg8: memref<128x4096xf32, #tpu.memory_space<vmem>>, %arg9: memref<4x256x25xf32, #tpu.memory_space<vmem>>, %arg10: memref<1xf32, #tpu.memory_space<smem>>, %arg11: memref<1x1x25xf32, #tpu.memory_space<vmem>>) attributes {dimension_semantics = [#tpu.dimension_semantics<parallel>], iteration_bounds = array<i64: 2>, scalar_prefetch = 0 : i64, scratch_operands = 0 : i64, tpu.core_type = #tpu.core_type<tc>, window_params = [{transform_indices = @transform_0, window_bounds = array<i64: 1, 256, 48>}, {pipeline_mode = #tpu.pipeline_mode<synchronous>, transform_indices = @transform_1, window_bounds = array<i64: 48, 32>}, {pipeline_mode = #tpu.pipeline_mode<synchronous>, transform_indices = @transform_2, window_bounds = array<i64: 16, 64, 256>}, {pipeline_mode = #tpu.pipeline_mode<synchronous>, transform_indices = @transform_3, window_bounds = array<i64: 32, 1024>}, {pipeline_mode = #tpu.pipeline_mode<synchronous>, transform_indices = @transform_4, window_bounds = array<i64: 16, 16, 64>}, {pipeline_mode = #tpu.pipeline_mode<synchronous>, transform_indices = @transform_5, window_bounds = array<i64: 64, 2048>}, {pipeline_mode = #tpu.pipeline_mode<synchronous>, transform_indices = @transform_6, window_bounds = array<i64: 16, 4, 16>}, {pipeline_mode = #tpu.pipeline_mode<synchronous>, transform_indices = @transform_7, window_bounds = array<i64: 128, 4096>}, {pipeline_mode = #tpu.pipeline_mode<synchronous>, transform_indices = @transform_8, window_bounds = array<i64: 4, 256, 25>}, {transform_indices = @transform_9, window_bounds = array<i64: 1>}, {transform_indices = @transform_10, window_bounds = array<i64: 1, 1, 25>}]} {
    %c0 = arith.constant 0 : index
    %c0_0 = arith.constant 0 : index
    %c0_1 = arith.constant 0 : index
    %0 = vector.load %arg1[%c0, %c0_0, %c0_1] : memref<1x256x48xf32, #tpu.memory_space<vmem>>, vector<1x256x48xf32>
    %1 = vector.shape_cast %0 : vector<1x256x48xf32> to vector<256x48xf32>
    %c0_2 = arith.constant 0 : index
    %c0_3 = arith.constant 0 : index
    %2 = vector.load %arg2[%c0_2, %c0_3] : memref<48x32xf32, #tpu.memory_space<vmem>>, vector<48x32xf32>
    %cst = arith.constant dense<0.000000e+00> : vector<256x32xf32>
    %3 = tpu.matmul %1, %2, %cst {dimension_numbers = #tpu.dot_dimension_numbers<[1], [0], [0], [1], [0, 0, 1, 1], [], []>} : vector<256x48xf32>, vector<48x32xf32>, vector<256x32xf32> -> vector<256x32xf32>
    %cst_4 = arith.constant dense<0.000000e+00> : vector<32xf32>
    %4 = vector.multi_reduction <add>, %3, %cst_4 [0] : vector<256x32xf32> to vector<32xf32>
    %5 = vector.shape_cast %4 : vector<32xf32> to vector<1x32xf32>
    %6 = arith.mulf %3, %3 : vector<256x32xf32>
    %cst_5 = arith.constant dense<0.000000e+00> : vector<32xf32>
    %7 = vector.multi_reduction <add>, %6, %cst_5 [0] : vector<256x32xf32> to vector<32xf32>
    %8 = vector.shape_cast %7 : vector<32xf32> to vector<1x32xf32>
    %cst_6 = arith.constant 3.906250e-03 : f32
    %9 = vector.broadcast %cst_6 : f32 to vector<1x32xf32>
    %10 = arith.mulf %5, %9 : vector<1x32xf32>
    %cst_7 = arith.constant 3.906250e-03 : f32
    %11 = vector.broadcast %cst_7 : f32 to vector<1x32xf32>
    %12 = arith.mulf %8, %11 : vector<1x32xf32>
    %13 = arith.mulf %10, %10 : vector<1x32xf32>
    %14 = arith.subf %12, %13 : vector<1x32xf32>
    %cst_8 = arith.constant 0.000000e+00 : f32
    %15 = vector.broadcast %cst_8 : f32 to vector<1x32xf32>
    %16 = arith.maximumf %14, %15 : vector<1x32xf32>
    %17 = vector.broadcast %10 : vector<1x32xf32> to vector<256x32xf32>
    %18 = arith.subf %3, %17 : vector<256x32xf32>
    %cst_9 = arith.constant 9.99999974E-6 : f32
    %19 = vector.broadcast %cst_9 : f32 to vector<1x32xf32>
    %20 = arith.addf %16, %19 : vector<1x32xf32>
    %21 = math.rsqrt %20 : vector<1x32xf32>
    %22 = vector.broadcast %21 : vector<1x32xf32> to vector<256x32xf32>
    %23 = arith.mulf %18, %22 : vector<256x32xf32>
    %cst_10 = arith.constant 0.000000e+00 : f32
    %24 = vector.broadcast %cst_10 : f32 to vector<256x32xf32>
    %25 = arith.cmpf ogt, %23, %24 : vector<256x32xf32>
    %cst_11 = arith.constant 0.00999999977 : f32
    %26 = vector.broadcast %cst_11 : f32 to vector<256x32xf32>
    %27 = arith.mulf %26, %23 : vector<256x32xf32>
    %28 = arith.select %25, %23, %27 : vector<256x32xi1>, vector<256x32xf32>
    %c0_12 = arith.constant 0 : index
    %c0_13 = arith.constant 0 : index
    %29 = vector.load %arg4[%c0_12, %c0_13] : memref<32x1024xf32, #tpu.memory_space<vmem>>, vector<32x1024xf32>
    %cst_14 = arith.constant dense<0.000000e+00> : vector<256x1024xf32>
    %30 = tpu.matmul %28, %29, %cst_14 {dimension_numbers = #tpu.dot_dimension_numbers<[1], [0], [0], [1], [0, 0, 1, 1], [], []>} : vector<256x32xf32>, vector<32x1024xf32>, vector<256x1024xf32> -> vector<256x1024xf32>
    %c0_15 = arith.constant 0 : index
    %c0_16 = arith.constant 0 : index
    %c0_17 = arith.constant 0 : index
    %31 = vector.load %arg3[%c0_15, %c0_16, %c0_17] : memref<16x64x256xf32, #tpu.memory_space<vmem>>, vector<1x64x256xf32>
    %32 = vector.shape_cast %31 : vector<1x64x256xf32> to vector<64x256xf32>
    %33 = vector.extract_strided_slice %30 {offsets = [0, 0], sizes = [256, 64], strides = [1, 1]} : vector<256x1024xf32> to vector<256x64xf32>
    %cst_18 = arith.constant dense<0.000000e+00> : vector<64x64xf32>
    %34 = tpu.matmul %32, %33, %cst_18 {dimension_numbers = #tpu.dot_dimension_numbers<[1], [0], [0], [1], [0, 0, 1, 1], [], []>} : vector<64x256xf32>, vector<256x64xf32>, vector<64x64xf32> -> vector<64x64xf32>
    %c1 = arith.constant 1 : index
    %c0_19 = arith.constant 0 : index
    %c0_20 = arith.constant 0 : index
    %35 = vector.load %arg3[%c1, %c0_19, %c0_20] : memref<16x64x256xf32, #tpu.memory_space<vmem>>, vector<1x64x256xf32>
    %36 = vector.shape_cast %35 : vector<1x64x256xf32> to vector<64x256xf32>
    %37 = vector.extract_strided_slice %30 {offsets = [0, 64], sizes = [256, 64], strides = [1, 1]} : vector<256x1024xf32> to vector<256x64xf32>
    %cst_21 = arith.constant dense<0.000000e+00> : vector<64x64xf32>
    %38 = tpu.matmul %36, %37, %cst_21 {dimension_numbers = #tpu.dot_dimension_numbers<[1], [0], [0], [1], [0, 0, 1, 1], [], []>} : vector<64x256xf32>, vector<256x64xf32>, vector<64x64xf32> -> vector<64x64xf32>
    %c2 = arith.constant 2 : index
    %c0_22 = arith.constant 0 : index
    %c0_23 = arith.constant 0 : index
    %39 = vector.load %arg3[%c2, %c0_22, %c0_23] : memref<16x64x256xf32, #tpu.memory_space<vmem>>, vector<1x64x256xf32>
    %40 = vector.shape_cast %39 : vector<1x64x256xf32> to vector<64x256xf32>
    %41 = vector.extract_strided_slice %30 {offsets = [0, 128], sizes = [256, 64], strides = [1, 1]} : vector<256x1024xf32> to vector<256x64xf32>
    %cst_24 = arith.constant dense<0.000000e+00> : vector<64x64xf32>
    %42 = tpu.matmul %40, %41, %cst_24 {dimension_numbers = #tpu.dot_dimension_numbers<[1], [0], [0], [1], [0, 0, 1, 1], [], []>} : vector<64x256xf32>, vector<256x64xf32>, vector<64x64xf32> -> vector<64x64xf32>
    %c3 = arith.constant 3 : index
    %c0_25 = arith.constant 0 : index
    %c0_26 = arith.constant 0 : index
    %43 = vector.load %arg3[%c3, %c0_25, %c0_26] : memref<16x64x256xf32, #tpu.memory_space<vmem>>, vector<1x64x256xf32>
    %44 = vector.shape_cast %43 : vector<1x64x256xf32> to vector<64x256xf32>
    %45 = vector.extract_strided_slice %30 {offsets = [0, 192], sizes = [256, 64], strides = [1, 1]} : vector<256x1024xf32> to vector<256x64xf32>
    %cst_27 = arith.constant dense<0.000000e+00> : vector<64x64xf32>
    %46 = tpu.matmul %44, %45, %cst_27 {dimension_numbers = #tpu.dot_dimension_numbers<[1], [0], [0], [1], [0, 0, 1, 1], [], []>} : vector<64x256xf32>, vector<256x64xf32>, vector<64x64xf32> -> vector<64x64xf32>
    %c4 = arith.constant 4 : index
    %c0_28 = arith.constant 0 : index
    %c0_29 = arith.constant 0 : index
    %47 = vector.load %arg3[%c4, %c0_28, %c0_29] : memref<16x64x256xf32, #tpu.memory_space<vmem>>, vector<1x64x256xf32>
    %48 = vector.shape_cast %47 : vector<1x64x256xf32> to vector<64x256xf32>
    %49 = vector.extract_strided_slice %30 {offsets = [0, 256], sizes = [256, 64], strides = [1, 1]} : vector<256x1024xf32> to vector<256x64xf32>
    %cst_30 = arith.constant dense<0.000000e+00> : vector<64x64xf32>
    %50 = tpu.matmul %48, %49, %cst_30 {dimension_numbers = #tpu.dot_dimension_numbers<[1], [0], [0], [1], [0, 0, 1, 1], [], []>} : vector<64x256xf32>, vector<256x64xf32>, vector<64x64xf32> -> vector<64x64xf32>
    %c5 = arith.constant 5 : index
    %c0_31 = arith.constant 0 : index
    %c0_32 = arith.constant 0 : index
    %51 = vector.load %arg3[%c5, %c0_31, %c0_32] : memref<16x64x256xf32, #tpu.memory_space<vmem>>, vector<1x64x256xf32>
    %52 = vector.shape_cast %51 : vector<1x64x256xf32> to vector<64x256xf32>
    %53 = vector.extract_strided_slice %30 {offsets = [0, 320], sizes = [256, 64], strides = [1, 1]} : vector<256x1024xf32> to vector<256x64xf32>
    %cst_33 = arith.constant dense<0.000000e+00> : vector<64x64xf32>
    %54 = tpu.matmul %52, %53, %cst_33 {dimension_numbers = #tpu.dot_dimension_numbers<[1], [0], [0], [1], [0, 0, 1, 1], [], []>} : vector<64x256xf32>, vector<256x64xf32>, vector<64x64xf32> -> vector<64x64xf32>
    %c6 = arith.constant 6 : index
    %c0_34 = arith.constant 0 : index
    %c0_35 = arith.constant 0 : index
    %55 = vector.load %arg3[%c6, %c0_34, %c0_35] : memref<16x64x256xf32, #tpu.memory_space<vmem>>, vector<1x64x256xf32>
    %56 = vector.shape_cast %55 : vector<1x64x256xf32> to vector<64x256xf32>
    %57 = vector.extract_strided_slice %30 {offsets = [0, 384], sizes = [256, 64], strides = [1, 1]} : vector<256x1024xf32> to vector<256x64xf32>
    %cst_36 = arith.constant dense<0.000000e+00> : vector<64x64xf32>
    %58 = tpu.matmul %56, %57, %cst_36 {dimension_numbers = #tpu.dot_dimension_numbers<[1], [0], [0], [1], [0, 0, 1, 1], [], []>} : vector<64x256xf32>, vector<256x64xf32>, vector<64x64xf32> -> vector<64x64xf32>
    %c7 = arith.constant 7 : index
    %c0_37 = arith.constant 0 : index
    %c0_38 = arith.constant 0 : index
    %59 = vector.load %arg3[%c7, %c0_37, %c0_38] : memref<16x64x256xf32, #tpu.memory_space<vmem>>, vector<1x64x256xf32>
    %60 = vector.shape_cast %59 : vector<1x64x256xf32> to vector<64x256xf32>
    %61 = vector.extract_strided_slice %30 {offsets = [0, 448], sizes = [256, 64], strides = [1, 1]} : vector<256x1024xf32> to vector<256x64xf32>
    %cst_39 = arith.constant dense<0.000000e+00> : vector<64x64xf32>
    %62 = tpu.matmul %60, %61, %cst_39 {dimension_numbers = #tpu.dot_dimension_numbers<[1], [0], [0], [1], [0, 0, 1, 1], [], []>} : vector<64x256xf32>, vector<256x64xf32>, vector<64x64xf32> -> vector<64x64xf32>
    %c8 = arith.constant 8 : index
    %c0_40 = arith.constant 0 : index
    %c0_41 = arith.constant 0 : index
    %63 = vector.load %arg3[%c8, %c0_40, %c0_41] : memref<16x64x256xf32, #tpu.memory_space<vmem>>, vector<1x64x256xf32>
    %64 = vector.shape_cast %63 : vector<1x64x256xf32> to vector<64x256xf32>
    %65 = vector.extract_strided_slice %30 {offsets = [0, 512], sizes = [256, 64], strides = [1, 1]} : vector<256x1024xf32> to vector<256x64xf32>
    %cst_42 = arith.constant dense<0.000000e+00> : vector<64x64xf32>
    %66 = tpu.matmul %64, %65, %cst_42 {dimension_numbers = #tpu.dot_dimension_numbers<[1], [0], [0], [1], [0, 0, 1, 1], [], []>} : vector<64x256xf32>, vector<256x64xf32>, vector<64x64xf32> -> vector<64x64xf32>
    %c9 = arith.constant 9 : index
    %c0_43 = arith.constant 0 : index
    %c0_44 = arith.constant 0 : index
    %67 = vector.load %arg3[%c9, %c0_43, %c0_44] : memref<16x64x256xf32, #tpu.memory_space<vmem>>, vector<1x64x256xf32>
    %68 = vector.shape_cast %67 : vector<1x64x256xf32> to vector<64x256xf32>
    %69 = vector.extract_strided_slice %30 {offsets = [0, 576], sizes = [256, 64], strides = [1, 1]} : vector<256x1024xf32> to vector<256x64xf32>
    %cst_45 = arith.constant dense<0.000000e+00> : vector<64x64xf32>
    %70 = tpu.matmul %68, %69, %cst_45 {dimension_numbers = #tpu.dot_dimension_numbers<[1], [0], [0], [1], [0, 0, 1, 1], [], []>} : vector<64x256xf32>, vector<256x64xf32>, vector<64x64xf32> -> vector<64x64xf32>
    %c10 = arith.constant 10 : index
    %c0_46 = arith.constant 0 : index
    %c0_47 = arith.constant 0 : index
    %71 = vector.load %arg3[%c10, %c0_46, %c0_47] : memref<16x64x256xf32, #tpu.memory_space<vmem>>, vector<1x64x256xf32>
    %72 = vector.shape_cast %71 : vector<1x64x256xf32> to vector<64x256xf32>
    %73 = vector.extract_strided_slice %30 {offsets = [0, 640], sizes = [256, 64], strides = [1, 1]} : vector<256x1024xf32> to vector<256x64xf32>
    %cst_48 = arith.constant dense<0.000000e+00> : vector<64x64xf32>
    %74 = tpu.matmul %72, %73, %cst_48 {dimension_numbers = #tpu.dot_dimension_numbers<[1], [0], [0], [1], [0, 0, 1, 1], [], []>} : vector<64x256xf32>, vector<256x64xf32>, vector<64x64xf32> -> vector<64x64xf32>
    %c11 = arith.constant 11 : index
    %c0_49 = arith.constant 0 : index
    %c0_50 = arith.constant 0 : index
    %75 = vector.load %arg3[%c11, %c0_49, %c0_50] : memref<16x64x256xf32, #tpu.memory_space<vmem>>, vector<1x64x256xf32>
    %76 = vector.shape_cast %75 : vector<1x64x256xf32> to vector<64x256xf32>
    %77 = vector.extract_strided_slice %30 {offsets = [0, 704], sizes = [256, 64], strides = [1, 1]} : vector<256x1024xf32> to vector<256x64xf32>
    %cst_51 = arith.constant dense<0.000000e+00> : vector<64x64xf32>
    %78 = tpu.matmul %76, %77, %cst_51 {dimension_numbers = #tpu.dot_dimension_numbers<[1], [0], [0], [1], [0, 0, 1, 1], [], []>} : vector<64x256xf32>, vector<256x64xf32>, vector<64x64xf32> -> vector<64x64xf32>
    %c12 = arith.constant 12 : index
    %c0_52 = arith.constant 0 : index
    %c0_53 = arith.constant 0 : index
    %79 = vector.load %arg3[%c12, %c0_52, %c0_53] : memref<16x64x256xf32, #tpu.memory_space<vmem>>, vector<1x64x256xf32>
    %80 = vector.shape_cast %79 : vector<1x64x256xf32> to vector<64x256xf32>
    %81 = vector.extract_strided_slice %30 {offsets = [0, 768], sizes = [256, 64], strides = [1, 1]} : vector<256x1024xf32> to vector<256x64xf32>
    %cst_54 = arith.constant dense<0.000000e+00> : vector<64x64xf32>
    %82 = tpu.matmul %80, %81, %cst_54 {dimension_numbers = #tpu.dot_dimension_numbers<[1], [0], [0], [1], [0, 0, 1, 1], [], []>} : vector<64x256xf32>, vector<256x64xf32>, vector<64x64xf32> -> vector<64x64xf32>
    %c13 = arith.constant 13 : index
    %c0_55 = arith.constant 0 : index
    %c0_56 = arith.constant 0 : index
    %83 = vector.load %arg3[%c13, %c0_55, %c0_56] : memref<16x64x256xf32, #tpu.memory_space<vmem>>, vector<1x64x256xf32>
    %84 = vector.shape_cast %83 : vector<1x64x256xf32> to vector<64x256xf32>
    %85 = vector.extract_strided_slice %30 {offsets = [0, 832], sizes = [256, 64], strides = [1, 1]} : vector<256x1024xf32> to vector<256x64xf32>
    %cst_57 = arith.constant dense<0.000000e+00> : vector<64x64xf32>
    %86 = tpu.matmul %84, %85, %cst_57 {dimension_numbers = #tpu.dot_dimension_numbers<[1], [0], [0], [1], [0, 0, 1, 1], [], []>} : vector<64x256xf32>, vector<256x64xf32>, vector<64x64xf32> -> vector<64x64xf32>
    %c14 = arith.constant 14 : index
    %c0_58 = arith.constant 0 : index
    %c0_59 = arith.constant 0 : index
    %87 = vector.load %arg3[%c14, %c0_58, %c0_59] : memref<16x64x256xf32, #tpu.memory_space<vmem>>, vector<1x64x256xf32>
    %88 = vector.shape_cast %87 : vector<1x64x256xf32> to vector<64x256xf32>
    %89 = vector.extract_strided_slice %30 {offsets = [0, 896], sizes = [256, 64], strides = [1, 1]} : vector<256x1024xf32> to vector<256x64xf32>
    %cst_60 = arith.constant dense<0.000000e+00> : vector<64x64xf32>
    %90 = tpu.matmul %88, %89, %cst_60 {dimension_numbers = #tpu.dot_dimension_numbers<[1], [0], [0], [1], [0, 0, 1, 1], [], []>} : vector<64x256xf32>, vector<256x64xf32>, vector<64x64xf32> -> vector<64x64xf32>
    %c15 = arith.constant 15 : index
    %c0_61 = arith.constant 0 : index
    %c0_62 = arith.constant 0 : index
    %91 = vector.load %arg3[%c15, %c0_61, %c0_62] : memref<16x64x256xf32, #tpu.memory_space<vmem>>, vector<1x64x256xf32>
    %92 = vector.shape_cast %91 : vector<1x64x256xf32> to vector<64x256xf32>
    %93 = vector.extract_strided_slice %30 {offsets = [0, 960], sizes = [256, 64], strides = [1, 1]} : vector<256x1024xf32> to vector<256x64xf32>
    %cst_63 = arith.constant dense<0.000000e+00> : vector<64x64xf32>
    %94 = tpu.matmul %92, %93, %cst_63 {dimension_numbers = #tpu.dot_dimension_numbers<[1], [0], [0], [1], [0, 0, 1, 1], [], []>} : vector<64x256xf32>, vector<256x64xf32>, vector<64x64xf32> -> vector<64x64xf32>
    %95 = arith.addf %34, %38 : vector<64x64xf32>
    %96 = arith.addf %42, %46 : vector<64x64xf32>
    %97 = arith.addf %50, %54 : vector<64x64xf32>
    %98 = arith.addf %58, %62 : vector<64x64xf32>
    %99 = arith.addf %66, %70 : vector<64x64xf32>
    %100 = arith.addf %74, %78 : vector<64x64xf32>
    %101 = arith.addf %82, %86 : vector<64x64xf32>
    %102 = arith.addf %90, %94 : vector<64x64xf32>
    %103 = arith.addf %95, %96 : vector<64x64xf32>
    %104 = arith.addf %97, %98 : vector<64x64xf32>
    %105 = arith.addf %99, %100 : vector<64x64xf32>
    %106 = arith.addf %101, %102 : vector<64x64xf32>
    %107 = arith.addf %103, %104 : vector<64x64xf32>
    %108 = arith.addf %105, %106 : vector<64x64xf32>
    %109 = arith.addf %107, %108 : vector<64x64xf32>
    %cst_64 = arith.constant dense<0.000000e+00> : vector<64xf32>
    %110 = vector.multi_reduction <add>, %109, %cst_64 [0] : vector<64x64xf32> to vector<64xf32>
    %111 = vector.shape_cast %110 : vector<64xf32> to vector<1x64xf32>
    %112 = arith.mulf %109, %109 : vector<64x64xf32>
    %cst_65 = arith.constant dense<0.000000e+00> : vector<64xf32>
    %113 = vector.multi_reduction <add>, %112, %cst_65 [0] : vector<64x64xf32> to vector<64xf32>
    %114 = vector.shape_cast %113 : vector<64xf32> to vector<1x64xf32>
    %cst_66 = arith.constant 1.562500e-02 : f32
    %115 = vector.broadcast %cst_66 : f32 to vector<1x64xf32>
    %116 = arith.mulf %111, %115 : vector<1x64xf32>
    %cst_67 = arith.constant 1.562500e-02 : f32
    %117 = vector.broadcast %cst_67 : f32 to vector<1x64xf32>
    %118 = arith.mulf %114, %117 : vector<1x64xf32>
    %119 = arith.mulf %116, %116 : vector<1x64xf32>
    %120 = arith.subf %118, %119 : vector<1x64xf32>
    %cst_68 = arith.constant 0.000000e+00 : f32
    %121 = vector.broadcast %cst_68 : f32 to vector<1x64xf32>
    %122 = arith.maximumf %120, %121 : vector<1x64xf32>
    %123 = vector.broadcast %116 : vector<1x64xf32> to vector<64x64xf32>
    %124 = arith.subf %109, %123 : vector<64x64xf32>
    %cst_69 = arith.constant 9.99999974E-6 : f32
    %125 = vector.broadcast %cst_69 : f32 to vector<1x64xf32>
    %126 = arith.addf %122, %125 : vector<1x64xf32>
    %127 = math.rsqrt %126 : vector<1x64xf32>
    %128 = vector.broadcast %127 : vector<1x64xf32> to vector<64x64xf32>
    %129 = arith.mulf %124, %128 : vector<64x64xf32>
    %cst_70 = arith.constant 0.000000e+00 : f32
    %130 = vector.broadcast %cst_70 : f32 to vector<64x64xf32>
    %131 = arith.cmpf ogt, %129, %130 : vector<64x64xf32>
    %cst_71 = arith.constant 0.00999999977 : f32
    %132 = vector.broadcast %cst_71 : f32 to vector<64x64xf32>
    %133 = arith.mulf %132, %129 : vector<64x64xf32>
    %134 = arith.select %131, %129, %133 : vector<64x64xi1>, vector<64x64xf32>
    %c0_72 = arith.constant 0 : index
    %c0_73 = arith.constant 0 : index
    %135 = vector.load %arg6[%c0_72, %c0_73] : memref<64x2048xf32, #tpu.memory_space<vmem>>, vector<64x2048xf32>
    %cst_74 = arith.constant dense<0.000000e+00> : vector<64x2048xf32>
    %136 = tpu.matmul %134, %135, %cst_74 {dimension_numbers = #tpu.dot_dimension_numbers<[1], [0], [0], [1], [0, 0, 1, 1], [], []>} : vector<64x64xf32>, vector<64x2048xf32>, vector<64x2048xf32> -> vector<64x2048xf32>
    %c0_75 = arith.constant 0 : index
    %c0_76 = arith.constant 0 : index
    %c0_77 = arith.constant 0 : index
    %137 = vector.load %arg5[%c0_75, %c0_76, %c0_77] : memref<16x16x64xf32, #tpu.memory_space<vmem>>, vector<1x16x64xf32>
    %138 = vector.shape_cast %137 : vector<1x16x64xf32> to vector<16x64xf32>
    %139 = vector.extract_strided_slice %136 {offsets = [0, 0], sizes = [64, 128], strides = [1, 1]} : vector<64x2048xf32> to vector<64x128xf32>
    %cst_78 = arith.constant dense<0.000000e+00> : vector<16x128xf32>
    %140 = tpu.matmul %138, %139, %cst_78 {dimension_numbers = #tpu.dot_dimension_numbers<[1], [0], [0], [1], [0, 0, 1, 1], [], []>} : vector<16x64xf32>, vector<64x128xf32>, vector<16x128xf32> -> vector<16x128xf32>
    %c1_79 = arith.constant 1 : index
    %c0_80 = arith.constant 0 : index
    %c0_81 = arith.constant 0 : index
    %141 = vector.load %arg5[%c1_79, %c0_80, %c0_81] : memref<16x16x64xf32, #tpu.memory_space<vmem>>, vector<1x16x64xf32>
    %142 = vector.shape_cast %141 : vector<1x16x64xf32> to vector<16x64xf32>
    %143 = vector.extract_strided_slice %136 {offsets = [0, 128], sizes = [64, 128], strides = [1, 1]} : vector<64x2048xf32> to vector<64x128xf32>
    %cst_82 = arith.constant dense<0.000000e+00> : vector<16x128xf32>
    %144 = tpu.matmul %142, %143, %cst_82 {dimension_numbers = #tpu.dot_dimension_numbers<[1], [0], [0], [1], [0, 0, 1, 1], [], []>} : vector<16x64xf32>, vector<64x128xf32>, vector<16x128xf32> -> vector<16x128xf32>
    %c2_83 = arith.constant 2 : index
    %c0_84 = arith.constant 0 : index
    %c0_85 = arith.constant 0 : index
    %145 = vector.load %arg5[%c2_83, %c0_84, %c0_85] : memref<16x16x64xf32, #tpu.memory_space<vmem>>, vector<1x16x64xf32>
    %146 = vector.shape_cast %145 : vector<1x16x64xf32> to vector<16x64xf32>
    %147 = vector.extract_strided_slice %136 {offsets = [0, 256], sizes = [64, 128], strides = [1, 1]} : vector<64x2048xf32> to vector<64x128xf32>
    %cst_86 = arith.constant dense<0.000000e+00> : vector<16x128xf32>
    %148 = tpu.matmul %146, %147, %cst_86 {dimension_numbers = #tpu.dot_dimension_numbers<[1], [0], [0], [1], [0, 0, 1, 1], [], []>} : vector<16x64xf32>, vector<64x128xf32>, vector<16x128xf32> -> vector<16x128xf32>
    %c3_87 = arith.constant 3 : index
    %c0_88 = arith.constant 0 : index
    %c0_89 = arith.constant 0 : index
    %149 = vector.load %arg5[%c3_87, %c0_88, %c0_89] : memref<16x16x64xf32, #tpu.memory_space<vmem>>, vector<1x16x64xf32>
    %150 = vector.shape_cast %149 : vector<1x16x64xf32> to vector<16x64xf32>
    %151 = vector.extract_strided_slice %136 {offsets = [0, 384], sizes = [64, 128], strides = [1, 1]} : vector<64x2048xf32> to vector<64x128xf32>
    %cst_90 = arith.constant dense<0.000000e+00> : vector<16x128xf32>
    %152 = tpu.matmul %150, %151, %cst_90 {dimension_numbers = #tpu.dot_dimension_numbers<[1], [0], [0], [1], [0, 0, 1, 1], [], []>} : vector<16x64xf32>, vector<64x128xf32>, vector<16x128xf32> -> vector<16x128xf32>
    %c4_91 = arith.constant 4 : index
    %c0_92 = arith.constant 0 : index
    %c0_93 = arith.constant 0 : index
    %153 = vector.load %arg5[%c4_91, %c0_92, %c0_93] : memref<16x16x64xf32, #tpu.memory_space<vmem>>, vector<1x16x64xf32>
    %154 = vector.shape_cast %153 : vector<1x16x64xf32> to vector<16x64xf32>
    %155 = vector.extract_strided_slice %136 {offsets = [0, 512], sizes = [64, 128], strides = [1, 1]} : vector<64x2048xf32> to vector<64x128xf32>
    %cst_94 = arith.constant dense<0.000000e+00> : vector<16x128xf32>
    %156 = tpu.matmul %154, %155, %cst_94 {dimension_numbers = #tpu.dot_dimension_numbers<[1], [0], [0], [1], [0, 0, 1, 1], [], []>} : vector<16x64xf32>, vector<64x128xf32>, vector<16x128xf32> -> vector<16x128xf32>
    %c5_95 = arith.constant 5 : index
    %c0_96 = arith.constant 0 : index
    %c0_97 = arith.constant 0 : index
    %157 = vector.load %arg5[%c5_95, %c0_96, %c0_97] : memref<16x16x64xf32, #tpu.memory_space<vmem>>, vector<1x16x64xf32>
    %158 = vector.shape_cast %157 : vector<1x16x64xf32> to vector<16x64xf32>
    %159 = vector.extract_strided_slice %136 {offsets = [0, 640], sizes = [64, 128], strides = [1, 1]} : vector<64x2048xf32> to vector<64x128xf32>
    %cst_98 = arith.constant dense<0.000000e+00> : vector<16x128xf32>
    %160 = tpu.matmul %158, %159, %cst_98 {dimension_numbers = #tpu.dot_dimension_numbers<[1], [0], [0], [1], [0, 0, 1, 1], [], []>} : vector<16x64xf32>, vector<64x128xf32>, vector<16x128xf32> -> vector<16x128xf32>
    %c6_99 = arith.constant 6 : index
    %c0_100 = arith.constant 0 : index
    %c0_101 = arith.constant 0 : index
    %161 = vector.load %arg5[%c6_99, %c0_100, %c0_101] : memref<16x16x64xf32, #tpu.memory_space<vmem>>, vector<1x16x64xf32>
    %162 = vector.shape_cast %161 : vector<1x16x64xf32> to vector<16x64xf32>
    %163 = vector.extract_strided_slice %136 {offsets = [0, 768], sizes = [64, 128], strides = [1, 1]} : vector<64x2048xf32> to vector<64x128xf32>
    %cst_102 = arith.constant dense<0.000000e+00> : vector<16x128xf32>
    %164 = tpu.matmul %162, %163, %cst_102 {dimension_numbers = #tpu.dot_dimension_numbers<[1], [0], [0], [1], [0, 0, 1, 1], [], []>} : vector<16x64xf32>, vector<64x128xf32>, vector<16x128xf32> -> vector<16x128xf32>
    %c7_103 = arith.constant 7 : index
    %c0_104 = arith.constant 0 : index
    %c0_105 = arith.constant 0 : index
    %165 = vector.load %arg5[%c7_103, %c0_104, %c0_105] : memref<16x16x64xf32, #tpu.memory_space<vmem>>, vector<1x16x64xf32>
    %166 = vector.shape_cast %165 : vector<1x16x64xf32> to vector<16x64xf32>
    %167 = vector.extract_strided_slice %136 {offsets = [0, 896], sizes = [64, 128], strides = [1, 1]} : vector<64x2048xf32> to vector<64x128xf32>
    %cst_106 = arith.constant dense<0.000000e+00> : vector<16x128xf32>
    %168 = tpu.matmul %166, %167, %cst_106 {dimension_numbers = #tpu.dot_dimension_numbers<[1], [0], [0], [1], [0, 0, 1, 1], [], []>} : vector<16x64xf32>, vector<64x128xf32>, vector<16x128xf32> -> vector<16x128xf32>
    %c8_107 = arith.constant 8 : index
    %c0_108 = arith.constant 0 : index
    %c0_109 = arith.constant 0 : index
    %169 = vector.load %arg5[%c8_107, %c0_108, %c0_109] : memref<16x16x64xf32, #tpu.memory_space<vmem>>, vector<1x16x64xf32>
    %170 = vector.shape_cast %169 : vector<1x16x64xf32> to vector<16x64xf32>
    %171 = vector.extract_strided_slice %136 {offsets = [0, 1024], sizes = [64, 128], strides = [1, 1]} : vector<64x2048xf32> to vector<64x128xf32>
    %cst_110 = arith.constant dense<0.000000e+00> : vector<16x128xf32>
    %172 = tpu.matmul %170, %171, %cst_110 {dimension_numbers = #tpu.dot_dimension_numbers<[1], [0], [0], [1], [0, 0, 1, 1], [], []>} : vector<16x64xf32>, vector<64x128xf32>, vector<16x128xf32> -> vector<16x128xf32>
    %c9_111 = arith.constant 9 : index
    %c0_112 = arith.constant 0 : index
    %c0_113 = arith.constant 0 : index
    %173 = vector.load %arg5[%c9_111, %c0_112, %c0_113] : memref<16x16x64xf32, #tpu.memory_space<vmem>>, vector<1x16x64xf32>
    %174 = vector.shape_cast %173 : vector<1x16x64xf32> to vector<16x64xf32>
    %175 = vector.extract_strided_slice %136 {offsets = [0, 1152], sizes = [64, 128], strides = [1, 1]} : vector<64x2048xf32> to vector<64x128xf32>
    %cst_114 = arith.constant dense<0.000000e+00> : vector<16x128xf32>
    %176 = tpu.matmul %174, %175, %cst_114 {dimension_numbers = #tpu.dot_dimension_numbers<[1], [0], [0], [1], [0, 0, 1, 1], [], []>} : vector<16x64xf32>, vector<64x128xf32>, vector<16x128xf32> -> vector<16x128xf32>
    %c10_115 = arith.constant 10 : index
    %c0_116 = arith.constant 0 : index
    %c0_117 = arith.constant 0 : index
    %177 = vector.load %arg5[%c10_115, %c0_116, %c0_117] : memref<16x16x64xf32, #tpu.memory_space<vmem>>, vector<1x16x64xf32>
    %178 = vector.shape_cast %177 : vector<1x16x64xf32> to vector<16x64xf32>
    %179 = vector.extract_strided_slice %136 {offsets = [0, 1280], sizes = [64, 128], strides = [1, 1]} : vector<64x2048xf32> to vector<64x128xf32>
    %cst_118 = arith.constant dense<0.000000e+00> : vector<16x128xf32>
    %180 = tpu.matmul %178, %179, %cst_118 {dimension_numbers = #tpu.dot_dimension_numbers<[1], [0], [0], [1], [0, 0, 1, 1], [], []>} : vector<16x64xf32>, vector<64x128xf32>, vector<16x128xf32> -> vector<16x128xf32>
    %c11_119 = arith.constant 11 : index
    %c0_120 = arith.constant 0 : index
    %c0_121 = arith.constant 0 : index
    %181 = vector.load %arg5[%c11_119, %c0_120, %c0_121] : memref<16x16x64xf32, #tpu.memory_space<vmem>>, vector<1x16x64xf32>
    %182 = vector.shape_cast %181 : vector<1x16x64xf32> to vector<16x64xf32>
    %183 = vector.extract_strided_slice %136 {offsets = [0, 1408], sizes = [64, 128], strides = [1, 1]} : vector<64x2048xf32> to vector<64x128xf32>
    %cst_122 = arith.constant dense<0.000000e+00> : vector<16x128xf32>
    %184 = tpu.matmul %182, %183, %cst_122 {dimension_numbers = #tpu.dot_dimension_numbers<[1], [0], [0], [1], [0, 0, 1, 1], [], []>} : vector<16x64xf32>, vector<64x128xf32>, vector<16x128xf32> -> vector<16x128xf32>
    %c12_123 = arith.constant 12 : index
    %c0_124 = arith.constant 0 : index
    %c0_125 = arith.constant 0 : index
    %185 = vector.load %arg5[%c12_123, %c0_124, %c0_125] : memref<16x16x64xf32, #tpu.memory_space<vmem>>, vector<1x16x64xf32>
    %186 = vector.shape_cast %185 : vector<1x16x64xf32> to vector<16x64xf32>
    %187 = vector.extract_strided_slice %136 {offsets = [0, 1536], sizes = [64, 128], strides = [1, 1]} : vector<64x2048xf32> to vector<64x128xf32>
    %cst_126 = arith.constant dense<0.000000e+00> : vector<16x128xf32>
    %188 = tpu.matmul %186, %187, %cst_126 {dimension_numbers = #tpu.dot_dimension_numbers<[1], [0], [0], [1], [0, 0, 1, 1], [], []>} : vector<16x64xf32>, vector<64x128xf32>, vector<16x128xf32> -> vector<16x128xf32>
    %c13_127 = arith.constant 13 : index
    %c0_128 = arith.constant 0 : index
    %c0_129 = arith.constant 0 : index
    %189 = vector.load %arg5[%c13_127, %c0_128, %c0_129] : memref<16x16x64xf32, #tpu.memory_space<vmem>>, vector<1x16x64xf32>
    %190 = vector.shape_cast %189 : vector<1x16x64xf32> to vector<16x64xf32>
    %191 = vector.extract_strided_slice %136 {offsets = [0, 1664], sizes = [64, 128], strides = [1, 1]} : vector<64x2048xf32> to vector<64x128xf32>
    %cst_130 = arith.constant dense<0.000000e+00> : vector<16x128xf32>
    %192 = tpu.matmul %190, %191, %cst_130 {dimension_numbers = #tpu.dot_dimension_numbers<[1], [0], [0], [1], [0, 0, 1, 1], [], []>} : vector<16x64xf32>, vector<64x128xf32>, vector<16x128xf32> -> vector<16x128xf32>
    %c14_131 = arith.constant 14 : index
    %c0_132 = arith.constant 0 : index
    %c0_133 = arith.constant 0 : index
    %193 = vector.load %arg5[%c14_131, %c0_132, %c0_133] : memref<16x16x64xf32, #tpu.memory_space<vmem>>, vector<1x16x64xf32>
    %194 = vector.shape_cast %193 : vector<1x16x64xf32> to vector<16x64xf32>
    %195 = vector.extract_strided_slice %136 {offsets = [0, 1792], sizes = [64, 128], strides = [1, 1]} : vector<64x2048xf32> to vector<64x128xf32>
    %cst_134 = arith.constant dense<0.000000e+00> : vector<16x128xf32>
    %196 = tpu.matmul %194, %195, %cst_134 {dimension_numbers = #tpu.dot_dimension_numbers<[1], [0], [0], [1], [0, 0, 1, 1], [], []>} : vector<16x64xf32>, vector<64x128xf32>, vector<16x128xf32> -> vector<16x128xf32>
    %c15_135 = arith.constant 15 : index
    %c0_136 = arith.constant 0 : index
    %c0_137 = arith.constant 0 : index
    %197 = vector.load %arg5[%c15_135, %c0_136, %c0_137] : memref<16x16x64xf32, #tpu.memory_space<vmem>>, vector<1x16x64xf32>
    %198 = vector.shape_cast %197 : vector<1x16x64xf32> to vector<16x64xf32>
    %199 = vector.extract_strided_slice %136 {offsets = [0, 1920], sizes = [64, 128], strides = [1, 1]} : vector<64x2048xf32> to vector<64x128xf32>
    %cst_138 = arith.constant dense<0.000000e+00> : vector<16x128xf32>
    %200 = tpu.matmul %198, %199, %cst_138 {dimension_numbers = #tpu.dot_dimension_numbers<[1], [0], [0], [1], [0, 0, 1, 1], [], []>} : vector<16x64xf32>, vector<64x128xf32>, vector<16x128xf32> -> vector<16x128xf32>
    %201 = arith.addf %140, %144 : vector<16x128xf32>
    %202 = arith.addf %148, %152 : vector<16x128xf32>
    %203 = arith.addf %156, %160 : vector<16x128xf32>
    %204 = arith.addf %164, %168 : vector<16x128xf32>
    %205 = arith.addf %172, %176 : vector<16x128xf32>
    %206 = arith.addf %180, %184 : vector<16x128xf32>
    %207 = arith.addf %188, %192 : vector<16x128xf32>
    %208 = arith.addf %196, %200 : vector<16x128xf32>
    %209 = arith.addf %201, %202 : vector<16x128xf32>
    %210 = arith.addf %203, %204 : vector<16x128xf32>
    %211 = arith.addf %205, %206 : vector<16x128xf32>
    %212 = arith.addf %207, %208 : vector<16x128xf32>
    %213 = arith.addf %209, %210 : vector<16x128xf32>
    %214 = arith.addf %211, %212 : vector<16x128xf32>
    %215 = arith.addf %213, %214 : vector<16x128xf32>
    %cst_139 = arith.constant dense<0.000000e+00> : vector<128xf32>
    %216 = vector.multi_reduction <add>, %215, %cst_139 [0] : vector<16x128xf32> to vector<128xf32>
    %217 = vector.shape_cast %216 : vector<128xf32> to vector<1x128xf32>
    %218 = arith.mulf %215, %215 : vector<16x128xf32>
    %cst_140 = arith.constant dense<0.000000e+00> : vector<128xf32>
    %219 = vector.multi_reduction <add>, %218, %cst_140 [0] : vector<16x128xf32> to vector<128xf32>
    %220 = vector.shape_cast %219 : vector<128xf32> to vector<1x128xf32>
    %cst_141 = arith.constant 6.250000e-02 : f32
    %221 = vector.broadcast %cst_141 : f32 to vector<1x128xf32>
    %222 = arith.mulf %217, %221 : vector<1x128xf32>
    %cst_142 = arith.constant 6.250000e-02 : f32
    %223 = vector.broadcast %cst_142 : f32 to vector<1x128xf32>
    %224 = arith.mulf %220, %223 : vector<1x128xf32>
    %225 = arith.mulf %222, %222 : vector<1x128xf32>
    %226 = arith.subf %224, %225 : vector<1x128xf32>
    %cst_143 = arith.constant 0.000000e+00 : f32
    %227 = vector.broadcast %cst_143 : f32 to vector<1x128xf32>
    %228 = arith.maximumf %226, %227 : vector<1x128xf32>
    %229 = vector.broadcast %222 : vector<1x128xf32> to vector<16x128xf32>
    %230 = arith.subf %215, %229 : vector<16x128xf32>
    %cst_144 = arith.constant 9.99999974E-6 : f32
    %231 = vector.broadcast %cst_144 : f32 to vector<1x128xf32>
    %232 = arith.addf %228, %231 : vector<1x128xf32>
    %233 = math.rsqrt %232 : vector<1x128xf32>
    %234 = vector.broadcast %233 : vector<1x128xf32> to vector<16x128xf32>
    %235 = arith.mulf %230, %234 : vector<16x128xf32>
    %cst_145 = arith.constant 0.000000e+00 : f32
    %236 = vector.broadcast %cst_145 : f32 to vector<16x128xf32>
    %237 = arith.cmpf ogt, %235, %236 : vector<16x128xf32>
    %cst_146 = arith.constant 0.00999999977 : f32
    %238 = vector.broadcast %cst_146 : f32 to vector<16x128xf32>
    %239 = arith.mulf %238, %235 : vector<16x128xf32>
    %240 = arith.select %237, %235, %239 : vector<16x128xi1>, vector<16x128xf32>
    %c0_147 = arith.constant 0 : index
    %c0_148 = arith.constant 0 : index
    %241 = vector.load %arg8[%c0_147, %c0_148] : memref<128x4096xf32, #tpu.memory_space<vmem>>, vector<128x4096xf32>
    %cst_149 = arith.constant dense<0.000000e+00> : vector<16x4096xf32>
    %242 = tpu.matmul %240, %241, %cst_149 {dimension_numbers = #tpu.dot_dimension_numbers<[1], [0], [0], [1], [0, 0, 1, 1], [], []>} : vector<16x128xf32>, vector<128x4096xf32>, vector<16x4096xf32> -> vector<16x4096xf32>
    %c0_150 = arith.constant 0 : index
    %c0_151 = arith.constant 0 : index
    %c0_152 = arith.constant 0 : index
    %243 = vector.load %arg7[%c0_150, %c0_151, %c0_152] : memref<16x4x16xf32, #tpu.memory_space<vmem>>, vector<1x4x16xf32>
    %244 = vector.shape_cast %243 : vector<1x4x16xf32> to vector<4x16xf32>
    %245 = vector.extract_strided_slice %242 {offsets = [0, 0], sizes = [16, 256], strides = [1, 1]} : vector<16x4096xf32> to vector<16x256xf32>
    %cst_153 = arith.constant dense<0.000000e+00> : vector<4x256xf32>
    %246 = tpu.matmul %244, %245, %cst_153 {dimension_numbers = #tpu.dot_dimension_numbers<[1], [0], [0], [1], [0, 0, 1, 1], [], []>} : vector<4x16xf32>, vector<16x256xf32>, vector<4x256xf32> -> vector<4x256xf32>
    %c1_154 = arith.constant 1 : index
    %c0_155 = arith.constant 0 : index
    %c0_156 = arith.constant 0 : index
    %247 = vector.load %arg7[%c1_154, %c0_155, %c0_156] : memref<16x4x16xf32, #tpu.memory_space<vmem>>, vector<1x4x16xf32>
    %248 = vector.shape_cast %247 : vector<1x4x16xf32> to vector<4x16xf32>
    %249 = vector.extract_strided_slice %242 {offsets = [0, 256], sizes = [16, 256], strides = [1, 1]} : vector<16x4096xf32> to vector<16x256xf32>
    %cst_157 = arith.constant dense<0.000000e+00> : vector<4x256xf32>
    %250 = tpu.matmul %248, %249, %cst_157 {dimension_numbers = #tpu.dot_dimension_numbers<[1], [0], [0], [1], [0, 0, 1, 1], [], []>} : vector<4x16xf32>, vector<16x256xf32>, vector<4x256xf32> -> vector<4x256xf32>
    %c2_158 = arith.constant 2 : index
    %c0_159 = arith.constant 0 : index
    %c0_160 = arith.constant 0 : index
    %251 = vector.load %arg7[%c2_158, %c0_159, %c0_160] : memref<16x4x16xf32, #tpu.memory_space<vmem>>, vector<1x4x16xf32>
    %252 = vector.shape_cast %251 : vector<1x4x16xf32> to vector<4x16xf32>
    %253 = vector.extract_strided_slice %242 {offsets = [0, 512], sizes = [16, 256], strides = [1, 1]} : vector<16x4096xf32> to vector<16x256xf32>
    %cst_161 = arith.constant dense<0.000000e+00> : vector<4x256xf32>
    %254 = tpu.matmul %252, %253, %cst_161 {dimension_numbers = #tpu.dot_dimension_numbers<[1], [0], [0], [1], [0, 0, 1, 1], [], []>} : vector<4x16xf32>, vector<16x256xf32>, vector<4x256xf32> -> vector<4x256xf32>
    %c3_162 = arith.constant 3 : index
    %c0_163 = arith.constant 0 : index
    %c0_164 = arith.constant 0 : index
    %255 = vector.load %arg7[%c3_162, %c0_163, %c0_164] : memref<16x4x16xf32, #tpu.memory_space<vmem>>, vector<1x4x16xf32>
    %256 = vector.shape_cast %255 : vector<1x4x16xf32> to vector<4x16xf32>
    %257 = vector.extract_strided_slice %242 {offsets = [0, 768], sizes = [16, 256], strides = [1, 1]} : vector<16x4096xf32> to vector<16x256xf32>
    %cst_165 = arith.constant dense<0.000000e+00> : vector<4x256xf32>
    %258 = tpu.matmul %256, %257, %cst_165 {dimension_numbers = #tpu.dot_dimension_numbers<[1], [0], [0], [1], [0, 0, 1, 1], [], []>} : vector<4x16xf32>, vector<16x256xf32>, vector<4x256xf32> -> vector<4x256xf32>
    %c4_166 = arith.constant 4 : index
    %c0_167 = arith.constant 0 : index
    %c0_168 = arith.constant 0 : index
    %259 = vector.load %arg7[%c4_166, %c0_167, %c0_168] : memref<16x4x16xf32, #tpu.memory_space<vmem>>, vector<1x4x16xf32>
    %260 = vector.shape_cast %259 : vector<1x4x16xf32> to vector<4x16xf32>
    %261 = vector.extract_strided_slice %242 {offsets = [0, 1024], sizes = [16, 256], strides = [1, 1]} : vector<16x4096xf32> to vector<16x256xf32>
    %cst_169 = arith.constant dense<0.000000e+00> : vector<4x256xf32>
    %262 = tpu.matmul %260, %261, %cst_169 {dimension_numbers = #tpu.dot_dimension_numbers<[1], [0], [0], [1], [0, 0, 1, 1], [], []>} : vector<4x16xf32>, vector<16x256xf32>, vector<4x256xf32> -> vector<4x256xf32>
    %c5_170 = arith.constant 5 : index
    %c0_171 = arith.constant 0 : index
    %c0_172 = arith.constant 0 : index
    %263 = vector.load %arg7[%c5_170, %c0_171, %c0_172] : memref<16x4x16xf32, #tpu.memory_space<vmem>>, vector<1x4x16xf32>
    %264 = vector.shape_cast %263 : vector<1x4x16xf32> to vector<4x16xf32>
    %265 = vector.extract_strided_slice %242 {offsets = [0, 1280], sizes = [16, 256], strides = [1, 1]} : vector<16x4096xf32> to vector<16x256xf32>
    %cst_173 = arith.constant dense<0.000000e+00> : vector<4x256xf32>
    %266 = tpu.matmul %264, %265, %cst_173 {dimension_numbers = #tpu.dot_dimension_numbers<[1], [0], [0], [1], [0, 0, 1, 1], [], []>} : vector<4x16xf32>, vector<16x256xf32>, vector<4x256xf32> -> vector<4x256xf32>
    %c6_174 = arith.constant 6 : index
    %c0_175 = arith.constant 0 : index
    %c0_176 = arith.constant 0 : index
    %267 = vector.load %arg7[%c6_174, %c0_175, %c0_176] : memref<16x4x16xf32, #tpu.memory_space<vmem>>, vector<1x4x16xf32>
    %268 = vector.shape_cast %267 : vector<1x4x16xf32> to vector<4x16xf32>
    %269 = vector.extract_strided_slice %242 {offsets = [0, 1536], sizes = [16, 256], strides = [1, 1]} : vector<16x4096xf32> to vector<16x256xf32>
    %cst_177 = arith.constant dense<0.000000e+00> : vector<4x256xf32>
    %270 = tpu.matmul %268, %269, %cst_177 {dimension_numbers = #tpu.dot_dimension_numbers<[1], [0], [0], [1], [0, 0, 1, 1], [], []>} : vector<4x16xf32>, vector<16x256xf32>, vector<4x256xf32> -> vector<4x256xf32>
    %c7_178 = arith.constant 7 : index
    %c0_179 = arith.constant 0 : index
    %c0_180 = arith.constant 0 : index
    %271 = vector.load %arg7[%c7_178, %c0_179, %c0_180] : memref<16x4x16xf32, #tpu.memory_space<vmem>>, vector<1x4x16xf32>
    %272 = vector.shape_cast %271 : vector<1x4x16xf32> to vector<4x16xf32>
    %273 = vector.extract_strided_slice %242 {offsets = [0, 1792], sizes = [16, 256], strides = [1, 1]} : vector<16x4096xf32> to vector<16x256xf32>
    %cst_181 = arith.constant dense<0.000000e+00> : vector<4x256xf32>
    %274 = tpu.matmul %272, %273, %cst_181 {dimension_numbers = #tpu.dot_dimension_numbers<[1], [0], [0], [1], [0, 0, 1, 1], [], []>} : vector<4x16xf32>, vector<16x256xf32>, vector<4x256xf32> -> vector<4x256xf32>
    %c8_182 = arith.constant 8 : index
    %c0_183 = arith.constant 0 : index
    %c0_184 = arith.constant 0 : index
    %275 = vector.load %arg7[%c8_182, %c0_183, %c0_184] : memref<16x4x16xf32, #tpu.memory_space<vmem>>, vector<1x4x16xf32>
    %276 = vector.shape_cast %275 : vector<1x4x16xf32> to vector<4x16xf32>
    %277 = vector.extract_strided_slice %242 {offsets = [0, 2048], sizes = [16, 256], strides = [1, 1]} : vector<16x4096xf32> to vector<16x256xf32>
    %cst_185 = arith.constant dense<0.000000e+00> : vector<4x256xf32>
    %278 = tpu.matmul %276, %277, %cst_185 {dimension_numbers = #tpu.dot_dimension_numbers<[1], [0], [0], [1], [0, 0, 1, 1], [], []>} : vector<4x16xf32>, vector<16x256xf32>, vector<4x256xf32> -> vector<4x256xf32>
    %c9_186 = arith.constant 9 : index
    %c0_187 = arith.constant 0 : index
    %c0_188 = arith.constant 0 : index
    %279 = vector.load %arg7[%c9_186, %c0_187, %c0_188] : memref<16x4x16xf32, #tpu.memory_space<vmem>>, vector<1x4x16xf32>
    %280 = vector.shape_cast %279 : vector<1x4x16xf32> to vector<4x16xf32>
    %281 = vector.extract_strided_slice %242 {offsets = [0, 2304], sizes = [16, 256], strides = [1, 1]} : vector<16x4096xf32> to vector<16x256xf32>
    %cst_189 = arith.constant dense<0.000000e+00> : vector<4x256xf32>
    %282 = tpu.matmul %280, %281, %cst_189 {dimension_numbers = #tpu.dot_dimension_numbers<[1], [0], [0], [1], [0, 0, 1, 1], [], []>} : vector<4x16xf32>, vector<16x256xf32>, vector<4x256xf32> -> vector<4x256xf32>
    %c10_190 = arith.constant 10 : index
    %c0_191 = arith.constant 0 : index
    %c0_192 = arith.constant 0 : index
    %283 = vector.load %arg7[%c10_190, %c0_191, %c0_192] : memref<16x4x16xf32, #tpu.memory_space<vmem>>, vector<1x4x16xf32>
    %284 = vector.shape_cast %283 : vector<1x4x16xf32> to vector<4x16xf32>
    %285 = vector.extract_strided_slice %242 {offsets = [0, 2560], sizes = [16, 256], strides = [1, 1]} : vector<16x4096xf32> to vector<16x256xf32>
    %cst_193 = arith.constant dense<0.000000e+00> : vector<4x256xf32>
    %286 = tpu.matmul %284, %285, %cst_193 {dimension_numbers = #tpu.dot_dimension_numbers<[1], [0], [0], [1], [0, 0, 1, 1], [], []>} : vector<4x16xf32>, vector<16x256xf32>, vector<4x256xf32> -> vector<4x256xf32>
    %c11_194 = arith.constant 11 : index
    %c0_195 = arith.constant 0 : index
    %c0_196 = arith.constant 0 : index
    %287 = vector.load %arg7[%c11_194, %c0_195, %c0_196] : memref<16x4x16xf32, #tpu.memory_space<vmem>>, vector<1x4x16xf32>
    %288 = vector.shape_cast %287 : vector<1x4x16xf32> to vector<4x16xf32>
    %289 = vector.extract_strided_slice %242 {offsets = [0, 2816], sizes = [16, 256], strides = [1, 1]} : vector<16x4096xf32> to vector<16x256xf32>
    %cst_197 = arith.constant dense<0.000000e+00> : vector<4x256xf32>
    %290 = tpu.matmul %288, %289, %cst_197 {dimension_numbers = #tpu.dot_dimension_numbers<[1], [0], [0], [1], [0, 0, 1, 1], [], []>} : vector<4x16xf32>, vector<16x256xf32>, vector<4x256xf32> -> vector<4x256xf32>
    %c12_198 = arith.constant 12 : index
    %c0_199 = arith.constant 0 : index
    %c0_200 = arith.constant 0 : index
    %291 = vector.load %arg7[%c12_198, %c0_199, %c0_200] : memref<16x4x16xf32, #tpu.memory_space<vmem>>, vector<1x4x16xf32>
    %292 = vector.shape_cast %291 : vector<1x4x16xf32> to vector<4x16xf32>
    %293 = vector.extract_strided_slice %242 {offsets = [0, 3072], sizes = [16, 256], strides = [1, 1]} : vector<16x4096xf32> to vector<16x256xf32>
    %cst_201 = arith.constant dense<0.000000e+00> : vector<4x256xf32>
    %294 = tpu.matmul %292, %293, %cst_201 {dimension_numbers = #tpu.dot_dimension_numbers<[1], [0], [0], [1], [0, 0, 1, 1], [], []>} : vector<4x16xf32>, vector<16x256xf32>, vector<4x256xf32> -> vector<4x256xf32>
    %c13_202 = arith.constant 13 : index
    %c0_203 = arith.constant 0 : index
    %c0_204 = arith.constant 0 : index
    %295 = vector.load %arg7[%c13_202, %c0_203, %c0_204] : memref<16x4x16xf32, #tpu.memory_space<vmem>>, vector<1x4x16xf32>
    %296 = vector.shape_cast %295 : vector<1x4x16xf32> to vector<4x16xf32>
    %297 = vector.extract_strided_slice %242 {offsets = [0, 3328], sizes = [16, 256], strides = [1, 1]} : vector<16x4096xf32> to vector<16x256xf32>
    %cst_205 = arith.constant dense<0.000000e+00> : vector<4x256xf32>
    %298 = tpu.matmul %296, %297, %cst_205 {dimension_numbers = #tpu.dot_dimension_numbers<[1], [0], [0], [1], [0, 0, 1, 1], [], []>} : vector<4x16xf32>, vector<16x256xf32>, vector<4x256xf32> -> vector<4x256xf32>
    %c14_206 = arith.constant 14 : index
    %c0_207 = arith.constant 0 : index
    %c0_208 = arith.constant 0 : index
    %299 = vector.load %arg7[%c14_206, %c0_207, %c0_208] : memref<16x4x16xf32, #tpu.memory_space<vmem>>, vector<1x4x16xf32>
    %300 = vector.shape_cast %299 : vector<1x4x16xf32> to vector<4x16xf32>
    %301 = vector.extract_strided_slice %242 {offsets = [0, 3584], sizes = [16, 256], strides = [1, 1]} : vector<16x4096xf32> to vector<16x256xf32>
    %cst_209 = arith.constant dense<0.000000e+00> : vector<4x256xf32>
    %302 = tpu.matmul %300, %301, %cst_209 {dimension_numbers = #tpu.dot_dimension_numbers<[1], [0], [0], [1], [0, 0, 1, 1], [], []>} : vector<4x16xf32>, vector<16x256xf32>, vector<4x256xf32> -> vector<4x256xf32>
    %c15_210 = arith.constant 15 : index
    %c0_211 = arith.constant 0 : index
    %c0_212 = arith.constant 0 : index
    %303 = vector.load %arg7[%c15_210, %c0_211, %c0_212] : memref<16x4x16xf32, #tpu.memory_space<vmem>>, vector<1x4x16xf32>
    %304 = vector.shape_cast %303 : vector<1x4x16xf32> to vector<4x16xf32>
    %305 = vector.extract_strided_slice %242 {offsets = [0, 3840], sizes = [16, 256], strides = [1, 1]} : vector<16x4096xf32> to vector<16x256xf32>
    %cst_213 = arith.constant dense<0.000000e+00> : vector<4x256xf32>
    %306 = tpu.matmul %304, %305, %cst_213 {dimension_numbers = #tpu.dot_dimension_numbers<[1], [0], [0], [1], [0, 0, 1, 1], [], []>} : vector<4x16xf32>, vector<16x256xf32>, vector<4x256xf32> -> vector<4x256xf32>
    %307 = arith.addf %246, %250 : vector<4x256xf32>
    %308 = arith.addf %254, %258 : vector<4x256xf32>
    %309 = arith.addf %262, %266 : vector<4x256xf32>
    %310 = arith.addf %270, %274 : vector<4x256xf32>
    %311 = arith.addf %278, %282 : vector<4x256xf32>
    %312 = arith.addf %286, %290 : vector<4x256xf32>
    %313 = arith.addf %294, %298 : vector<4x256xf32>
    %314 = arith.addf %302, %306 : vector<4x256xf32>
    %315 = arith.addf %307, %308 : vector<4x256xf32>
    %316 = arith.addf %309, %310 : vector<4x256xf32>
    %317 = arith.addf %311, %312 : vector<4x256xf32>
    %318 = arith.addf %313, %314 : vector<4x256xf32>
    %319 = arith.addf %315, %316 : vector<4x256xf32>
    %320 = arith.addf %317, %318 : vector<4x256xf32>
    %321 = arith.addf %319, %320 : vector<4x256xf32>
    %cst_214 = arith.constant dense<0.000000e+00> : vector<256xf32>
    %322 = vector.multi_reduction <add>, %321, %cst_214 [0] : vector<4x256xf32> to vector<256xf32>
    %323 = vector.shape_cast %322 : vector<256xf32> to vector<1x256xf32>
    %324 = arith.mulf %321, %321 : vector<4x256xf32>
    %cst_215 = arith.constant dense<0.000000e+00> : vector<256xf32>
    %325 = vector.multi_reduction <add>, %324, %cst_215 [0] : vector<4x256xf32> to vector<256xf32>
    %326 = vector.shape_cast %325 : vector<256xf32> to vector<1x256xf32>
    %cst_216 = arith.constant 2.500000e-01 : f32
    %327 = vector.broadcast %cst_216 : f32 to vector<1x256xf32>
    %328 = arith.mulf %323, %327 : vector<1x256xf32>
    %cst_217 = arith.constant 2.500000e-01 : f32
    %329 = vector.broadcast %cst_217 : f32 to vector<1x256xf32>
    %330 = arith.mulf %326, %329 : vector<1x256xf32>
    %331 = arith.mulf %328, %328 : vector<1x256xf32>
    %332 = arith.subf %330, %331 : vector<1x256xf32>
    %cst_218 = arith.constant 0.000000e+00 : f32
    %333 = vector.broadcast %cst_218 : f32 to vector<1x256xf32>
    %334 = arith.maximumf %332, %333 : vector<1x256xf32>
    %335 = vector.broadcast %328 : vector<1x256xf32> to vector<4x256xf32>
    %336 = arith.subf %321, %335 : vector<4x256xf32>
    %cst_219 = arith.constant 9.99999974E-6 : f32
    %337 = vector.broadcast %cst_219 : f32 to vector<1x256xf32>
    %338 = arith.addf %334, %337 : vector<1x256xf32>
    %339 = math.rsqrt %338 : vector<1x256xf32>
    %340 = vector.broadcast %339 : vector<1x256xf32> to vector<4x256xf32>
    %341 = arith.mulf %336, %340 : vector<4x256xf32>
    %cst_220 = arith.constant 0.000000e+00 : f32
    %342 = vector.broadcast %cst_220 : f32 to vector<4x256xf32>
    %343 = arith.cmpf ogt, %341, %342 : vector<4x256xf32>
    %cst_221 = arith.constant 0.00999999977 : f32
    %344 = vector.broadcast %cst_221 : f32 to vector<4x256xf32>
    %345 = arith.mulf %344, %341 : vector<4x256xf32>
    %346 = arith.select %343, %341, %345 : vector<4x256xi1>, vector<4x256xf32>
    %347 = vector.extract_strided_slice %346 {offsets = [0, 0], sizes = [1, 256], strides = [1, 1]} : vector<4x256xf32> to vector<1x256xf32>
    %c0_222 = arith.constant 0 : index
    %c0_223 = arith.constant 0 : index
    %c0_224 = arith.constant 0 : index
    %348 = vector.load %arg9[%c0_222, %c0_223, %c0_224] : memref<4x256x25xf32, #tpu.memory_space<vmem>>, vector<1x256x25xf32>
    %349 = vector.shape_cast %348 : vector<1x256x25xf32> to vector<256x25xf32>
    %cst_225 = arith.constant dense<0.000000e+00> : vector<1x25xf32>
    %350 = tpu.matmul %347, %349, %cst_225 {dimension_numbers = #tpu.dot_dimension_numbers<[1], [0], [0], [1], [0, 0, 1, 1], [], []>} : vector<1x256xf32>, vector<256x25xf32>, vector<1x25xf32> -> vector<1x25xf32>
    %351 = vector.extract_strided_slice %346 {offsets = [1, 0], sizes = [1, 256], strides = [1, 1]} : vector<4x256xf32> to vector<1x256xf32>
    %c1_226 = arith.constant 1 : index
    %c0_227 = arith.constant 0 : index
    %c0_228 = arith.constant 0 : index
    %352 = vector.load %arg9[%c1_226, %c0_227, %c0_228] : memref<4x256x25xf32, #tpu.memory_space<vmem>>, vector<1x256x25xf32>
    %353 = vector.shape_cast %352 : vector<1x256x25xf32> to vector<256x25xf32>
    %cst_229 = arith.constant dense<0.000000e+00> : vector<1x25xf32>
    %354 = tpu.matmul %351, %353, %cst_229 {dimension_numbers = #tpu.dot_dimension_numbers<[1], [0], [0], [1], [0, 0, 1, 1], [], []>} : vector<1x256xf32>, vector<256x25xf32>, vector<1x25xf32> -> vector<1x25xf32>
    %355 = vector.extract_strided_slice %346 {offsets = [2, 0], sizes = [1, 256], strides = [1, 1]} : vector<4x256xf32> to vector<1x256xf32>
    %c2_230 = arith.constant 2 : index
    %c0_231 = arith.constant 0 : index
    %c0_232 = arith.constant 0 : index
    %356 = vector.load %arg9[%c2_230, %c0_231, %c0_232] : memref<4x256x25xf32, #tpu.memory_space<vmem>>, vector<1x256x25xf32>
    %357 = vector.shape_cast %356 : vector<1x256x25xf32> to vector<256x25xf32>
    %cst_233 = arith.constant dense<0.000000e+00> : vector<1x25xf32>
    %358 = tpu.matmul %355, %357, %cst_233 {dimension_numbers = #tpu.dot_dimension_numbers<[1], [0], [0], [1], [0, 0, 1, 1], [], []>} : vector<1x256xf32>, vector<256x25xf32>, vector<1x25xf32> -> vector<1x25xf32>
    %359 = vector.extract_strided_slice %346 {offsets = [3, 0], sizes = [1, 256], strides = [1, 1]} : vector<4x256xf32> to vector<1x256xf32>
    %c3_234 = arith.constant 3 : index
    %c0_235 = arith.constant 0 : index
    %c0_236 = arith.constant 0 : index
    %360 = vector.load %arg9[%c3_234, %c0_235, %c0_236] : memref<4x256x25xf32, #tpu.memory_space<vmem>>, vector<1x256x25xf32>
    %361 = vector.shape_cast %360 : vector<1x256x25xf32> to vector<256x25xf32>
    %cst_237 = arith.constant dense<0.000000e+00> : vector<1x25xf32>
    %362 = tpu.matmul %359, %361, %cst_237 {dimension_numbers = #tpu.dot_dimension_numbers<[1], [0], [0], [1], [0, 0, 1, 1], [], []>} : vector<1x256xf32>, vector<256x25xf32>, vector<1x25xf32> -> vector<1x25xf32>
    %363 = arith.addf %350, %354 : vector<1x25xf32>
    %364 = arith.addf %358, %362 : vector<1x25xf32>
    %365 = arith.addf %363, %364 : vector<1x25xf32>
    %c0_238 = arith.constant 0 : index
    %366 = memref.load %arg10[%c0_238] : memref<1xf32, #tpu.memory_space<smem>>
    %367 = vector.broadcast %366 : f32 to vector<1x25xf32>
    %368 = arith.addf %365, %367 : vector<1x25xf32>
    %c0_239 = arith.constant 0 : index
    %c0_240 = arith.constant 0 : index
    %c0_241 = arith.constant 0 : index
    %369 = vector.load %arg11[%c0_239, %c0_240, %c0_241] : memref<1x1x25xf32, #tpu.memory_space<vmem>>, vector<1x1x25xf32>
    %370 = vector.shape_cast %369 : vector<1x1x25xf32> to vector<1x25xf32>
    %371 = vector.shape_cast %368 : vector<1x25xf32> to vector<1x1x25xf32>
    tpu.vector_store %arg11[%c0_239, %c0_240, %c0_241], %371 {strides = array<i32>} : memref<1x1x25xf32, #tpu.memory_space<vmem>>, vector<1x1x25xf32>,
    return
  }
  func.func @transform_0(%arg0: i32) -> (i32, i32, i32) {
    %c0_i32 = arith.constant 0 : i32
    %c0_i32_0 = arith.constant 0 : i32
    %c0_i32_1 = arith.constant 0 : i32
    return %arg0, %c0_i32, %c0_i32_0 : i32, i32, i32
  }
  func.func @transform_1(%arg0: i32) -> (i32, i32) {
    %c0_i32 = arith.constant 0 : i32
    %c0_i32_0 = arith.constant 0 : i32
    %c0_i32_1 = arith.constant 0 : i32
    return %c0_i32, %c0_i32_0 : i32, i32
  }
  func.func @transform_2(%arg0: i32) -> (i32, i32, i32) {
    %c0_i32 = arith.constant 0 : i32
    %c0_i32_0 = arith.constant 0 : i32
    %c0_i32_1 = arith.constant 0 : i32
    %c0_i32_2 = arith.constant 0 : i32
    return %c0_i32, %c0_i32_0, %c0_i32_1 : i32, i32, i32
  }
  func.func @transform_3(%arg0: i32) -> (i32, i32) {
    %c0_i32 = arith.constant 0 : i32
    %c0_i32_0 = arith.constant 0 : i32
    %c0_i32_1 = arith.constant 0 : i32
    return %c0_i32, %c0_i32_0 : i32, i32
  }
  func.func @transform_4(%arg0: i32) -> (i32, i32, i32) {
    %c0_i32 = arith.constant 0 : i32
    %c0_i32_0 = arith.constant 0 : i32
    %c0_i32_1 = arith.constant 0 : i32
    %c0_i32_2 = arith.constant 0 : i32
    return %c0_i32, %c0_i32_0, %c0_i32_1 : i32, i32, i32
  }
  func.func @transform_5(%arg0: i32) -> (i32, i32) {
    %c0_i32 = arith.constant 0 : i32
    %c0_i32_0 = arith.constant 0 : i32
    %c0_i32_1 = arith.constant 0 : i32
    return %c0_i32, %c0_i32_0 : i32, i32
  }
  func.func @transform_6(%arg0: i32) -> (i32, i32, i32) {
    %c0_i32 = arith.constant 0 : i32
    %c0_i32_0 = arith.constant 0 : i32
    %c0_i32_1 = arith.constant 0 : i32
    %c0_i32_2 = arith.constant 0 : i32
    return %c0_i32, %c0_i32_0, %c0_i32_1 : i32, i32, i32
  }
  func.func @transform_7(%arg0: i32) -> (i32, i32) {
    %c0_i32 = arith.constant 0 : i32
    %c0_i32_0 = arith.constant 0 : i32
    %c0_i32_1 = arith.constant 0 : i32
    return %c0_i32, %c0_i32_0 : i32, i32
  }
  func.func @transform_8(%arg0: i32) -> (i32, i32, i32) {
    %c0_i32 = arith.constant 0 : i32
    %c0_i32_0 = arith.constant 0 : i32
    %c0_i32_1 = arith.constant 0 : i32
    %c0_i32_2 = arith.constant 0 : i32
    return %c0_i32, %c0_i32_0, %c0_i32_1 : i32, i32, i32
  }
  func.func @transform_9(%arg0: i32) -> i32 {
    %c0_i32 = arith.constant 0 : i32
    %c0_i32_0 = arith.constant 0 : i32
    return %c0_i32 : i32
  }
  func.func @transform_10(%arg0: i32) -> (i32, i32, i32) {
    %c0_i32 = arith.constant 0 : i32
    %c0_i32_0 = arith.constant 0 : i32
    %c0_i32_1 = arith.constant 0 : i32
    return %arg0, %c0_i32, %c0_i32_0 : i32, i32, i32
  }
}

</mosaic_0001>

<bundles_post_ra>
// kernel: critic_forward.1
= control target key start
LH: loop header
LB: loop body
LE: loop exit
PB: predicated region body
PF: predicated region fallthrough
CT: control target
= control target key end

     0   :  { %s15986_s15 = smov 0   ;;  %s23367_s0 = inlined_call_operand.vmem [shape: f32[2,256,48], index: 0, kind: input, shape index: {}]   ;;  %s23368_s1 = inlined_call_operand.vmem [shape: f32[48,32], index: 1, kind: input, shape index: {}]   ;;  %s23369_s2 = inlined_call_operand.vmem [shape: f32[16,64,256], index: 2, kind: input, shape index: {}]   ;;  %s23370_s3 = inlined_call_operand.vmem [shape: f32[32,1024], index: 3, kind: input, shape index: {}]   ;;  %s23371_s4 = inlined_call_operand.vmem [shape: f32[16,16,64], index: 4, kind: input, shape index: {}]   ;;  %s23372_s5 = inlined_call_operand.vmem [shape: f32[64,2048], index: 5, kind: input, shape index: {}]   ;;  %s23373_s6 = inlined_call_operand.vmem [shape: f32[16,4,16], index: 6, kind: input, shape index: {}]   ;;  %s23374_s7 = inlined_call_operand.vmem [shape: f32[128,4096], index: 7, kind: input, shape index: {}]   ;;  %s23375_s8 = inlined_call_operand.vmem [shape: f32[4,256,25], index: 8, kind: input, shape index: {}]   ;;  %s23376_s9 = inlined_call_operand.<no memory space> [shape: f32[1], index: 9, kind: input, shape index: {}]   ;;  %s23377_s10 = inlined_call_operand.vmem [shape: f32[2,1,25], index: 10, kind: output, shape index: {}]  }
   0x1   :  { %15 = sst [smem:[#allocation2]] %s23376_s9 }
   0x2 LB: > { %s11293_s16 = sadd.s32 4294967295, %s15924_s15   ;;  %p11297_p0 = scmp.ge.s32.totalorder %s15924_s15, 1  ;;  %s15924_s15 = sphi %s15986_s15, %s21_s15  }
   0x3   : > { %p313_p1 = scmp.lt.s32.totalorder %s15924_s15, 3 }
   0x5   : > { %p314_p2 = pnand %p11297_p0, %p313_p1 }
   0x7   : > { %317 = sbr.rel (%p314_p2) target bundleno = 3248 (0xcb0), region = 60 }
   0xe   : > { %v389_v0 = vld [vmem:[%s23368_s1] sm:$0xff]  ;;  %v390_v1 = vld [vmem:[%s23368_s1 + $0x8] sm:$0xff]  ;;  %v391_v2 = vld [vmem:[%s23368_s1 + $0x10] sm:$0xff]  ;;  %p349_p3 = scmp.lt.s32.totalorder %s11293_s16, 1  ;;  %vm395_vm0 = vcmask 392192   ;;  %v23378_v48 = vmov 0.0  }
   0xf   : > { %v13554_v3 = vpack.c.bf16 %v390_v1, %v389_v0  ;;  %v392_v4 = vld [vmem:[%s23368_s1 + $0x18] sm:$0xff]  ;;  %v393_v6 = vld [vmem:[%s23368_s1 + $0x20] sm:$0xff]  ;;  %v394_v7 = vld [vmem:[%s23368_s1 + $0x28] sm:$0xff]  ;;  %1247 = vmatprep.mubr.f32.mxu1 %v23378_v48  ;;  %vm717_vm1 = vcmask 261120   ;;  %s15927_s20 = smov 64   ;;  %s11241_s21 = sld [smem:[#allocation2]] }
  0x10   : > { %v13558_v5 = vpack.c.bf16 %v392_v4, %v391_v2  ;;  %s24369_s16 = smov (!%p349_p3, %s11293_s16), 1  ;;  %v13562_v8 = vpack.c.bf16 %v394_v7, %v393_v6  ;;  %v1056_v41 = vld [vmem:[%s23370_s3 + $0x8] sm:$0xff]  ;;  %v1058_v43 = vld [vmem:[%s23370_s3 + $0x18] sm:$0xff]  ;;  %v1055_v46 = vld [vmem:[%s23370_s3] sm:$0xff] }
  0x11   : > { %13555 = vmatprep.subr.bf16.mxu0 %v13554_v3  ;;  %s11955_s28 = sshll.u32 %s24369_s16, 8  ;;  %v1064_v42 = vld [vmem:[%s23370_s3 + $0x48] sm:$0xff]  ;;  %v1066_v45 = vld [vmem:[%s23370_s3 + $0x58] sm:$0xff]  ;;  %v1063_v47 = vld [vmem:[%s23370_s3 + $0x40] sm:$0xff]  ;;  %s356_s24 = scalar_lea.vmem %s23377_s10, %s24369_s16 }
  0x12   : > { %13557 = vmatpush3.bf16.msra.mxu0 %v13554_v3  ;;  %s16018_s11 = scalar_lea.vmem %s23367_s0, %s11955_s28  ;;  %v13566_v44 = vpack.c.bf16 %v1064_v42, %v1056_v41  ;;  %v13574_v49 = vpack.c.bf16 %v1066_v45, %v1058_v43  ;;  %v13568_v50 = vpack.c.bf16 %v1063_v47, %v1055_v46  ;;  %v1057_v51 = vld [vmem:[%s23370_s3 + $0x10] sm:$0xff]  ;;  %v1072_v53 = vld [vmem:[%s23370_s3 + $0x88] sm:$0xff]  ;;  %v1074_v56 = vld [vmem:[%s23370_s3 + $0x98] sm:$0xff] }
  0x13   : > { %13559 = vmatprep.subr.bf16.mxu0 %v13558_v5  ;;  %v357_v9 = vld [vmem:[%s16018_s11] sm:$0xff]  ;;  %v358_v10 = vld [vmem:[%s16018_s11 + $0x8] sm:$0xff]  ;;  %v359_v11 = vld [vmem:[%s16018_s11 + $0x10] sm:$0xff] }
  0x14   : > { %13202 = vmatprep.mubr.msk.f32.mxu0 %vm395_vm0, %v357_v9  ;;  %v360_v12 = vld [vmem:[%s16018_s11 + $0x18] sm:$0xff]  ;;  %v361_v13 = vld [vmem:[%s16018_s11 + $0x20] sm:$0xff]  ;;  %v362_v14 = vld [vmem:[%s16018_s11 + $0x28] sm:$0xff]  ;;  %13567 = vmatprep.subr.bf16.mxu1 %v13566_v44 }
  0x15   : > { %v363_v15 = vld [vmem:[%s16018_s11 + $0x30] sm:$0xff]  ;;  %v364_v16 = vld [vmem:[%s16018_s11 + $0x38] sm:$0xff]  ;;  %v365_v17 = vld [vmem:[%s16018_s11 + $0x40] sm:$0xff]  ;;  %13569 = vmatpush1.bf16.msra.mxu1 %v13568_v50 }
  0x16   : > { %13561 = vmatpush3.bf16.msra.mxu0 %v13558_v5  ;;  %v366_v18 = vld [vmem:[%s16018_s11 + $0x48] sm:$0xff]  ;;  %v367_v19 = vld [vmem:[%s16018_s11 + $0x50] sm:$0xff]  ;;  %v368_v20 = vld [vmem:[%s16018_s11 + $0x58] sm:$0xff] }
  0x17   : > { %13563 = vmatprep.subr.bf16.mxu0 %v13562_v8  ;;  %v369_v21 = vld [vmem:[%s16018_s11 + $0x60] sm:$0xff]  ;;  %v370_v22 = vld [vmem:[%s16018_s11 + $0x68] sm:$0xff]  ;;  %v371_v23 = vld [vmem:[%s16018_s11 + $0x70] sm:$0xff] }
  0x18   : > { %v372_v24 = vld [vmem:[%s16018_s11 + $0x78] sm:$0xff]  ;;  %v373_v25 = vld [vmem:[%s16018_s11 + $0x80] sm:$0xff]  ;;  %v374_v26 = vld [vmem:[%s16018_s11 + $0x88] sm:$0xff] }
  0x19   : > { %v375_v27 = vld [vmem:[%s16018_s11 + $0x90] sm:$0xff]  ;;  %v376_v28 = vld [vmem:[%s16018_s11 + $0x98] sm:$0xff]  ;;  %v377_v29 = vld [vmem:[%s16018_s11 + $0xa0] sm:$0xff] }
  0x1a   : > { %13565 = vmatpush3.bf16.msra.mxu0 %v13562_v8  ;;  %v378_v30 = vld [vmem:[%s16018_s11 + $0xa8] sm:$0xff]  ;;  %v379_v31 = vld [vmem:[%s16018_s11 + $0xb0] sm:$0xff]  ;;  %v380_v32 = vld [vmem:[%s16018_s11 + $0xb8] sm:$0xff] }
  0x1b   : > { %v381_v33 = vld [vmem:[%s16018_s11 + $0xc0] sm:$0xff]  ;;  %v382_v34 = vld [vmem:[%s16018_s11 + $0xc8] sm:$0xff]  ;;  %v383_v35 = vld [vmem:[%s16018_s11 + $0xd0] sm:$0xff]  ;;  %13575 = vmatprep.subr.bf16.mxu0 %v13574_v49 }
  0x1c   : > { %v384_v36 = vld [vmem:[%s16018_s11 + $0xd8] sm:$0xff]  ;;  %v385_v37 = vld [vmem:[%s16018_s11 + $0xe0] sm:$0xff]  ;;  %v386_v38 = vld [vmem:[%s16018_s11 + $0xe8] sm:$0xff] }
  0x1d   : > { %13203 = vmatmul.mubr.msk.f32.vlgmr.msra.gmra.mrb[0].mxu0 %vm395_vm0, %v358_v10  ;;  %v387_v39 = vld [vmem:[%s16018_s11 + $0xf0] sm:$0xff]  ;;  %v388_v40 = vld [vmem:[%s16018_s11 + $0xf8] sm:$0xff]  ;;  %v1080_v55 = vld [vmem:[%s23370_s3 + $0xc8] sm:$0xff] }
  0x1e   : > { %13205 = vmatprep.mubr.msk.f32.mxu0 %vm395_vm0, %v359_v11  ;;  %v1065_v52 = vld [vmem:[%s23370_s3 + $0x50] sm:$0xff]  ;;  %v1082_v57 = vld [vmem:[%s23370_s3 + $0xd8] sm:$0xff]  ;;  %v13570_v58 = vpack.c.bf16 %v1080_v55, %v1072_v53  ;;  %v1071_v60 = vld [vmem:[%s23370_s3 + $0x80] sm:$0xff] }
  0x1f   : > { %v13576_v54 = vpack.c.bf16 %v1065_v52, %v1057_v51  ;;  %v13578_v59 = vpack.c.bf16 %v1082_v57, %v1074_v56  ;;  %v1079_v61 = vld [vmem:[%s23370_s3 + $0xc0] sm:$0xff]  ;;  %v1073_v62 = vld [vmem:[%s23370_s3 + $0x90] sm:$0xff] }
  0x20   : > { %v13572_v63 = vpack.c.bf16 %v1079_v61, %v1071_v60  ;;  %v1081_v0 = vld [vmem:[%s23370_s3 + $0xd0] sm:$0xff]  ;;  %13571 = vmatprep.subr.bf16.mxu1 %v13570_v58 }
  0x21   : > { %13206 = vmatmul.mubr.msk.f32.gmra.mrb[2].mxu0 %vm395_vm0, %v360_v12  ;;  %v13580_v1 = vpack.c.bf16 %v1081_v0, %v1073_v62 }
  0x22   : > { %13208 = vmatprep.mubr.msk.f32.mxu0 %vm395_vm0, %v361_v13  ;;  %13577 = vmatpush1.bf16.msra.mxu0 %v13576_v54 }
  0x23   : > { %13579 = vmatprep.subr.bf16.mxu0 %v13578_v59  ;;  %13573 = vmatpush1.bf16.msra.mxu1 %v13572_v63 }
  0x25   : > { %13209 = vmatmul.mubr.msk.f32.gmra.mrb[4].mxu0 %vm395_vm0, %v362_v14 }
  0x26   : > { %13211 = vmatprep.mubr.msk.f32.mxu0 %vm395_vm0, %v363_v15  ;;  %13581 = vmatpush1.bf16.msra.mxu0 %v13580_v1 }
  0x29   : > { %13212 = vmatmul.mubr.msk.f32.gmra.mrb[6].mxu0 %vm395_vm0, %v364_v16 }
  0x2a   : > { %13214 = vmatprep.mubr.msk.f32.mxu0 %vm395_vm0, %v365_v17 }
  0x2d   : > { %13215 = vmatmul.mubr.msk.f32.gmra.mrb[8].mxu0 %vm395_vm0, %v366_v18 }
  0x2e   : > { %13217 = vmatprep.mubr.msk.f32.mxu0 %vm395_vm0, %v367_v19 }
  0x31   : > { %13218 = vmatmul.mubr.msk.f32.gmra.mrb[10].mxu0 %vm395_vm0, %v368_v20 }
  0x32   : > { %13220 = vmatprep.mubr.msk.f32.mxu0 %vm395_vm0, %v369_v21 }
  0x35   : > { %13221 = vmatmul.mubr.msk.f32.gmra.mrb[12].mxu0 %vm395_vm0, %v370_v22 }
  0x36   : > { %13223 = vmatprep.mubr.msk.f32.mxu0 %vm395_vm0, %v371_v23 }
  0x39   : > { %13224 = vmatmul.mubr.msk.f32.gmra.mrb[14].mxu0 %vm395_vm0, %v372_v24 }
  0x3a   : > { %13226 = vmatprep.mubr.msk.f32.mxu0 %vm395_vm0, %v373_v25 }
  0x3d   : > { %13227 = vmatmul.mubr.msk.f32.gmra.mrb[16].mxu0 %vm395_vm0, %v374_v26 }
  0x3e   : > { %13229 = vmatprep.mubr.msk.f32.mxu0 %vm395_vm0, %v375_v27 }
  0x41   : > { %13230 = vmatmul.mubr.msk.f32.gmra.mrb[18].mxu0 %vm395_vm0, %v376_v28 }
  0x42   : > { %13232 = vmatprep.mubr.msk.f32.mxu0 %vm395_vm0, %v377_v29 }
  0x45   : > { %13233 = vmatmul.mubr.msk.f32.gmra.mrb[20].mxu0 %vm395_vm0, %v378_v30 }
  0x46   : > { %13235 = vmatprep.mubr.msk.f32.mxu0 %vm395_vm0, %v379_v31 }
  0x49   : > { %13236 = vmatmul.mubr.msk.f32.gmra.mrb[22].mxu0 %vm395_vm0, %v380_v32 }
  0x4a   : > { %13238 = vmatprep.mubr.msk.f32.mxu0 %vm395_vm0, %v381_v33 }
  0x4d   : > { %13239 = vmatmul.mubr.msk.f32.gmra.mrb[24].mxu0 %vm395_vm0, %v382_v34 }
  0x4e   : > { %13241 = vmatprep.mubr.msk.f32.mxu0 %vm395_vm0, %v383_v35 }
  0x51   : > { %13242 = vmatmul.mubr.msk.f32.gmra.mrb[26].mxu0 %vm395_vm0, %v384_v36 }
  0x52   : > { %13244 = vmatprep.mubr.msk.f32.mxu0 %vm395_vm0, %v385_v37 }
  0x55   : > { %13245 = vmatmul.mubr.msk.f32.gmra.mrb[28].mxu0 %vm395_vm0, %v386_v38 }
  0x56   : > { %13247 = vmatprep.mubr.msk.f32.mxu0 %vm395_vm0, %v387_v39 }
  0x59   : > { %13248 = vmatmul.mubr.msk.f32.gmra.mrb[30].mxu0 %vm395_vm0, %v388_v40 }
  0x5a   : > { %1504 = vmatprep.mubr.f32.mxu0 %v23378_v48 }
  0xf0   : > { %v16134_v2 = vpop.f32.mrb[0].mxu0 }
  0xf1   : > { %v719_v3 = vsel %vm717_vm1, %v16134_v2, 0.0  ;;  %v788_v4 = vmul.f32 %v16134_v2, %v16134_v2  ;;  %v16140_v5 = vpop.f32.mrb[1].mxu0 }
  0xf2   : > { %v718_v6 = vsel %vm717_vm1, %v16140_v5, 0.0  ;;  %v787_v7 = vmul.f32 %v16140_v5, %v16140_v5 }
  0xf3   : > { %v820_v8 = vsel %vm717_vm1, %v788_v4, 0.0  ;;  %v720_v9 = vadd.f32 %v719_v3, %v718_v6 }
  0xf4   : > { %v819_v10 = vsel %vm717_vm1, %v787_v7, 0.0  ;;  %v16148_v11 = vpop.f32.mrb[2].mxu0 }
  0xf5   : > { %v821_v12 = vadd.f32 %v820_v8, %v819_v10  ;;  %v16150_v13 = vpop.f32.mrb[3].mxu0  ;;  %v790_v14 = vmul.f32 %v16148_v11, %v16148_v11  ;;  %v723_v18 = vsel %vm717_vm1, %v16148_v11, 0.0 }
  0xf6   : > { %v721_v15 = vsel %vm717_vm1, %v16150_v13, 0.0  ;;  %v789_v16 = vmul.f32 %v16150_v13, %v16150_v13 }
  0xf7   : > { %v722_v17 = vadd.f32 %v721_v15, %v720_v9  ;;  %v824_v24 = vsel %vm717_vm1, %v790_v14, 0.0  ;;  %v1060_v14 = vld [vmem:[%s23370_s3 + $0x28] sm:$0xff] }
  0xf8   : > { %v822_v19 = vsel %vm717_vm1, %v789_v16, 0.0  ;;  %v16161_v20 = vpop.f32.mrb[4].mxu0  ;;  %v1068_v15 = vld [vmem:[%s23370_s3 + $0x68] sm:$0xff] }
  0xf9   : > { %v823_v21 = vadd.f32 %v822_v19, %v821_v12  ;;  %v16163_v22 = vpop.f32.mrb[5].mxu0  ;;  %v724_v23 = vadd.f32 %v723_v18, %v722_v17  ;;  %v792_v25 = vmul.f32 %v16161_v20, %v16161_v20  ;;  %v727_v30 = vsel %vm717_vm1, %v16161_v20, 0.0 }
  0xfa   : > { %v725_v26 = vsel %vm717_vm1, %v16163_v22, 0.0  ;;  %v791_v27 = vmul.f32 %v16163_v22, %v16163_v22  ;;  %v13582_v19 = vpack.c.bf16 %v1068_v15, %v1060_v14 }
  0xfb   : > { %v726_v28 = vadd.f32 %v725_v26, %v724_v23  ;;  %v825_v29 = vadd.f32 %v824_v24, %v823_v21  ;;  %v828_v36 = vsel %vm717_vm1, %v792_v25, 0.0 }
  0xfc   : > { %v826_v31 = vsel %vm717_vm1, %v791_v27, 0.0  ;;  %v16175_v32 = vpop.f32.mrb[6].mxu0  ;;  %13583 = vmatprep.subr.bf16.mxu1 %v13582_v19 }
  0xfd   : > { %v827_v33 = vadd.f32 %v826_v31, %v825_v29  ;;  %v16177_v34 = vpop.f32.mrb[7].mxu0  ;;  %v728_v35 = vadd.f32 %v727_v30, %v726_v28  ;;  %v794_v37 = vmul.f32 %v16175_v32, %v16175_v32  ;;  %v731_v42 = vsel %vm717_vm1, %v16175_v32, 0.0 }
  0xfe   : > { %v729_v38 = vsel %vm717_vm1, %v16177_v34, 0.0  ;;  %v793_v39 = vmul.f32 %v16177_v34, %v16177_v34 }
  0xff   : > { %v730_v40 = vadd.f32 %v729_v38, %v728_v35  ;;  %v829_v41 = vadd.f32 %v828_v36, %v827_v33  ;;  %v832_v49 = vsel %vm717_vm1, %v794_v37, 0.0 }
 0x100   : > { %v830_v43 = vsel %vm717_vm1, %v793_v39, 0.0  ;;  %v16189_v44 = vpop.f32.mrb[8].mxu0 }
 0x101   : > { %v831_v45 = vadd.f32 %v830_v43, %v829_v41  ;;  %v16191_v46 = vpop.f32.mrb[9].mxu0  ;;  %v732_v47 = vadd.f32 %v731_v42, %v730_v40  ;;  %v796_v50 = vmul.f32 %v16189_v44, %v16189_v44  ;;  %v735_v55 = vsel %vm717_vm1, %v16189_v44, 0.0 }
 0x102   : > { %v733_v51 = vsel %vm717_vm1, %v16191_v46, 0.0  ;;  %v795_v52 = vmul.f32 %v16191_v46, %v16191_v46 }
 0x103   : > { %v734_v53 = vadd.f32 %v733_v51, %v732_v47  ;;  %v833_v54 = vadd.f32 %v832_v49, %v831_v45  ;;  %v836_v62 = vsel %vm717_vm1, %v796_v50, 0.0 }
 0x104   : > { %v834_v56 = vsel %vm717_vm1, %v795_v52, 0.0  ;;  %v16203_v57 = vpop.f32.mrb[10].mxu0 }
 0x105   : > { %v835_v58 = vadd.f32 %v834_v56, %v833_v54  ;;  %v798_v59 = vmul.f32 %v16203_v57, %v16203_v57  ;;  %v16207_v60 = vpop.f32.mrb[11].mxu0  ;;  %v736_v61 = vadd.f32 %v735_v55, %v734_v53  ;;  %v739_v4 = vsel %vm717_vm1, %v16203_v57, 0.0 }
 0x106   : > { %v737_v63 = vsel %vm717_vm1, %v16207_v60, 0.0  ;;  %v797_v0 = vmul.f32 %v16207_v60, %v16207_v60 }
 0x107   : > { %v738_v1 = vadd.f32 %v737_v63, %v736_v61  ;;  %v837_v3 = vadd.f32 %v836_v62, %v835_v58  ;;  %v840_v8 = vsel %vm717_vm1, %v798_v59, 0.0 }
 0x108   : > { %v838_v6 = vsel %vm717_vm1, %v797_v0, 0.0  ;;  %v16217_v7 = vpop.f32.mrb[12].mxu0 }
 0x109   : > { %v839_v9 = vadd.f32 %v838_v6, %v837_v3  ;;  %v16220_v10 = vpop.f32.mrb[13].mxu0  ;;  %v740_v12 = vadd.f32 %v739_v4, %v738_v1  ;;  %v800_v16 = vmul.f32 %v16217_v7, %v16217_v7  ;;  %v743_v24 = vsel %vm717_vm1, %v16217_v7, 0.0 }
 0x10a   : > { %v741_v17 = vsel %vm717_vm1, %v16220_v10, 0.0  ;;  %v799_v18 = vmul.f32 %v16220_v10, %v16220_v10 }
 0x10b   : > { %v742_v21 = vadd.f32 %v741_v17, %v740_v12  ;;  %v841_v23 = vadd.f32 %v840_v8, %v839_v9  ;;  %v844_v30 = vsel %vm717_vm1, %v800_v16, 0.0  ;;  %v1062_v16 = vld [vmem:[%s23370_s3 + $0x38] sm:$0xff] }
 0x10c   : > { %v842_v25 = vsel %vm717_vm1, %v799_v18, 0.0  ;;  %v16237_v26 = vpop.f32.mrb[14].mxu0  ;;  %v1070_v17 = vld [vmem:[%s23370_s3 + $0x78] sm:$0xff] }
 0x10d   : > { %v843_v27 = vadd.f32 %v842_v25, %v841_v23  ;;  %v16239_v28 = vpop.f32.mrb[15].mxu0  ;;  %v744_v29 = vadd.f32 %v743_v24, %v742_v21  ;;  %v802_v31 = vmul.f32 %v16237_v26, %v16237_v26  ;;  %v747_v38 = vsel %vm717_vm1, %v16237_v26, 0.0 }
 0x10e   : > { %v745_v33 = vsel %vm717_vm1, %v16239_v28, 0.0  ;;  %v801_v35 = vmul.f32 %v16239_v28, %v16239_v28  ;;  %v13590_v23 = vpack.c.bf16 %v1070_v17, %v1062_v16 }
 0x10f   : > { %v746_v36 = vadd.f32 %v745_v33, %v744_v29  ;;  %v845_v37 = vadd.f32 %v844_v30, %v843_v27  ;;  %v848_v45 = vsel %vm717_vm1, %v802_v31, 0.0 }
 0x110   : > { %v846_v39 = vsel %vm717_vm1, %v801_v35, 0.0  ;;  %v16251_v40 = vpop.f32.mrb[16].mxu0  ;;  %13591 = vmatprep.subr.bf16.mxu0 %v13590_v23 }
 0x111   : > { %v847_v41 = vadd.f32 %v846_v39, %v845_v37  ;;  %v16253_v42 = vpop.f32.mrb[17].mxu0  ;;  %v748_v43 = vadd.f32 %v747_v38, %v746_v36  ;;  %v804_v47 = vmul.f32 %v16251_v40, %v16251_v40  ;;  %v751_v53 = vsel %vm717_vm1, %v16251_v40, 0.0 }
 0x112   : > { %v749_v49 = vsel %vm717_vm1, %v16253_v42, 0.0  ;;  %v803_v50 = vmul.f32 %v16253_v42, %v16253_v42 }
 0x113   : > { %v750_v51 = vadd.f32 %v749_v49, %v748_v43  ;;  %v849_v52 = vadd.f32 %v848_v45, %v847_v41  ;;  %v852_v62 = vsel %vm717_vm1, %v804_v47, 0.0 }
 0x114   : > { %v850_v54 = vsel %vm717_vm1, %v803_v50, 0.0  ;;  %v16265_v55 = vpop.f32.mrb[18].mxu0 }
 0x115   : > { %v851_v56 = vadd.f32 %v850_v54, %v849_v52  ;;  %v806_v58 = vmul.f32 %v16265_v55, %v16265_v55  ;;  %v16269_v59 = vpop.f32.mrb[19].mxu0  ;;  %v752_v61 = vadd.f32 %v751_v53, %v750_v51  ;;  %v755_v4 = vsel %vm717_vm1, %v16265_v55, 0.0 }
 0x116   : > { %v753_v63 = vsel %vm717_vm1, %v16269_v59, 0.0  ;;  %v805_v0 = vmul.f32 %v16269_v59, %v16269_v59 }
 0x117   : > { %v754_v1 = vadd.f32 %v753_v63, %v752_v61  ;;  %v853_v3 = vadd.f32 %v852_v62, %v851_v56  ;;  %v856_v9 = vsel %vm717_vm1, %v806_v58, 0.0 }
 0x118   : > { %v854_v6 = vsel %vm717_vm1, %v805_v0, 0.0  ;;  %v16279_v8 = vpop.f32.mrb[20].mxu0 }
 0x119   : > { %v855_v12 = vadd.f32 %v854_v6, %v853_v3  ;;  %v16282_v14 = vpop.f32.mrb[21].mxu0  ;;  %v756_v15 = vadd.f32 %v755_v4, %v754_v1  ;;  %v808_v18 = vmul.f32 %v16279_v8, %v16279_v8  ;;  %v759_v27 = vsel %vm717_vm1, %v16279_v8, 0.0 }
 0x11a   : > { %v757_v19 = vsel %vm717_vm1, %v16282_v14, 0.0  ;;  %v807_v21 = vmul.f32 %v16282_v14, %v16282_v14 }
 0x11b   : > { %v758_v24 = vadd.f32 %v757_v19, %v756_v15  ;;  %v857_v25 = vadd.f32 %v856_v9, %v855_v12  ;;  %v860_v36 = vsel %vm717_vm1, %v808_v18, 0.0 }
 0x11c   : > { %v858_v29 = vsel %vm717_vm1, %v807_v21, 0.0  ;;  %v16299_v30 = vpop.f32.mrb[22].mxu0 }
 0x11d   : > { %v859_v31 = vadd.f32 %v858_v29, %v857_v25  ;;  %v16301_v33 = vpop.f32.mrb[23].mxu0  ;;  %v760_v35 = vadd.f32 %v759_v27, %v758_v24  ;;  %v810_v37 = vmul.f32 %v16299_v30, %v16299_v30  ;;  %v763_v45 = vsel %vm717_vm1, %v16299_v30, 0.0 }
 0x11e   : > { %v761_v38 = vsel %vm717_vm1, %v16301_v33, 0.0  ;;  %v809_v39 = vmul.f32 %v16301_v33, %v16301_v33 }
 0x11f   : > { %v762_v41 = vadd.f32 %v761_v38, %v760_v35  ;;  %v861_v43 = vadd.f32 %v860_v36, %v859_v31  ;;  %v864_v53 = vsel %vm717_vm1, %v810_v37, 0.0 }
 0x120   : > { %v862_v47 = vsel %vm717_vm1, %v809_v39, 0.0  ;;  %v16313_v49 = vpop.f32.mrb[24].mxu0 }
 0x121   : > { %v863_v50 = vadd.f32 %v862_v47, %v861_v43  ;;  %v16315_v51 = vpop.f32.mrb[25].mxu0  ;;  %v764_v52 = vadd.f32 %v763_v45, %v762_v41  ;;  %v812_v54 = vmul.f32 %v16313_v49, %v16313_v49  ;;  %v767_v63 = vsel %vm717_vm1, %v16313_v49, 0.0 }
 0x122   : > { %v765_v56 = vsel %vm717_vm1, %v16315_v51, 0.0  ;;  %v811_v58 = vmul.f32 %v16315_v51, %v16315_v51 }
 0x123   : > { %v766_v61 = vadd.f32 %v765_v56, %v764_v52  ;;  %v865_v62 = vadd.f32 %v864_v53, %v863_v50  ;;  %v868_v9 = vsel %vm717_vm1, %v812_v54, 0.0 }
 0x124   : > { %v866_v0 = vsel %vm717_vm1, %v811_v58, 0.0  ;;  %v16327_v1 = vpop.f32.mrb[26].mxu0 }
 0x125   : > { %v867_v3 = vadd.f32 %v866_v0, %v865_v62  ;;  %v16329_v4 = vpop.f32.mrb[27].mxu0  ;;  %v768_v6 = vadd.f32 %v767_v63, %v766_v61  ;;  %v814_v12 = vmul.f32 %v16327_v1, %v16327_v1  ;;  %v771_v19 = vsel %vm717_vm1, %v16327_v1, 0.0 }
 0x126   : > { %v769_v15 = vsel %vm717_vm1, %v16329_v4, 0.0  ;;  %v813_v16 = vmul.f32 %v16329_v4, %v16329_v4 }
 0x127   : > { %v770_v17 = vadd.f32 %v769_v15, %v768_v6  ;;  %v869_v18 = vadd.f32 %v868_v9, %v867_v3  ;;  %v872_v29 = vsel %vm717_vm1, %v814_v12, 0.0 }
 0x128   : > { %v870_v21 = vsel %vm717_vm1, %v813_v16, 0.0  ;;  %v16341_v23 = vpop.f32.mrb[28].mxu0 }
 0x129   : > { %v871_v24 = vadd.f32 %v870_v21, %v869_v18  ;;  %v16343_v25 = vpop.f32.mrb[29].mxu0  ;;  %v772_v27 = vadd.f32 %v771_v19, %v770_v17  ;;  %v816_v31 = vmul.f32 %v16341_v23, %v16341_v23  ;;  %v775_v39 = vsel %vm717_vm1, %v16341_v23, 0.0 }
 0x12a   : > { %v773_v35 = vsel %vm717_vm1, %v16343_v25, 0.0  ;;  %v815_v36 = vmul.f32 %v16343_v25, %v16343_v25 }
 0x12b   : > { %v774_v37 = vadd.f32 %v773_v35, %v772_v27  ;;  %v873_v38 = vadd.f32 %v872_v29, %v871_v24  ;;  %v876_v52 = vsel %vm717_vm1, %v816_v31, 0.0 }
 0x12c   : > { %v874_v41 = vsel %vm717_vm1, %v815_v36, 0.0  ;;  %v16355_v43 = vpop.f32.mrb[30].mxu0 }
 0x12d   : > { %v875_v45 = vadd.f32 %v874_v41, %v873_v38  ;;  %v16357_v47 = vpop.f32.mrb[31].mxu0  ;;  %v776_v50 = vadd.f32 %v775_v39, %v774_v37  ;;  %v818_v53 = vmul.f32 %v16355_v43, %v16355_v43  ;;  %v779_v62 = vsel %vm717_vm1, %v16355_v43, 0.0 }
 0x12e   : > { %v777_v54 = vsel %vm717_vm1, %v16357_v47, 0.0  ;;  %v817_v56 = vmul.f32 %v16357_v47, %v16357_v47 }
 0x12f   : > { %v778_v58 = vadd.f32 %v777_v54, %v776_v50  ;;  %v877_v61 = vadd.f32 %v876_v52, %v875_v45  ;;  %v880_v6 = vsel %vm717_vm1, %v818_v53, 0.0 }
 0x130   : > { %v878_v63 = vsel %vm717_vm1, %v817_v56, 0.0 }
 0x131   : > { %v780_v0 = vadd.f32 %v779_v62, %v778_v58  ;;  %v879_v3 = vadd.f32 %v878_v63, %v877_v61 }
 0x133   : > { %v781_v9 = vrot.slane %v780_v0, 4  ;;  %v881_v12 = vadd.f32 %v880_v6, %v879_v3 }
 0x135   : > { %v782_v15 = vadd.f32 %v781_v9, %v780_v0  ;;  %v882_v16 = vrot.slane %v881_v12, 4 }
 0x137   : > { %v783_v17 = vrot.slane %v782_v15, 2  ;;  %v883_v18 = vadd.f32 %v882_v16, %v881_v12 }
 0x139   : > { %v784_v19 = vadd.f32 %v783_v17, %v782_v15  ;;  %v884_v21 = vrot.slane %v883_v18, 2  ;;  %v1083_v17 = vld [vmem:[%s23370_s3 + $0xe0] sm:$0xff] }
 0x13b   : > { %v785_v24 = vrot.slane %v784_v19, 1  ;;  %v885_v27 = vadd.f32 %v884_v21, %v883_v18 }
 0x13d   : > { %v786_v29 = vadd.f32 %v785_v24, %v784_v19  ;;  %v886_v31 = vrot.slane %v885_v27, 1  ;;  %v1059_v24 = vld [vmem:[%s23370_s3 + $0x20] sm:$0xff] }
 0x13f   : > { %v887_v35 = vadd.f32 %v886_v31, %v885_v27  ;;  %v16370_v36 = vmul.f32 0.00390625, %v786_v29 }
 0x141   : > { %v889_v37 = vmul.f32 0.00390625, %v887_v35  ;;  %v890_v38 = vmul.f32 %v16370_v36, %v16370_v36  ;;  %v893_v41 = vsub.f32 %v16140_v5, %v16370_v36  ;;  %v894_v45 = vsub.f32 %v16134_v2, %v16370_v36 }
 0x142   : > { %v895_v50 = vsub.f32 %v16150_v13, %v16370_v36  ;;  %v896_v52 = vsub.f32 %v16148_v11, %v16370_v36  ;;  %v897_v53 = vsub.f32 %v16163_v22, %v16370_v36  ;;  %v898_v56 = vsub.f32 %v16161_v20, %v16370_v36 }
 0x143   : > { %v891_v54 = vsub.f32 %v889_v37, %v890_v38  ;;  %v899_v58 = vsub.f32 %v16177_v34, %v16370_v36  ;;  %v900_v5 = vsub.f32 %v16175_v32, %v16370_v36  ;;  %v901_v2 = vsub.f32 %v16191_v46, %v16370_v36  ;;  %v1067_v37 = vld [vmem:[%s23370_s3 + $0x60] sm:$0xff]  ;;  %v1061_v38 = vld [vmem:[%s23370_s3 + $0x30] sm:$0xff] }
 0x144   : > { %v902_v13 = vsub.f32 %v16189_v44, %v16370_v36  ;;  %v903_v11 = vsub.f32 %v16207_v60, %v16370_v36  ;;  %v904_v22 = vsub.f32 %v16203_v57, %v16370_v36  ;;  %v905_v20 = vsub.f32 %v16220_v10, %v16370_v36 }
 0x145   : > { %v892_v61 = vmax.f32 %v891_v54, 0.0  ;;  %v906_v34 = vsub.f32 %v16217_v7, %v16370_v36  ;;  %v907_v32 = vsub.f32 %v16239_v28, %v16370_v36  ;;  %v908_v46 = vsub.f32 %v16237_v26, %v16370_v36  ;;  %v1069_v54 = vld [vmem:[%s23370_s3 + $0x70] sm:$0xff] }
 0x146   : > { %v909_v44 = vsub.f32 %v16253_v42, %v16370_v36  ;;  %v910_v60 = vsub.f32 %v16251_v40, %v16370_v36  ;;  %v911_v57 = vsub.f32 %v16269_v59, %v16370_v36  ;;  %v912_v10 = vsub.f32 %v16265_v55, %v16370_v36 }
 0x147   : > { %v925_v62 = vadd.f32 1e-05, %v892_v61  ;;  %v913_v63 = vsub.f32 %v16282_v14, %v16370_v36  ;;  %v914_v0 = vsub.f32 %v16279_v8, %v16370_v36  ;;  %v915_v3 = vsub.f32 %v16301_v33, %v16370_v36  ;;  %v1076_v61 = vld [vmem:[%s23370_s3 + $0xa8] sm:$0xff] }
 0x148   : > { %v916_v6 = vsub.f32 %v16299_v30, %v16370_v36  ;;  %v917_v9 = vsub.f32 %v16315_v51, %v16370_v36  ;;  %v918_v12 = vsub.f32 %v16313_v49, %v16370_v36  ;;  %v919_v15 = vsub.f32 %v16329_v4, %v16370_v36 }
 0x149   : > { %15908 = vrsqrt.f32 %v925_v62  ;;  %v920_v16 = vsub.f32 %v16327_v1, %v16370_v36  ;;  %v1084_v62 = vld [vmem:[%s23370_s3 + $0xe8] sm:$0xff]  ;;  %v13592_v39 = vpack.c.bf16 %v1069_v54, %v1061_v38  ;;  %v23640_v49 = vsub.f32 %v16343_v25, %v16370_v36 }
 0x14a   : > { %v23641_v4 = vsub.f32 %v16341_v23, %v16370_v36  ;;  %v23643_v25 = vsub.f32 %v16355_v43, %v16370_v36  ;;  %v1078_v23 = vld [vmem:[%s23370_s3 + $0xb8] sm:$0xff]  ;;  %v1077_v43 = vld [vmem:[%s23370_s3 + $0xb0] sm:$0xff] }
 0x153   : > { %v16438_v21 = vpop.eup %15908 }
 0x154   : > { %v927_v27 = vmul.f32 %v16438_v21, %v893_v41  ;;  %v928_v29 = vmul.f32 %v16438_v21, %v894_v45  ;;  %v929_v31 = vmul.f32 %v16438_v21, %v895_v50  ;;  %v930_v35 = vmul.f32 %v16438_v21, %v896_v52 }
 0x155   : > { %v931_v41 = vmul.f32 %v16438_v21, %v897_v53  ;;  %v16458_v45 = vmul.f32 %v16438_v21, %v898_v56  ;;  %v16461_v50 = vmul.f32 %v16438_v21, %v899_v58  ;;  %v16464_v52 = vmul.f32 %v16438_v21, %v900_v5  ;;  %v1075_v5 = vld [vmem:[%s23370_s3 + $0xa0] sm:$0xff] }
 0x156   : > { %vm959_vm2 = vcmp.gt.f32.partialorder %v927_v27, 0.0  ;;  %v991_v19 = vmul.f32 0.01, %v927_v27  ;;  %v13584_v53 = vpack.c.bf16 %v1067_v37, %v1059_v24  ;;  %v992_v18 = vmul.f32 0.01, %v928_v29 }
 0x157   : > { %v13586_v58 = vpack.c.bf16 %v1084_v62, %v1076_v61  ;;  %vm960_vm3 = vcmp.gt.f32.partialorder %v928_v29, 0.0  ;;  %v16487_v24 = vmul.f32 %v16438_v21, %v901_v2  ;;  %v13588_v37 = vpack.c.bf16 %v1083_v17, %v1075_v5 }
 0x158   : > { %v16472_v56 = vsel %vm959_vm2, %v927_v27, %v991_v19  ;;  %v993_v19 = vmul.f32 0.01, %v929_v31  ;;  %v16490_v27 = vmul.f32 %v16438_v21, %v902_v13  ;;  %v16492_v38 = vsel %vm960_vm3, %v928_v29, %v992_v18 }
 0x159   : > { %11332 = vmatmul.mubr.msk.f32.vlgmr.msra.gmra.mrb[0].mxu1 %vm717_vm1, %v16472_v56  ;;  %11364 = vmatmul.mubr.msk.f32.vlgmr.msra.gmra.mrb[32].mxu0 %vm717_vm1, %v16472_v56  ;;  %v16495_v54 = vmul.f32 %v16438_v21, %v903_v11  ;;  %v16498_v61 = vmul.f32 %v16438_v21, %v904_v22  ;;  %v16501_v62 = vmul.f32 %v16438_v21, %v905_v20  ;;  %vm961_vm4 = vcmp.gt.f32.partialorder %v929_v31, 0.0 }
 0x15a   : > { %1253 = vmatprep.mubr.f32.mxu1 %v23378_v48  ;;  %1510 = vmatprep.mubr.f32.mxu0 %v23378_v48  ;;  %v994_v2 = vmul.f32 0.01, %v930_v35  ;;  %v16515_v13 = vmul.f32 %v16438_v21, %v906_v34  ;;  %v16521_v11 = vmul.f32 %v16438_v21, %v907_v32  ;;  %vm962_vm5 = vcmp.gt.f32.partialorder %v930_v35, 0.0 }
 0x15b   : > { %13585 = vmatpush1.bf16.msra.mxu1 %v13584_v53  ;;  %13593 = vmatpush1.bf16.msra.mxu0 %v13592_v39  ;;  %v16509_v39 = vsel %vm961_vm4, %v929_v31, %v993_v19  ;;  %v16531_v7 = vmul.f32 %v16438_v21, %v908_v46  ;;  %v16539_v28 = vmul.f32 %v16438_v21, %v909_v44  ;;  %v995_v20 = vmul.f32 0.01, %v931_v41 }
 0x15c   : > { %13587 = vmatprep.subr.bf16.mxu1 %v13586_v58  ;;  %v16545_v22 = vmul.f32 %v16438_v21, %v910_v60  ;;  %v16547_v26 = vsel %vm962_vm5, %v930_v35, %v994_v2  ;;  %v16553_v34 = vmul.f32 %v16438_v21, %v911_v57  ;;  %v16559_v42 = vmul.f32 %v16438_v21, %v912_v10 }
 0x15d   : > { %11333 = vmatmul.mubr.msk.f32.gmra.mrb[2].mxu1 %vm717_vm1, %v16492_v38  ;;  %11365 = vmatmul.mubr.msk.f32.gmra.mrb[34].mxu0 %vm717_vm1, %v16492_v38  ;;  %vm963_vm6 = vcmp.gt.f32.partialorder %v931_v41, 0.0  ;;  %v16571_v40 = vmul.f32 %v16438_v21, %v913_v63  ;;  %v16577_v55 = vmul.f32 %v16438_v21, %v914_v0  ;;  %v996_v32 = vmul.f32 0.01, %v16458_v45 }
 0x15e   : > { %1259 = vmatprep.mubr.f32.mxu1 %v23378_v48  ;;  %1516 = vmatprep.mubr.f32.mxu0 %v23378_v48  ;;  %v16579_v59 = vsel %vm963_vm6, %v931_v41, %v995_v20  ;;  %v16586_v46 = vmul.f32 %v16438_v21, %v915_v3  ;;  %v16592_v14 = vmul.f32 %v16438_v21, %v916_v6  ;;  %vm964_vm7 = vcmp.gt.f32.partialorder %v16458_v45, 0.0 }
 0x15f   : > { %13589 = vmatpush1.bf16.msra.mxu1 %v13588_v37  ;;  %v16605_v8 = vmul.f32 %v16438_v21, %v917_v9  ;;  %v16611_v30 = vmul.f32 %v16438_v21, %v918_v12  ;;  %v16614_v33 = vsel %vm964_vm7, %v16458_v45, %v996_v32  ;;  %v997_v44 = vmul.f32 0.01, %v16461_v50  ;;  %v1086_v9 = vld [vmem:[%s23370_s3 + $0xf8] sm:$0xff] }
 0x160   : > { %v16621_v60 = vmul.f32 %v16438_v21, %v919_v15  ;;  %v16627_v51 = vmul.f32 %v16438_v21, %v920_v16  ;;  %vm965_vm8 = vcmp.gt.f32.partialorder %v16461_v50, 0.0  ;;  %v16640_v1 = vmul.f32 %v16438_v21, %v23640_v49 }
 0x161   : > { %11334 = vmatmul.mubr.msk.f32.gmra.mrb[4].mxu1 %vm717_vm1, %v16509_v39  ;;  %11366 = vmatmul.mubr.msk.f32.gmra.mrb[36].mxu0 %vm717_vm1, %v16509_v39  ;;  %v16646_v57 = vmul.f32 %v16438_v21, %v23641_v4  ;;  %v16649_v10 = vsel %vm965_vm8, %v16461_v50, %v997_v44  ;;  %v998_v63 = vmul.f32 0.01, %v16464_v52  ;;  %v23642_v0 = vsub.f32 %v16357_v47, %v16370_v36  ;;  %v1085_v47 = vld [vmem:[%s23370_s3 + $0xf0] sm:$0xff] }
 0x162   : > { %1265 = vmatprep.mubr.f32.mxu1 %v23378_v48  ;;  %1522 = vmatprep.mubr.f32.mxu0 %v23378_v48  ;;  %v16662_v6 = vmul.f32 %v16438_v21, %v23643_v25  ;;  %vm966_vm9 = vcmp.gt.f32.partialorder %v16464_v52, 0.0  ;;  %v13594_v36 = vpack.c.bf16 %v1086_v9, %v1078_v23  ;;  %v999_v15 = vmul.f32 0.01, %v16487_v24 }
 0x163   : > { %v16656_v3 = vmul.f32 %v16438_v21, %v23642_v0  ;;  %v16684_v12 = vsel %vm966_vm9, %v16464_v52, %v998_v63  ;;  %v13596_v16 = vpack.c.bf16 %v1085_v47, %v1077_v43  ;;  %vm967_vm10 = vcmp.gt.f32.partialorder %v16487_v24, 0.0 }
 0x164   : > { %13595 = vmatprep.subr.bf16.mxu0 %v13594_v36  ;;  %v16695_v17 = vsel %vm967_vm10, %v16487_v24, %v999_v15  ;;  %v1000_v18 = vmul.f32 0.01, %v16490_v27  ;;  %vm968_vm11 = vcmp.gt.f32.partialorder %v16490_v27, 0.0  ;;  %v1001_v29 = vmul.f32 0.01, %v16495_v54 }
 0x165   : > { %11335 = vmatmul.mubr.msk.f32.gmra.mrb[6].mxu1 %vm717_vm1, %v16547_v26  ;;  %11367 = vmatmul.mubr.msk.f32.gmra.mrb[38].mxu0 %vm717_vm1, %v16547_v26  ;;  %vm969_vm12 = vcmp.gt.f32.partialorder %v16495_v54, 0.0  ;;  %v1002_v35 = vmul.f32 0.01, %v16498_v61  ;;  %vm970_vm13 = vcmp.gt.f32.partialorder %v16498_v61, 0.0  ;;  %v1003_v45 = vmul.f32 0.01, %v16501_v62 }
 0x166   : > { %1271 = vmatprep.mubr.f32.mxu1 %v23378_v48  ;;  %1528 = vmatprep.mubr.f32.mxu0 %v23378_v48  ;;  %v16706_v21 = vsel %vm968_vm11, %v16490_v27, %v1000_v18  ;;  %v16717_v31 = vsel %vm969_vm12, %v16495_v54, %v1001_v29  ;;  %vm971_vm14 = vcmp.gt.f32.partialorder %v16501_v62, 0.0  ;;  %v1004_v52 = vmul.f32 0.01, %v16515_v13 }
 0x167   : > { %13597 = vmatpush1.bf16.msra.mxu0 %v13596_v16  ;;  %v16728_v41 = vsel %vm970_vm13, %v16498_v61, %v1002_v35  ;;  %v16739_v50 = vsel %vm971_vm14, %v16501_v62, %v1003_v45  ;;  %vm972_vm15 = vcmp.gt.f32.partialorder %v16515_v13, 0.0  ;;  %v1005_v58 = vmul.f32 0.01, %v16521_v11 }
 0x168   : > { %v16750_v53 = vsel %vm972_vm15, %v16515_v13, %v1004_v52  ;;  %vm973_vm0 = vcmp.gt.f32.partialorder %v16521_v11, 0.0  ;;  %v1006_v19 = vmul.f32 0.01, %v16531_v7  ;;  %vm974_vm2 = vcmp.gt.f32.partialorder %v16531_v7, 0.0 }
 0x169   : > { %11336 = vmatmul.mubr.msk.f32.gmra.mrb[8].mxu1 %vm717_vm1, %v16579_v59  ;;  %11368 = vmatmul.mubr.msk.f32.gmra.mrb[40].mxu0 %vm717_vm1, %v16579_v59  ;;  %v16761_v5 = vsel %vm973_vm0, %v16521_v11, %v1005_v58  ;;  %v1007_v27 = vmul.f32 0.01, %v16539_v28  ;;  %vm975_vm3 = vcmp.gt.f32.partialorder %v16539_v28, 0.0  ;;  %v1008_v54 = vmul.f32 0.01, %v16545_v22 }
 0x16a   : > { %1277 = vmatprep.mubr.f32.mxu1 %v23378_v48  ;;  %1534 = vmatprep.mubr.f32.mxu0 %v23378_v48  ;;  %v16772_v24 = vsel %vm974_vm2, %v16531_v7, %v1006_v19  ;;  %vm976_vm4 = vcmp.gt.f32.partialorder %v16545_v22, 0.0  ;;  %v1009_v62 = vmul.f32 0.01, %v16553_v34  ;;  %vm977_vm5 = vcmp.gt.f32.partialorder %v16553_v34, 0.0 }
 0x16b   : > { %v16783_v37 = vsel %vm975_vm3, %v16539_v28, %v1007_v27  ;;  %v16794_v61 = vsel %vm976_vm4, %v16545_v22, %v1008_v54  ;;  %v1010_v13 = vmul.f32 0.01, %v16559_v42  ;;  %vm978_vm6 = vcmp.gt.f32.partialorder %v16559_v42, 0.0 }
 0x16c   : > { %v16805_v2 = vsel %vm977_vm5, %v16553_v34, %v1009_v62  ;;  %v1011_v7 = vmul.f32 0.01, %v16571_v40  ;;  %vm979_vm7 = vcmp.gt.f32.partialorder %v16571_v40, 0.0  ;;  %v1012_v22 = vmul.f32 0.01, %v16577_v55 }
 0x16d   : > { %11337 = vmatmul.mubr.msk.f32.gmra.mrb[10].mxu1 %vm717_vm1, %v16614_v33  ;;  %11369 = vmatmul.mubr.msk.f32.gmra.mrb[42].mxu0 %vm717_vm1, %v16614_v33  ;;  %v16816_v11 = vsel %vm978_vm6, %v16559_v42, %v1010_v13  ;;  %vm980_vm8 = vcmp.gt.f32.partialorder %v16577_v55, 0.0  ;;  %v1013_v34 = vmul.f32 0.01, %v16586_v46  ;;  %vm981_vm9 = vcmp.gt.f32.partialorder %v16586_v46, 0.0 }
 0x16e   : > { %1283 = vmatprep.mubr.f32.mxu1 %v23378_v48  ;;  %1540 = vmatprep.mubr.f32.mxu0 %v23378_v48  ;;  %v16827_v28 = vsel %vm979_vm7, %v16571_v40, %v1011_v7  ;;  %v16838_v20 = vsel %vm980_vm8, %v16577_v55, %v1012_v22  ;;  %v1014_v40 = vmul.f32 0.01, %v16592_v14  ;;  %vm982_vm10 = vcmp.gt.f32.partialorder %v16592_v14, 0.0 }
 0x16f   : > { %v16849_v42 = vsel %vm981_vm9, %v16586_v46, %v1013_v34  ;;  %v1015_v32 = vmul.f32 0.01, %v16605_v8  ;;  %vm983_vm11 = vcmp.gt.f32.partialorder %v16605_v8, 0.0  ;;  %vm984_vm12 = vcmp.gt.f32.partialorder %v16611_v30, 0.0 }
 0x170   : > { %v16860_v55 = vsel %vm982_vm10, %v16592_v14, %v1014_v40  ;;  %v1016_v14 = vmul.f32 0.01, %v16611_v30  ;;  %vm985_vm13 = vcmp.gt.f32.partialorder %v16621_v60, 0.0  ;;  %vm986_vm14 = vcmp.gt.f32.partialorder %v16627_v51, 0.0 }
 0x171   : > { %11338 = vmatmul.mubr.msk.f32.gmra.mrb[12].mxu1 %vm717_vm1, %v16649_v10  ;;  %11370 = vmatmul.mubr.msk.f32.gmra.mrb[44].mxu0 %vm717_vm1, %v16649_v10  ;;  %v16871_v46 = vsel %vm983_vm11, %v16605_v8, %v1015_v32  ;;  %v1017_v8 = vmul.f32 0.01, %v16621_v60  ;;  %vm987_vm15 = vcmp.gt.f32.partialorder %v16640_v1, 0.0  ;;  %vm988_vm0 = vcmp.gt.f32.partialorder %v16646_v57, 0.0 }
 0x172   : > { %1289 = vmatprep.mubr.f32.mxu1 %v23378_v48  ;;  %1546 = vmatprep.mubr.f32.mxu0 %v23378_v48  ;;  %v16882_v44 = vsel %vm984_vm12, %v16611_v30, %v1016_v14  ;;  %v1018_v30 = vmul.f32 0.01, %v16627_v51  ;;  %vm989_vm2 = vcmp.gt.f32.partialorder %v16656_v3, 0.0  ;;  %vm990_vm3 = vcmp.gt.f32.partialorder %v16662_v6, 0.0 }
 0x173   : > { %v16893_v49 = vsel %vm985_vm13, %v16621_v60, %v1017_v8  ;;  %v1019_v60 = vmul.f32 0.01, %v16640_v1 }
 0x174   : > { %v16904_v4 = vsel %vm986_vm14, %v16627_v51, %v1018_v30  ;;  %v1020_v51 = vmul.f32 0.01, %v16646_v57  ;;  %vm9533_vm14 = vcmask 130048  }
 0x175   : > { %11339 = vmatmul.mubr.msk.f32.gmra.mrb[14].mxu1 %vm717_vm1, %v16684_v12  ;;  %11371 = vmatmul.mubr.msk.f32.gmra.mrb[46].mxu0 %vm717_vm1, %v16684_v12  ;;  %v16915_v63 = vsel %vm987_vm15, %v16640_v1, %v1019_v60  ;;  %v1021_v1 = vmul.f32 0.01, %v16656_v3  ;;  %vm10760_vm15 = vcmask 1043456  }
 0x176   : > { %1295 = vmatprep.mubr.f32.mxu1 %v23378_v48  ;;  %1552 = vmatprep.mubr.f32.mxu0 %v23378_v48  ;;  %v16926_v0 = vsel %vm988_vm0, %v16646_v57, %v1020_v51  ;;  %v1022_v57 = vmul.f32 0.01, %v16662_v6 }
 0x177   : > { %v16937_v25 = vsel %vm989_vm2, %v16656_v3, %v1021_v1 }
 0x178   : > { %v16948_v23 = vsel %vm990_vm3, %v16662_v6, %v1022_v57  ;;  %vm11244_vm3 = vcmask 196608  }
 0x179   : > { %11340 = vmatmul.mubr.msk.f32.gmra.mrb[16].mxu1 %vm717_vm1, %v16695_v17  ;;  %11372 = vmatmul.mubr.msk.f32.gmra.mrb[48].mxu0 %vm717_vm1, %v16695_v17 }
 0x17a   : > { %1301 = vmatprep.mubr.f32.mxu1 %v23378_v48  ;;  %1558 = vmatprep.mubr.f32.mxu0 %v23378_v48 }
 0x17d   : > { %11341 = vmatmul.mubr.msk.f32.gmra.mrb[18].mxu1 %vm717_vm1, %v16706_v21  ;;  %11373 = vmatmul.mubr.msk.f32.gmra.mrb[50].mxu0 %vm717_vm1, %v16706_v21 }
 0x17e   : > { %1307 = vmatprep.mubr.f32.mxu1 %v23378_v48  ;;  %1564 = vmatprep.mubr.f32.mxu0 %v23378_v48 }
 0x181   : > { %11342 = vmatmul.mubr.msk.f32.gmra.mrb[20].mxu1 %vm717_vm1, %v16717_v31  ;;  %11374 = vmatmul.mubr.msk.f32.gmra.mrb[52].mxu0 %vm717_vm1, %v16717_v31 }
 0x182   : > { %1313 = vmatprep.mubr.f32.mxu1 %v23378_v48  ;;  %1570 = vmatprep.mubr.f32.mxu0 %v23378_v48 }
 0x185   : > { %11343 = vmatmul.mubr.msk.f32.gmra.mrb[22].mxu1 %vm717_vm1, %v16728_v41  ;;  %11375 = vmatmul.mubr.msk.f32.gmra.mrb[54].mxu0 %vm717_vm1, %v16728_v41 }
 0x186   : > { %1319 = vmatprep.mubr.f32.mxu1 %v23378_v48  ;;  %1576 = vmatprep.mubr.f32.mxu0 %v23378_v48 }
 0x189   : > { %11344 = vmatmul.mubr.msk.f32.gmra.mrb[24].mxu1 %vm717_vm1, %v16739_v50  ;;  %11376 = vmatmul.mubr.msk.f32.gmra.mrb[56].mxu0 %vm717_vm1, %v16739_v50 }
 0x18a   : > { %1325 = vmatprep.mubr.f32.mxu1 %v23378_v48  ;;  %1582 = vmatprep.mubr.f32.mxu0 %v23378_v48 }
 0x18d   : > { %11345 = vmatmul.mubr.msk.f32.gmra.mrb[26].mxu1 %vm717_vm1, %v16750_v53  ;;  %11377 = vmatmul.mubr.msk.f32.gmra.mrb[58].mxu0 %vm717_vm1, %v16750_v53 }
 0x18e   : > { %1331 = vmatprep.mubr.f32.mxu1 %v23378_v48  ;;  %1588 = vmatprep.mubr.f32.mxu0 %v23378_v48 }
 0x191   : > { %11346 = vmatmul.mubr.msk.f32.gmra.mrb[28].mxu1 %vm717_vm1, %v16761_v5  ;;  %11378 = vmatmul.mubr.msk.f32.gmra.mrb[60].mxu0 %vm717_vm1, %v16761_v5 }
 0x192   : > { %1337 = vmatprep.mubr.f32.mxu1 %v23378_v48  ;;  %1594 = vmatprep.mubr.f32.mxu0 %v23378_v48 }
 0x195   : > { %11347 = vmatmul.mubr.msk.f32.gmra.mrb[30].mxu1 %vm717_vm1, %v16772_v24  ;;  %11379 = vmatmul.mubr.msk.f32.gmra.mrb[62].mxu0 %vm717_vm1, %v16772_v24 }
 0x196   : > { %1343 = vmatprep.mubr.f32.mxu1 %v23378_v48  ;;  %1600 = vmatprep.mubr.f32.mxu0 %v23378_v48 }
 0x199   : > { %11348 = vmatmul.mubr.msk.f32.gmra.mrb[32].mxu1 %vm717_vm1, %v16783_v37  ;;  %11380 = vmatmul.mubr.msk.f32.gmra.mrb[64].mxu0 %vm717_vm1, %v16783_v37 }
 0x19a   : > { %1349 = vmatprep.mubr.f32.mxu1 %v23378_v48  ;;  %1606 = vmatprep.mubr.f32.mxu0 %v23378_v48 }
 0x19d   : > { %11349 = vmatmul.mubr.msk.f32.gmra.mrb[34].mxu1 %vm717_vm1, %v16794_v61  ;;  %11381 = vmatmul.mubr.msk.f32.gmra.mrb[66].mxu0 %vm717_vm1, %v16794_v61 }
 0x19e   : > { %1355 = vmatprep.mubr.f32.mxu1 %v23378_v48  ;;  %1612 = vmatprep.mubr.f32.mxu0 %v23378_v48 }
 0x1a1   : > { %11350 = vmatmul.mubr.msk.f32.gmra.mrb[36].mxu1 %vm717_vm1, %v16805_v2  ;;  %11382 = vmatmul.mubr.msk.f32.gmra.mrb[68].mxu0 %vm717_vm1, %v16805_v2 }
 0x1a2   : > { %1361 = vmatprep.mubr.f32.mxu1 %v23378_v48  ;;  %1618 = vmatprep.mubr.f32.mxu0 %v23378_v48 }
 0x1a5   : > { %11351 = vmatmul.mubr.msk.f32.gmra.mrb[38].mxu1 %vm717_vm1, %v16816_v11  ;;  %11383 = vmatmul.mubr.msk.f32.gmra.mrb[70].mxu0 %vm717_vm1, %v16816_v11 }
 0x1a6   : > { %1367 = vmatprep.mubr.f32.mxu1 %v23378_v48  ;;  %1624 = vmatprep.mubr.f32.mxu0 %v23378_v48 }
 0x1a9   : > { %11352 = vmatmul.mubr.msk.f32.gmra.mrb[40].mxu1 %vm717_vm1, %v16827_v28  ;;  %11384 = vmatmul.mubr.msk.f32.gmra.mrb[72].mxu0 %vm717_vm1, %v16827_v28 }
 0x1aa   : > { %1373 = vmatprep.mubr.f32.mxu1 %v23378_v48  ;;  %1630 = vmatprep.mubr.f32.mxu0 %v23378_v48 }
 0x1ad   : > { %11353 = vmatmul.mubr.msk.f32.gmra.mrb[42].mxu1 %vm717_vm1, %v16838_v20  ;;  %11385 = vmatmul.mubr.msk.f32.gmra.mrb[74].mxu0 %vm717_vm1, %v16838_v20 }
 0x1ae   : > { %1379 = vmatprep.mubr.f32.mxu1 %v23378_v48  ;;  %1636 = vmatprep.mubr.f32.mxu0 %v23378_v48 }
 0x1b1   : > { %11354 = vmatmul.mubr.msk.f32.gmra.mrb[44].mxu1 %vm717_vm1, %v16849_v42  ;;  %11386 = vmatmul.mubr.msk.f32.gmra.mrb[76].mxu0 %vm717_vm1, %v16849_v42 }
 0x1b2   : > { %1385 = vmatprep.mubr.f32.mxu1 %v23378_v48  ;;  %1642 = vmatprep.mubr.f32.mxu0 %v23378_v48 }
 0x1b5   : > { %11355 = vmatmul.mubr.msk.f32.gmra.mrb[46].mxu1 %vm717_vm1, %v16860_v55  ;;  %11387 = vmatmul.mubr.msk.f32.gmra.mrb[78].mxu0 %vm717_vm1, %v16860_v55 }
 0x1b6   : > { %1391 = vmatprep.mubr.f32.mxu1 %v23378_v48  ;;  %1648 = vmatprep.mubr.f32.mxu0 %v23378_v48 }
 0x1b9   : > { %11356 = vmatmul.mubr.msk.f32.gmra.mrb[48].mxu1 %vm717_vm1, %v16871_v46  ;;  %11388 = vmatmul.mubr.msk.f32.gmra.mrb[80].mxu0 %vm717_vm1, %v16871_v46 }
 0x1ba   : > { %1397 = vmatprep.mubr.f32.mxu1 %v23378_v48  ;;  %1654 = vmatprep.mubr.f32.mxu0 %v23378_v48 }
 0x1bd   : > { %11357 = vmatmul.mubr.msk.f32.gmra.mrb[50].mxu1 %vm717_vm1, %v16882_v44  ;;  %11389 = vmatmul.mubr.msk.f32.gmra.mrb[82].mxu0 %vm717_vm1, %v16882_v44 }
 0x1be   : > { %1403 = vmatprep.mubr.f32.mxu1 %v23378_v48  ;;  %1660 = vmatprep.mubr.f32.mxu0 %v23378_v48 }
 0x1c1   : > { %11358 = vmatmul.mubr.msk.f32.gmra.mrb[52].mxu1 %vm717_vm1, %v16893_v49  ;;  %11390 = vmatmul.mubr.msk.f32.gmra.mrb[84].mxu0 %vm717_vm1, %v16893_v49 }
 0x1c2   : > { %1409 = vmatprep.mubr.f32.mxu1 %v23378_v48  ;;  %1666 = vmatprep.mubr.f32.mxu0 %v23378_v48 }
 0x1c5   : > { %11359 = vmatmul.mubr.msk.f32.gmra.mrb[54].mxu1 %vm717_vm1, %v16904_v4  ;;  %11391 = vmatmul.mubr.msk.f32.gmra.mrb[86].mxu0 %vm717_vm1, %v16904_v4 }
 0x1c6   : > { %1415 = vmatprep.mubr.f32.mxu1 %v23378_v48  ;;  %1672 = vmatprep.mubr.f32.mxu0 %v23378_v48 }
 0x1c9   : > { %11360 = vmatmul.mubr.msk.f32.gmra.mrb[56].mxu1 %vm717_vm1, %v16915_v63  ;;  %11392 = vmatmul.mubr.msk.f32.gmra.mrb[88].mxu0 %vm717_vm1, %v16915_v63 }
 0x1ca   : > { %1421 = vmatprep.mubr.f32.mxu1 %v23378_v48  ;;  %1678 = vmatprep.mubr.f32.mxu0 %v23378_v48 }
 0x1cd   : > { %11361 = vmatmul.mubr.msk.f32.gmra.mrb[58].mxu1 %vm717_vm1, %v16926_v0  ;;  %11393 = vmatmul.mubr.msk.f32.gmra.mrb[90].mxu0 %vm717_vm1, %v16926_v0 }
 0x1ce   : > { %1427 = vmatprep.mubr.f32.mxu1 %v23378_v48  ;;  %1684 = vmatprep.mubr.f32.mxu0 %v23378_v48 }
 0x1d1   : > { %11362 = vmatmul.mubr.msk.f32.gmra.mrb[60].mxu1 %vm717_vm1, %v16937_v25  ;;  %11394 = vmatmul.mubr.msk.f32.gmra.mrb[92].mxu0 %vm717_vm1, %v16937_v25 }
 0x1d2   : > { %1433 = vmatprep.mubr.f32.mxu1 %v23378_v48  ;;  %1690 = vmatprep.mubr.f32.mxu0 %v23378_v48 }
 0x1d5   : > { %11363 = vmatmul.mubr.msk.f32.gmra.mrb[62].mxu1 %vm717_vm1, %v16948_v23  ;;  %11395 = vmatmul.mubr.msk.f32.gmra.mrb[94].mxu0 %vm717_vm1, %v16948_v23 }
 0x1d6   : > { %1761 = vmatprep.mubr.f32.mxu1 %v23378_v48  ;;  %2018 = vmatprep.mubr.f32.mxu0 %v23378_v48 }
 0x1d9   : > { %11396 = vmatmul.mubr.msk.f32.vlgmr.msra.gmra.mrb[64].mxu1 %vm717_vm1, %v16472_v56  ;;  %11428 = vmatmul.mubr.msk.f32.vlgmr.msra.gmra.mrb[96].mxu0 %vm717_vm1, %v16472_v56 }
 0x1da   : > { %1767 = vmatprep.mubr.f32.mxu1 %v23378_v48  ;;  %2024 = vmatprep.mubr.f32.mxu0 %v23378_v48 }
 0x1dd   : > { %11397 = vmatmul.mubr.msk.f32.gmra.mrb[66].mxu1 %vm717_vm1, %v16492_v38  ;;  %11429 = vmatmul.mubr.msk.f32.gmra.mrb[98].mxu0 %vm717_vm1, %v16492_v38 }
 0x1de   : > { %1773 = vmatprep.mubr.f32.mxu1 %v23378_v48  ;;  %2030 = vmatprep.mubr.f32.mxu0 %v23378_v48 }
 0x1e1   : > { %11398 = vmatmul.mubr.msk.f32.gmra.mrb[68].mxu1 %vm717_vm1, %v16509_v39  ;;  %11430 = vmatmul.mubr.msk.f32.gmra.mrb[100].mxu0 %vm717_vm1, %v16509_v39 }
 0x1e2   : > { %1779 = vmatprep.mubr.f32.mxu1 %v23378_v48  ;;  %2036 = vmatprep.mubr.f32.mxu0 %v23378_v48 }
 0x1e5   : > { %11399 = vmatmul.mubr.msk.f32.gmra.mrb[70].mxu1 %vm717_vm1, %v16547_v26  ;;  %11431 = vmatmul.mubr.msk.f32.gmra.mrb[102].mxu0 %vm717_vm1, %v16547_v26 }
 0x1e6   : > { %1785 = vmatprep.mubr.f32.mxu1 %v23378_v48  ;;  %2042 = vmatprep.mubr.f32.mxu0 %v23378_v48 }
 0x1e9   : > { %11400 = vmatmul.mubr.msk.f32.gmra.mrb[72].mxu1 %vm717_vm1, %v16579_v59  ;;  %11432 = vmatmul.mubr.msk.f32.gmra.mrb[104].mxu0 %vm717_vm1, %v16579_v59 }
 0x1ea   : > { %1791 = vmatprep.mubr.f32.mxu1 %v23378_v48  ;;  %2048 = vmatprep.mubr.f32.mxu0 %v23378_v48 }
 0x1ed   : > { %11401 = vmatmul.mubr.msk.f32.gmra.mrb[74].mxu1 %vm717_vm1, %v16614_v33  ;;  %11433 = vmatmul.mubr.msk.f32.gmra.mrb[106].mxu0 %vm717_vm1, %v16614_v33 }
 0x1ee   : > { %1797 = vmatprep.mubr.f32.mxu1 %v23378_v48  ;;  %2054 = vmatprep.mubr.f32.mxu0 %v23378_v48 }
 0x1f1   : > { %11402 = vmatmul.mubr.msk.f32.gmra.mrb[76].mxu1 %vm717_vm1, %v16649_v10  ;;  %11434 = vmatmul.mubr.msk.f32.gmra.mrb[108].mxu0 %vm717_vm1, %v16649_v10 }
 0x1f2   : > { %1803 = vmatprep.mubr.f32.mxu1 %v23378_v48  ;;  %2060 = vmatprep.mubr.f32.mxu0 %v23378_v48 }
 0x1f5   : > { %11403 = vmatmul.mubr.msk.f32.gmra.mrb[78].mxu1 %vm717_vm1, %v16684_v12  ;;  %11435 = vmatmul.mubr.msk.f32.gmra.mrb[110].mxu0 %vm717_vm1, %v16684_v12 }
 0x1f6   : > { %1809 = vmatprep.mubr.f32.mxu1 %v23378_v48  ;;  %2066 = vmatprep.mubr.f32.mxu0 %v23378_v48 }
 0x1f9   : > { %11404 = vmatmul.mubr.msk.f32.gmra.mrb[80].mxu1 %vm717_vm1, %v16695_v17  ;;  %11436 = vmatmul.mubr.msk.f32.gmra.mrb[112].mxu0 %vm717_vm1, %v16695_v17 }
 0x1fa   : > { %1815 = vmatprep.mubr.f32.mxu1 %v23378_v48  ;;  %2072 = vmatprep.mubr.f32.mxu0 %v23378_v48 }
 0x1fd   : > { %11405 = vmatmul.mubr.msk.f32.gmra.mrb[82].mxu1 %vm717_vm1, %v16706_v21  ;;  %11437 = vmatmul.mubr.msk.f32.gmra.mrb[114].mxu0 %vm717_vm1, %v16706_v21 }
 0x1fe   : > { %1821 = vmatprep.mubr.f32.mxu1 %v23378_v48  ;;  %2078 = vmatprep.mubr.f32.mxu0 %v23378_v48 }
 0x201   : > { %11406 = vmatmul.mubr.msk.f32.gmra.mrb[84].mxu1 %vm717_vm1, %v16717_v31  ;;  %11438 = vmatmul.mubr.msk.f32.gmra.mrb[116].mxu0 %vm717_vm1, %v16717_v31 }
 0x202   : > { %1827 = vmatprep.mubr.f32.mxu1 %v23378_v48  ;;  %2084 = vmatprep.mubr.f32.mxu0 %v23378_v48 }
 0x205   : > { %11407 = vmatmul.mubr.msk.f32.gmra.mrb[86].mxu1 %vm717_vm1, %v16728_v41  ;;  %11439 = vmatmul.mubr.msk.f32.gmra.mrb[118].mxu0 %vm717_vm1, %v16728_v41 }
 0x206   : > { %1833 = vmatprep.mubr.f32.mxu1 %v23378_v48  ;;  %2090 = vmatprep.mubr.f32.mxu0 %v23378_v48 }
 0x209   : > { %11408 = vmatmul.mubr.msk.f32.gmra.mrb[88].mxu1 %vm717_vm1, %v16739_v50  ;;  %11440 = vmatmul.mubr.msk.f32.gmra.mrb[120].mxu0 %vm717_vm1, %v16739_v50 }
 0x20a   : > { %1839 = vmatprep.mubr.f32.mxu1 %v23378_v48  ;;  %2096 = vmatprep.mubr.f32.mxu0 %v23378_v48 }
 0x20d   : > { %11409 = vmatmul.mubr.msk.f32.gmra.mrb[90].mxu1 %vm717_vm1, %v16750_v53  ;;  %11441 = vmatmul.mubr.msk.f32.gmra.mrb[122].mxu0 %vm717_vm1, %v16750_v53 }
 0x20e   : > { %1845 = vmatprep.mubr.f32.mxu1 %v23378_v48  ;;  %2102 = vmatprep.mubr.f32.mxu0 %v23378_v48 }
 0x211   : > { %11410 = vmatmul.mubr.msk.f32.gmra.mrb[92].mxu1 %vm717_vm1, %v16761_v5  ;;  %11442 = vmatmul.mubr.msk.f32.gmra.mrb[124].mxu0 %vm717_vm1, %v16761_v5 }
 0x212   : > { %1851 = vmatprep.mubr.f32.mxu1 %v23378_v48  ;;  %2108 = vmatprep.mubr.f32.mxu0 %v23378_v48 }
 0x215   : > { %11411 = vmatmul.mubr.msk.f32.gmra.mrb[94].mxu1 %vm717_vm1, %v16772_v24  ;;  %11443 = vmatmul.mubr.msk.f32.gmra.mrb[126].mxu0 %vm717_vm1, %v16772_v24 }
 0x216   : > { %1857 = vmatprep.mubr.f32.mxu1 %v23378_v48  ;;  %2114 = vmatprep.mubr.f32.mxu0 %v23378_v48 }
 0x219   : > { %11412 = vmatmul.mubr.msk.f32.gmra.mrb[96].mxu1 %vm717_vm1, %v16783_v37  ;;  %11444 = vmatmul.mubr.msk.f32.gmra.mrb[128].mxu0 %vm717_vm1, %v16783_v37 }
 0x21a   : > { %1863 = vmatprep.mubr.f32.mxu1 %v23378_v48  ;;  %2120 = vmatprep.mubr.f32.mxu0 %v23378_v48 }
 0x21d   : > { %11413 = vmatmul.mubr.msk.f32.gmra.mrb[98].mxu1 %vm717_vm1, %v16794_v61  ;;  %11445 = vmatmul.mubr.msk.f32.gmra.mrb[130].mxu0 %vm717_vm1, %v16794_v61 }
 0x21e   : > { %1869 = vmatprep.mubr.f32.mxu1 %v23378_v48  ;;  %2126 = vmatprep.mubr.f32.mxu0 %v23378_v48 }
 0x221   : > { %11414 = vmatmul.mubr.msk.f32.gmra.mrb[100].mxu1 %vm717_vm1, %v16805_v2  ;;  %11446 = vmatmul.mubr.msk.f32.gmra.mrb[132].mxu0 %vm717_vm1, %v16805_v2 }
 0x222   : > { %1875 = vmatprep.mubr.f32.mxu1 %v23378_v48  ;;  %2132 = vmatprep.mubr.f32.mxu0 %v23378_v48 }
 0x225   : > { %11415 = vmatmul.mubr.msk.f32.gmra.mrb[102].mxu1 %vm717_vm1, %v16816_v11  ;;  %11447 = vmatmul.mubr.msk.f32.gmra.mrb[134].mxu0 %vm717_vm1, %v16816_v11 }
 0x226   : > { %1881 = vmatprep.mubr.f32.mxu1 %v23378_v48  ;;  %2138 = vmatprep.mubr.f32.mxu0 %v23378_v48 }
 0x229   : > { %11416 = vmatmul.mubr.msk.f32.gmra.mrb[104].mxu1 %vm717_vm1, %v16827_v28  ;;  %11448 = vmatmul.mubr.msk.f32.gmra.mrb[136].mxu0 %vm717_vm1, %v16827_v28 }
 0x22a   : > { %1887 = vmatprep.mubr.f32.mxu1 %v23378_v48  ;;  %2144 = vmatprep.mubr.f32.mxu0 %v23378_v48 }
 0x22c   : > { %v17082_v56 = vpop.f32.mrb[0].mxu1  ;;  %v17084_v38 = vpop.f32.mrb[32].mxu0 }
 0x22d   : > { %23644 = vst [vmem:[#allocation3_spill] sm:$0xff] %v17082_v56  ;;  %23645 = vst [vmem:[#allocation4_spill] sm:$0xff] %v17084_v38  ;;  %v17086_v39 = vpop.f32.mrb[1].mxu1  ;;  %v17088_v26 = vpop.f32.mrb[33].mxu0  ;;  %11417 = vmatmul.mubr.msk.f32.gmra.mrb[106].mxu1 %vm717_vm1, %v16838_v20  ;;  %11449 = vmatmul.mubr.msk.f32.gmra.mrb[138].mxu0 %vm717_vm1, %v16838_v20 }
 0x22e   : > { %23646 = vst [vmem:[#allocation5_spill] sm:$0xff] %v17086_v39  ;;  %23647 = vst [vmem:[#allocation6_spill] sm:$0xff] %v17088_v26  ;;  %1893 = vmatprep.mubr.f32.mxu1 %v23378_v48  ;;  %2150 = vmatprep.mubr.f32.mxu0 %v23378_v48 }
 0x230   : > { %v17096_v59 = vpop.f32.mrb[2].mxu1  ;;  %v17098_v33 = vpop.f32.mrb[34].mxu0 }
 0x231   : > { %23648 = vst [vmem:[#allocation7_spill] sm:$0xff] %v17096_v59  ;;  %23649 = vst [vmem:[#allocation8_spill] sm:$0xff] %v17098_v33  ;;  %v17104_v6 = vpop.f32.mrb[3].mxu1  ;;  %v17106_v9 = vpop.f32.mrb[35].mxu0  ;;  %11418 = vmatmul.mubr.msk.f32.gmra.mrb[108].mxu1 %vm717_vm1, %v16849_v42  ;;  %11450 = vmatmul.mubr.msk.f32.gmra.mrb[140].mxu0 %vm717_vm1, %v16849_v42  ;;  %v15268_v43 = vpack.i.bf16 %v17096_v59, %v17082_v56  ;;  %v15273_v15 = vpack.i.bf16 %v17098_v33, %v17084_v38 }
 0x232   : > { %23650 = vst [vmem:[#allocation9_spill] sm:$0xff] %v17104_v6  ;;  %23651 = vst [vmem:[#allocation10_spill] sm:$0xff] %v17106_v9  ;;  %1899 = vmatprep.mubr.f32.mxu1 %v23378_v48  ;;  %2156 = vmatprep.mubr.f32.mxu0 %v23378_v48  ;;  %v15278_v12 = vpack.i.bf16 %v17104_v6, %v17086_v39  ;;  %v15283_v16 = vpack.i.bf16 %v17106_v9, %v17088_v26 }
 0x233   : > { %15269 = vrot.lane.b32.xlu0 %v15268_v43, %s15927_s20 }
 0x234   : > { %v17127_v17 = vpop.f32.mrb[36].mxu0  ;;  %15279 = vrot.lane.b32.xlu1 %v15278_v12, %s15927_s20  ;;  %v17130_v18 = vpop.f32.mrb[4].mxu1 }
 0x235   : > { %23652 = vst [vmem:[#allocation11_spill] sm:$0xff] %v17127_v17  ;;  %23653 = vst [vmem:[#allocation12_spill] sm:$0xff] %v17130_v18  ;;  %v17132_v21 = vpop.f32.mrb[5].mxu1  ;;  %v17134_v29 = vpop.f32.mrb[37].mxu0  ;;  %11419 = vmatmul.mubr.msk.f32.gmra.mrb[110].mxu1 %vm717_vm1, %v16860_v55  ;;  %11451 = vmatmul.mubr.msk.f32.gmra.mrb[142].mxu0 %vm717_vm1, %v16860_v55 }
 0x236   : > { %23654 = vst [vmem:[#allocation13_spill] sm:$0xff] %v17132_v21  ;;  %23655 = vst [vmem:[#allocation14_spill] sm:$0xff] %v17134_v29  ;;  %1905 = vmatprep.mubr.f32.mxu1 %v23378_v48  ;;  %2162 = vmatprep.mubr.f32.mxu0 %v23378_v48 }
 0x237   : > { %15274 = vrot.lane.b32.xlu0 %v15273_v15, %s15927_s20 }
 0x238   : > { %v17143_v31 = vpop.f32.mrb[38].mxu0  ;;  %15284 = vrot.lane.b32.xlu1 %v15283_v16, %s15927_s20  ;;  %v17146_v35 = vpop.f32.mrb[6].mxu1 }
 0x239   : > { %23656 = vst [vmem:[#allocation15_spill] sm:$0xff] %v17143_v31  ;;  %23657 = vst [vmem:[#allocation16_spill] sm:$0xff] %v17146_v35  ;;  %v17152_v50 = vpop.f32.mrb[7].mxu1  ;;  %v17154_v52 = vpop.f32.mrb[39].mxu0  ;;  %11420 = vmatmul.mubr.msk.f32.gmra.mrb[112].mxu1 %vm717_vm1, %v16871_v46  ;;  %11452 = vmatmul.mubr.msk.f32.gmra.mrb[144].mxu0 %vm717_vm1, %v16871_v46  ;;  %v15293_v53 = vpack.i.bf16 %v17143_v31, %v17127_v17  ;;  %v15288_v19 = vpack.i.bf16 %v17146_v35, %v17130_v18 }
 0x23a   : > { %23658 = vst [vmem:[#allocation17_spill] sm:$0xff] %v17152_v50  ;;  %23659 = vst [vmem:[#allocation18_spill] sm:$0xff] %v17154_v52  ;;  %1911 = vmatprep.mubr.f32.mxu1 %v23378_v48  ;;  %2168 = vmatprep.mubr.f32.mxu0 %v23378_v48  ;;  %v15298_v24 = vpack.i.bf16 %v17152_v50, %v17132_v21  ;;  %v15303_v27 = vpack.i.bf16 %v17154_v52, %v17134_v29 }
 0x23b   : > { %15294 = vrot.lane.b32.xlu0 %v15293_v53, %s15927_s20 }
 0x23c   : > { %v17175_v37 = vpop.f32.mrb[40].mxu0  ;;  %15289 = vrot.lane.b32.xlu1 %v15288_v19, %s15927_s20  ;;  %v17178_v54 = vpop.f32.mrb[8].mxu1 }
 0x23d   : > { %23660 = vst [vmem:[#allocation19_spill] sm:$0xff] %v17175_v37  ;;  %23661 = vst [vmem:[#allocation20_spill] sm:$0xff] %v17178_v54  ;;  %v17180_v61 = vpop.f32.mrb[9].mxu1  ;;  %v17182_v62 = vpop.f32.mrb[41].mxu0  ;;  %11421 = vmatmul.mubr.msk.f32.gmra.mrb[114].mxu1 %vm717_vm1, %v16882_v44  ;;  %11453 = vmatmul.mubr.msk.f32.gmra.mrb[146].mxu0 %vm717_vm1, %v16882_v44 }
 0x23e   : > { %23662 = vst [vmem:[#allocation21_spill] sm:$0xff] %v17180_v61  ;;  %23663 = vst [vmem:[#allocation22_spill] sm:$0xff] %v17182_v62  ;;  %1917 = vmatprep.mubr.f32.mxu1 %v23378_v48  ;;  %2174 = vmatprep.mubr.f32.mxu0 %v23378_v48 }
 0x240   : > { %v17190_v2 = vpop.f32.mrb[42].mxu0  ;;  %15299 = vrot.lane.b32.xlu1 %v15298_v24, %s15927_s20  ;;  %v17193_v13 = vpop.f32.mrb[10].mxu1 }
 0x241   : > { %23664 = vst [vmem:[#allocation23_spill] sm:$0xff] %v17190_v2  ;;  %23665 = vst [vmem:[#allocation24_spill] sm:$0xff] %v17193_v13  ;;  %v17199_v28 = vpop.f32.mrb[11].mxu1  ;;  %v17201_v22 = vpop.f32.mrb[43].mxu0  ;;  %11422 = vmatmul.mubr.msk.f32.gmra.mrb[116].mxu1 %vm717_vm1, %v16893_v49  ;;  %11454 = vmatmul.mubr.msk.f32.gmra.mrb[148].mxu0 %vm717_vm1, %v16893_v49  ;;  %v15313_v20 = vpack.i.bf16 %v17190_v2, %v17175_v37  ;;  %v15308_v40 = vpack.i.bf16 %v17193_v13, %v17178_v54 }
 0x242   : > { %23666 = vst [vmem:[#allocation25_spill] sm:$0xff] %v17199_v28  ;;  %23667 = vst [vmem:[#allocation26_spill] sm:$0xff] %v17201_v22  ;;  %1923 = vmatprep.mubr.f32.mxu1 %v23378_v48  ;;  %2180 = vmatprep.mubr.f32.mxu0 %v23378_v48  ;;  %v15318_v55 = vpack.i.bf16 %v17199_v28, %v17180_v61  ;;  %v15323_v32 = vpack.i.bf16 %v17201_v22, %v17182_v62 }
 0x243   : > { %15314 = vrot.lane.b32.xlu0 %v15313_v20, %s15927_s20 }
 0x244   : > { %v17222_v46 = vpop.f32.mrb[44].mxu0  ;;  %15304 = vrot.lane.b32.xlu1 %v15303_v27, %s15927_s20  ;;  %v17225_v14 = vpop.f32.mrb[12].mxu1 }
 0x245   : > { %23668 = vst [vmem:[#allocation27_spill] sm:$0xff] %v17222_v46  ;;  %23669 = vst [vmem:[#allocation28_spill] sm:$0xff] %v17225_v14  ;;  %v17227_v44 = vpop.f32.mrb[13].mxu1  ;;  %v17229_v8 = vpop.f32.mrb[45].mxu0  ;;  %11423 = vmatmul.mubr.msk.f32.gmra.mrb[118].mxu1 %vm717_vm1, %v16904_v4  ;;  %11455 = vmatmul.mubr.msk.f32.gmra.mrb[150].mxu0 %vm717_vm1, %v16904_v4 }
 0x246   : > { %23670 = vst [vmem:[#allocation29_spill] sm:$0xff] %v17227_v44  ;;  %23671 = vst [vmem:[#allocation30_spill] sm:$0xff] %v17229_v8  ;;  %1929 = vmatprep.mubr.f32.mxu1 %v23378_v48  ;;  %2186 = vmatprep.mubr.f32.mxu0 %v23378_v48 }
 0x248   : > { %v17237_v49 = vpop.f32.mrb[46].mxu0  ;;  %15309 = vrot.lane.b32.xlu1 %v15308_v40, %s15927_s20  ;;  %v17240_v30 = vpop.f32.mrb[14].mxu1 }
 0x249   : > { %23672 = vst [vmem:[#allocation31_spill] sm:$0xff] %v17237_v49  ;;  %23673 = vst [vmem:[#allocation32_spill] sm:$0xff] %v17240_v30  ;;  %v17246_v1 = vpop.f32.mrb[15].mxu1  ;;  %v17248_v57 = vpop.f32.mrb[47].mxu0  ;;  %11424 = vmatmul.mubr.msk.f32.gmra.mrb[120].mxu1 %vm717_vm1, %v16915_v63  ;;  %11456 = vmatmul.mubr.msk.f32.gmra.mrb[152].mxu0 %vm717_vm1, %v16915_v63  ;;  %v15333_v4 = vpack.i.bf16 %v17237_v49, %v17222_v46  ;;  %v15328_v15 = vpack.i.bf16 %v17240_v30, %v17225_v14 }
 0x24a   : > { %23674 = vst [vmem:[#allocation33_spill] sm:$0xff] %v17246_v1  ;;  %23675 = vst [vmem:[#allocation34_spill] sm:$0xff] %v17248_v57  ;;  %1935 = vmatprep.mubr.f32.mxu1 %v23378_v48  ;;  %2192 = vmatprep.mubr.f32.mxu0 %v23378_v48  ;;  %v15338_v63 = vpack.i.bf16 %v17246_v1, %v17227_v44  ;;  %v15343_v16 = vpack.i.bf16 %v17248_v57, %v17229_v8 }
 0x24b   : > { %15334 = vrot.lane.b32.xlu0 %v15333_v4, %s15927_s20 }
 0x24c   : > { %v17269_v53 = vpop.f32.mrb[48].mxu0  ;;  %15319 = vrot.lane.b32.xlu1 %v15318_v55, %s15927_s20  ;;  %v17272_v19 = vpop.f32.mrb[16].mxu1 }
 0x24d   : > { %23676 = vst [vmem:[#allocation35_spill] sm:$0xff] %v17269_v53  ;;  %23677 = vst [vmem:[#allocation36_spill] sm:$0xff] %v17272_v19  ;;  %v17274_v24 = vpop.f32.mrb[17].mxu1  ;;  %v17276_v27 = vpop.f32.mrb[49].mxu0  ;;  %11425 = vmatmul.mubr.msk.f32.gmra.mrb[122].mxu1 %vm717_vm1, %v16926_v0  ;;  %11457 = vmatmul.mubr.msk.f32.gmra.mrb[154].mxu0 %vm717_vm1, %v16926_v0 }
 0x24e   : > { %23678 = vst [vmem:[#allocation37_spill] sm:$0xff] %v17274_v24  ;;  %23679 = vst [vmem:[#allocation38_spill] sm:$0xff] %v17276_v27  ;;  %1941 = vmatprep.mubr.f32.mxu1 %v23378_v48  ;;  %2198 = vmatprep.mubr.f32.mxu0 %v23378_v48 }
 0x250   : > { %v17284_v20 = vpop.f32.mrb[50].mxu0  ;;  %15324 = vrot.lane.b32.xlu1 %v15323_v32, %s15927_s20  ;;  %v17287_v40 = vpop.f32.mrb[18].mxu1 }
 0x251   : > { %23680 = vst [vmem:[#allocation39_spill] sm:$0xff] %v17284_v20  ;;  %23681 = vst [vmem:[#allocation40_spill] sm:$0xff] %v17287_v40  ;;  %v17293_v12 = vpop.f32.mrb[19].mxu1  ;;  %v17295_v60 = vpop.f32.mrb[51].mxu0  ;;  %11426 = vmatmul.mubr.msk.f32.gmra.mrb[124].mxu1 %vm717_vm1, %v16937_v25  ;;  %11458 = vmatmul.mubr.msk.f32.gmra.mrb[156].mxu0 %vm717_vm1, %v16937_v25  ;;  %v15353_v0 = vpack.i.bf16 %v17284_v20, %v17269_v53  ;;  %v15348_v42 = vpack.i.bf16 %v17287_v40, %v17272_v19 }
 0x252   : > { %23682 = vst [vmem:[#allocation41_spill] sm:$0xff] %v17293_v12  ;;  %23683 = vst [vmem:[#allocation42_spill] sm:$0xff] %v17295_v60  ;;  %1947 = vmatprep.mubr.f32.mxu1 %v23378_v48  ;;  %2204 = vmatprep.mubr.f32.mxu0 %v23378_v48  ;;  %v15358_v25 = vpack.i.bf16 %v17293_v12, %v17274_v24  ;;  %v15363_v11 = vpack.i.bf16 %v17295_v60, %v17276_v27 }
 0x253   : > { %15354 = vrot.lane.b32.xlu0 %v15353_v0, %s15927_s20 }
 0x254   : > { %v17316_v5 = vpop.f32.mrb[52].mxu0  ;;  %15329 = vrot.lane.b32.xlu1 %v15328_v15, %s15927_s20  ;;  %v17319_v55 = vpop.f32.mrb[20].mxu1 }
 0x255   : > { %23684 = vst [vmem:[#allocation43_spill] sm:$0xff] %v17316_v5  ;;  %23685 = vst [vmem:[#allocation44_spill] sm:$0xff] %v17319_v55  ;;  %v17321_v41 = vpop.f32.mrb[21].mxu1  ;;  %v17323_v48 = vpop.f32.mrb[53].mxu0  ;;  %11427 = vmatmul.mubr.msk.f32.gmra.mrb[126].mxu1 %vm717_vm1, %v16948_v23  ;;  %11459 = vmatmul.mubr.msk.f32.gmra.mrb[158].mxu0 %vm717_vm1, %v16948_v23  ;;  %vm5242_vm1 = vcmask 523264  }
 0x256   : > { %23686 = vst [vmem:[#allocation45_spill] sm:$0xff] %v17321_v41  ;;  %23687 = vst [vmem:[#allocation46_spill] sm:$0xff] %v17323_v48 }
 0x258   : > { %v17329_v0 = vpop.f32.mrb[54].mxu0  ;;  %15339 = vrot.lane.b32.xlu1 %v15338_v63, %s15927_s20  ;;  %v17332_v36 = vpop.f32.mrb[22].mxu1 }
 0x259   : > { %23688 = vst [vmem:[#allocation47_spill] sm:$0xff] %v17329_v0  ;;  %23689 = vst [vmem:[#allocation48_spill] sm:$0xff] %v17332_v36  ;;  %v17338_v32 = vpop.f32.mrb[23].mxu1  ;;  %v17340_v4 = vpop.f32.mrb[55].mxu0  ;;  %v15373_v43 = vpack.i.bf16 %v17329_v0, %v17316_v5  ;;  %v15368_v23 = vpack.i.bf16 %v17332_v36, %v17319_v55 }
 0x25a   : > { %23690 = vst [vmem:[#allocation49_spill] sm:$0xff] %v17338_v32  ;;  %23691 = vst [vmem:[#allocation50_spill] sm:$0xff] %v17340_v4  ;;  %v15378_v15 = vpack.i.bf16 %v17338_v32, %v17321_v41  ;;  %v15383_v3 = vpack.i.bf16 %v17340_v4, %v17323_v48 }
 0x25b   : > { %15374 = vrot.lane.b32.xlu0 %v15373_v43, %s15927_s20 }
 0x25c   : > { %v17355_v34 = vpop.f32.mrb[56].mxu0  ;;  %15344 = vrot.lane.b32.xlu1 %v15343_v16, %s15927_s20  ;;  %v17358_v7 = vpop.f32.mrb[24].mxu1 }
 0x25d   : > { %23692 = vst [vmem:[#allocation51_spill] sm:$0xff] %v17355_v34  ;;  %23693 = vst [vmem:[#allocation52_spill] sm:$0xff] %v17358_v7  ;;  %v17360_v58 = vpop.f32.mrb[25].mxu1  ;;  %v17362_v63 = vpop.f32.mrb[57].mxu0 }
 0x25e   : > { %23694 = vst [vmem:[#allocation53_spill] sm:$0xff] %v17360_v58  ;;  %23695 = vst [vmem:[#allocation54_spill] sm:$0xff] %v17362_v63 }
 0x260   : > { %v17364_v45 = vpop.f32.mrb[58].mxu0  ;;  %15349 = vrot.lane.b32.xlu1 %v15348_v42, %s15927_s20  ;;  %v17367_v51 = vpop.f32.mrb[26].mxu1 }
 0x261   : > { %23696 = vst [vmem:[#allocation55_spill] sm:$0xff] %v17364_v45  ;;  %23697 = vst [vmem:[#allocation56_spill] sm:$0xff] %v17367_v51  ;;  %v17373_v10 = vpop.f32.mrb[27].mxu1  ;;  %v17375_v16 = vpop.f32.mrb[59].mxu0  ;;  %v15393_v48 = vpack.i.bf16 %v17364_v45, %v17355_v34  ;;  %v15388_v4 = vpack.i.bf16 %v17367_v51, %v17358_v7 }
 0x262   : > { %23698 = vst [vmem:[#allocation57_spill] sm:$0xff] %v17373_v10  ;;  %23699 = vst [vmem:[#allocation58_spill] sm:$0xff] %v17375_v16  ;;  %v15398_v47 = vpack.i.bf16 %v17373_v10, %v17360_v58  ;;  %v23729_v9 = vpack.i.bf16 %v17375_v16, %v17362_v63 }
 0x263   : > { %15394 = vrot.lane.b32.xlu0 %v15393_v48, %s15927_s20 }
 0x264   : > { %v17390_v0 = vpop.f32.mrb[60].mxu0  ;;  %15359 = vrot.lane.b32.xlu1 %v15358_v25, %s15927_s20  ;;  %v17393_v34 = vpop.f32.mrb[28].mxu1 }
 0x265   : > { %23700 = vst [vmem:[#allocation59_spill] sm:$0xff] %v17390_v0  ;;  %23701 = vst [vmem:[#allocation60_spill] sm:$0xff] %v17393_v34  ;;  %v17395_v45 = vpop.f32.mrb[29].mxu1  ;;  %v17397_v42 = vpop.f32.mrb[61].mxu0 }
 0x266   : > { %23702 = vst [vmem:[#allocation61_spill] sm:$0xff] %v17395_v45  ;;  %23703 = vst [vmem:[#allocation62_spill] sm:$0xff] %v17397_v42 }
 0x268   : > { %v17399_v27 = vpop.f32.mrb[62].mxu0  ;;  %15364 = vrot.lane.b32.xlu1 %v15363_v11, %s15927_s20  ;;  %v17402_v5 = vpop.f32.mrb[30].mxu1 }
 0x269   : > { %23704 = vst [vmem:[#allocation63_spill] sm:$0xff] %v17399_v27  ;;  %23705 = vst [vmem:[#allocation64_spill] sm:$0xff] %v17402_v5  ;;  %v17408_v60 = vpop.f32.mrb[31].mxu1  ;;  %v17410_v25 = vpop.f32.mrb[63].mxu0  ;;  %v15413_v53 = vpack.i.bf16 %v17399_v27, %v17390_v0  ;;  %v23734_v33 = vpack.i.bf16 %v17402_v5, %v17393_v34 }
 0x26a   : > { %23706 = vst [vmem:[#allocation65_spill] sm:$0xff] %v17408_v60  ;;  %23707 = vst [vmem:[#allocation66_spill] sm:$0xff] %v17410_v25  ;;  %v23744_v58 = vpack.i.bf16 %v17410_v25, %v17397_v42 }
 0x26b   : > { %15414 = vrot.lane.b32.xlu0 %v15413_v53, %s15927_s20 }
 0x26c   : > { %v17425_v57 = vpop.f32.mrb[64].mxu0  ;;  %15369 = vrot.lane.b32.xlu1 %v15368_v23, %s15927_s20  ;;  %v17428_v0 = vpop.f32.mrb[32].mxu1 }
 0x26d   : > { %23708 = vst [vmem:[#allocation67_spill] sm:$0xff] %v17425_v57  ;;  %23709 = vst [vmem:[#allocation68_spill] sm:$0xff] %v17428_v0  ;;  %v17430_v20 = vpop.f32.mrb[33].mxu1  ;;  %v17432_v11 = vpop.f32.mrb[65].mxu0 }
 0x26e   : > { %23710 = vst [vmem:[#allocation69_spill] sm:$0xff] %v17430_v20  ;;  %23711 = vst [vmem:[#allocation70_spill] sm:$0xff] %v17432_v11 }
 0x270   : > { %v17434_v27 = vpop.f32.mrb[66].mxu0  ;;  %15379 = vrot.lane.b32.xlu1 %v15378_v15, %s15927_s20  ;;  %v17437_v8 = vpop.f32.mrb[34].mxu1 }
 0x271   : > { %23712 = vst [vmem:[#allocation71_spill] sm:$0xff] %v17434_v27  ;;  %23713 = vst [vmem:[#allocation72_spill] sm:$0xff] %v17437_v8  ;;  %v17439_v43 = vpop.f32.mrb[35].mxu1  ;;  %v17441_v48 = vpop.f32.mrb[67].mxu0  ;;  %v15428_v53 = vpack.i.bf16 %v17437_v8, %v17428_v0  ;;  %v15433_v23 = vpack.i.bf16 %v17434_v27, %v17425_v57 }
 0x272   : > { %23714 = vst [vmem:[#allocation73_spill] sm:$0xff] %v17439_v43  ;;  %23715 = vst [vmem:[#allocation74_spill] sm:$0xff] %v17441_v48  ;;  %v15438_v15 = vpack.i.bf16 %v17439_v43, %v17430_v20 }
 0x273   : > { %15429 = vrot.lane.b32.xlu0 %v15428_v53, %s15927_s20 }
 0x274   : > { %v17460_v2 = vpop.f32.mrb[68].mxu0  ;;  %15384 = vrot.lane.b32.xlu1 %v15383_v3, %s15927_s20  ;;  %v17463_v46 = vpop.f32.mrb[36].mxu1 }
 0x275   : > { %23716 = vst [vmem:[#allocation75_spill] sm:$0xff] %v17460_v2  ;;  %23717 = vst [vmem:[#allocation76_spill] sm:$0xff] %v17463_v46  ;;  %v17465_v49 = vpop.f32.mrb[37].mxu1  ;;  %v17467_v29 = vpop.f32.mrb[69].mxu0 }
 0x276   : > { %23718 = vst [vmem:[#allocation77_spill] sm:$0xff] %v17465_v49  ;;  %23719 = vst [vmem:[#allocation78_spill] sm:$0xff] %v17467_v29 }
 0x277   : > { %15434 = vrot.lane.b32.xlu0 %v15433_v23, %s15927_s20 }
 0x278   : > { %v17470_v62 = vpop.f32.mrb[70].mxu0  ;;  %15389 = vrot.lane.b32.xlu1 %v15388_v4, %s15927_s20  ;;  %v17473_v22 = vpop.f32.mrb[38].mxu1 }
 0x279   : > { %23720 = vst [vmem:[#allocation79_spill] sm:$0xff] %v17470_v62  ;;  %23721 = vst [vmem:[#allocation80_spill] sm:$0xff] %v17473_v22  ;;  %v17475_v37 = vpop.f32.mrb[39].mxu1  ;;  %v17477_v53 = vpop.f32.mrb[71].mxu0  ;;  %v15453_v3 = vpack.i.bf16 %v17470_v62, %v17460_v2 }
 0x27a   : > { %23722 = vst [vmem:[#allocation81_spill] sm:$0xff] %v17475_v37  ;;  %23723 = vst [vmem:[#allocation82_spill] sm:$0xff] %v17477_v53  ;;  %v15458_v4 = vpack.i.bf16 %v17475_v37, %v17465_v49 }
 0x27b   : > { %15439 = vrot.lane.b32.xlu0 %v15438_v15, %s15927_s20 }
 0x27c   : > { %v17496_v52 = vpop.f32.mrb[72].mxu0  ;;  %15399 = vrot.lane.b32.xlu1 %v15398_v47, %s15927_s20  ;;  %v17499_v17 = vpop.f32.mrb[40].mxu1 }
 0x27d   : > { %23724 = vst [vmem:[#allocation83_spill] sm:$0xff] %v17496_v52  ;;  %23725 = vst [vmem:[#allocation84_spill] sm:$0xff] %v17499_v17  ;;  %v17501_v23 = vpop.f32.mrb[41].mxu1  ;;  %v17503_v2 = vpop.f32.mrb[73].mxu0 }
 0x27e   : > { %23726 = vst [vmem:[#allocation85_spill] sm:$0xff] %v17501_v23  ;;  %23727 = vst [vmem:[#allocation86_spill] sm:$0xff] %v17503_v2 }
 0x27f   : > { %15454 = vrot.lane.b32.xlu0 %v15453_v3, %s15927_s20 }
 0x280   : > { %v17506_v31 = vpop.f32.mrb[74].mxu0  ;;  %15404 = vrot.lane.b32.xlu1 %v23729_v9, %s15927_s20  ;;  %v17512_v15 = vpop.f32.mrb[42].mxu1 }
 0x281   : > { %23728 = vst [vmem:[#allocation87_spill] sm:$0xff] %v17506_v31  ;;  %23730 = vst [vmem:[#allocation88_spill] sm:$0xff] %v17512_v15  ;;  %v17514_v26 = vpop.f32.mrb[43].mxu1  ;;  %v17516_v47 = vpop.f32.mrb[75].mxu0  ;;  %v15468_v62 = vpack.i.bf16 %v17512_v15, %v17499_v17  ;;  %v15473_v38 = vpack.i.bf16 %v17506_v31, %v17496_v52 }
 0x282   : > { %23731 = vst [vmem:[#allocation89_spill] sm:$0xff] %v17514_v26  ;;  %23732 = vst [vmem:[#allocation90_spill] sm:$0xff] %v17516_v47  ;;  %v15478_v9 = vpack.i.bf16 %v17514_v26, %v17501_v23  ;;  %v23764_v55 = vpack.i.bf16 %v17516_v47, %v17503_v2 }
 0x283   : > { %15459 = vrot.lane.b32.xlu0 %v15458_v4, %s15927_s20  ;;  %v23739_v4 = vpack.i.bf16 %v17408_v60, %v17395_v45 }
 0x284   : > { %v17535_v27 = vpop.f32.mrb[76].mxu0  ;;  %15409 = vrot.lane.b32.xlu1 %v23734_v33, %s15927_s20  ;;  %v17541_v3 = vpop.f32.mrb[44].mxu1 }
 0x285   : > { %23733 = vst [vmem:[#allocation91_spill] sm:$0xff] %v17535_v27  ;;  %23735 = vst [vmem:[#allocation92_spill] sm:$0xff] %v17541_v3  ;;  %v17543_v52 = vpop.f32.mrb[45].mxu1  ;;  %v17545_v63 = vpop.f32.mrb[77].mxu0 }
 0x286   : > { %23736 = vst [vmem:[#allocation93_spill] sm:$0xff] %v17543_v52  ;;  %23737 = vst [vmem:[#allocation94_spill] sm:$0xff] %v17545_v63 }
 0x287   : > { %15469 = vrot.lane.b32.xlu0 %v15468_v62, %s15927_s20 }
 0x288   : > { %v17548_v16 = vpop.f32.mrb[78].mxu0  ;;  %15419 = vrot.lane.b32.xlu1 %v23739_v4, %s15927_s20  ;;  %v17554_v57 = vpop.f32.mrb[46].mxu1 }
 0x289   : > { %23738 = vst [vmem:[#allocation95_spill] sm:$0xff] %v17548_v16  ;;  %23740 = vst [vmem:[#allocation96_spill] sm:$0xff] %v17554_v57  ;;  %v17556_v31 = vpop.f32.mrb[47].mxu1  ;;  %v17558_v33 = vpop.f32.mrb[79].mxu0  ;;  %v15488_v34 = vpack.i.bf16 %v17554_v57, %v17541_v3  ;;  %v15493_v5 = vpack.i.bf16 %v17548_v16, %v17535_v27 }
 0x28a   : > { %23741 = vst [vmem:[#allocation97_spill] sm:$0xff] %v17556_v31  ;;  %23742 = vst [vmem:[#allocation98_spill] sm:$0xff] %v17558_v33  ;;  %v15498_v4 = vpack.i.bf16 %v17556_v31, %v17543_v52  ;;  %v15503_v45 = vpack.i.bf16 %v17558_v33, %v17545_v63  ;;  %v23754_v33 = vpack.i.bf16 %v17473_v22, %v17463_v46 }
 0x28b   : > { %15474 = vrot.lane.b32.xlu0 %v15473_v38, %s15927_s20  ;;  %v23749_v38 = vpack.i.bf16 %v17441_v48, %v17432_v11 }
 0x28c   : > { %v17577_v7 = vpop.f32.mrb[80].mxu0  ;;  %15424 = vrot.lane.b32.xlu1 %v23744_v58, %s15927_s20  ;;  %v17583_v62 = vpop.f32.mrb[48].mxu1 }
 0x28d   : > { %23743 = vst [vmem:[#allocation99_spill] sm:$0xff] %v17577_v7  ;;  %23745 = vst [vmem:[#allocation100_spill] sm:$0xff] %v17583_v62  ;;  %v17585_v27 = vpop.f32.mrb[49].mxu1  ;;  %v17587_v16 = vpop.f32.mrb[81].mxu0 }
 0x28e   : > { %23746 = vst [vmem:[#allocation101_spill] sm:$0xff] %v17585_v27  ;;  %23747 = vst [vmem:[#allocation102_spill] sm:$0xff] %v17587_v16 }
 0x28f   : > { %15479 = vrot.lane.b32.xlu0 %v15478_v9, %s15927_s20 }
 0x290   : > { %v17590_v60 = vpop.f32.mrb[82].mxu0  ;;  %15444 = vrot.lane.b32.xlu1 %v23749_v38, %s15927_s20  ;;  %v17596_v10 = vpop.f32.mrb[50].mxu1 }
 0x291   : > { %23748 = vst [vmem:[#allocation103_spill] sm:$0xff] %v17590_v60  ;;  %23750 = vst [vmem:[#allocation104_spill] sm:$0xff] %v17596_v10  ;;  %v17598_v63 = vpop.f32.mrb[51].mxu1  ;;  %v17600_v58 = vpop.f32.mrb[83].mxu0  ;;  %v15508_v42 = vpack.i.bf16 %v17596_v10, %v17583_v62  ;;  %v15513_v25 = vpack.i.bf16 %v17590_v60, %v17577_v7 }
 0x292   : > { %23751 = vst [vmem:[#allocation105_spill] sm:$0xff] %v17598_v63  ;;  %23752 = vst [vmem:[#allocation106_spill] sm:$0xff] %v17600_v58  ;;  %v15523_v38 = vpack.i.bf16 %v17600_v58, %v17587_v16  ;;  %v15518_v11 = vpack.i.bf16 %v17598_v63, %v17585_v27 }
 0x293   : > { %15489 = vrot.lane.b32.xlu0 %v15488_v34, %s15927_s20  ;;  %v23759_v34 = vpack.i.bf16 %v17477_v53, %v17467_v29 }
 0x294   : > { %v17619_v41 = vpop.f32.mrb[84].mxu0  ;;  %15449 = vrot.lane.b32.xlu1 %v23754_v33, %s15927_s20  ;;  %v17625_v9 = vpop.f32.mrb[52].mxu1 }
 0x295   : > { %23753 = vst [vmem:[#allocation107_spill] sm:$0xff] %v17619_v41  ;;  %23755 = vst [vmem:[#allocation108_spill] sm:$0xff] %v17625_v9  ;;  %v17627_v7 = vpop.f32.mrb[53].mxu1  ;;  %v17629_v60 = vpop.f32.mrb[85].mxu0 }
 0x296   : > { %23756 = vst [vmem:[#allocation109_spill] sm:$0xff] %v17627_v7  ;;  %23757 = vst [vmem:[#allocation110_spill] sm:$0xff] %v17629_v60 }
 0x297   : > { %15494 = vrot.lane.b32.xlu0 %v15493_v5, %s15927_s20 }
 0x298   : > { %v17632_v48 = vpop.f32.mrb[86].mxu0  ;;  %15464 = vrot.lane.b32.xlu1 %v23759_v34, %s15927_s20  ;;  %v17638_v51 = vpop.f32.mrb[54].mxu1 }
 0x299   : > { %23758 = vst [vmem:[#allocation111_spill] sm:$0xff] %v17632_v48  ;;  %23760 = vst [vmem:[#allocation112_spill] sm:$0xff] %v17638_v51  ;;  %v17640_v16 = vpop.f32.mrb[55].mxu1  ;;  %v17642_v33 = vpop.f32.mrb[87].mxu0  ;;  %v15528_v58 = vpack.i.bf16 %v17638_v51, %v17625_v9  ;;  %v15533_v32 = vpack.i.bf16 %v17632_v48, %v17619_v41 }
 0x29a   : > { %23761 = vst [vmem:[#allocation113_spill] sm:$0xff] %v17640_v16  ;;  %23762 = vst [vmem:[#allocation114_spill] sm:$0xff] %v17642_v33  ;;  %v15543_v34 = vpack.i.bf16 %v17642_v33, %v17629_v60  ;;  %v23788_v44 = vpack.i.bf16 %v17640_v16, %v17627_v7 }
 0x29b   : > { %15499 = vrot.lane.b32.xlu0 %v15498_v4, %s15927_s20 }
 0x29c   : > { %v17661_v24 = vpop.f32.mrb[88].mxu0  ;;  %15484 = vrot.lane.b32.xlu1 %v23764_v55, %s15927_s20  ;;  %v17667_v5 = vpop.f32.mrb[56].mxu1 }
 0x29d   : > { %23763 = vst [vmem:[#allocation115_spill] sm:$0xff] %v17661_v24  ;;  %23765 = vst [vmem:[#allocation116_spill] sm:$0xff] %v17667_v5  ;;  %v17669_v41 = vpop.f32.mrb[57].mxu1  ;;  %v17671_v29 = vpop.f32.mrb[89].mxu0 }
 0x29e   : > { %23766 = vst [vmem:[#allocation117_spill] sm:$0xff] %v17669_v41  ;;  %23767 = vst [vmem:[#allocation118_spill] sm:$0xff] %v17671_v29 }
 0x29f   : > { %15509 = vrot.lane.b32.xlu0 %v15508_v42, %s15927_s20 }
 0x2a0   : > { %v17674_v53 = vpop.f32.mrb[90].mxu0  ;;  %15504 = vrot.lane.b32.xlu1 %v15503_v45, %s15927_s20  ;;  %v17677_v4 = vpop.f32.mrb[58].mxu1 }
 0x2a1   : > { %23768 = vst [vmem:[#allocation119_spill] sm:$0xff] %v17674_v53  ;;  %23769 = vst [vmem:[#allocation120_spill] sm:$0xff] %v17677_v4  ;;  %v17679_v36 = vpop.f32.mrb[59].mxu1  ;;  %v17681_v60 = vpop.f32.mrb[91].mxu0  ;;  %v15548_v55 = vpack.i.bf16 %v17677_v4, %v17667_v5  ;;  %v23797_v14 = vpack.i.bf16 %v17674_v53, %v17661_v24 }
 0x2a2   : > { %23770 = vst [vmem:[#allocation121_spill] sm:$0xff] %v17679_v36  ;;  %23771 = vst [vmem:[#allocation122_spill] sm:$0xff] %v17681_v60  ;;  %v15563_v45 = vpack.i.bf16 %v17681_v60, %v17671_v29 }
 0x2a3   : > { %15514 = vrot.lane.b32.xlu0 %v15513_v25, %s15927_s20 }
 0x2a4   : > { %v17700_v33 = vpop.f32.mrb[92].mxu0  ;;  %15524 = vrot.lane.b32.xlu1 %v15523_v38, %s15927_s20  ;;  %v17703_v48 = vpop.f32.mrb[60].mxu1 }
 0x2a5   : > { %23772 = vst [vmem:[#allocation123_spill] sm:$0xff] %v17700_v33  ;;  %23773 = vst [vmem:[#allocation124_spill] sm:$0xff] %v17703_v48  ;;  %v17705_v42 = vpop.f32.mrb[93].mxu0  ;;  %v17707_v5 = vpop.f32.mrb[61].mxu1 }
 0x2a6   : > { %23774 = vst [vmem:[#allocation125_spill] sm:$0xff] %v17705_v42  ;;  %23775 = vst [vmem:[#allocation126_spill] sm:$0xff] %v17707_v5  ;;  %v17709_v4 = vpop.permute.xlu1 %15279 }
 0x2a7   : > { %15519 = vrot.lane.b32.xlu0 %v15518_v11, %s15927_s20 }
 0x2a8   : > { %v17712_v47 = vpop.f32.mrb[94].mxu0  ;;  %15544 = vrot.lane.b32.xlu1 %v15543_v34, %s15927_s20  ;;  %v17715_v12 = vpop.f32.mrb[62].mxu1 }
 0x2a9   : > { %23776 = vst [vmem:[#allocation127_spill] sm:$0xff] %v17712_v47  ;;  %23777 = vst [vmem:[#allocation128_spill] sm:$0xff] %v17715_v12  ;;  %v17717_v25 = vpop.f32.mrb[95].mxu0  ;;  %v17725_v60 = vpop.f32.mrb[63].mxu1  ;;  %v23808_v61 = vpack.i.bf16 %v17715_v12, %v17703_v48 }
 0x2aa   : > { %23778 = vst [vmem:[#allocation129_spill] sm:$0xff] %v17717_v25  ;;  %23779 = vst [vmem:[#allocation130_spill] sm:$0xff] %v17725_v60  ;;  %v17727_v11 = vpop.permute.xlu1 %15284  ;;  %v15583_v34 = vpack.i.bf16 %v17717_v25, %v17705_v42  ;;  %v23816_v12 = vpack.i.bf16 %v17725_v60, %v17707_v5 }
 0x2ab   : > { %15529 = vrot.lane.b32.xlu0 %v15528_v58, %s15927_s20 }
 0x2ac   : > { %v17738_v51 = vpop.f32.mrb[96].mxu0  ;;  %15564 = vrot.lane.b32.xlu1 %v15563_v45, %s15927_s20  ;;  %v17741_v29 = vpop.f32.mrb[64].mxu1 }
 0x2ad   : > { %23780 = vst [vmem:[#allocation131_spill] sm:$0xff] %v17738_v51  ;;  %23781 = vst [vmem:[#allocation132_spill] sm:$0xff] %v17741_v29  ;;  %v17745_v40 = vpop.f32.mrb[97].mxu0  ;;  %v17747_v9 = vpop.f32.mrb[65].mxu1 }
 0x2ae   : > { %23782 = vst [vmem:[#allocation133_spill] sm:$0xff] %v17745_v40  ;;  %23783 = vst [vmem:[#allocation134_spill] sm:$0xff] %v17747_v9  ;;  %v17749_v58 = vpop.permute.xlu1 %15289 }
 0x2af   : > { %15534 = vrot.lane.b32.xlu0 %v15533_v32, %s15927_s20 }
 0x2b0   : > { %v17752_v38 = vpop.f32.mrb[98].mxu0  ;;  %15584 = vrot.lane.b32.xlu1 %v15583_v34, %s15927_s20  ;;  %v17755_v2 = vpop.f32.mrb[66].mxu1 }
 0x2b1   : > { %23784 = vst [vmem:[#allocation135_spill] sm:$0xff] %v17752_v38  ;;  %23785 = vst [vmem:[#allocation136_spill] sm:$0xff] %v17755_v2  ;;  %v17761_v42 = vpop.f32.mrb[67].mxu1  ;;  %v17763_v25 = vpop.f32.mrb[99].mxu0  ;;  %v23825_v13 = vpack.i.bf16 %v17752_v38, %v17738_v51 }
 0x2b2   : > { %23786 = vst [vmem:[#allocation137_spill] sm:$0xff] %v17761_v42  ;;  %23787 = vst [vmem:[#allocation138_spill] sm:$0xff] %v17763_v25  ;;  %v17771_v63 = vpop.permute.xlu1 %15299  ;;  %v15598_v45 = vpack.i.bf16 %v17761_v42, %v17747_v9  ;;  %v15603_v19 = vpack.i.bf16 %v17763_v25, %v17745_v40  ;;  %v17794_v40 = vpop.permute.xlu0 %15269 }
 0x2b3   : > { %15539 = vrot.lane.b32.xlu0 %v23788_v44, %s15927_s20  ;;  %v15271_v56 = vunpack.i.l.bf16 %v17794_v40 }
 0x2b4   : > { %v17783_v32 = vpop.f32.mrb[100].mxu0  ;;  %15599 = vrot.lane.b32.xlu1 %v15598_v45, %s15927_s20  ;;  %v17786_v34 = vpop.f32.mrb[68].mxu1 }
 0x2b5   : > { %23789 = vst [vmem:[#allocation139_spill] sm:$0xff] %v17783_v32  ;;  %23790 = vst [vmem:[#allocation140_spill] sm:$0xff] %v17786_v34  ;;  %v17788_v1 = vpop.f32.mrb[101].mxu0  ;;  %v17790_v9 = vpop.f32.mrb[69].mxu1 }
 0x2b6   : > { %23791 = vst [vmem:[#allocation141_spill] sm:$0xff] %v17788_v1  ;;  %23792 = vst [vmem:[#allocation142_spill] sm:$0xff] %v17790_v9  ;;  %v17792_v42 = vpop.permute.xlu1 %15304 }
 0x2b7   : > { %15549 = vrot.lane.b32.xlu0 %v15548_v55, %s15927_s20 }
 0x2b8   : > { %v17797_v44 = vpop.f32.mrb[102].mxu0  ;;  %15604 = vrot.lane.b32.xlu1 %v15603_v19, %s15927_s20  ;;  %v17800_v27 = vpop.f32.mrb[70].mxu1 }
 0x2b9   : > { %23793 = vst [vmem:[#allocation143_spill] sm:$0xff] %v17797_v44  ;;  %23794 = vst [vmem:[#allocation144_spill] sm:$0xff] %v17800_v27  ;;  %v17806_v7 = vpop.f32.mrb[71].mxu1  ;;  %v17808_v16 = vpop.f32.mrb[103].mxu0  ;;  %v23838_v15 = vpack.i.bf16 %v17797_v44, %v17783_v32 }
 0x2ba   : > { %23795 = vst [vmem:[#allocation145_spill] sm:$0xff] %v17806_v7  ;;  %23796 = vst [vmem:[#allocation146_spill] sm:$0xff] %v17808_v16  ;;  %v17816_v10 = vpop.permute.xlu1 %15309  ;;  %v15618_v45 = vpack.i.bf16 %v17806_v7, %v17790_v9  ;;  %v15623_v25 = vpack.i.bf16 %v17808_v16, %v17788_v1  ;;  %v17839_v1 = vpop.permute.xlu0 %15274  ;;  %v11461_v16 = vld [vmem:[%s23369_s2 + $0x88] sm:$0xff] }
 0x2bb   : > { %15554 = vrot.lane.b32.xlu0 %v23797_v14, %s15927_s20  ;;  %23802 = vst [vmem:[#allocation151_spill] sm:$0xff] %v17839_v1  ;;  %v23803_v14 = vpack.i.bf16 %v17679_v36, %v17669_v41  ;;  %2436 = vmatprep.mubr.f32.mxu1 %v11461_v16 }
 0x2bc   : > { %v17828_v55 = vpop.f32.mrb[104].mxu0  ;;  %15619 = vrot.lane.b32.xlu1 %v15618_v45, %s15927_s20  ;;  %v17831_v19 = vpop.f32.mrb[72].mxu1 }
 0x2bd   : > { %23798 = vst [vmem:[#allocation147_spill] sm:$0xff] %v17828_v55  ;;  %23799 = vst [vmem:[#allocation148_spill] sm:$0xff] %v17831_v19  ;;  %v17833_v30 = vpop.f32.mrb[105].mxu0  ;;  %v17835_v9 = vpop.f32.mrb[73].mxu1 }
 0x2be   : > { %23800 = vst [vmem:[#allocation149_spill] sm:$0xff] %v17833_v30  ;;  %23801 = vst [vmem:[#allocation150_spill] sm:$0xff] %v17835_v9  ;;  %v17837_v7 = vpop.permute.xlu1 %15319 }
 0x2bf   : > { %15559 = vrot.lane.b32.xlu0 %v23803_v14, %s15927_s20 }
 0x2c0   : > { %v17845_v62 = vpop.f32.mrb[106].mxu0  ;;  %15624 = vrot.lane.b32.xlu1 %v15623_v25, %s15927_s20  ;;  %v17848_v45 = vpop.f32.mrb[74].mxu1 }
 0x2c1   : > { %23804 = vst [vmem:[#allocation152_spill] sm:$0xff] %v17845_v62  ;;  %23805 = vst [vmem:[#allocation153_spill] sm:$0xff] %v17848_v45  ;;  %v17857_v52 = vpop.f32.mrb[75].mxu1  ;;  %v17859_v41 = vpop.f32.mrb[107].mxu0 }
 0x2c2   : > { %23806 = vst [vmem:[#allocation154_spill] sm:$0xff] %v17857_v52  ;;  %23807 = vst [vmem:[#allocation155_spill] sm:$0xff] %v17859_v41  ;;  %v17867_v31 = vpop.permute.xlu1 %15324  ;;  %v15638_v24 = vpack.i.bf16 %v17857_v52, %v17835_v9  ;;  %v15643_v53 = vpack.i.bf16 %v17859_v41, %v17833_v30  ;;  %v17890_v30 = vpop.permute.xlu0 %15294 }
 0x2c3   : > { %15569 = vrot.lane.b32.xlu0 %v23808_v61, %s15927_s20  ;;  %23811 = vst [vmem:[#allocation158_spill] sm:$0xff] %v17890_v30  ;;  %v23812_v61 = vpack.i.bf16 %v17712_v47, %v17700_v33 }
 0x2c4   : > { %v17879_v25 = vpop.f32.mrb[108].mxu0  ;;  %15639 = vrot.lane.b32.xlu1 %v15638_v24, %s15927_s20  ;;  %v17882_v36 = vpop.f32.mrb[76].mxu1 }
 0x2c5   : > { %23809 = vst [vmem:[#allocation156_spill] sm:$0xff] %v17882_v36  ;;  %v17884_v14 = vpop.f32.mrb[109].mxu0  ;;  %v17886_v9 = vpop.f32.mrb[77].mxu1 }
 0x2c6   : > { %23810 = vst [vmem:[#allocation157_spill] sm:$0xff] %v17886_v9  ;;  %v17888_v52 = vpop.permute.xlu1 %15329  ;;  %v17921_v47 = vpop.permute.xlu0 %15314 }
 0x2c7   : > { %15574 = vrot.lane.b32.xlu0 %v23812_v61, %s15927_s20  ;;  %23815 = vst [vmem:[#allocation161_spill] sm:$0xff] %v17921_v47 }
 0x2c8   : > { %v17896_v16 = vpop.f32.mrb[110].mxu0  ;;  %15644 = vrot.lane.b32.xlu1 %v15643_v53, %s15927_s20  ;;  %v17899_v24 = vpop.f32.mrb[78].mxu1 }
 0x2c9   : > { %23813 = vst [vmem:[#allocation159_spill] sm:$0xff] %v17899_v24  ;;  %v17907_v28 = vpop.f32.mrb[79].mxu1  ;;  %v17909_v3 = vpop.f32.mrb[111].mxu0 }
 0x2ca   : > { %23814 = vst [vmem:[#allocation160_spill] sm:$0xff] %v17907_v28  ;;  %v17917_v41 = vpop.permute.xlu1 %15339  ;;  %v15653_v48 = vpack.i.bf16 %v17907_v28, %v17886_v9  ;;  %v17940_v28 = vpop.permute.xlu0 %15334 }
 0x2cb   : > { %15579 = vrot.lane.b32.xlu0 %v23816_v12, %s15927_s20  ;;  %23820 = vst [vmem:[#allocation165_spill] sm:$0xff] %v17940_v28  ;;  %v23821_v12 = vpack.i.bf16 %v17755_v2, %v17741_v29 }
 0x2cc   : > { %v17929_v57 = vpop.f32.mrb[112].mxu0  ;;  %15654 = vrot.lane.b32.xlu1 %v15653_v48, %s15927_s20  ;;  %v17932_v33 = vpop.f32.mrb[80].mxu1 }
 0x2cd   : > { %23817 = vst [vmem:[#allocation162_spill] sm:$0xff] %v17929_v57  ;;  %23818 = vst [vmem:[#allocation163_spill] sm:$0xff] %v17932_v33  ;;  %v17934_v53 = vpop.f32.mrb[113].mxu0  ;;  %v17936_v54 = vpop.f32.mrb[81].mxu1 }
 0x2ce   : > { %23819 = vst [vmem:[#allocation164_spill] sm:$0xff] %v17936_v54  ;;  %v17938_v9 = vpop.permute.xlu1 %15344  ;;  %v17970_v21 = vpop.permute.xlu0 %15354 }
 0x2cf   : > { %15589 = vrot.lane.b32.xlu0 %v23821_v12, %s15927_s20  ;;  %23824 = vst [vmem:[#allocation168_spill] sm:$0xff] %v17970_v21 }
 0x2d0   : > { %v17946_v61 = vpop.f32.mrb[82].mxu1  ;;  %v17948_v5 = vpop.f32.mrb[114].mxu0 }
 0x2d1   : > { %23822 = vst [vmem:[#allocation166_spill] sm:$0xff] %v17946_v61  ;;  %v17956_v23 = vpop.f32.mrb[83].mxu1  ;;  %v17958_v26 = vpop.f32.mrb[115].mxu0  ;;  %v23861_v0 = vpack.i.bf16 %v17946_v61, %v17932_v33 }
 0x2d2   : > { %23823 = vst [vmem:[#allocation167_spill] sm:$0xff] %v17956_v23  ;;  %v17966_v48 = vpop.permute.xlu1 %15349  ;;  %v15663_v60 = vpack.i.bf16 %v17956_v23, %v17936_v54  ;;  %v17989_v23 = vpop.permute.xlu0 %15374 }
 0x2d3   : > { %15594 = vrot.lane.b32.xlu0 %v23825_v13, %s15927_s20  ;;  %23831 = vst [vmem:[#allocation174_spill] sm:$0xff] %v17989_v23  ;;  %v23832_v13 = vpack.i.bf16 %v17800_v27, %v17786_v34 }
 0x2d4   : > { %v17978_v50 = vpop.f32.mrb[116].mxu0  ;;  %15664 = vrot.lane.b32.xlu1 %v15663_v60, %s15927_s20  ;;  %v17981_v2 = vpop.f32.mrb[84].mxu1 }
 0x2d5   : > { %23826 = vst [vmem:[#allocation169_spill] sm:$0xff] %v17978_v50  ;;  %23827 = vst [vmem:[#allocation170_spill] sm:$0xff] %v17981_v2  ;;  %v17983_v29 = vpop.f32.mrb[117].mxu0  ;;  %v17985_v17 = vpop.f32.mrb[85].mxu1 }
 0x2d6   : > { %23828 = vst [vmem:[#allocation171_spill] sm:$0xff] %v17983_v29  ;;  %23829 = vst [vmem:[#allocation172_spill] sm:$0xff] %v17985_v17  ;;  %v17987_v54 = vpop.permute.xlu1 %15359  ;;  %v18019_v49 = vpop.permute.xlu0 %15394 }
 0x2d7   : > { %23830 = vst [vmem:[#allocation173_spill] sm:$0xff] %v17987_v54  ;;  %15609 = vrot.lane.b32.xlu0 %v23832_v13, %s15927_s20  ;;  %23837 = vst [vmem:[#allocation179_spill] sm:$0xff] %v18019_v49 }
 0x2d8   : > { %v17995_v12 = vpop.f32.mrb[86].mxu1  ;;  %v17997_v51 = vpop.f32.mrb[118].mxu0 }
 0x2d9   : > { %23833 = vst [vmem:[#allocation175_spill] sm:$0xff] %v17995_v12  ;;  %23834 = vst [vmem:[#allocation176_spill] sm:$0xff] %v17997_v51  ;;  %v18005_v18 = vpop.f32.mrb[87].mxu1  ;;  %v18007_v35 = vpop.f32.mrb[119].mxu0  ;;  %v15668_v13 = vpack.i.bf16 %v17995_v12, %v17981_v2  ;;  %v23850_v12 = vpack.i.bf16 %v17845_v62, %v17828_v55  ;;  %v23855_v62 = vpack.i.bf16 %v17899_v24, %v17882_v36 }
 0x2da   : > { %23835 = vst [vmem:[#allocation177_spill] sm:$0xff] %v18005_v18  ;;  %23836 = vst [vmem:[#allocation178_spill] sm:$0xff] %v18007_v35  ;;  %v18015_v60 = vpop.permute.xlu1 %15364  ;;  %v15673_v38 = vpack.i.bf16 %v18005_v18, %v17985_v17 }
 0x2db   : > { %15614 = vrot.lane.b32.xlu0 %v23838_v15, %s15927_s20  ;;  %v23844_v15 = vpack.i.bf16 %v17848_v45, %v17831_v19  ;;  %v15272_v45 = vunpack.i.h.bf16 %v17794_v40 }
 0x2dc   : > { %v18027_v37 = vpop.f32.mrb[120].mxu0  ;;  %15674 = vrot.lane.b32.xlu1 %v15673_v38, %s15927_s20  ;;  %v18030_v27 = vpop.f32.mrb[88].mxu1 }
 0x2dd   : > { %23839 = vst [vmem:[#allocation180_spill] sm:$0xff] %v18027_v37  ;;  %23840 = vst [vmem:[#allocation181_spill] sm:$0xff] %v18030_v27  ;;  %v18032_v34 = vpop.f32.mrb[121].mxu0  ;;  %v18034_v39 = vpop.f32.mrb[89].mxu1  ;;  %v13600_v40 = vpack.c.bf16 %v15272_v45, %v15271_v56 }
 0x2de   : > { %23841 = vst [vmem:[#allocation182_spill] sm:$0xff] %v18032_v34  ;;  %23842 = vst [vmem:[#allocation183_spill] sm:$0xff] %v18034_v39  ;;  %v18036_v17 = vpop.permute.xlu1 %15369  ;;  %v18038_v18 = vpop.permute.xlu0 %15414 }
 0x2df   : > { %23843 = vst [vmem:[#allocation184_spill] sm:$0xff] %v18038_v18  ;;  %15629 = vrot.lane.b32.xlu0 %v23844_v15, %s15927_s20 }
 0x2e0   : > { %v18044_v32 = vpop.f32.mrb[90].mxu1  ;;  %v18046_v44 = vpop.f32.mrb[122].mxu0 }
 0x2e1   : > { %23845 = vst [vmem:[#allocation185_spill] sm:$0xff] %v18044_v32  ;;  %23846 = vst [vmem:[#allocation186_spill] sm:$0xff] %v18046_v44  ;;  %v18054_v6 = vpop.f32.mrb[91].mxu1  ;;  %v18056_v46 = vpop.f32.mrb[123].mxu0  ;;  %v15678_v22 = vpack.i.bf16 %v18044_v32, %v18030_v27 }
 0x2e2   : > { %23847 = vst [vmem:[#allocation187_spill] sm:$0xff] %v18054_v6  ;;  %23848 = vst [vmem:[#allocation188_spill] sm:$0xff] %v18056_v46  ;;  %v18064_v38 = vpop.permute.xlu1 %15379  ;;  %v15683_v2 = vpack.i.bf16 %v18054_v6, %v18034_v39 }
 0x2e3   : > { %23849 = vst [vmem:[#allocation189_spill] sm:$0xff] %v18064_v38  ;;  %15634 = vrot.lane.b32.xlu0 %v23850_v12, %s15927_s20  ;;  %v15332_v38 = vunpack.i.h.bf16 %v17888_v52 }
 0x2e4   : > { %v18074_v15 = vpop.f32.mrb[124].mxu0  ;;  %15684 = vrot.lane.b32.xlu1 %v15683_v2, %s15927_s20  ;;  %v18077_v19 = vpop.f32.mrb[92].mxu1 }
 0x2e5   : > { %23851 = vst [vmem:[#allocation190_spill] sm:$0xff] %v18074_v15  ;;  %23852 = vst [vmem:[#allocation191_spill] sm:$0xff] %v18077_v19  ;;  %v18081_v59 = vpop.f32.mrb[125].mxu0  ;;  %v15430_v39 = vpop.permute.xlu0 %15429  ;;  %v15307_v15 = vunpack.i.h.bf16 %v17792_v42 }
 0x2e6   : > { %23853 = vst [vmem:[#allocation192_spill] sm:$0xff] %v18081_v59  ;;  %v15432_v6 = vunpack.i.h.bf16 %v15430_v39  ;;  %v15431_v20 = vunpack.i.l.bf16 %v15430_v39  ;;  %v18083_v55 = vpop.f32.mrb[93].mxu1  ;;  %v18085_v12 = vpop.permute.xlu1 %15384 }
 0x2e7   : > { %23854 = vst [vmem:[#allocation193_spill] sm:$0xff] %v18083_v55  ;;  %15649 = vrot.lane.b32.xlu0 %v23855_v62, %s15927_s20 }
 0x2e8   : > { %v18091_v2 = vpop.f32.mrb[94].mxu1  ;;  %v18093_v27 = vpop.f32.mrb[126].mxu0  ;;  %v13598_v32 = vpack.c.bf16 %v15432_v6, %v15431_v20 }
 0x2e9   : > { %23856 = vst [vmem:[#allocation194_spill] sm:$0xff] %v18091_v2  ;;  %23857 = vst [vmem:[#allocation195_spill] sm:$0xff] %v18093_v27  ;;  %v18101_v8 = vpop.f32.mrb[127].mxu0  ;;  %v18103_v18 = vpop.permute.xlu0 %15434  ;;  %v15688_v39 = vpack.i.bf16 %v18091_v2, %v18077_v19 }
 0x2ea   : > { %23858 = vst [vmem:[#allocation196_spill] sm:$0xff] %v18101_v8  ;;  %23859 = vst [vmem:[#allocation197_spill] sm:$0xff] %v18103_v18  ;;  %v18109_v56 = vpop.f32.mrb[95].mxu1  ;;  %v18111_v20 = vpop.permute.xlu1 %15389  ;;  %13599 = vmatprep.subr.bf16.mxu1 %v13598_v32  ;;  %v15306_v8 = vunpack.i.l.bf16 %v17792_v42  ;;  %v15326_v42 = vunpack.i.l.bf16 %v17867_v31 }
 0x2eb   : > { %23860 = vst [vmem:[#allocation198_spill] sm:$0xff] %v18109_v56  ;;  %13601 = vmatpush3.bf16.msra.mxu1 %v13600_v40  ;;  %15659 = vrot.lane.b32.xlu0 %v23861_v0, %s15927_s20  ;;  %v15693_v43 = vpack.i.bf16 %v18109_v56, %v18083_v55  ;;  %v11557_v0 = vld [vmem:[%s23369_s2 + $0x388] sm:$0xff] }
 0x2ec   : > { %v18121_v62 = vpop.f32.mrb[128].mxu0  ;;  %v18123_v6 = vpop.f32.mrb[96].mxu1  ;;  %3237 = vmatprep.mubr.f32.mxu0 %v11557_v0 }
 0x2ed   : > { %23862 = vst [vmem:[#allocation199_spill] sm:$0xff] %v18121_v62  ;;  %23863 = vst [vmem:[#allocation200_spill] sm:$0xff] %v18123_v6  ;;  %15694 = vrot.lane.b32.xlu1 %v15693_v43, %s15927_s20  ;;  %v18128_v32 = vpop.f32.mrb[129].mxu0  ;;  %v18130_v40 = vpop.permute.xlu0 %15439 }
 0x2ee   : > { %23864 = vst [vmem:[#allocation201_spill] sm:$0xff] %v18128_v32  ;;  %v18132_v45 = vpop.f32.mrb[97].mxu1  ;;  %v18134_v33 = vpop.permute.xlu1 %15399 }
 0x2ef   : > { %23865 = vst [vmem:[#allocation202_spill] sm:$0xff] %v18132_v45  ;;  %23866 = vst [vmem:[#allocation203_spill] sm:$0xff] %v18134_v33  ;;  %15669 = vrot.lane.b32.xlu0 %v15668_v13, %s15927_s20 }
 0x2f0   : > { %v18140_v55 = vpop.f32.mrb[98].mxu1  ;;  %v18142_v56 = vpop.f32.mrb[130].mxu0 }
 0x2f1   : > { %23867 = vst [vmem:[#allocation204_spill] sm:$0xff] %v18140_v55  ;;  %23868 = vst [vmem:[#allocation205_spill] sm:$0xff] %v18142_v56  ;;  %v18144_v43 = vpop.f32.mrb[131].mxu0  ;;  %v18146_v19 = vpop.permute.xlu0 %15454  ;;  %v15698_v2 = vpack.i.bf16 %v18140_v55, %v18123_v6  ;;  %v15703_v61 = vpack.i.bf16 %v18142_v56, %v18121_v62 }
 0x2f2   : > { %23869 = vst [vmem:[#allocation206_spill] sm:$0xff] %v18144_v43  ;;  %23870 = vst [vmem:[#allocation207_spill] sm:$0xff] %v18146_v19  ;;  %v18154_v24 = vpop.f32.mrb[99].mxu1  ;;  %v18156_v13 = vpop.permute.xlu1 %15404  ;;  %v15713_v0 = vpack.i.bf16 %v18144_v43, %v18128_v32 }
 0x2f3   : > { %23871 = vst [vmem:[#allocation208_spill] sm:$0xff] %v18154_v24  ;;  %15679 = vrot.lane.b32.xlu0 %v15678_v22, %s15927_s20  ;;  %v15708_v23 = vpack.i.bf16 %v18154_v24, %v18132_v45 }
 0x2f4   : > { %v18167_v28 = vpop.f32.mrb[132].mxu0  ;;  %v18169_v36 = vpop.f32.mrb[100].mxu1 }
 0x2f5   : > { %23872 = vst [vmem:[#allocation209_spill] sm:$0xff] %v18167_v28  ;;  %23873 = vst [vmem:[#allocation210_spill] sm:$0xff] %v18169_v36  ;;  %15709 = vrot.lane.b32.xlu1 %v15708_v23, %s15927_s20  ;;  %v18174_v55 = vpop.f32.mrb[133].mxu0  ;;  %v18176_v49 = vpop.permute.xlu0 %15459  ;;  %v15287_v23 = vunpack.i.h.bf16 %v17727_v11 }
 0x2f6   : > { %23874 = vst [vmem:[#allocation211_spill] sm:$0xff] %v18174_v55  ;;  %v18178_v22 = vpop.f32.mrb[101].mxu1  ;;  %v18180_v62 = vpop.permute.xlu1 %15409 }
 0x2f7   : > { %23875 = vst [vmem:[#allocation212_spill] sm:$0xff] %v18178_v22  ;;  %15689 = vrot.lane.b32.xlu0 %v15688_v39, %s15927_s20 }
 0x2f8   : > { %v18183_v21 = vpop.f32.mrb[134].mxu0  ;;  %v18185_v56 = vpop.f32.mrb[102].mxu1 }
 0x2f9   : > { %23876 = vst [vmem:[#allocation213_spill] sm:$0xff] %v18183_v21  ;;  %23877 = vst [vmem:[#allocation214_spill] sm:$0xff] %v18185_v56  ;;  %v15723_v45 = vpack.i.bf16 %v18183_v21, %v18167_v28  ;;  %15714 = vrot.lane.b32.xlu1 %v15713_v0, %s15927_s20  ;;  %v18192_v6 = vpop.f32.mrb[135].mxu0  ;;  %v18194_v32 = vpop.permute.xlu0 %15469  ;;  %v15718_v43 = vpack.i.bf16 %v18185_v56, %v18169_v36  ;;  %v15286_v36 = vunpack.i.l.bf16 %v17727_v11 }
 0x2fa   : > { %23878 = vst [vmem:[#allocation215_spill] sm:$0xff] %v18192_v6  ;;  %v15733_v39 = vpack.i.bf16 %v18192_v6, %v18174_v55  ;;  %v18202_v47 = vpop.f32.mrb[103].mxu1  ;;  %v18204_v30 = vpop.permute.xlu1 %15419  ;;  %v15471_v27 = vunpack.i.l.bf16 %v18194_v32 }
 0x2fb   : > { %23879 = vst [vmem:[#allocation216_spill] sm:$0xff] %v18202_v47  ;;  %23880 = vst [vmem:[#allocation217_spill] sm:$0xff] %v18204_v30  ;;  %15699 = vrot.lane.b32.xlu0 %v15698_v2, %s15927_s20  ;;  %v15728_v0 = vpack.i.bf16 %v18202_v47, %v18178_v22 }
 0x2fc   : > { %v18211_v28 = vpop.f32.mrb[136].mxu0  ;;  %v18213_v21 = vpop.f32.mrb[104].mxu1 }
 0x2fd   : > { %23881 = vst [vmem:[#allocation218_spill] sm:$0xff] %v18211_v28  ;;  %23882 = vst [vmem:[#allocation219_spill] sm:$0xff] %v18213_v21  ;;  %15729 = vrot.lane.b32.xlu1 %v15728_v0, %s15927_s20  ;;  %v18218_v24 = vpop.f32.mrb[137].mxu0  ;;  %v18220_v55 = vpop.permute.xlu0 %15474  ;;  %v15292_v0 = vunpack.i.h.bf16 %v17749_v58 }
 0x2fe   : > { %23883 = vst [vmem:[#allocation220_spill] sm:$0xff] %v18218_v24  ;;  %23884 = vst [vmem:[#allocation221_spill] sm:$0xff] %v18220_v55  ;;  %v18222_v2 = vpop.f32.mrb[105].mxu1  ;;  %v18224_v6 = vpop.permute.xlu1 %15424  ;;  %v15291_v55 = vunpack.i.l.bf16 %v17749_v58 }
 0x2ff   : > { %23885 = vst [vmem:[#allocation222_spill] sm:$0xff] %v18222_v2  ;;  %15704 = vrot.lane.b32.xlu0 %v15703_v61, %s15927_s20 }
 0x300   : > { %v18229_v56 = vpop.f32.mrb[138].mxu0  ;;  %v18231_v1 = vpop.f32.mrb[106].mxu1 }
 0x301   : > { %23886 = vst [vmem:[#allocation223_spill] sm:$0xff] %v18229_v56  ;;  %23887 = vst [vmem:[#allocation224_spill] sm:$0xff] %v18231_v1  ;;  %15734 = vrot.lane.b32.xlu1 %v15733_v39, %s15927_s20  ;;  %v15738_v61 = vpack.i.bf16 %v18231_v1, %v18213_v21  ;;  %v18241_v47 = vpop.f32.mrb[139].mxu0  ;;  %v18243_v11 = vpop.permute.xlu0 %15479  ;;  %v13696_v1 = vpack.c.bf16 %v15287_v23, %v15286_v36 }
 0x302   : > { %23888 = vst [vmem:[#allocation225_spill] sm:$0xff] %v18241_v47  ;;  %v15753_v19 = vpack.i.bf16 %v18241_v47, %v18218_v24  ;;  %v18252_v30 = vpop.f32.mrb[107].mxu1  ;;  %v15445_v39 = vpop.permute.xlu1 %15444  ;;  %v13604_v47 = vpack.c.bf16 %v15292_v0, %v15291_v55  ;;  %v15311_v55 = vunpack.i.l.bf16 %v17816_v10  ;;  %v15327_v0 = vunpack.i.h.bf16 %v17867_v31 }
 0x303   : > { %23889 = vst [vmem:[#allocation226_spill] sm:$0xff] %v18252_v30  ;;  %v15748_v59 = vpack.i.bf16 %v18252_v30, %v18222_v2  ;;  %v15447_v33 = vunpack.i.h.bf16 %v15445_v39  ;;  %15719 = vrot.lane.b32.xlu0 %v15718_v43, %s15927_s20  ;;  %v15446_v58 = vunpack.i.l.bf16 %v15445_v39  ;;  %v15472_v39 = vunpack.i.h.bf16 %v18194_v32 }
 0x304   : > { %v18259_v18 = vpop.f32.mrb[140].mxu0  ;;  %v18261_v21 = vpop.f32.mrb[108].mxu1 }
 0x305   : > { %23890 = vst [vmem:[#allocation227_spill] sm:$0xff] %v18259_v18  ;;  %23891 = vst [vmem:[#allocation228_spill] sm:$0xff] %v18261_v21  ;;  %15749 = vrot.lane.b32.xlu1 %v15748_v59, %s15927_s20  ;;  %v18264_v22 = vpop.f32.mrb[141].mxu0  ;;  %v18266_v24 = vpop.permute.xlu0 %15489  ;;  %v13694_v2 = vpack.c.bf16 %v15447_v33, %v15446_v58  ;;  %v15312_v59 = vunpack.i.h.bf16 %v17816_v10  ;;  %v13606_v34 = vpack.c.bf16 %v15472_v39, %v15471_v27 }
 0x306   : > { %23892 = vst [vmem:[#allocation229_spill] sm:$0xff] %v18264_v22  ;;  %v18270_v30 = vpop.f32.mrb[109].mxu1  ;;  %v15450_v43 = vpop.permute.xlu1 %15449 }
 0x307   : > { %23893 = vst [vmem:[#allocation230_spill] sm:$0xff] %v18270_v30  ;;  %v15452_v36 = vunpack.i.h.bf16 %v15450_v43  ;;  %v15451_v23 = vunpack.i.l.bf16 %v15450_v43  ;;  %15724 = vrot.lane.b32.xlu0 %v15723_v45, %s15927_s20  ;;  %13695 = vmatprep.subr.bf16.mxu0 %v13694_v2  ;;  %v13608_v27 = vpack.c.bf16 %v15312_v59, %v15311_v55 }
 0x308   : > { %v18279_v33 = vpop.f32.mrb[142].mxu0  ;;  %v18281_v58 = vpop.f32.mrb[110].mxu1  ;;  %13697 = vmatpush3.bf16.msra.mxu0 %v13696_v1 }
 0x309   : > { %23894 = vst [vmem:[#allocation231_spill] sm:$0xff] %v18279_v33  ;;  %23895 = vst [vmem:[#allocation232_spill] sm:$0xff] %v18281_v58  ;;  %v13602_v32 = vpack.c.bf16 %v15452_v36, %v15451_v23  ;;  %15754 = vrot.lane.b32.xlu1 %v15753_v19, %s15927_s20  ;;  %v18289_v10 = vpop.f32.mrb[143].mxu0  ;;  %v18291_v31 = vpop.permute.xlu0 %15494  ;;  %v15758_v2 = vpack.i.bf16 %v18281_v58, %v18261_v21  ;;  %v15331_v19 = vunpack.i.l.bf16 %v17888_v52  ;;  %v15492_v21 = vunpack.i.h.bf16 %v18266_v24 }
 0x30a   : > { %23896 = vst [vmem:[#allocation233_spill] sm:$0xff] %v18289_v10  ;;  %23897 = vst [vmem:[#allocation234_spill] sm:$0xff] %v18291_v31  ;;  %v15773_v36 = vpack.i.bf16 %v18289_v10, %v18264_v22  ;;  %v18301_v45 = vpop.f32.mrb[111].mxu1  ;;  %v15465_v1 = vpop.permute.xlu1 %15464  ;;  %v15491_v58 = vunpack.i.l.bf16 %v18266_v24 }
 0x30b   : > { %23898 = vst [vmem:[#allocation235_spill] sm:$0xff] %v18301_v45  ;;  %v15768_v43 = vpack.i.bf16 %v18301_v45, %v18270_v30  ;;  %13603 = vmatprep.subr.bf16.mxu1 %v13602_v32  ;;  %15739 = vrot.lane.b32.xlu0 %v15738_v61, %s15927_s20  ;;  %v15467_v23 = vunpack.i.h.bf16 %v15465_v1  ;;  %v15466_v22 = vunpack.i.l.bf16 %v15465_v1  ;;  %v13700_v61 = vpack.c.bf16 %v15307_v15, %v15306_v8 }
 0x30c   : > { %v18311_v10 = vpop.f32.mrb[144].mxu0  ;;  %13605 = vmatpush3.bf16.msra.mxu1 %v13604_v47  ;;  %v18313_v52 = vpop.f32.mrb[112].mxu1  ;;  %v13704_v30 = vpack.c.bf16 %v15327_v0, %v15326_v42  ;;  %v13612_v1 = vpack.c.bf16 %v15332_v38, %v15331_v19  ;;  %v23901_v47 = vpack.i.bf16 %v18229_v56, %v18211_v28  ;;  %v15352_v8 = vunpack.i.h.bf16 %v17966_v48 }
 0x30d   : > { %15769 = vrot.lane.b32.xlu1 %v15768_v43, %s15927_s20  ;;  %v18316_v46 = vpop.f32.mrb[145].mxu0  ;;  %13607 = vmatprep.subr.bf16.mxu1 %v13606_v34  ;;  %v18318_v32 = vpop.permute.xlu0 %15499  ;;  %v13698_v39 = vpack.c.bf16 %v15467_v23, %v15466_v22  ;;  %v15347_v43 = vunpack.i.h.bf16 %v17938_v9  ;;  %v15346_v34 = vunpack.i.l.bf16 %v17938_v9  ;;  %v13610_v15 = vpack.c.bf16 %v15492_v21, %v15491_v58 }
 0x30e   : > { %23899 = vst [vmem:[#allocation236_spill] sm:$0xff] %v18316_v46  ;;  %v18320_v31 = vpop.f32.mrb[113].mxu1  ;;  %v15485_v24 = vpop.permute.xlu1 %15484  ;;  %v15351_v38 = vunpack.i.l.bf16 %v17966_v48 }
 0x30f   : > { %23900 = vst [vmem:[#allocation237_spill] sm:$0xff] %v18320_v31  ;;  %v15487_v45 = vunpack.i.h.bf16 %v15485_v24  ;;  %v15486_v54 = vunpack.i.l.bf16 %v15485_v24  ;;  %15744 = vrot.lane.b32.xlu0 %v23901_v47, %s15927_s20  ;;  %13699 = vmatprep.subr.bf16.mxu0 %v13698_v39  ;;  %v15367_v24 = vunpack.i.h.bf16 %v18015_v60  ;;  %v15366_v47 = vunpack.i.l.bf16 %v18015_v60 }
 0x310   : > { %v18329_v22 = vpop.f32.mrb[146].mxu0  ;;  %13609 = vmatpush3.bf16.msra.mxu1 %v13608_v27  ;;  %v18331_v59 = vpop.f32.mrb[114].mxu1  ;;  %13701 = vmatpush3.bf16.msra.mxu0 %v13700_v61  ;;  %v13708_v28 = vpack.c.bf16 %v15347_v43, %v15346_v34  ;;  %v15407_v34 = vunpack.i.h.bf16 %v18156_v13 }
 0x311   : > { %v13702_v55 = vpack.c.bf16 %v15487_v45, %v15486_v54  ;;  %15774 = vrot.lane.b32.xlu1 %v15773_v36, %s15927_s20  ;;  %v18339_v9 = vpop.f32.mrb[147].mxu0  ;;  %v15510_v21 = vpop.permute.xlu0 %15509  ;;  %v15778_v58 = vpack.i.bf16 %v18331_v59, %v18313_v52  ;;  %13611 = vmatprep.subr.bf16.mxu1 %v13610_v15 }
 0x312   : > { %23902 = vst [vmem:[#allocation238_spill] sm:$0xff] %v18339_v9  ;;  %v18349_v45 = vpop.f32.mrb[115].mxu1  ;;  %v15505_v19 = vpop.permute.xlu1 %15504  ;;  %v15512_v36 = vunpack.i.h.bf16 %v15510_v21  ;;  %v15511_v61 = vunpack.i.l.bf16 %v15510_v21 }
 0x313   : > { %23903 = vst [vmem:[#allocation239_spill] sm:$0xff] %v18349_v45  ;;  %v15783_v27 = vpack.i.bf16 %v18349_v45, %v18320_v31  ;;  %13703 = vmatprep.subr.bf16.mxu0 %v13702_v55  ;;  %15759 = vrot.lane.b32.xlu0 %v15758_v2, %s15927_s20  ;;  %v15507_v48 = vunpack.i.h.bf16 %v15505_v19  ;;  %v15506_v15 = vunpack.i.l.bf16 %v15505_v19  ;;  %v13616_v2 = vpack.c.bf16 %v15352_v8, %v15351_v38 }
 0x314   : > { %v18358_v42 = vpop.f32.mrb[148].mxu0  ;;  %13613 = vmatpush3.bf16.msra.mxu1 %v13612_v1  ;;  %v18360_v23 = vpop.f32.mrb[116].mxu1  ;;  %v13614_v21 = vpack.c.bf16 %v15512_v36, %v15511_v61  ;;  %13705 = vmatpush3.bf16.msra.mxu0 %v13704_v30  ;;  %v23906_v1 = vpack.i.bf16 %v18279_v33, %v18259_v18  ;;  %v13712_v30 = vpack.c.bf16 %v15367_v24, %v15366_v47  ;;  %v15372_v36 = vunpack.i.h.bf16 %v18036_v17 }
 0x315   : > { %23904 = vst [vmem:[#allocation240_spill] sm:$0xff] %v18360_v23  ;;  %15784 = vrot.lane.b32.xlu1 %v15783_v27, %s15927_s20  ;;  %v18363_v54 = vpop.f32.mrb[149].mxu0  ;;  %v18365_v55 = vpop.permute.xlu0 %15514  ;;  %v13706_v39 = vpack.c.bf16 %v15507_v48, %v15506_v15  ;;  %v15371_v47 = vunpack.i.l.bf16 %v18036_v17  ;;  %v15406_v15 = vunpack.i.l.bf16 %v18156_v13 }
 0x316   : > { %v18367_v0 = vpop.f32.mrb[117].mxu1  ;;  %v15525_v60 = vpop.permute.xlu1 %15524  ;;  %13615 = vmatprep.subr.bf16.mxu1 %v13614_v21 }
 0x317   : > { %23905 = vst [vmem:[#allocation241_spill] sm:$0xff] %v18367_v0  ;;  %v15527_v19 = vunpack.i.h.bf16 %v15525_v60  ;;  %v15526_v56 = vunpack.i.l.bf16 %v15525_v60  ;;  %15764 = vrot.lane.b32.xlu0 %v23906_v1, %s15927_s20  ;;  %13707 = vmatprep.subr.bf16.mxu0 %v13706_v39  ;;  %v15387_v39 = vunpack.i.h.bf16 %v18085_v12 }
 0x318   : > { %v18374_v61 = vpop.f32.mrb[118].mxu1  ;;  %v18376_v8 = vpop.f32.mrb[150].mxu0  ;;  %13617 = vmatpush3.bf16.msra.mxu1 %v13616_v2  ;;  %13709 = vmatpush3.bf16.msra.mxu0 %v13708_v28  ;;  %v15386_v28 = vunpack.i.l.bf16 %v18085_v12 }
 0x319   : > { %23907 = vst [vmem:[#allocation242_spill] sm:$0xff] %v18374_v61  ;;  %v13710_v38 = vpack.c.bf16 %v15527_v19, %v15526_v56  ;;  %v15788_v43 = vpack.i.bf16 %v18374_v61, %v18360_v23  ;;  %v18384_v27 = vpop.f32.mrb[151].mxu0  ;;  %v18386_v24 = vpop.permute.xlu0 %15519  ;;  %v13720_v61 = vpack.c.bf16 %v15407_v34, %v15406_v15 }
 0x31a   : > { %v18395_v21 = vpop.f32.mrb[119].mxu1  ;;  %v15545_v2 = vpop.permute.xlu1 %15544 }
 0x31b   : > { %23908 = vst [vmem:[#allocation243_spill] sm:$0xff] %v18395_v21  ;;  %v15793_v60 = vpack.i.bf16 %v18395_v21, %v18367_v0  ;;  %v15547_v1 = vunpack.i.h.bf16 %v15545_v2  ;;  %13711 = vmatprep.subr.bf16.mxu0 %v13710_v38  ;;  %15779 = vrot.lane.b32.xlu0 %v15778_v58, %s15927_s20  ;;  %v15546_v56 = vunpack.i.l.bf16 %v15545_v2  ;;  %v13716_v21 = vpack.c.bf16 %v15387_v39, %v15386_v28 }
 0x31c   : > { %v18406_v48 = vpop.f32.mrb[152].mxu0  ;;  %v18408_v12 = vpop.f32.mrb[120].mxu1  ;;  %13713 = vmatpush3.bf16.msra.mxu0 %v13712_v30  ;;  %v13620_v2 = vpack.c.bf16 %v15372_v36, %v15371_v47 }
 0x31d   : > { %23909 = vst [vmem:[#allocation244_spill] sm:$0xff] %v18406_v48  ;;  %15794 = vrot.lane.b32.xlu1 %v15793_v60, %s15927_s20  ;;  %v18411_v18 = vpop.f32.mrb[153].mxu0  ;;  %v15530_v19 = vpop.permute.xlu0 %15529  ;;  %v13714_v38 = vpack.c.bf16 %v15547_v1, %v15546_v56 }
 0x31e   : > { %23910 = vst [vmem:[#allocation245_spill] sm:$0xff] %v18411_v18  ;;  %v15532_v33 = vunpack.i.h.bf16 %v15530_v19  ;;  %v15531_v58 = vunpack.i.l.bf16 %v15530_v19  ;;  %v18413_v0 = vpop.f32.mrb[121].mxu1  ;;  %v15565_v17 = vpop.permute.xlu1 %15564 }
 0x31f   : > { %23911 = vst [vmem:[#allocation246_spill] sm:$0xff] %v18413_v0  ;;  %v15567_v23 = vunpack.i.h.bf16 %v15565_v17  ;;  %v15566_v13 = vunpack.i.l.bf16 %v15565_v17  ;;  %15789 = vrot.lane.b32.xlu0 %v15788_v43, %s15927_s20  ;;  %13715 = vmatprep.subr.bf16.mxu0 %v13714_v38 }
 0x320   : > { %v13618_v31 = vpack.c.bf16 %v15532_v33, %v15531_v58  ;;  %v18416_v30 = vpop.f32.mrb[122].mxu1  ;;  %v18418_v60 = vpop.f32.mrb[154].mxu0  ;;  %13717 = vmatpush3.bf16.msra.mxu0 %v13716_v21  ;;  %v15427_v33 = vunpack.i.h.bf16 %v18224_v6  ;;  %v15426_v21 = vunpack.i.l.bf16 %v18224_v6 }
 0x321   : > { %23912 = vst [vmem:[#allocation247_spill] sm:$0xff] %v18418_v60  ;;  %v13718_v45 = vpack.c.bf16 %v15567_v23, %v15566_v13  ;;  %v15798_v56 = vpack.i.bf16 %v18416_v30, %v18408_v12  ;;  %v18426_v43 = vpop.f32.mrb[155].mxu0  ;;  %v18428_v36 = vpop.permute.xlu0 %15534 }
 0x322   : > { %23913 = vst [vmem:[#allocation248_spill] sm:$0xff] %v18426_v43  ;;  %v18437_v15 = vpop.f32.mrb[123].mxu1  ;;  %v15585_v28 = vpop.permute.xlu1 %15584  ;;  %13619 = vmatprep.subr.bf16.mxu1 %v13618_v31  ;;  %v13724_v38 = vpack.c.bf16 %v15427_v33, %v15426_v21 }
 0x323   : > { %23914 = vst [vmem:[#allocation249_spill] sm:$0xff] %v18437_v15  ;;  %v15803_v1 = vpack.i.bf16 %v18437_v15, %v18413_v0  ;;  %v15587_v58 = vunpack.i.h.bf16 %v15585_v28  ;;  %13621 = vmatpush3.bf16.msra.mxu1 %v13620_v2  ;;  %13719 = vmatprep.subr.bf16.mxu0 %v13718_v45  ;;  %v15586_v17 = vunpack.i.l.bf16 %v15585_v28  ;;  %v15392_v45 = vunpack.i.h.bf16 %v18111_v20  ;;  %v11561_v0 = vld [vmem:[%s23369_s2 + $0x3a8] sm:$0xff] }
 0x324   : > { %15799 = vrot.lane.b32.xlu0 %v15798_v56, %s15927_s20  ;;  %v18445_v13 = vpop.f32.mrb[156].mxu0  ;;  %v18447_v47 = vpop.f32.mrb[124].mxu1  ;;  %13721 = vmatpush3.bf16.msra.mxu0 %v13720_v61  ;;  %v15391_v28 = vunpack.i.l.bf16 %v18111_v20  ;;  %v15282_v20 = vunpack.i.h.bf16 %v17709_v4 }
 0x325   : > { %23915 = vst [vmem:[#allocation250_spill] sm:$0xff] %v18445_v13  ;;  %23916 = vst [vmem:[#allocation251_spill] sm:$0xff] %v18447_v47  ;;  %15804 = vrot.lane.b32.xlu1 %v15803_v1, %s15927_s20  ;;  %v18450_v6 = vpop.f32.mrb[157].mxu0  ;;  %v18452_v31 = vpop.permute.xlu0 %15539  ;;  %v13722_v34 = vpack.c.bf16 %v15587_v58, %v15586_v17 }
 0x326   : > { %23917 = vst [vmem:[#allocation252_spill] sm:$0xff] %v18450_v6  ;;  %v18454_v19 = vpop.f32.mrb[125].mxu1  ;;  %v18498_v15 = vpop.permute.xlu1 %15599 }
 0x327   : > { %13723 = vmatprep.subr.bf16.mxu0 %v13722_v34  ;;  %v11556_v34 = vld [vmem:[%s23369_s2 + $0x380] sm:$0xff] }
 0x328   : > { %v18457_v2 = vpop.f32.mrb[126].mxu1  ;;  %v18459_v56 = vpop.f32.mrb[158].mxu0  ;;  %13725 = vmatpush3.bf16.msra.mxu0 %v13724_v38  ;;  %v11559_v38 = vld [vmem:[%s23369_s2 + $0x398] sm:$0xff] }
 0x329   : > { %23918 = vst [vmem:[#allocation253_spill] sm:$0xff] %v18457_v2  ;;  %23919 = vst [vmem:[#allocation254_spill] sm:$0xff] %v18459_v56  ;;  %v15808_v61 = vpack.i.bf16 %v18457_v2, %v18447_v47  ;;  %v18468_v33 = vpop.f32.mrb[159].mxu0  ;;  %v15550_v21 = vpop.permute.xlu0 %15549  ;;  %v11558_v2 = vld [vmem:[%s23369_s2 + $0x390] sm:$0xff] }
 0x32a   : > { %23920 = vst [vmem:[#allocation255_spill] sm:$0xff] %v18468_v33  ;;  %v15552_v23 = vunpack.i.h.bf16 %v15550_v21  ;;  %v18479_v39 = vpop.f32.mrb[127].mxu1  ;;  %v15551_v58 = vunpack.i.l.bf16 %v15550_v21  ;;  %v13624_v21 = vpack.c.bf16 %v15392_v45, %v15391_v28  ;;  %v11560_v28 = vld [vmem:[%s23369_s2 + $0x3a0] sm:$0xff] }
 0x32b   : > { %v15818_v47 = vpack.i.bf16 %v18479_v39, %v18454_v19  ;;  %15809 = vrot.lane.b32.xlu0 %v15808_v61, %s15927_s20  ;;  %3238 = vmatmul.mubr.f32.vlgmr.msra.gmra.mrb[160].mxu0 %v11556_v34  ;;  %v11563_v61 = vld [vmem:[%s23369_s2 + $0x3b8] sm:$0xff]  ;;  %v15411_v34 = vunpack.i.l.bf16 %v18180_v62 }
 0x32c   : > { %v13622_v17 = vpack.c.bf16 %v15552_v23, %v15551_v58  ;;  %3242 = vmatprep.mubr.f32.mxu0 %v11559_v38  ;;  %v23921_v23 = vpack.i.bf16 %v17896_v16, %v17879_v25  ;;  %v15412_v58 = vunpack.i.h.bf16 %v18180_v62  ;;  %v11565_v62 = vld [vmem:[%s23369_s2 + $0x3c8] sm:$0xff] }
 0x32d   : > { %15819 = vrot.lane.b32.xlu1 %v15818_v47, %s15927_s20  ;;  %v18490_v1 = vpop.permute.xlu0 %15554  ;;  %v23922_v47 = vpack.i.bf16 %v17909_v3, %v17884_v14 }
 0x32e   : > { %13623 = vmatprep.subr.bf16.mxu1 %v13622_v17  ;;  %v18522_v17 = vpop.permute.xlu1 %15604 }
 0x32f   : > { %15814 = vrot.lane.b32.xlu0 %v23921_v23, %s15927_s20  ;;  %13625 = vmatpush3.bf16.msra.mxu1 %v13624_v21  ;;  %v11562_v21 = vld [vmem:[%s23369_s2 + $0x3b0] sm:$0xff]  ;;  %v15442_v23 = vunpack.i.h.bf16 %v18130_v40 }
 0x330   : > { %3243 = vmatmul.mubr.f32.gmra.mrb[162].mxu0 %v11558_v2  ;;  %v23923_v2 = vpack.i.bf16 %v18329_v22, %v18311_v10 }
 0x331   : > { %15824 = vrot.lane.b32.xlu1 %v23922_v47, %s15927_s20  ;;  %v18508_v45 = vpop.permute.xlu0 %15559  ;;  %3247 = vmatprep.mubr.f32.mxu0 %v11561_v0  ;;  %v23924_v0 = vpack.i.bf16 %v18339_v9, %v18316_v46  ;;  %v15441_v47 = vunpack.i.l.bf16 %v18130_v40  ;;  %v15281_v46 = vunpack.i.l.bf16 %v17709_v4  ;;  %v13628_v9 = vpack.c.bf16 %v15412_v58, %v15411_v34  ;;  %v11567_v4 = vld [vmem:[%s23369_s2 + $0x3d8] sm:$0xff] }
 0x332   : > { %v23926_v40 = vpack.i.bf16 %v17958_v26, %v17934_v53  ;;  %v18556_v58 = vpop.permute.xlu1 %15619  ;;  %v23927_v34 = vpack.i.bf16 %v18376_v8, %v18358_v42 }
 0x333   : > { %15829 = vrot.lane.b32.xlu0 %v23923_v2, %s15927_s20 }
 0x334   : > { %3248 = vmatmul.mubr.f32.gmra.mrb[164].mxu0 %v11560_v28 }
 0x335   : > { %15834 = vrot.lane.b32.xlu1 %v23924_v0, %s15927_s20  ;;  %v15570_v38 = vpop.permute.xlu0 %15569  ;;  %3252 = vmatprep.mubr.f32.mxu0 %v11563_v61  ;;  %v23925_v0 = vpack.i.bf16 %v17948_v5, %v17929_v57  ;;  %v11564_v57 = vld [vmem:[%s23369_s2 + $0x3c0] sm:$0xff] }
 0x336   : > { %v15572_v28 = vunpack.i.h.bf16 %v15570_v38  ;;  %v15571_v2 = vunpack.i.l.bf16 %v15570_v38 }
 0x337   : > { %15839 = vrot.lane.b32.xlu0 %v23925_v0, %s15927_s20 }
 0x338   : > { %v13626_v61 = vpack.c.bf16 %v15572_v28, %v15571_v2  ;;  %3253 = vmatmul.mubr.f32.gmra.mrb[166].mxu0 %v11562_v21  ;;  %v15462_v28 = vunpack.i.h.bf16 %v18176_v49  ;;  %v15461_v21 = vunpack.i.l.bf16 %v18176_v49  ;;  %v13630_v2 = vpack.c.bf16 %v15442_v23, %v15441_v47 }
 0x339   : > { %15844 = vrot.lane.b32.xlu1 %v23926_v40, %s15927_s20  ;;  %v18546_v38 = vpop.permute.xlu0 %15574  ;;  %3257 = vmatprep.mubr.f32.mxu0 %v11565_v62  ;;  %v11460_v62 = vld [vmem:[%s23369_s2 + $0x80] sm:$0xff]  ;;  %v13632_v49 = vpack.c.bf16 %v15282_v20, %v15281_v46  ;;  %v15302_v23 = vunpack.i.h.bf16 %v17771_v63  ;;  %v15301_v47 = vunpack.i.l.bf16 %v17771_v63  ;;  %v15482_v40 = vunpack.i.h.bf16 %v18243_v11  ;;  %v11566_v63 = vld [vmem:[%s23369_s2 + $0x3d0] sm:$0xff] }
 0x33a   : > { %13627 = vmatprep.subr.bf16.mxu1 %v13626_v61  ;;  %v11463_v61 = vld [vmem:[%s23369_s2 + $0x98] sm:$0xff]  ;;  %v15481_v46 = vunpack.i.l.bf16 %v18243_v11  ;;  %v23929_v20 = vpack.i.bf16 %v17997_v51, %v17978_v50  ;;  %v11569_v11 = vld [vmem:[%s23369_s2 + $0x3e8] sm:$0xff] }
 0x33b   : > { %13629 = vmatpush3.bf16.msra.mxu1 %v13628_v9  ;;  %15849 = vrot.lane.b32.xlu0 %v23927_v34, %s15927_s20  ;;  %v23928_v9 = vpack.i.bf16 %v18384_v27, %v18363_v54  ;;  %v18593_v34 = vpop.permute.xlu1 %15624 }
 0x33c   : > { %13631 = vmatprep.subr.bf16.mxu1 %v13630_v2  ;;  %3258 = vmatmul.mubr.f32.gmra.mrb[168].mxu0 %v11564_v57  ;;  %v13634_v57 = vpack.c.bf16 %v15462_v28, %v15461_v21  ;;  %v11462_v2 = vld [vmem:[%s23369_s2 + $0x90] sm:$0xff]  ;;  %v13636_v28 = vpack.c.bf16 %v15302_v23, %v15301_v47  ;;  %v15322_v21 = vunpack.i.h.bf16 %v17837_v7  ;;  %v15502_v23 = vunpack.i.h.bf16 %v18318_v32 }
 0x33d   : > { %15854 = vrot.lane.b32.xlu1 %v23928_v9, %s15927_s20  ;;  %v18571_v0 = vpop.permute.xlu0 %15579  ;;  %3262 = vmatprep.mubr.f32.mxu0 %v11567_v4  ;;  %v15321_v4 = vunpack.i.l.bf16 %v17837_v7  ;;  %v11465_v9 = vld [vmem:[%s23369_s2 + $0xa8] sm:$0xff]  ;;  %v15501_v47 = vunpack.i.l.bf16 %v18318_v32  ;;  %v11568_v7 = vld [vmem:[%s23369_s2 + $0x3e0] sm:$0xff]  ;;  %v11571_v32 = vld [vmem:[%s23369_s2 + $0x3f8] sm:$0xff] }
 0x33e   : > { %2437 = vmatmul.mubr.f32.vlgmr.msra.gmra.mrb[128].mxu1 %v11460_v62  ;;  %v23930_v62 = vpack.i.bf16 %v18007_v35, %v17983_v29  ;;  %v15602_v29 = vunpack.i.h.bf16 %v18498_v15 }
 0x33f   : > { %13633 = vmatpush3.bf16.msra.mxu1 %v13632_v49  ;;  %15859 = vrot.lane.b32.xlu0 %v23929_v20, %s15927_s20  ;;  %v15341_v20 = vunpack.i.l.bf16 %v17917_v41 }
 0x340   : > { %13635 = vmatprep.subr.bf16.mxu1 %v13634_v57  ;;  %2441 = vmatprep.mubr.f32.mxu1 %v11463_v61  ;;  %v13638_v61 = vpack.c.bf16 %v15482_v40, %v15481_v46  ;;  %v23931_v57 = vpack.i.bf16 %v18418_v60, %v18406_v48  ;;  %v11464_v40 = vld [vmem:[%s23369_s2 + $0xa0] sm:$0xff]  ;;  %v13640_v46 = vpack.c.bf16 %v15322_v21, %v15321_v4  ;;  %v15521_v21 = vunpack.i.l.bf16 %v18386_v24  ;;  %v18635_v4 = vpop.permute.xlu1 %15639 }
 0x341   : > { %15864 = vrot.lane.b32.xlu1 %v23930_v62, %s15927_s20  ;;  %v18599_v49 = vpop.permute.xlu0 %15589  ;;  %3263 = vmatmul.mubr.f32.gmra.mrb[170].mxu0 %v11566_v63  ;;  %v15342_v63 = vunpack.i.h.bf16 %v17917_v41  ;;  %v13642_v62 = vpack.c.bf16 %v15502_v23, %v15501_v47  ;;  %v11570_v41 = vld [vmem:[%s23369_s2 + $0x3f0] sm:$0xff]  ;;  %v15536_v60 = vunpack.i.l.bf16 %v18428_v36 }
 0x342   : > { %2442 = vmatmul.mubr.f32.gmra.mrb[130].mxu1 %v11462_v2  ;;  %3267 = vmatprep.mubr.f32.mxu0 %v11569_v11  ;;  %v23932_v2 = vpack.i.bf16 %v18426_v43, %v18411_v18  ;;  %v11466_v23 = vld [vmem:[%s23369_s2 + $0xb0] sm:$0xff] }
 0x343   : > { %13637 = vmatpush3.bf16.msra.mxu1 %v13636_v28  ;;  %15869 = vrot.lane.b32.xlu0 %v23931_v57, %s15927_s20  ;;  %v11467_v28 = vld [vmem:[%s23369_s2 + $0xb8] sm:$0xff]  ;;  %v13644_v47 = vpack.c.bf16 %v15342_v63, %v15341_v20  ;;  %v15541_v63 = vunpack.i.l.bf16 %v18452_v31  ;;  %v23938_v20 = vpack.i.bf16 %v18459_v56, %v18445_v13 }
 0x344   : > { %13639 = vmatprep.subr.bf16.mxu1 %v13638_v61  ;;  %2446 = vmatprep.mubr.f32.mxu1 %v11465_v9  ;;  %v15522_v9 = vunpack.i.h.bf16 %v18386_v24  ;;  %v23933_v61 = vpack.i.bf16 %v18046_v44, %v18027_v37  ;;  %v11621_v24 = vld [vmem:[%s23369_s2 + $0x588] sm:$0xff] }
 0x345   : > { %15874 = vrot.lane.b32.xlu1 %v23932_v2, %s15927_s20  ;;  %v18625_v11 = vpop.permute.xlu0 %15594  ;;  %3268 = vmatmul.mubr.f32.gmra.mrb[172].mxu0 %v11568_v7  ;;  %v23934_v7 = vld [vmem:[#allocation173_spill] sm:$0xff]  ;;  %v11469_v37 = vld [vmem:[%s23369_s2 + $0xc8] sm:$0xff] }
 0x346   : > { %2447 = vmatmul.mubr.f32.gmra.mrb[132].mxu1 %v11464_v40  ;;  %3272 = vmatprep.mubr.f32.mxu0 %v11571_v32  ;;  %v15362_v57 = vunpack.i.h.bf16 %v23934_v7  ;;  %v15361_v40 = vunpack.i.l.bf16 %v23934_v7  ;;  %v23935_v32 = vld [vmem:[#allocation188_spill] sm:$0xff]  ;;  %v13646_v44 = vpack.c.bf16 %v15522_v9, %v15521_v21  ;;  %v23939_v9 = vld [vmem:[#allocation189_spill] sm:$0xff] }
 0x347   : > { %13641 = vmatpush3.bf16.msra.mxu1 %v13640_v46  ;;  %15879 = vrot.lane.b32.xlu0 %v23933_v61, %s15927_s20  ;;  %v23936_v46 = vld [vmem:[#allocation182_spill] sm:$0xff]  ;;  %v15382_v21 = vunpack.i.h.bf16 %v23939_v9  ;;  %v15381_v7 = vunpack.i.l.bf16 %v23939_v9  ;;  %v11470_v9 = vld [vmem:[%s23369_s2 + $0xd0] sm:$0xff] }
 0x348   : > { %13643 = vmatprep.subr.bf16.mxu1 %v13642_v62  ;;  %2451 = vmatprep.mubr.f32.mxu1 %v11467_v28  ;;  %v23937_v2 = vpack.i.bf16 %v23935_v32, %v23936_v46  ;;  %v15542_v28 = vunpack.i.h.bf16 %v18452_v31  ;;  %v11468_v62 = vld [vmem:[%s23369_s2 + $0xc0] sm:$0xff]  ;;  %v18669_v31 = vpop.permute.xlu1 %15644 }
 0x349   : > { %v18653_v61 = vpop.permute.xlu0 %15609  ;;  %3273 = vmatmul.mubr.f32.gmra.mrb[174].mxu0 %v11570_v41  ;;  %v13648_v41 = vpack.c.bf16 %v15362_v57, %v15361_v40  ;;  %v15561_v57 = vunpack.i.l.bf16 %v18508_v45  ;;  %v23941_v40 = vld [vmem:[#allocation195_spill] sm:$0xff] }
 0x34a   : > { %15884 = vrot.lane.b32.xlu1 %v23937_v2, %s15927_s20  ;;  %2452 = vmatmul.mubr.f32.gmra.mrb[134].mxu1 %v11466_v23  ;;  %v23940_v23 = vpack.i.bf16 %v18468_v33, %v18450_v6  ;;  %v23942_v2 = vld [vmem:[#allocation190_spill] sm:$0xff]  ;;  %v23946_v6 = vld [vmem:[#allocation192_spill] sm:$0xff] }
 0x34b   : > { %3771 = vmatprep.mubr.f32.mxu0 %v11621_v24  ;;  %13645 = vmatpush3.bf16.msra.mxu1 %v13644_v47  ;;  %v11471_v47 = vld [vmem:[%s23369_s2 + $0xd8] sm:$0xff] }
 0x34c   : > { %15889 = vrot.lane.b32.xlu0 %v23938_v20, %s15927_s20  ;;  %13647 = vmatprep.subr.bf16.mxu1 %v13646_v44  ;;  %v13650_v44 = vpack.c.bf16 %v15542_v28, %v15541_v63  ;;  %v23943_v20 = vpack.i.bf16 %v23941_v40, %v23942_v2  ;;  %v11473_v28 = vld [vmem:[%s23369_s2 + $0xe8] sm:$0xff]  ;;  %v13652_v63 = vpack.c.bf16 %v15382_v21, %v15381_v7  ;;  %v18702_v33 = vpop.permute.xlu1 %15654  ;;  %v11472_v21 = vld [vmem:[%s23369_s2 + $0xe0] sm:$0xff]  ;;  %v11475_v7 = vld [vmem:[%s23369_s2 + $0xf8] sm:$0xff] }
 0x34d   : > { %2456 = vmatprep.mubr.f32.mxu1 %v11469_v37  ;;  %v18675_v24 = vpop.permute.xlu0 %15614  ;;  %v15562_v37 = vunpack.i.h.bf16 %v18508_v45 }
 0x34e   : > { %15894 = vrot.lane.b32.xlu1 %v23940_v23, %s15927_s20  ;;  %2457 = vmatmul.mubr.f32.gmra.mrb[136].mxu1 %v11468_v62  ;;  %v23944_v23 = vld [vmem:[#allocation203_spill] sm:$0xff] }
 0x34f   : > { %13649 = vmatpush3.bf16.msra.mxu1 %v13648_v41  ;;  %2461 = vmatprep.mubr.f32.mxu1 %v11471_v47  ;;  %v15402_v45 = vunpack.i.h.bf16 %v23944_v23  ;;  %v15401_v62 = vunpack.i.l.bf16 %v23944_v23  ;;  %v23945_v41 = vld [vmem:[#allocation196_spill] sm:$0xff]  ;;  %v13654_v40 = vpack.c.bf16 %v15562_v37, %v15561_v57  ;;  %v15581_v47 = vunpack.i.l.bf16 %v18571_v0  ;;  %v23948_v37 = vld [vmem:[#allocation217_spill] sm:$0xff] }
 0x350   : > { %15899 = vrot.lane.b32.xlu0 %v23943_v20, %s15927_s20  ;;  %13651 = vmatprep.subr.bf16.mxu1 %v13650_v44  ;;  %v23947_v2 = vpack.i.bf16 %v23945_v41, %v23946_v6  ;;  %v15582_v44 = vunpack.i.h.bf16 %v18571_v0  ;;  %v15422_v57 = vunpack.i.h.bf16 %v23948_v37  ;;  %v15421_v23 = vunpack.i.l.bf16 %v23948_v37  ;;  %v18716_v41 = vpop.permute.xlu1 %15664 }
 0x351   : > { %v18698_v20 = vpop.permute.xlu0 %15629 }
 0x352   : > { %15904 = vrot.lane.b32.xlu1 %v23947_v2, %s15927_s20  ;;  %2462 = vmatmul.mubr.f32.gmra.mrb[138].mxu1 %v11470_v9  ;;  %v13656_v2 = vpack.c.bf16 %v15402_v45, %v15401_v62  ;;  %v23949_v9 = vld [vmem:[#allocation197_spill] sm:$0xff]  ;;  %v11493_v45 = vld [vmem:[%s23369_s2 + $0x188] sm:$0xff]  ;;  %v23950_v62 = vld [vmem:[#allocation151_spill] sm:$0xff] }
 0x353   : > { %13653 = vmatpush3.bf16.msra.mxu1 %v13652_v63  ;;  %2466 = vmatprep.mubr.f32.mxu1 %v11473_v28  ;;  %v15437_v6 = vunpack.i.h.bf16 %v23949_v9  ;;  %v15436_v28 = vunpack.i.l.bf16 %v23949_v9  ;;  %v13658_v63 = vpack.c.bf16 %v15582_v44, %v15581_v47  ;;  %v15277_v37 = vunpack.i.h.bf16 %v23950_v62  ;;  %v23951_v47 = vld [vmem:[#allocation207_spill] sm:$0xff] }
 0x354   : > { %13655 = vmatprep.subr.bf16.mxu1 %v13654_v40  ;;  %v11474_v40 = vld [vmem:[%s23369_s2 + $0xf0] sm:$0xff]  ;;  %v15276_v46 = vunpack.i.l.bf16 %v23950_v62  ;;  %v13660_v9 = vpack.c.bf16 %v15422_v57, %v15421_v23  ;;  %v18730_v32 = vpop.permute.xlu1 %15674  ;;  %v11495_v57 = vld [vmem:[%s23369_s2 + $0x198] sm:$0xff] }
 0x355   : > { %v18712_v0 = vpop.permute.xlu0 %15634  ;;  %v23952_v62 = vld [vmem:[#allocation158_spill] sm:$0xff] }
 0x356   : > { %2467 = vmatmul.mubr.f32.gmra.mrb[140].mxu1 %v11472_v21  ;;  %v15457_v21 = vunpack.i.h.bf16 %v23951_v47  ;;  %v13664_v23 = vpack.c.bf16 %v15277_v37, %v15276_v46  ;;  %v15297_v13 = vunpack.i.h.bf16 %v23952_v62  ;;  %v11494_v46 = vld [vmem:[%s23369_s2 + $0x190] sm:$0xff]  ;;  %v11497_v37 = vld [vmem:[%s23369_s2 + $0x1a8] sm:$0xff] }
 0x357   : > { %13657 = vmatpush3.bf16.msra.mxu1 %v13656_v2  ;;  %2471 = vmatprep.mubr.f32.mxu1 %v11475_v7  ;;  %v15456_v7 = vunpack.i.l.bf16 %v23951_v47  ;;  %v13662_v2 = vpack.c.bf16 %v15437_v6, %v15436_v28  ;;  %v15296_v47 = vunpack.i.l.bf16 %v23952_v62  ;;  %v23953_v6 = vld [vmem:[#allocation221_spill] sm:$0xff] }
 0x358   : > { %13659 = vmatprep.subr.bf16.mxu1 %v13658_v63  ;;  %v11492_v63 = vld [vmem:[%s23369_s2 + $0x180] sm:$0xff]  ;;  %v15477_v28 = vunpack.i.h.bf16 %v23953_v6  ;;  %v18744_v56 = vpop.permute.xlu1 %15684  ;;  %v23954_v62 = vld [vmem:[#allocation161_spill] sm:$0xff] }
 0x359   : > { %v18726_v44 = vpop.permute.xlu0 %15649  ;;  %v15317_v18 = vunpack.i.h.bf16 %v23954_v62 }
 0x35a   : > { %2472 = vmatmul.mubr.f32.gmra.mrb[142].mxu1 %v11474_v40 }
 0x35b   : > { %13661 = vmatpush3.bf16.msra.mxu1 %v13660_v9  ;;  %2703 = vmatprep.mubr.f32.mxu1 %v11493_v45  ;;  %v15476_v45 = vunpack.i.l.bf16 %v23953_v6  ;;  %v13666_v9 = vpack.c.bf16 %v15457_v21, %v15456_v7  ;;  %v15316_v6 = vunpack.i.l.bf16 %v23954_v62  ;;  %v23955_v7 = vld [vmem:[#allocation234_spill] sm:$0xff] }
 0x35c   : > { %13663 = vmatprep.subr.bf16.mxu1 %v13662_v2  ;;  %v13668_v2 = vpack.c.bf16 %v15297_v13, %v15296_v47  ;;  %v11496_v13 = vld [vmem:[%s23369_s2 + $0x1a0] sm:$0xff]  ;;  %v11499_v47 = vld [vmem:[%s23369_s2 + $0x1b8] sm:$0xff] }
 0x35d   : > { %v18740_v40 = vpop.permute.xlu0 %15659  ;;  %v13670_v21 = vpack.c.bf16 %v15477_v28, %v15476_v45  ;;  %v23956_v28 = vld [vmem:[#allocation165_spill] sm:$0xff] }
 0x35e   : > { %2704 = vmatmul.mubr.f32.vlgmr.msra.gmra.mrb[144].mxu1 %v11492_v63  ;;  %v15337_v45 = vunpack.i.h.bf16 %v23956_v28  ;;  %v15336_v62 = vunpack.i.l.bf16 %v23956_v28 }
 0x35f   : > { %13665 = vmatpush3.bf16.msra.mxu1 %v13664_v23  ;;  %2708 = vmatprep.mubr.f32.mxu1 %v11495_v57  ;;  %v15497_v23 = vunpack.i.h.bf16 %v23955_v7  ;;  %v15496_v57 = vunpack.i.l.bf16 %v23955_v7  ;;  %v18758_v43 = vpop.permute.xlu1 %15694 }
 0x360   : > { %13667 = vmatprep.subr.bf16.mxu1 %v13666_v9  ;;  %v13672_v9 = vpack.c.bf16 %v15317_v18, %v15316_v6  ;;  %v11498_v18 = vld [vmem:[%s23369_s2 + $0x1b0] sm:$0xff] }
 0x361   : > { %v18754_v63 = vpop.permute.xlu0 %15669 }
 0x362   : > { %2709 = vmatmul.mubr.f32.gmra.mrb[146].mxu1 %v11494_v46  ;;  %v13674_v46 = vpack.c.bf16 %v15497_v23, %v15496_v57  ;;  %v11501_v23 = vld [vmem:[%s23369_s2 + $0x1c8] sm:$0xff] }
 0x363   : > { %13669 = vmatpush3.bf16.msra.mxu1 %v13668_v2  ;;  %2713 = vmatprep.mubr.f32.mxu1 %v11497_v37  ;;  %v15517_v2 = vunpack.i.h.bf16 %v18365_v55  ;;  %v15516_v37 = vunpack.i.l.bf16 %v18365_v55  ;;  %v13676_v55 = vpack.c.bf16 %v15337_v45, %v15336_v62  ;;  %v23957_v57 = vld [vmem:[#allocation168_spill] sm:$0xff]  ;;  %v11500_v45 = vld [vmem:[%s23369_s2 + $0x1c0] sm:$0xff]  ;;  %v11503_v62 = vld [vmem:[%s23369_s2 + $0x1d8] sm:$0xff] }
 0x364   : > { %13671 = vmatprep.subr.bf16.mxu1 %v13670_v21  ;;  %v15601_v21 = vunpack.i.l.bf16 %v18498_v15  ;;  %v15356_v48 = vunpack.i.l.bf16 %v23957_v57 }
 0x365   : > { %v18768_v7 = vpop.permute.xlu0 %15679 }
 0x366   : > { %2714 = vmatmul.mubr.f32.gmra.mrb[148].mxu1 %v11496_v13  ;;  %v15357_v13 = vunpack.i.h.bf16 %v23957_v57 }
 0x367   : > { %v15710_v35 = vpop.permute.xlu1 %15709  ;;  %13673 = vmatpush3.bf16.msra.mxu1 %v13672_v9  ;;  %2718 = vmatprep.mubr.f32.mxu1 %v11499_v47  ;;  %v13678_v9 = vpack.c.bf16 %v15517_v2, %v15516_v37  ;;  %v15537_v47 = vunpack.i.h.bf16 %v18428_v36  ;;  %v23958_v37 = vld [vmem:[#allocation174_spill] sm:$0xff] }
 0x368   : > { %v15712_v6 = vunpack.i.h.bf16 %v15710_v35  ;;  %v15711_v28 = vunpack.i.l.bf16 %v15710_v35  ;;  %13675 = vmatprep.subr.bf16.mxu1 %v13674_v46  ;;  %v13760_v35 = vpack.c.bf16 %v15602_v29, %v15601_v21  ;;  %v13680_v2 = vpack.c.bf16 %v15357_v13, %v15356_v48  ;;  %v11502_v48 = vld [vmem:[%s23369_s2 + $0x1d0] sm:$0xff] }
 0x369   : > { %v18782_v15 = vpop.permute.xlu0 %15689  ;;  %v15377_v36 = vunpack.i.h.bf16 %v23958_v37  ;;  %v13682_v21 = vpack.c.bf16 %v15537_v47, %v15536_v60  ;;  %v11505_v60 = vld [vmem:[%s23369_s2 + $0x1e8] sm:$0xff] }
 0x36a   : > { %v13758_v50 = vpack.c.bf16 %v15712_v6, %v15711_v28  ;;  %2719 = vmatmul.mubr.f32.gmra.mrb[150].mxu1 %v11498_v18  ;;  %v15376_v18 = vunpack.i.l.bf16 %v23958_v37  ;;  %v15557_v6 = vunpack.i.h.bf16 %v18490_v1  ;;  %v15556_v28 = vunpack.i.l.bf16 %v18490_v1 }
 0x36b   : > { %v18786_v46 = vpop.permute.xlu1 %15714  ;;  %13677 = vmatpush3.bf16.msra.mxu1 %v13676_v55  ;;  %2723 = vmatprep.mubr.f32.mxu1 %v11501_v23  ;;  %v15621_v23 = vunpack.i.l.bf16 %v18556_v58 }
 0x36c   : > { %13759 = vmatprep.subr.bf16.mxu0 %v13758_v50  ;;  %13679 = vmatprep.subr.bf16.mxu1 %v13678_v9  ;;  %v15622_v50 = vunpack.i.h.bf16 %v18556_v58  ;;  %v13684_v1 = vpack.c.bf16 %v15377_v36, %v15376_v18  ;;  %v23959_v9 = vld [vmem:[#allocation179_spill] sm:$0xff]  ;;  %v11507_v18 = vld [vmem:[%s23369_s2 + $0x1f8] sm:$0xff] }
 0x36d   : > { %13761 = vmatpush3.bf16.msra.mxu0 %v13760_v35  ;;  %v15700_v29 = vpop.permute.xlu0 %15699  ;;  %v15397_v47 = vunpack.i.h.bf16 %v23959_v9  ;;  %v15396_v35 = vunpack.i.l.bf16 %v23959_v9  ;;  %v11504_v36 = vld [vmem:[%s23369_s2 + $0x1e0] sm:$0xff] }
 0x36e   : > { %2724 = vmatmul.mubr.f32.gmra.mrb[152].mxu1 %v11500_v45  ;;  %v13686_v45 = vpack.c.bf16 %v15557_v6, %v15556_v28  ;;  %v23960_v28 = vld [vmem:[#allocation184_spill] sm:$0xff] }
 0x36f   : > { %v15730_v55 = vpop.permute.xlu1 %15729  ;;  %13681 = vmatpush3.bf16.msra.mxu1 %v13680_v2  ;;  %2728 = vmatprep.mubr.f32.mxu1 %v11503_v62  ;;  %v15577_v62 = vunpack.i.h.bf16 %v18546_v38  ;;  %v15576_v2 = vunpack.i.l.bf16 %v18546_v38  ;;  %v13688_v6 = vpack.c.bf16 %v15397_v47, %v15396_v35  ;;  %v15417_v38 = vunpack.i.h.bf16 %v23960_v28  ;;  %v11506_v47 = vld [vmem:[%s23369_s2 + $0x1f0] sm:$0xff] }
 0x370   : > { %v15732_v57 = vunpack.i.h.bf16 %v15730_v55  ;;  %v15731_v13 = vunpack.i.l.bf16 %v15730_v55  ;;  %13683 = vmatprep.subr.bf16.mxu1 %v13682_v21  ;;  %v13764_v55 = vpack.c.bf16 %v15622_v50, %v15621_v23 }
 0x371   : > { %v18808_v58 = vpop.permute.xlu0 %15704  ;;  %v13690_v23 = vpack.c.bf16 %v15577_v62, %v15576_v2  ;;  %v11525_v62 = vld [vmem:[%s23369_s2 + $0x288] sm:$0xff]  ;;  %v15592_v2 = vunpack.i.h.bf16 %v18599_v49 }
 0x372   : > { %v13762_v37 = vpack.c.bf16 %v15732_v57, %v15731_v13  ;;  %2729 = vmatmul.mubr.f32.gmra.mrb[154].mxu1 %v11502_v48  ;;  %v15416_v48 = vunpack.i.l.bf16 %v23960_v28  ;;  %v15702_v57 = vunpack.i.h.bf16 %v15700_v29  ;;  %v15701_v13 = vunpack.i.l.bf16 %v15700_v29 }
 0x373   : > { %v18812_v21 = vpop.permute.xlu1 %15734  ;;  %13685 = vmatpush3.bf16.msra.mxu1 %v13684_v1  ;;  %2733 = vmatprep.mubr.f32.mxu1 %v11505_v60  ;;  %v15642_v60 = vunpack.i.h.bf16 %v18635_v4  ;;  %v15641_v1 = vunpack.i.l.bf16 %v18635_v4 }
 0x374   : > { %13763 = vmatprep.subr.bf16.mxu0 %v13762_v37  ;;  %13687 = vmatprep.subr.bf16.mxu1 %v13686_v45  ;;  %v13692_v29 = vpack.c.bf16 %v15417_v38, %v15416_v48  ;;  %v15591_v37 = vunpack.i.l.bf16 %v18599_v49  ;;  %v11524_v38 = vld [vmem:[%s23369_s2 + $0x280] sm:$0xff]  ;;  %v11527_v49 = vld [vmem:[%s23369_s2 + $0x298] sm:$0xff] }
 0x375   : > { %13765 = vmatpush3.bf16.msra.mxu0 %v13764_v55  ;;  %v15720_v50 = vpop.permute.xlu0 %15719  ;;  %v13726_v55 = vpack.c.bf16 %v15702_v57, %v15701_v13  ;;  %v13768_v28 = vpack.c.bf16 %v15642_v60, %v15641_v1 }
 0x376   : > { %2734 = vmatmul.mubr.f32.gmra.mrb[156].mxu1 %v11504_v36  ;;  %v15722_v36 = vunpack.i.h.bf16 %v15720_v50  ;;  %v13728_v48 = vpack.c.bf16 %v15592_v2, %v15591_v37  ;;  %v15632_v37 = vunpack.i.h.bf16 %v18698_v20 }
 0x377   : > { %v15750_v9 = vpop.permute.xlu1 %15749  ;;  %13689 = vmatpush3.bf16.msra.mxu1 %v13688_v6  ;;  %2738 = vmatprep.mubr.f32.mxu1 %v11507_v18  ;;  %v15721_v18 = vunpack.i.l.bf16 %v15720_v50  ;;  %v15612_v50 = vunpack.i.h.bf16 %v18653_v61 }
 0x378   : > { %v15752_v35 = vunpack.i.h.bf16 %v15750_v9  ;;  %v15751_v45 = vunpack.i.l.bf16 %v15750_v9  ;;  %13691 = vmatprep.subr.bf16.mxu1 %v13690_v23  ;;  %v15611_v23 = vunpack.i.l.bf16 %v18653_v61  ;;  %v15657_v9 = vunpack.i.h.bf16 %v18702_v33  ;;  %v11529_v61 = vld [vmem:[%s23369_s2 + $0x2a8] sm:$0xff] }
 0x379   : > { %v18832_v4 = vpop.permute.xlu0 %15724  ;;  %v13730_v13 = vpack.c.bf16 %v15722_v36, %v15721_v18 }
 0x37a   : > { %v13766_v6 = vpack.c.bf16 %v15752_v35, %v15751_v45  ;;  %2739 = vmatmul.mubr.f32.gmra.mrb[158].mxu1 %v11506_v47  ;;  %v15656_v47 = vunpack.i.l.bf16 %v18702_v33  ;;  %v11526_v45 = vld [vmem:[%s23369_s2 + $0x290] sm:$0xff]  ;;  %v13732_v2 = vpack.c.bf16 %v15612_v50, %v15611_v23  ;;  %v15651_v50 = vunpack.i.l.bf16 %v18726_v44 }
 0x37b   : > { %v18834_v51 = vpop.permute.xlu1 %15754  ;;  %13693 = vmatpush3.bf16.msra.mxu1 %v13692_v29  ;;  %2970 = vmatprep.mubr.f32.mxu1 %v11525_v62 }
 0x37c   : > { %13767 = vmatprep.subr.bf16.mxu0 %v13766_v6  ;;  %13727 = vmatprep.subr.bf16.mxu1 %v13726_v55  ;;  %v15631_v55 = vunpack.i.l.bf16 %v18698_v20  ;;  %v13772_v6 = vpack.c.bf16 %v15657_v9, %v15656_v47  ;;  %v11531_v20 = vld [vmem:[%s23369_s2 + $0x2b8] sm:$0xff]  ;;  %v11530_v47 = vld [vmem:[%s23369_s2 + $0x2b0] sm:$0xff] }
 0x37d   : > { %13769 = vmatpush3.bf16.msra.mxu0 %v13768_v28  ;;  %v15740_v57 = vpop.permute.xlu0 %15739 }
 0x37e   : > { %v15742_v60 = vunpack.i.h.bf16 %v15740_v57  ;;  %v15741_v1 = vunpack.i.l.bf16 %v15740_v57  ;;  %2971 = vmatmul.mubr.f32.vlgmr.msra.gmra.mrb[160].mxu1 %v11524_v38  ;;  %v11528_v38 = vld [vmem:[%s23369_s2 + $0x2a0] sm:$0xff] }
 0x37f   : > { %v15770_v35 = vpop.permute.xlu1 %15769  ;;  %13729 = vmatpush3.bf16.msra.mxu1 %v13728_v48  ;;  %2975 = vmatprep.mubr.f32.mxu1 %v11527_v49  ;;  %v13736_v49 = vpack.c.bf16 %v15632_v37, %v15631_v55  ;;  %v15652_v48 = vunpack.i.h.bf16 %v18726_v44  ;;  %v11533_v44 = vld [vmem:[%s23369_s2 + $0x2c8] sm:$0xff]  ;;  %v11532_v37 = vld [vmem:[%s23369_s2 + $0x2c0] sm:$0xff]  ;;  %v11535_v55 = vld [vmem:[%s23369_s2 + $0x2d8] sm:$0xff] }
 0x380   : > { %v15772_v62 = vunpack.i.h.bf16 %v15770_v35  ;;  %v15771_v29 = vunpack.i.l.bf16 %v15770_v35  ;;  %13731 = vmatprep.subr.bf16.mxu1 %v13730_v13  ;;  %v13734_v36 = vpack.c.bf16 %v15742_v60, %v15741_v1  ;;  %v15667_v60 = vunpack.i.h.bf16 %v18716_v41 }
 0x381   : > { %v18854_v33 = vpop.permute.xlu0 %15744  ;;  %v15666_v1 = vunpack.i.l.bf16 %v18716_v41 }
 0x382   : > { %v13770_v18 = vpack.c.bf16 %v15772_v62, %v15771_v29  ;;  %2976 = vmatmul.mubr.f32.gmra.mrb[162].mxu1 %v11526_v45  ;;  %v13740_v29 = vpack.c.bf16 %v15652_v48, %v15651_v50  ;;  %v15676_v48 = vunpack.i.l.bf16 %v18730_v32 }
 0x383   : > { %v18856_v28 = vpop.permute.xlu1 %15774  ;;  %13733 = vmatpush3.bf16.msra.mxu1 %v13732_v2  ;;  %2980 = vmatprep.mubr.f32.mxu1 %v11529_v61  ;;  %v13776_v41 = vpack.c.bf16 %v15667_v60, %v15666_v1 }
 0x384   : > { %13771 = vmatprep.subr.bf16.mxu0 %v13770_v18  ;;  %13735 = vmatprep.subr.bf16.mxu1 %v13734_v36  ;;  %v15662_v36 = vunpack.i.h.bf16 %v18740_v40  ;;  %v15661_v18 = vunpack.i.l.bf16 %v18740_v40  ;;  %v11537_v40 = vld [vmem:[%s23369_s2 + $0x2e8] sm:$0xff] }
 0x385   : > { %13773 = vmatpush3.bf16.msra.mxu0 %v13772_v6  ;;  %v15760_v23 = vpop.permute.xlu0 %15759 }
 0x386   : > { %v15762_v57 = vunpack.i.h.bf16 %v15760_v23  ;;  %v15761_v13 = vunpack.i.l.bf16 %v15760_v23  ;;  %2981 = vmatmul.mubr.f32.gmra.mrb[164].mxu1 %v11528_v38  ;;  %v11534_v23 = vld [vmem:[%s23369_s2 + $0x2d0] sm:$0xff]  ;;  %v13744_v1 = vpack.c.bf16 %v15662_v36, %v15661_v18  ;;  %v15687_v18 = vunpack.i.h.bf16 %v18744_v56 }
 0x387   : > { %v15785_v9 = vpop.permute.xlu1 %15784  ;;  %13737 = vmatpush3.bf16.msra.mxu1 %v13736_v49  ;;  %2985 = vmatprep.mubr.f32.mxu1 %v11531_v20  ;;  %v15677_v49 = vunpack.i.h.bf16 %v18730_v32 }
 0x388   : > { %v13738_v35 = vpack.c.bf16 %v15762_v57, %v15761_v13  ;;  %v15787_v45 = vunpack.i.h.bf16 %v15785_v9  ;;  %v15786_v62 = vunpack.i.l.bf16 %v15785_v9  ;;  %v15672_v9 = vunpack.i.h.bf16 %v18754_v63 }
 0x389   : > { %v18874_v61 = vpop.permute.xlu0 %15764 }
 0x38a   : > { %v13774_v2 = vpack.c.bf16 %v15787_v45, %v15786_v62  ;;  %13739 = vmatprep.subr.bf16.mxu1 %v13738_v35  ;;  %2986 = vmatmul.mubr.f32.gmra.mrb[166].mxu1 %v11530_v47  ;;  %v15671_v47 = vunpack.i.l.bf16 %v18754_v63 }
 0x38b   : > { %13741 = vmatpush3.bf16.msra.mxu1 %v13740_v29  ;;  %2990 = vmatprep.mubr.f32.mxu1 %v11533_v44  ;;  %v13780_v44 = vpack.c.bf16 %v15677_v49, %v15676_v48  ;;  %v11536_v29 = vld [vmem:[%s23369_s2 + $0x2e0] sm:$0xff]  ;;  %v11538_v48 = vld [vmem:[%s23369_s2 + $0x2f0] sm:$0xff] }
 0x38c   : > { %13775 = vmatprep.subr.bf16.mxu0 %v13774_v2  ;;  %v13748_v63 = vpack.c.bf16 %v15672_v9, %v15671_v47  ;;  %v15707_v47 = vunpack.i.h.bf16 %v18808_v58 }
 0x38d   : > { %13777 = vmatpush3.bf16.msra.mxu0 %v13776_v41  ;;  %v15780_v6 = vpop.permute.xlu0 %15779  ;;  %v11539_v41 = vld [vmem:[%s23369_s2 + $0x2f8] sm:$0xff] }
 0x38e   : > { %v15782_v38 = vunpack.i.h.bf16 %v15780_v6  ;;  %v15781_v20 = vunpack.i.l.bf16 %v15780_v6  ;;  %2991 = vmatmul.mubr.f32.gmra.mrb[168].mxu1 %v11532_v37  ;;  %v15682_v37 = vunpack.i.h.bf16 %v18768_v7  ;;  %v15686_v6 = vunpack.i.l.bf16 %v18744_v56 }
 0x38f   : > { %v15795_v50 = vpop.permute.xlu1 %15794  ;;  %2995 = vmatprep.mubr.f32.mxu1 %v11535_v55  ;;  %v15681_v55 = vunpack.i.l.bf16 %v18768_v7  ;;  %v11589_v7 = vld [vmem:[%s23369_s2 + $0x488] sm:$0xff] }
 0x390   : > { %v13742_v57 = vpack.c.bf16 %v15782_v38, %v15781_v20  ;;  %v15797_v13 = vunpack.i.h.bf16 %v15795_v50  ;;  %v15796_v60 = vunpack.i.l.bf16 %v15795_v50  ;;  %v13784_v56 = vpack.c.bf16 %v15687_v18, %v15686_v6 }
 0x391   : > { %v15790_v35 = vpop.permute.xlu0 %15789 }
 0x392   : > { %v13778_v32 = vpack.c.bf16 %v15797_v13, %v15796_v60  ;;  %v15792_v45 = vunpack.i.h.bf16 %v15790_v35  ;;  %v15791_v62 = vunpack.i.l.bf16 %v15790_v35  ;;  %13743 = vmatprep.subr.bf16.mxu1 %v13742_v57  ;;  %2996 = vmatmul.mubr.f32.gmra.mrb[170].mxu1 %v11534_v23  ;;  %v13752_v13 = vpack.c.bf16 %v15682_v37, %v15681_v55 }
 0x393   : > { %13745 = vmatpush3.bf16.msra.mxu1 %v13744_v1  ;;  %3000 = vmatprep.mubr.f32.mxu1 %v11537_v40  ;;  %v15692_v40 = vunpack.i.h.bf16 %v18782_v15  ;;  %v15691_v1 = vunpack.i.l.bf16 %v18782_v15  ;;  %v15706_v35 = vunpack.i.l.bf16 %v18808_v58  ;;  %v15597_v55 = vunpack.i.h.bf16 %v18625_v11 }
 0x394   : > { %v13746_v2 = vpack.c.bf16 %v15792_v45, %v15791_v62  ;;  %13779 = vmatprep.subr.bf16.mxu0 %v13778_v32  ;;  %v15697_v62 = vunpack.i.h.bf16 %v18758_v43 }
 0x395   : > { %13781 = vmatpush3.bf16.msra.mxu0 %v13780_v44  ;;  %v15696_v44 = vunpack.i.l.bf16 %v18758_v43  ;;  %v13756_v18 = vpack.c.bf16 %v15692_v40, %v15691_v1  ;;  %v13790_v6 = vpack.c.bf16 %v15707_v47, %v15706_v35  ;;  %v15726_v43 = vunpack.i.l.bf16 %v18832_v4  ;;  %v11620_v40 = vld [vmem:[%s23369_s2 + $0x580] sm:$0xff]  ;;  %v11623_v47 = vld [vmem:[%s23369_s2 + $0x598] sm:$0xff] }
 0x396   : > { %v15800_v36 = vpop.permute.xlu0 %15799  ;;  %13747 = vmatprep.subr.bf16.mxu1 %v13746_v2  ;;  %3001 = vmatmul.mubr.f32.gmra.mrb[172].mxu1 %v11536_v29  ;;  %v15717_v29 = vunpack.i.h.bf16 %v18786_v46 }
 0x397   : > { %v15802_v38 = vunpack.i.h.bf16 %v15800_v36  ;;  %v15801_v20 = vunpack.i.l.bf16 %v15800_v36  ;;  %v15805_v49 = vpop.permute.xlu1 %15804  ;;  %13749 = vmatpush3.bf16.msra.mxu1 %v13748_v63  ;;  %3005 = vmatprep.mubr.f32.mxu1 %v11539_v41  ;;  %v15716_v41 = vunpack.i.l.bf16 %v18786_v46  ;;  %v15596_v36 = vunpack.i.l.bf16 %v18625_v11  ;;  %v11588_v11 = vld [vmem:[%s23369_s2 + $0x480] sm:$0xff] }
 0x398   : > { %v15807_v50 = vunpack.i.h.bf16 %v15805_v49  ;;  %v15806_v23 = vunpack.i.l.bf16 %v15805_v49  ;;  %v15607_v49 = vunpack.i.h.bf16 %v18522_v17  ;;  %v15606_v46 = vunpack.i.l.bf16 %v18522_v17 }
 0x399   : > { %v13750_v57 = vpack.c.bf16 %v15802_v38, %v15801_v20  ;;  %v15727_v38 = vunpack.i.h.bf16 %v18832_v4  ;;  %v11591_v4 = vld [vmem:[%s23369_s2 + $0x498] sm:$0xff]  ;;  %v13792_v17 = vpack.c.bf16 %v15597_v55, %v15596_v36  ;;  %v15767_v55 = vunpack.i.h.bf16 %v18874_v61 }
 0x39a   : > { %v13782_v60 = vpack.c.bf16 %v15807_v50, %v15806_v23  ;;  %3006 = vmatmul.mubr.f32.gmra.mrb[174].mxu1 %v11538_v48  ;;  %v13788_v48 = vpack.c.bf16 %v15697_v62, %v15696_v44  ;;  %v13822_v23 = vpack.c.bf16 %v15717_v29, %v15716_v41  ;;  %v13824_v35 = vpack.c.bf16 %v15607_v49, %v15606_v46  ;;  %v11590_v62 = vld [vmem:[%s23369_s2 + $0x490] sm:$0xff] }
 0x39b   : > { %13751 = vmatprep.subr.bf16.mxu1 %v13750_v57  ;;  %3504 = vmatprep.mubr.f32.mxu1 %v11589_v7  ;;  %v15737_v7 = vunpack.i.h.bf16 %v18812_v21  ;;  %v15736_v57 = vunpack.i.l.bf16 %v18812_v21  ;;  %v13794_v1 = vpack.c.bf16 %v15727_v38, %v15726_v43  ;;  %v15747_v21 = vunpack.i.h.bf16 %v18854_v33 }
 0x39c   : > { %13753 = vmatpush3.bf16.msra.mxu1 %v13752_v13  ;;  %13783 = vmatprep.subr.bf16.mxu0 %v13782_v60  ;;  %v15617_v13 = vunpack.i.h.bf16 %v18675_v24  ;;  %v15616_v60 = vunpack.i.l.bf16 %v18675_v24  ;;  %v15627_v24 = vunpack.i.h.bf16 %v18593_v34  ;;  %v15757_v44 = vunpack.i.h.bf16 %v18834_v51 }
 0x39d   : > { %13785 = vmatpush3.bf16.msra.mxu0 %v13784_v56  ;;  %v15810_v9 = vpop.permute.xlu0 %15809  ;;  %v15756_v29 = vunpack.i.l.bf16 %v18834_v51  ;;  %v15637_v41 = vunpack.i.h.bf16 %v18712_v0  ;;  %v15766_v36 = vunpack.i.l.bf16 %v18874_v61  ;;  %v15646_v38 = vunpack.i.l.bf16 %v18669_v31 }
 0x39e   : > { %v15812_v32 = vunpack.i.h.bf16 %v15810_v9  ;;  %v15811_v45 = vunpack.i.l.bf16 %v15810_v9  ;;  %v15746_v9 = vunpack.i.l.bf16 %v18854_v33  ;;  %v13826_v33 = vpack.c.bf16 %v15737_v7, %v15736_v57  ;;  %v11624_v57 = vld [vmem:[%s23369_s2 + $0x5a0] sm:$0xff] }
 0x39f   : > { %v15820_v2 = vpop.permute.xlu1 %15819  ;;  %v13830_v61 = vpack.c.bf16 %v15757_v44, %v15756_v29  ;;  %v15777_v49 = vunpack.i.h.bf16 %v18856_v28  ;;  %v15776_v46 = vunpack.i.l.bf16 %v18856_v28 }
 0x3a0   : > { %v13754_v63 = vpack.c.bf16 %v15812_v32, %v15811_v45  ;;  %v15822_v37 = vunpack.i.h.bf16 %v15820_v2  ;;  %v15821_v15 = vunpack.i.l.bf16 %v15820_v2  ;;  %v15626_v32 = vunpack.i.l.bf16 %v18593_v34  ;;  %v11593_v2 = vld [vmem:[%s23369_s2 + $0x4a8] sm:$0xff] }
 0x3a1   : > { %v18920_v58 = vpop.permute.xlu0 %15814  ;;  %v13796_v34 = vpack.c.bf16 %v15617_v13, %v15616_v60  ;;  %v13798_v51 = vpack.c.bf16 %v15747_v21, %v15746_v9  ;;  %v11627_v13 = vld [vmem:[%s23369_s2 + $0x5b8] sm:$0xff]  ;;  %v11594_v21 = vld [vmem:[%s23369_s2 + $0x4b0] sm:$0xff]  ;;  %v13834_v9 = vpack.c.bf16 %v15777_v49, %v15776_v46 }
 0x3a2   : > { %v13786_v20 = vpack.c.bf16 %v15822_v37, %v15821_v15  ;;  %13755 = vmatprep.subr.bf16.mxu1 %v13754_v63  ;;  %v15636_v63 = vunpack.i.l.bf16 %v18712_v0  ;;  %v11622_v15 = vld [vmem:[%s23369_s2 + $0x590] sm:$0xff]  ;;  %v13828_v0 = vpack.c.bf16 %v15627_v24, %v15626_v32 }
 0x3a3   : > { %v18926_v50 = vpop.permute.xlu1 %15824  ;;  %13757 = vmatpush3.bf16.msra.mxu1 %v13756_v18  ;;  %v11625_v18 = vld [vmem:[%s23369_s2 + $0x5a8] sm:$0xff] }
 0x3a4   : > { %13787 = vmatprep.subr.bf16.mxu0 %v13786_v20  ;;  %13791 = vmatprep.subr.bf16.mxu1 %v13790_v6  ;;  %v15647_v6 = vunpack.i.h.bf16 %v18669_v31  ;;  %v11592_v20 = vld [vmem:[%s23369_s2 + $0x4a0] sm:$0xff]  ;;  %v13800_v31 = vpack.c.bf16 %v15637_v41, %v15636_v63 }
 0x3a5   : > { %13789 = vmatpush3.bf16.msra.mxu0 %v13788_v48  ;;  %v18938_v56 = vpop.permute.xlu0 %15829  ;;  %v11595_v48 = vld [vmem:[%s23369_s2 + $0x4b8] sm:$0xff] }
 0x3a6   : > { %13823 = vmatprep.subr.bf16.mxu0 %v13822_v23  ;;  %3505 = vmatmul.mubr.f32.vlgmr.msra.gmra.mrb[176].mxu1 %v11588_v11  ;;  %v15817_v11 = vunpack.i.h.bf16 %v18920_v58  ;;  %v15816_v23 = vunpack.i.l.bf16 %v18920_v58  ;;  %v15832_v28 = vunpack.i.h.bf16 %v18938_v56  ;;  %v13832_v60 = vpack.c.bf16 %v15647_v6, %v15646_v38 }
 0x3a7   : > { %v18950_v45 = vpop.permute.xlu1 %15834  ;;  %13793 = vmatpush3.bf16.msra.mxu1 %v13792_v17  ;;  %3509 = vmatprep.mubr.f32.mxu1 %v11591_v4  ;;  %v13802_v4 = vpack.c.bf16 %v15767_v55, %v15766_v36  ;;  %v15831_v17 = vunpack.i.l.bf16 %v18938_v56  ;;  %v15827_v58 = vunpack.i.h.bf16 %v18926_v50 }
 0x3a8   : > { %3772 = vmatmul.mubr.f32.vlgmr.msra.gmra.mrb[176].mxu0 %v11620_v40  ;;  %13795 = vmatprep.subr.bf16.mxu1 %v13794_v1  ;;  %v15826_v40 = vunpack.i.l.bf16 %v18926_v50  ;;  %v15837_v56 = vunpack.i.h.bf16 %v18950_v45  ;;  %v13804_v24 = vpack.c.bf16 %v15817_v11, %v15816_v23 }
 0x3a9   : > { %13825 = vmatpush3.bf16.msra.mxu0 %v13824_v35  ;;  %v18962_v37 = vpop.permute.xlu0 %15839  ;;  %3776 = vmatprep.mubr.f32.mxu0 %v11623_v47  ;;  %v15836_v47 = vunpack.i.l.bf16 %v18950_v45  ;;  %v11597_v35 = vld [vmem:[%s23369_s2 + $0x4c8] sm:$0xff]  ;;  %v13806_v44 = vpack.c.bf16 %v15832_v28, %v15831_v17 }
 0x3aa   : > { %13827 = vmatprep.subr.bf16.mxu0 %v13826_v33  ;;  %3510 = vmatmul.mubr.f32.gmra.mrb[178].mxu1 %v11590_v62  ;;  %v15842_v50 = vunpack.i.h.bf16 %v18962_v37  ;;  %v15841_v32 = vunpack.i.l.bf16 %v18962_v37  ;;  %v11626_v33 = vld [vmem:[%s23369_s2 + $0x5b0] sm:$0xff] }
 0x3ab   : > { %v18974_v43 = vpop.permute.xlu1 %15844  ;;  %13797 = vmatpush3.bf16.msra.mxu1 %v13796_v34  ;;  %3514 = vmatprep.mubr.f32.mxu1 %v11593_v2  ;;  %v11629_v2 = vld [vmem:[%s23369_s2 + $0x5c8] sm:$0xff]  ;;  %v13836_v34 = vpack.c.bf16 %v15827_v58, %v15826_v40  ;;  %v11630_v40 = vld [vmem:[%s23369_s2 + $0x5d0] sm:$0xff] }
 0x3ac   : > { %13799 = vmatprep.subr.bf16.mxu1 %v13798_v51  ;;  %3777 = vmatmul.mubr.f32.gmra.mrb[178].mxu0 %v11622_v15  ;;  %v15847_v41 = vunpack.i.h.bf16 %v18974_v43  ;;  %v15846_v63 = vunpack.i.l.bf16 %v18974_v43  ;;  %v11596_v15 = vld [vmem:[%s23369_s2 + $0x4c0] sm:$0xff]  ;;  %v13838_v51 = vpack.c.bf16 %v15837_v56, %v15836_v47  ;;  %v11633_v56 = vld [vmem:[%s23369_s2 + $0x5e8] sm:$0xff] }
 0x3ad   : > { %13829 = vmatpush3.bf16.msra.mxu0 %v13828_v0  ;;  %v15850_v7 = vpop.permute.xlu0 %15849  ;;  %3781 = vmatprep.mubr.f32.mxu0 %v11625_v18  ;;  %v11599_v18 = vld [vmem:[%s23369_s2 + $0x4d8] sm:$0xff]  ;;  %v13808_v0 = vpack.c.bf16 %v15842_v50, %v15841_v32 }
 0x3ae   : > { %13831 = vmatprep.subr.bf16.mxu0 %v13830_v61  ;;  %3515 = vmatmul.mubr.f32.gmra.mrb[180].mxu1 %v11592_v20  ;;  %v15852_v45 = vunpack.i.h.bf16 %v15850_v7  ;;  %v15851_v29 = vunpack.i.l.bf16 %v15850_v7  ;;  %v11628_v20 = vld [vmem:[%s23369_s2 + $0x5c0] sm:$0xff] }
 0x3af   : > { %v15855_v1 = vpop.permute.xlu1 %15854  ;;  %13801 = vmatpush3.bf16.msra.mxu1 %v13800_v31  ;;  %3519 = vmatprep.mubr.f32.mxu1 %v11595_v48  ;;  %v11631_v48 = vld [vmem:[%s23369_s2 + $0x5d8] sm:$0xff]  ;;  %v13840_v31 = vpack.c.bf16 %v15847_v41, %v15846_v63 }
 0x3b0   : > { %13803 = vmatprep.subr.bf16.mxu1 %v13802_v4  ;;  %3782 = vmatmul.mubr.f32.gmra.mrb[180].mxu0 %v11624_v57  ;;  %v15857_v55 = vunpack.i.h.bf16 %v15855_v1  ;;  %v15856_v36 = vunpack.i.l.bf16 %v15855_v1  ;;  %v13810_v61 = vpack.c.bf16 %v15852_v45, %v15851_v29  ;;  %v11598_v57 = vld [vmem:[%s23369_s2 + $0x4d0] sm:$0xff]  ;;  %v11632_v29 = vld [vmem:[%s23369_s2 + $0x5e0] sm:$0xff]  ;;  %v11635_v63 = vld [vmem:[%s23369_s2 + $0x5f8] sm:$0xff] }
 0x3b1   : > { %13833 = vmatpush3.bf16.msra.mxu0 %v13832_v60  ;;  %v15860_v62 = vpop.permute.xlu0 %15859  ;;  %3786 = vmatprep.mubr.f32.mxu0 %v11627_v13  ;;  %v11601_v13 = vld [vmem:[%s23369_s2 + $0x4e8] sm:$0xff] }
 0x3b2   : > { %13835 = vmatprep.subr.bf16.mxu0 %v13834_v9  ;;  %3520 = vmatmul.mubr.f32.gmra.mrb[182].mxu1 %v11594_v21  ;;  %v15862_v6 = vunpack.i.h.bf16 %v15860_v62  ;;  %v15861_v38 = vunpack.i.l.bf16 %v15860_v62  ;;  %v13842_v4 = vpack.c.bf16 %v15857_v55, %v15856_v36 }
 0x3b3   : > { %v15865_v37 = vpop.permute.xlu1 %15864  ;;  %13805 = vmatpush3.bf16.msra.mxu1 %v13804_v24  ;;  %3524 = vmatprep.mubr.f32.mxu1 %v11597_v35  ;;  %v11600_v24 = vld [vmem:[%s23369_s2 + $0x4e0] sm:$0xff] }
 0x3b4   : > { %13807 = vmatprep.subr.bf16.mxu1 %v13806_v44  ;;  %3787 = vmatmul.mubr.f32.gmra.mrb[182].mxu0 %v11626_v33  ;;  %v15867_v11 = vunpack.i.h.bf16 %v15865_v37  ;;  %v15866_v23 = vunpack.i.l.bf16 %v15865_v37  ;;  %v13812_v60 = vpack.c.bf16 %v15862_v6, %v15861_v38  ;;  %v11603_v44 = vld [vmem:[%s23369_s2 + $0x4f8] sm:$0xff]  ;;  %v11634_v6 = vld [vmem:[%s23369_s2 + $0x5f0] sm:$0xff] }
 0x3b5   : > { %13837 = vmatpush3.bf16.msra.mxu0 %v13836_v34  ;;  %v15870_v43 = vpop.permute.xlu0 %15869  ;;  %3791 = vmatprep.mubr.f32.mxu0 %v11629_v2 }
 0x3b6   : > { %v15872_v49 = vunpack.i.h.bf16 %v15870_v43  ;;  %v15871_v46 = vunpack.i.l.bf16 %v15870_v43  ;;  %13839 = vmatprep.subr.bf16.mxu0 %v13838_v51  ;;  %3525 = vmatmul.mubr.f32.gmra.mrb[184].mxu1 %v11596_v15  ;;  %v13844_v47 = vpack.c.bf16 %v15867_v11, %v15866_v23  ;;  %v11602_v15 = vld [vmem:[%s23369_s2 + $0x4f0] sm:$0xff]  ;;  %v11652_v23 = vld [vmem:[%s23369_s2 + $0x680] sm:$0xff] }
 0x3b7   : > { %v15875_v7 = vpop.permute.xlu1 %15874  ;;  %13809 = vmatpush3.bf16.msra.mxu1 %v13808_v0  ;;  %3529 = vmatprep.mubr.f32.mxu1 %v11599_v18  ;;  %v11653_v18 = vld [vmem:[%s23369_s2 + $0x688] sm:$0xff] }
 0x3b8   : > { %v15877_v28 = vunpack.i.h.bf16 %v15875_v7  ;;  %v15876_v17 = vunpack.i.l.bf16 %v15875_v7  ;;  %13811 = vmatprep.subr.bf16.mxu1 %v13810_v61  ;;  %3792 = vmatmul.mubr.f32.gmra.mrb[184].mxu0 %v11628_v20  ;;  %v13814_v1 = vpack.c.bf16 %v15872_v49, %v15871_v46  ;;  %v11685_v61 = vld [vmem:[%s23369_s2 + $0x788] sm:$0xff] }
 0x3b9   : > { %13841 = vmatpush3.bf16.msra.mxu0 %v13840_v31  ;;  %v15880_v58 = vpop.permute.xlu0 %15879  ;;  %3796 = vmatprep.mubr.f32.mxu0 %v11631_v48  ;;  %v23961_v7 = vld [vmem:[#allocation72_spill] sm:$0xff] }
 0x3ba   : > { %v15882_v21 = vunpack.i.h.bf16 %v15880_v58  ;;  %v15881_v9 = vunpack.i.l.bf16 %v15880_v58  ;;  %13843 = vmatprep.subr.bf16.mxu0 %v13842_v4  ;;  %3530 = vmatmul.mubr.f32.gmra.mrb[186].mxu1 %v11598_v57  ;;  %v13846_v50 = vpack.c.bf16 %v15877_v28, %v15876_v17  ;;  %v23962_v57 = vld [vmem:[#allocation68_spill] sm:$0xff]  ;;  %v11655_v28 = vld [vmem:[%s23369_s2 + $0x698] sm:$0xff]  ;;  %v11684_v17 = vld [vmem:[%s23369_s2 + $0x780] sm:$0xff] }
 0x3bb   : > { %13813 = vmatpush3.bf16.msra.mxu1 %v13812_v60  ;;  %3534 = vmatprep.mubr.f32.mxu1 %v11601_v13  ;;  %v23963_v4 = vpack.c.bf16 %v23961_v7, %v23962_v57  ;;  %v23964_v13 = vld [vmem:[#allocation73_spill] sm:$0xff]  ;;  %v23994_v7 = vld [vmem:[#allocation96_spill] sm:$0xff] }
 0x3bc   : > { %v15885_v35 = vpop.permute.xlu1 %15884  ;;  %v13816_v32 = vpack.c.bf16 %v15882_v21, %v15881_v9  ;;  %13815 = vmatprep.subr.bf16.mxu1 %v13814_v1  ;;  %3797 = vmatmul.mubr.f32.gmra.mrb[186].mxu0 %v11630_v40  ;;  %v23965_v60 = vld [vmem:[#allocation69_spill] sm:$0xff]  ;;  %v11687_v40 = vld [vmem:[%s23369_s2 + $0x798] sm:$0xff]  ;;  %v23967_v1 = vld [vmem:[#allocation7_spill] sm:$0xff] }
 0x3bd   : > { %v15887_v62 = vunpack.i.h.bf16 %v15885_v35  ;;  %v15886_v33 = vunpack.i.l.bf16 %v15885_v35  ;;  %13845 = vmatpush3.bf16.msra.mxu0 %v13844_v47  ;;  %3801 = vmatprep.mubr.f32.mxu0 %v11633_v56  ;;  %v23966_v58 = vpack.c.bf16 %v23964_v13, %v23965_v60  ;;  %v23968_v21 = vld [vmem:[#allocation3_spill] sm:$0xff]  ;;  %v11654_v56 = vld [vmem:[%s23369_s2 + $0x690] sm:$0xff]  ;;  %v23970_v47 = vld [vmem:[#allocation80_spill] sm:$0xff] }
 0x3be   : > { %v15890_v45 = vpop.permute.xlu0 %15889  ;;  %13847 = vmatprep.subr.bf16.mxu0 %v13846_v50  ;;  %3535 = vmatmul.mubr.f32.gmra.mrb[188].mxu1 %v11600_v24  ;;  %v23969_v9 = vpack.c.bf16 %v23967_v1, %v23968_v21  ;;  %v23971_v35 = vld [vmem:[#allocation76_spill] sm:$0xff]  ;;  %v23998_v13 = vld [vmem:[#allocation21_spill] sm:$0xff] }
 0x3bf   : > { %v13848_v2 = vpack.c.bf16 %v15887_v62, %v15886_v33  ;;  %v15892_v34 = vunpack.i.h.bf16 %v15890_v45  ;;  %v15891_v41 = vunpack.i.l.bf16 %v15890_v45  ;;  %13817 = vmatpush3.bf16.msra.mxu1 %v13816_v32  ;;  %3539 = vmatprep.mubr.f32.mxu1 %v11603_v44  ;;  %v23972_v24 = vpack.c.bf16 %v23970_v47, %v23971_v35  ;;  %v11657_v50 = vld [vmem:[%s23369_s2 + $0x6a8] sm:$0xff]  ;;  %v23973_v32 = vld [vmem:[#allocation9_spill] sm:$0xff] }
 0x3c0   : > { %v15895_v37 = vpop.permute.xlu1 %15894  ;;  %3802 = vmatmul.mubr.f32.gmra.mrb[188].mxu0 %v11632_v29  ;;  %v23974_v62 = vld [vmem:[#allocation5_spill] sm:$0xff]  ;;  %v23995_v57 = vld [vmem:[#allocation92_spill] sm:$0xff] }
 0x3c1   : > { %v13818_v51 = vpack.c.bf16 %v15892_v34, %v15891_v41  ;;  %v15897_v55 = vunpack.i.h.bf16 %v15895_v37  ;;  %v15896_v36 = vunpack.i.l.bf16 %v15895_v37  ;;  %13849 = vmatpush3.bf16.msra.mxu0 %v13848_v2  ;;  %3806 = vmatprep.mubr.f32.mxu0 %v11635_v63  ;;  %v23975_v33 = vpack.c.bf16 %v23973_v32, %v23974_v62  ;;  %v11686_v44 = vld [vmem:[%s23369_s2 + $0x790] sm:$0xff]  ;;  %v11689_v34 = vld [vmem:[%s23369_s2 + $0x7a8] sm:$0xff] }
 0x3c2   : > { %v15900_v0 = vpop.permute.xlu0 %15899  ;;  %3540 = vmatmul.mubr.f32.gmra.mrb[190].mxu1 %v11602_v15  ;;  %v23976_v45 = vld [vmem:[#allocation81_spill] sm:$0xff]  ;;  %v23979_v41 = vld [vmem:[#allocation16_spill] sm:$0xff]  ;;  %v11656_v15 = vld [vmem:[%s23369_s2 + $0x6a0] sm:$0xff] }
 0x3c3   : > { %v13850_v38 = vpack.c.bf16 %v15897_v55, %v15896_v36  ;;  %v15902_v43 = vunpack.i.h.bf16 %v15900_v0  ;;  %v15901_v20 = vunpack.i.l.bf16 %v15900_v0  ;;  %13819 = vmatprep.subr.bf16.mxu1 %v13818_v51  ;;  %4038 = vmatprep.mubr.f32.mxu1 %v11653_v18  ;;  %v23977_v29 = vld [vmem:[#allocation77_spill] sm:$0xff]  ;;  %v23980_v63 = vld [vmem:[#allocation12_spill] sm:$0xff]  ;;  %v11659_v18 = vld [vmem:[%s23369_s2 + $0x6b8] sm:$0xff] }
 0x3c4   : > { %v15905_v49 = vpop.permute.xlu1 %15904  ;;  %3807 = vmatmul.mubr.f32.gmra.mrb[190].mxu0 %v11634_v6  ;;  %v23978_v2 = vpack.c.bf16 %v23976_v45, %v23977_v29  ;;  %v23981_v37 = vpack.c.bf16 %v23979_v41, %v23980_v63  ;;  %v23982_v51 = vld [vmem:[#allocation88_spill] sm:$0xff]  ;;  %v23985_v0 = vld [vmem:[#allocation17_spill] sm:$0xff] }
 0x3c5   : > { %v13820_v46 = vpack.c.bf16 %v15902_v43, %v15901_v20  ;;  %v15907_v48 = vunpack.i.h.bf16 %v15905_v49  ;;  %v15906_v31 = vunpack.i.l.bf16 %v15905_v49  ;;  %13851 = vmatprep.subr.bf16.mxu0 %v13850_v38  ;;  %4305 = vmatprep.mubr.f32.mxu0 %v11685_v61  ;;  %v23983_v55 = vld [vmem:[#allocation84_spill] sm:$0xff]  ;;  %v23986_v6 = vld [vmem:[#allocation13_spill] sm:$0xff]  ;;  %v11688_v43 = vld [vmem:[%s23369_s2 + $0x7a0] sm:$0xff] }
 0x3c6   : > { %v23984_v36 = vpack.c.bf16 %v23982_v51, %v23983_v55  ;;  %v23987_v38 = vpack.c.bf16 %v23985_v0, %v23986_v6  ;;  %v23988_v20 = vld [vmem:[#allocation89_spill] sm:$0xff]  ;;  %v24004_v47 = vld [vmem:[#allocation28_spill] sm:$0xff] }
 0x3c7   : > { %v13852_v11 = vpack.c.bf16 %v15907_v48, %v15906_v31  ;;  %13821 = vmatpush3.bf16.msra.mxu1 %v13820_v46  ;;  %v23989_v61 = vld [vmem:[#allocation85_spill] sm:$0xff]  ;;  %v11691_v46 = vld [vmem:[%s23369_s2 + $0x7b8] sm:$0xff]  ;;  %v23991_v48 = vld [vmem:[#allocation24_spill] sm:$0xff] }
 0x3c8   : > { %13855 = vmatprep.subr.bf16.mxu1 %v23963_v4  ;;  %v23990_v49 = vpack.c.bf16 %v23988_v20, %v23989_v61  ;;  %v23992_v31 = vld [vmem:[#allocation20_spill] sm:$0xff]  ;;  %v23996_v4 = vpack.c.bf16 %v23994_v7, %v23995_v57  ;;  %v24001_v1 = vld [vmem:[#allocation93_spill] sm:$0xff] }
 0x3c9   : > { %13853 = vmatpush3.bf16.msra.mxu0 %v13852_v11  ;;  %v23993_v11 = vpack.c.bf16 %v23991_v48, %v23992_v31  ;;  %v24007_v32 = vld [vmem:[#allocation100_spill] sm:$0xff]  ;;  %v24010_v45 = vld [vmem:[#allocation29_spill] sm:$0xff] }
 0x3ca   : > { %13887 = vmatprep.subr.bf16.mxu0 %v23966_v58  ;;  %4039 = vmatmul.mubr.f32.vlgmr.msra.gmra.mrb[192].mxu1 %v11652_v23  ;;  %v11658_v23 = vld [vmem:[%s23369_s2 + $0x6b0] sm:$0xff]  ;;  %v24016_v51 = vld [vmem:[#allocation36_spill] sm:$0xff] }
 0x3cb   : > { %13857 = vmatpush3.bf16.msra.mxu1 %v23969_v9  ;;  %4043 = vmatprep.mubr.f32.mxu1 %v11655_v28  ;;  %v11661_v28 = vld [vmem:[%s23369_s2 + $0x6c8] sm:$0xff]  ;;  %v11690_v58 = vld [vmem:[%s23369_s2 + $0x7b0] sm:$0xff] }
 0x3cc   : > { %4306 = vmatmul.mubr.f32.vlgmr.msra.gmra.mrb[192].mxu0 %v11684_v17  ;;  %13859 = vmatprep.subr.bf16.mxu1 %v23972_v24  ;;  %v23997_v17 = vld [vmem:[#allocation25_spill] sm:$0xff]  ;;  %v11693_v9 = vld [vmem:[%s23369_s2 + $0x7c8] sm:$0xff]  ;;  %v11660_v24 = vld [vmem:[%s23369_s2 + $0x6c0] sm:$0xff] }
 0x3cd   : > { %13889 = vmatpush3.bf16.msra.mxu0 %v23975_v33  ;;  %4310 = vmatprep.mubr.f32.mxu0 %v11687_v40  ;;  %v23999_v60 = vpack.c.bf16 %v23997_v17, %v23998_v13  ;;  %v24000_v40 = vld [vmem:[#allocation97_spill] sm:$0xff]  ;;  %v11663_v33 = vld [vmem:[%s23369_s2 + $0x6d8] sm:$0xff]  ;;  %v24019_v0 = vld [vmem:[#allocation108_spill] sm:$0xff] }
 0x3ce   : > { %13891 = vmatprep.subr.bf16.mxu0 %v23978_v2  ;;  %4044 = vmatmul.mubr.f32.gmra.mrb[194].mxu1 %v11654_v56  ;;  %v24002_v21 = vpack.c.bf16 %v24000_v40, %v24001_v1  ;;  %v24003_v56 = vld [vmem:[#allocation32_spill] sm:$0xff]  ;;  %v11692_v2 = vld [vmem:[%s23369_s2 + $0x7c0] sm:$0xff]  ;;  %v24013_v41 = vld [vmem:[#allocation101_spill] sm:$0xff] }
 0x3cf   : > { %13861 = vmatpush3.bf16.msra.mxu1 %v23981_v37  ;;  %4048 = vmatprep.mubr.f32.mxu1 %v11657_v50  ;;  %v24005_v35 = vpack.c.bf16 %v24003_v56, %v24004_v47  ;;  %v24006_v50 = vld [vmem:[#allocation104_spill] sm:$0xff]  ;;  %v11695_v37 = vld [vmem:[%s23369_s2 + $0x7d8] sm:$0xff]  ;;  %v24022_v20 = vld [vmem:[#allocation37_spill] sm:$0xff] }
 0x3d0   : > { %4311 = vmatmul.mubr.f32.gmra.mrb[194].mxu0 %v11686_v44  ;;  %13863 = vmatprep.subr.bf16.mxu1 %v23984_v36  ;;  %v24008_v62 = vpack.c.bf16 %v24006_v50, %v24007_v32  ;;  %v24009_v44 = vld [vmem:[#allocation33_spill] sm:$0xff]  ;;  %v24028_v7 = vld [vmem:[#allocation44_spill] sm:$0xff] }
 0x3d1   : > { %13893 = vmatpush3.bf16.msra.mxu0 %v23987_v38  ;;  %4315 = vmatprep.mubr.f32.mxu0 %v11689_v34  ;;  %v24011_v29 = vpack.c.bf16 %v24009_v44, %v24010_v45  ;;  %v24012_v34 = vld [vmem:[#allocation105_spill] sm:$0xff]  ;;  %v11665_v38 = vld [vmem:[%s23369_s2 + $0x6e8] sm:$0xff] }
 0x3d2   : > { %13895 = vmatprep.subr.bf16.mxu0 %v23990_v49  ;;  %4049 = vmatmul.mubr.f32.gmra.mrb[196].mxu1 %v11656_v15  ;;  %v24014_v63 = vpack.c.bf16 %v24012_v34, %v24013_v41  ;;  %v24015_v15 = vld [vmem:[#allocation40_spill] sm:$0xff]  ;;  %v11662_v36 = vld [vmem:[%s23369_s2 + $0x6d0] sm:$0xff] }
 0x3d3   : > { %13865 = vmatpush3.bf16.msra.mxu1 %v23993_v11  ;;  %4053 = vmatprep.mubr.f32.mxu1 %v11659_v18  ;;  %v24017_v55 = vpack.c.bf16 %v24015_v15, %v24016_v51  ;;  %v24018_v18 = vld [vmem:[#allocation112_spill] sm:$0xff]  ;;  %v11694_v49 = vld [vmem:[%s23369_s2 + $0x7d0] sm:$0xff]  ;;  %v24049_v15 = vld [vmem:[#allocation126_spill] sm:$0xff] }
 0x3d4   : > { %4316 = vmatmul.mubr.f32.gmra.mrb[196].mxu0 %v11688_v43  ;;  %13867 = vmatprep.subr.bf16.mxu1 %v23996_v4  ;;  %v24020_v6 = vpack.c.bf16 %v24018_v18, %v24019_v0  ;;  %v24021_v43 = vld [vmem:[#allocation41_spill] sm:$0xff]  ;;  %v11697_v11 = vld [vmem:[%s23369_s2 + $0x7e8] sm:$0xff]  ;;  %v11664_v4 = vld [vmem:[%s23369_s2 + $0x6e0] sm:$0xff] }
 0x3d5   : > { %13897 = vmatpush3.bf16.msra.mxu0 %v23999_v60  ;;  %4320 = vmatprep.mubr.f32.mxu0 %v11691_v46  ;;  %v24023_v61 = vpack.c.bf16 %v24021_v43, %v24022_v20  ;;  %v24024_v46 = vld [vmem:[#allocation113_spill] sm:$0xff]  ;;  %v24031_v17 = vld [vmem:[#allocation116_spill] sm:$0xff]  ;;  %v11667_v60 = vld [vmem:[%s23369_s2 + $0x6f8] sm:$0xff] }
 0x3d6   : > { %13899 = vmatprep.subr.bf16.mxu0 %v24002_v21  ;;  %4054 = vmatmul.mubr.f32.gmra.mrb[198].mxu1 %v11658_v23  ;;  %v24025_v48 = vld [vmem:[#allocation109_spill] sm:$0xff]  ;;  %v24027_v23 = vld [vmem:[#allocation48_spill] sm:$0xff]  ;;  %v11696_v21 = vld [vmem:[%s23369_s2 + $0x7e0] sm:$0xff] }
 0x3d7   : > { %13869 = vmatpush3.bf16.msra.mxu1 %v24005_v35  ;;  %4058 = vmatprep.mubr.f32.mxu1 %v11661_v28  ;;  %v24026_v31 = vpack.c.bf16 %v24024_v46, %v24025_v48  ;;  %v24029_v57 = vpack.c.bf16 %v24027_v23, %v24028_v7  ;;  %v24030_v28 = vld [vmem:[#allocation120_spill] sm:$0xff]  ;;  %v24034_v40 = vld [vmem:[#allocation45_spill] sm:$0xff]  ;;  %v11699_v35 = vld [vmem:[%s23369_s2 + $0x7f8] sm:$0xff] }
 0x3d8   : > { %4321 = vmatmul.mubr.f32.gmra.mrb[198].mxu0 %v11690_v58  ;;  %13871 = vmatprep.subr.bf16.mxu1 %v24008_v62  ;;  %v24032_v13 = vpack.c.bf16 %v24030_v28, %v24031_v17  ;;  %v24033_v58 = vld [vmem:[#allocation49_spill] sm:$0xff]  ;;  %v24040_v50 = vld [vmem:[#allocation52_spill] sm:$0xff]  ;;  %v24055_v43 = vld [vmem:[#allocation67_spill] sm:$0xff] }
 0x3d9   : > { %13901 = vmatpush3.bf16.msra.mxu0 %v24011_v29  ;;  %4325 = vmatprep.mubr.f32.mxu0 %v11693_v9  ;;  %v24035_v1 = vpack.c.bf16 %v24033_v58, %v24034_v40  ;;  %v24036_v9 = vld [vmem:[#allocation121_spill] sm:$0xff]  ;;  %v24043_v44 = vld [vmem:[#allocation124_spill] sm:$0xff]  ;;  %v24061_v23 = vld [vmem:[#allocation70_spill] sm:$0xff] }
 0x3da   : > { %13903 = vmatprep.subr.bf16.mxu0 %v24014_v63  ;;  %4059 = vmatmul.mubr.f32.gmra.mrb[200].mxu1 %v11660_v24  ;;  %v24037_v56 = vld [vmem:[#allocation117_spill] sm:$0xff]  ;;  %v24039_v24 = vld [vmem:[#allocation56_spill] sm:$0xff]  ;;  %v24067_v58 = vld [vmem:[#allocation75_spill] sm:$0xff] }
 0x3db   : > { %13873 = vmatpush3.bf16.msra.mxu1 %v24017_v55  ;;  %4063 = vmatprep.mubr.f32.mxu1 %v11663_v33  ;;  %v24038_v47 = vpack.c.bf16 %v24036_v9, %v24037_v56  ;;  %v24041_v32 = vpack.c.bf16 %v24039_v24, %v24040_v50  ;;  %v11666_v62 = vld [vmem:[%s23369_s2 + $0x6f0] sm:$0xff]  ;;  %v24042_v33 = vld [vmem:[#allocation128_spill] sm:$0xff]  ;;  %v24070_v9 = vld [vmem:[#allocation6_spill] sm:$0xff] }
 0x3dc   : > { %4326 = vmatmul.mubr.f32.gmra.mrb[200].mxu0 %v11692_v2  ;;  %13875 = vmatprep.subr.bf16.mxu1 %v24020_v6  ;;  %v24044_v45 = vpack.c.bf16 %v24042_v33, %v24043_v44  ;;  %v2212_v29 = vld [vmem:[%s23369_s2 + $0x8] sm:$0xff]  ;;  %v24045_v2 = vld [vmem:[#allocation57_spill] sm:$0xff]  ;;  %v2211_v6 = vld [vmem:[%s23369_s2] sm:$0xff] }
 0x3dd   : > { %13905 = vmatpush3.bf16.msra.mxu0 %v24023_v61  ;;  %4330 = vmatprep.mubr.f32.mxu0 %v11695_v37  ;;  %v24046_v34 = vld [vmem:[#allocation53_spill] sm:$0xff]  ;;  %v24048_v37 = vld [vmem:[#allocation130_spill] sm:$0xff]  ;;  %v11477_v55 = vld [vmem:[%s23369_s2 + $0x108] sm:$0xff] }
 0x3de   : > { %13907 = vmatprep.subr.bf16.mxu0 %v24026_v31  ;;  %4064 = vmatmul.mubr.f32.gmra.mrb[202].mxu1 %v11662_v36  ;;  %v24047_v41 = vpack.c.bf16 %v24045_v2, %v24046_v34  ;;  %v11698_v63 = vld [vmem:[%s23369_s2 + $0x7f0] sm:$0xff]  ;;  %v24050_v51 = vpack.c.bf16 %v24048_v37, %v24049_v15  ;;  %v24051_v36 = vld [vmem:[#allocation64_spill] sm:$0xff]  ;;  %v2214_v61 = vld [vmem:[%s23369_s2 + $0x18] sm:$0xff] }
 0x3df   : > { %13877 = vmatpush3.bf16.msra.mxu1 %v24029_v57  ;;  %4068 = vmatprep.mubr.f32.mxu1 %v11665_v38  ;;  %v24052_v18 = vld [vmem:[#allocation60_spill] sm:$0xff]  ;;  %v24054_v38 = vld [vmem:[#allocation71_spill] sm:$0xff]  ;;  %v24058_v46 = vld [vmem:[#allocation61_spill] sm:$0xff] }
 0x3e0   : > { %4331 = vmatmul.mubr.f32.gmra.mrb[202].mxu0 %v11694_v49  ;;  %13879 = vmatprep.subr.bf16.mxu1 %v24032_v13  ;;  %v24053_v0 = vpack.c.bf16 %v24051_v36, %v24052_v18  ;;  %v24056_v20 = vpack.c.bf16 %v24054_v38, %v24055_v43  ;;  %v24057_v49 = vld [vmem:[#allocation65_spill] sm:$0xff]  ;;  %v11476_v31 = vld [vmem:[%s23369_s2 + $0x100] sm:$0xff]  ;;  %v11479_v57 = vld [vmem:[%s23369_s2 + $0x118] sm:$0xff] }
 0x3e1   : > { %13909 = vmatpush3.bf16.msra.mxu0 %v24035_v1  ;;  %4335 = vmatprep.mubr.f32.mxu0 %v11697_v11  ;;  %v24059_v48 = vpack.c.bf16 %v24057_v49, %v24058_v46  ;;  %v24060_v11 = vld [vmem:[#allocation74_spill] sm:$0xff]  ;;  %v24064_v28 = vld [vmem:[#allocation4_spill] sm:$0xff]  ;;  %v2213_v13 = vld [vmem:[%s23369_s2 + $0x10] sm:$0xff] }
 0x3e2   : > { %13911 = vmatprep.subr.bf16.mxu0 %v24038_v47  ;;  %4069 = vmatmul.mubr.f32.gmra.mrb[204].mxu1 %v11664_v4  ;;  %v24062_v7 = vpack.c.bf16 %v24060_v11, %v24061_v23  ;;  %v24063_v4 = vld [vmem:[#allocation8_spill] sm:$0xff]  ;;  %v11478_v47 = vld [vmem:[%s23369_s2 + $0x110] sm:$0xff]  ;;  %v24073_v24 = vld [vmem:[#allocation78_spill] sm:$0xff] }
 0x3e3   : > { %13881 = vmatpush3.bf16.msra.mxu1 %v24041_v32  ;;  %4073 = vmatprep.mubr.f32.mxu1 %v11667_v60  ;;  %v24065_v17 = vpack.c.bf16 %v24063_v4, %v24064_v28  ;;  %v24066_v60 = vld [vmem:[#allocation79_spill] sm:$0xff]  ;;  %v2216_v1 = vld [vmem:[%s23369_s2 + $0x28] sm:$0xff]  ;;  %v24082_v37 = vld [vmem:[#allocation14_spill] sm:$0xff] }
 0x3e4   : > { %4336 = vmatmul.mubr.f32.gmra.mrb[204].mxu0 %v11696_v21  ;;  %13883 = vmatprep.subr.bf16.mxu1 %v24044_v45  ;;  %v24068_v40 = vpack.c.bf16 %v24066_v60, %v24067_v58  ;;  %v24069_v21 = vld [vmem:[#allocation10_spill] sm:$0xff]  ;;  %v11481_v32 = vld [vmem:[%s23369_s2 + $0x128] sm:$0xff]  ;;  %v24076_v33 = vld [vmem:[#allocation11_spill] sm:$0xff] }
 0x3e5   : > { %13913 = vmatpush3.bf16.msra.mxu0 %v24047_v41  ;;  %4340 = vmatprep.mubr.f32.mxu0 %v11699_v35  ;;  %v24071_v56 = vpack.c.bf16 %v24069_v21, %v24070_v9  ;;  %v24072_v35 = vld [vmem:[#allocation82_spill] sm:$0xff]  ;;  %v2215_v45 = vld [vmem:[%s23369_s2 + $0x20] sm:$0xff] }
 0x3e6   : > { %13915 = vmatprep.subr.bf16.mxu0 %v24050_v51  ;;  %4074 = vmatmul.mubr.f32.gmra.mrb[206].mxu1 %v11666_v62  ;;  %v24074_v50 = vpack.c.bf16 %v24072_v35, %v24073_v24  ;;  %v24075_v62 = vld [vmem:[#allocation15_spill] sm:$0xff]  ;;  %v2218_v41 = vld [vmem:[%s23369_s2 + $0x38] sm:$0xff] }
 0x3e7   : > { %13885 = vmatpush3.bf16.msra.mxu1 %v24053_v0  ;;  %4410 = vmatprep.mubr.f32.mxu1 %v2212_v29  ;;  %v24077_v44 = vpack.c.bf16 %v24075_v62, %v24076_v33  ;;  %v24078_v29 = vld [vmem:[#allocation87_spill] sm:$0xff]  ;;  %v24085_v36 = vld [vmem:[#allocation86_spill] sm:$0xff] }
 0x3e8   : > { %4341 = vmatmul.mubr.f32.gmra.mrb[206].mxu0 %v11698_v63  ;;  %13919 = vmatprep.subr.bf16.mxu1 %v24056_v20  ;;  %v24079_v2 = vld [vmem:[#allocation83_spill] sm:$0xff]  ;;  %v24081_v63 = vld [vmem:[#allocation18_spill] sm:$0xff]  ;;  %v2217_v20 = vld [vmem:[%s23369_s2 + $0x30] sm:$0xff] }
 0x3e9   : > { %13917 = vmatpush3.bf16.msra.mxu0 %v24059_v48  ;;  %4515 = vmatprep.mubr.f32.mxu0 %v11477_v55  ;;  %v24080_v34 = vpack.c.bf16 %v24078_v29, %v24079_v2  ;;  %v24083_v15 = vpack.c.bf16 %v24081_v63, %v24082_v37  ;;  %v11480_v51 = vld [vmem:[%s23369_s2 + $0x120] sm:$0xff]  ;;  %v24084_v55 = vld [vmem:[#allocation90_spill] sm:$0xff]  ;;  %v2220_v48 = vld [vmem:[%s23369_s2 + $0x48] sm:$0xff] }
 0x3ea   : > { %13951 = vmatprep.subr.bf16.mxu0 %v24062_v7  ;;  %4411 = vmatmul.mubr.f32.vlgmr.msra.gmra.mrb[208].mxu1 %v2211_v6  ;;  %v24086_v18 = vpack.c.bf16 %v24084_v55, %v24085_v36  ;;  %v11483_v0 = vld [vmem:[%s23369_s2 + $0x138] sm:$0xff]  ;;  %v24087_v6 = vld [vmem:[#allocation23_spill] sm:$0xff]  ;;  %v11482_v7 = vld [vmem:[%s23369_s2 + $0x130] sm:$0xff] }
 0x3eb   : > { %13921 = vmatpush3.bf16.msra.mxu1 %v24065_v17  ;;  %4415 = vmatprep.mubr.f32.mxu1 %v2214_v61  ;;  %v24088_v38 = vld [vmem:[#allocation19_spill] sm:$0xff]  ;;  %v24094_v11 = vld [vmem:[#allocation22_spill] sm:$0xff]  ;;  %v11485_v17 = vld [vmem:[%s23369_s2 + $0x148] sm:$0xff] }
 0x3ec   : > { %4516 = vmatmul.mubr.f32.vlgmr.msra.gmra.mrb[208].mxu0 %v11476_v31  ;;  %13923 = vmatprep.subr.bf16.mxu1 %v24068_v40  ;;  %v24089_v43 = vpack.c.bf16 %v24087_v6, %v24088_v38  ;;  %v24090_v61 = vld [vmem:[#allocation95_spill] sm:$0xff]  ;;  %v24093_v31 = vld [vmem:[#allocation26_spill] sm:$0xff] }
 0x3ed   : > { %13953 = vmatpush3.bf16.msra.mxu0 %v24071_v56  ;;  %4520 = vmatprep.mubr.f32.mxu0 %v11479_v57  ;;  %v24091_v49 = vld [vmem:[#allocation91_spill] sm:$0xff]  ;;  %v24095_v23 = vpack.c.bf16 %v24093_v31, %v24094_v11  ;;  %v24096_v57 = vld [vmem:[#allocation98_spill] sm:$0xff] }
 0x3ee   : > { %13955 = vmatprep.subr.bf16.mxu0 %v24074_v50  ;;  %4416 = vmatmul.mubr.f32.gmra.mrb[210].mxu1 %v2213_v13  ;;  %v24092_v46 = vpack.c.bf16 %v24090_v61, %v24091_v49  ;;  %v24097_v4 = vld [vmem:[#allocation94_spill] sm:$0xff]  ;;  %v24099_v13 = vld [vmem:[#allocation31_spill] sm:$0xff] }
 0x3ef   : > { %13925 = vmatpush3.bf16.msra.mxu1 %v24077_v44  ;;  %4420 = vmatprep.mubr.f32.mxu1 %v2216_v1  ;;  %v24098_v28 = vpack.c.bf16 %v24096_v57, %v24097_v4  ;;  %v24100_v60 = vld [vmem:[#allocation27_spill] sm:$0xff]  ;;  %v2222_v56 = vld [vmem:[%s23369_s2 + $0x58] sm:$0xff] }
 0x3f0   : > { %4521 = vmatmul.mubr.f32.gmra.mrb[210].mxu0 %v11478_v47  ;;  %13927 = vmatprep.subr.bf16.mxu1 %v24080_v34  ;;  %v24101_v58 = vpack.c.bf16 %v24099_v13, %v24100_v60  ;;  %v2219_v40 = vld [vmem:[%s23369_s2 + $0x40] sm:$0xff]  ;;  %v24105_v47 = vld [vmem:[#allocation34_spill] sm:$0xff]  ;;  %v2221_v34 = vld [vmem:[%s23369_s2 + $0x50] sm:$0xff] }
 0x3f1   : > { %13957 = vmatpush3.bf16.msra.mxu0 %v24083_v15  ;;  %4525 = vmatprep.mubr.f32.mxu0 %v11481_v32  ;;  %v24102_v1 = vld [vmem:[#allocation103_spill] sm:$0xff]  ;;  %v24106_v35 = vld [vmem:[#allocation30_spill] sm:$0xff]  ;;  %v2224_v15 = vld [vmem:[%s23369_s2 + $0x68] sm:$0xff] }
 0x3f2   : > { %13959 = vmatprep.subr.bf16.mxu0 %v24086_v18  ;;  %4421 = vmatmul.mubr.f32.gmra.mrb[212].mxu1 %v2215_v45  ;;  %v24103_v21 = vld [vmem:[#allocation99_spill] sm:$0xff]  ;;  %v24107_v24 = vpack.c.bf16 %v24105_v47, %v24106_v35  ;;  %v24108_v32 = vld [vmem:[#allocation106_spill] sm:$0xff]  ;;  %v11486_v18 = vld [vmem:[%s23369_s2 + $0x150] sm:$0xff] }
 0x3f3   : > { %13929 = vmatpush3.bf16.msra.mxu1 %v24089_v43  ;;  %4425 = vmatprep.mubr.f32.mxu1 %v2218_v41  ;;  %v24104_v9 = vpack.c.bf16 %v24102_v1, %v24103_v21  ;;  %v11484_v50 = vld [vmem:[%s23369_s2 + $0x140] sm:$0xff]  ;;  %v24109_v62 = vld [vmem:[#allocation102_spill] sm:$0xff]  ;;  %v11489_v43 = vld [vmem:[%s23369_s2 + $0x168] sm:$0xff] }
 0x3f4   : > { %4526 = vmatmul.mubr.f32.gmra.mrb[212].mxu0 %v11480_v51  ;;  %13931 = vmatprep.subr.bf16.mxu1 %v24092_v46  ;;  %v24110_v33 = vpack.c.bf16 %v24108_v32, %v24109_v62  ;;  %v11487_v44 = vld [vmem:[%s23369_s2 + $0x158] sm:$0xff]  ;;  %v24111_v45 = vld [vmem:[#allocation39_spill] sm:$0xff]  ;;  %v2225_v35 = vld [vmem:[%s23369_s2 + $0x70] sm:$0xff] }
 0x3f5   : > { %13961 = vmatpush3.bf16.msra.mxu0 %v24095_v23  ;;  %4530 = vmatprep.mubr.f32.mxu0 %v11483_v0  ;;  %v24112_v29 = vld [vmem:[#allocation35_spill] sm:$0xff]  ;;  %v24117_v51 = vld [vmem:[#allocation42_spill] sm:$0xff]  ;;  %v11509_v62 = vld [vmem:[%s23369_s2 + $0x208] sm:$0xff] }
 0x3f6   : > { %13963 = vmatprep.subr.bf16.mxu0 %v24098_v28  ;;  %4426 = vmatmul.mubr.f32.gmra.mrb[214].mxu1 %v2217_v20  ;;  %v24113_v2 = vpack.c.bf16 %v24111_v45, %v24112_v29  ;;  %v24114_v41 = vld [vmem:[#allocation111_spill] sm:$0xff]  ;;  %v24118_v55 = vld [vmem:[#allocation38_spill] sm:$0xff] }
 0x3f7   : > { %13933 = vmatpush3.bf16.msra.mxu1 %v24101_v58  ;;  %4430 = vmatprep.mubr.f32.mxu1 %v2220_v48  ;;  %v24115_v63 = vld [vmem:[#allocation107_spill] sm:$0xff]  ;;  %v24119_v36 = vpack.c.bf16 %v24117_v51, %v24118_v55  ;;  %v24120_v0 = vld [vmem:[#allocation114_spill] sm:$0xff] }
 0x3f8   : > { %4531 = vmatmul.mubr.f32.gmra.mrb[214].mxu0 %v11482_v7  ;;  %13935 = vmatprep.subr.bf16.mxu1 %v24104_v9  ;;  %v24116_v37 = vpack.c.bf16 %v24114_v41, %v24115_v63  ;;  %v24121_v6 = vld [vmem:[#allocation110_spill] sm:$0xff]  ;;  %v24123_v20 = vld [vmem:[#allocation47_spill] sm:$0xff]  ;;  %v24144_v41 = vld [vmem:[#allocation129_spill] sm:$0xff] }
 0x3f9   : > { %13965 = vmatpush3.bf16.msra.mxu0 %v24107_v24  ;;  %4535 = vmatprep.mubr.f32.mxu0 %v11485_v17  ;;  %v24122_v38 = vpack.c.bf16 %v24120_v0, %v24121_v6  ;;  %v24124_v61 = vld [vmem:[#allocation43_spill] sm:$0xff]  ;;  %v2226_v23 = vld [vmem:[%s23369_s2 + $0x78] sm:$0xff]  ;;  %v24145_v63 = vld [vmem:[#allocation125_spill] sm:$0xff] }
 0x3fa   : > { %13967 = vmatprep.subr.bf16.mxu0 %v24110_v33  ;;  %4431 = vmatmul.mubr.f32.gmra.mrb[216].mxu1 %v2219_v40  ;;  %v24125_v49 = vpack.c.bf16 %v24123_v20, %v24124_v61  ;;  %v2223_v46 = vld [vmem:[%s23369_s2 + $0x60] sm:$0xff]  ;;  %v24129_v57 = vld [vmem:[#allocation50_spill] sm:$0xff]  ;;  %v24150_v6 = vld [vmem:[#allocation204_spill] sm:$0xff] }
 0x3fb   : > { %13937 = vmatpush3.bf16.msra.mxu1 %v24113_v2  ;;  %4435 = vmatprep.mubr.f32.mxu1 %v2222_v56  ;;  %v24126_v48 = vld [vmem:[#allocation119_spill] sm:$0xff]  ;;  %v24130_v4 = vld [vmem:[#allocation46_spill] sm:$0xff]  ;;  %v11490_v2 = vld [vmem:[%s23369_s2 + $0x170] sm:$0xff] }
 0x3fc   : > { %4536 = vmatmul.mubr.f32.gmra.mrb[216].mxu0 %v11484_v50  ;;  %13939 = vmatprep.subr.bf16.mxu1 %v24116_v37  ;;  %v24127_v31 = vld [vmem:[#allocation115_spill] sm:$0xff]  ;;  %v24131_v28 = vpack.c.bf16 %v24129_v57, %v24130_v4  ;;  %v24132_v60 = vld [vmem:[#allocation122_spill] sm:$0xff]  ;;  %v24146_v37 = vpack.c.bf16 %v24144_v41, %v24145_v63  ;;  %v24172_v41 = vld [vmem:[#allocation140_spill] sm:$0xff] }
 0x3fd   : > { %13969 = vmatpush3.bf16.msra.mxu0 %v24119_v36  ;;  %4540 = vmatprep.mubr.f32.mxu0 %v11487_v44  ;;  %v24128_v11 = vpack.c.bf16 %v24126_v48, %v24127_v31  ;;  %v11488_v17 = vld [vmem:[%s23369_s2 + $0x160] sm:$0xff]  ;;  %v24133_v58 = vld [vmem:[#allocation118_spill] sm:$0xff] }
 0x3fe   : > { %13971 = vmatprep.subr.bf16.mxu0 %v24122_v38  ;;  %4436 = vmatmul.mubr.f32.gmra.mrb[218].mxu1 %v2221_v34  ;;  %v12194_v7 = vpop.f32.mrb[160].mxu0  ;;  %v24134_v40 = vpack.c.bf16 %v24132_v60, %v24133_v58  ;;  %v11491_v1 = vld [vmem:[%s23369_s2 + $0x178] sm:$0xff]  ;;  %v24135_v9 = vld [vmem:[#allocation55_spill] sm:$0xff]  ;;  %v24151_v38 = vld [vmem:[#allocation200_spill] sm:$0xff] }
 0x3ff   : > { %13941 = vmatpush3.bf16.msra.mxu1 %v24125_v49  ;;  %4440 = vmatprep.mubr.f32.mxu1 %v2224_v15  ;;  %v12195_v13 = vpop.f32.mrb[161].mxu0  ;;  %v24136_v56 = vld [vmem:[#allocation51_spill] sm:$0xff]  ;;  %v24141_v44 = vld [vmem:[#allocation58_spill] sm:$0xff]  ;;  %v11541_v15 = vld [vmem:[%s23369_s2 + $0x308] sm:$0xff] }
 0x400   : > { %4541 = vmatmul.mubr.f32.gmra.mrb[218].mxu0 %v11486_v18  ;;  %13943 = vmatprep.subr.bf16.mxu1 %v24128_v11  ;;  %v19416_v21 = vadd.f32 %v12195_v13, %v12194_v7  ;;  %v24137_v47 = vpack.c.bf16 %v24135_v9, %v24136_v56  ;;  %v24138_v24 = vld [vmem:[#allocation127_spill] sm:$0xff]  ;;  %v24142_v45 = vld [vmem:[#allocation54_spill] sm:$0xff]  ;;  %v24160_v13 = vld [vmem:[#allocation132_spill] sm:$0xff] }
 0x401   : > { %13973 = vmatpush3.bf16.msra.mxu0 %v24131_v28  ;;  %4545 = vmatprep.mubr.f32.mxu0 %v11489_v43  ;;  %v24139_v50 = vld [vmem:[#allocation123_spill] sm:$0xff]  ;;  %v24143_v29 = vpack.c.bf16 %v24141_v44, %v24142_v45  ;;  %v24152_v43 = vpack.c.bf16 %v24150_v6, %v24151_v38  ;;  %v11511_v20 = vld [vmem:[%s23369_s2 + $0x218] sm:$0xff]  ;;  %v11510_v58 = vld [vmem:[%s23369_s2 + $0x210] sm:$0xff] }
 0x402   : > { %13975 = vmatprep.subr.bf16.mxu0 %v24134_v40  ;;  %4441 = vmatmul.mubr.f32.gmra.mrb[220].mxu1 %v2223_v46  ;;  %v24140_v32 = vpack.c.bf16 %v24138_v24, %v24139_v50  ;;  %v24147_v55 = vld [vmem:[#allocation63_spill] sm:$0xff]  ;;  %v24153_v49 = vld [vmem:[#allocation66_spill] sm:$0xff]  ;;  %v11513_v56 = vld [vmem:[%s23369_s2 + $0x228] sm:$0xff] }
 0x403   : > { %13945 = vmatpush3.bf16.msra.mxu1 %v24137_v47  ;;  %4445 = vmatprep.mubr.f32.mxu1 %v2226_v23  ;;  %v12197_v33 = vpop.f32.mrb[162].mxu0  ;;  %v24148_v36 = vld [vmem:[#allocation59_spill] sm:$0xff]  ;;  %v24154_v46 = vld [vmem:[#allocation62_spill] sm:$0xff]  ;;  %v24156_v23 = vld [vmem:[#allocation208_spill] sm:$0xff] }
 0x404   : > { %4546 = vmatmul.mubr.f32.gmra.mrb[220].mxu0 %v11488_v17  ;;  %13947 = vmatprep.subr.bf16.mxu1 %v24140_v32  ;;  %v12198_v34 = vpop.f32.mrb[163].mxu0  ;;  %v24149_v18 = vpack.c.bf16 %v24147_v55, %v24148_v36  ;;  %v11508_v0 = vld [vmem:[%s23369_s2 + $0x200] sm:$0xff]  ;;  %v24155_v48 = vpack.c.bf16 %v24153_v49, %v24154_v46  ;;  %v24157_v7 = vld [vmem:[#allocation202_spill] sm:$0xff]  ;;  %v24159_v17 = vld [vmem:[#allocation136_spill] sm:$0xff] }
 0x405   : > { %13977 = vmatpush3.bf16.msra.mxu0 %v24143_v29  ;;  %4550 = vmatprep.mubr.f32.mxu0 %v11491_v1  ;;  %v19442_v51 = vadd.f32 %v12198_v34, %v12197_v33  ;;  %v11540_v31 = vld [vmem:[%s23369_s2 + $0x300] sm:$0xff]  ;;  %v24158_v57 = vpack.c.bf16 %v24156_v23, %v24157_v7  ;;  %v11543_v4 = vld [vmem:[%s23369_s2 + $0x318] sm:$0xff]  ;;  %v24161_v60 = vpack.c.bf16 %v24159_v17, %v24160_v13  ;;  %v11542_v32 = vld [vmem:[%s23369_s2 + $0x310] sm:$0xff] }
 0x406   : > { %13979 = vmatprep.subr.bf16.mxu0 %v24146_v37  ;;  %4446 = vmatmul.mubr.f32.gmra.mrb[222].mxu1 %v2225_v35  ;;  %v24162_v40 = vld [vmem:[#allocation214_spill] sm:$0xff]  ;;  %v24165_v35 = vld [vmem:[#allocation137_spill] sm:$0xff]  ;;  %v24168_v33 = vld [vmem:[#allocation216_spill] sm:$0xff] }
 0x407   : > { %13949 = vmatpush3.bf16.msra.mxu1 %v24149_v18  ;;  %4620 = vmatprep.mubr.f32.mxu1 %v11509_v62  ;;  %v12200_v61 = vpop.f32.mrb[164].mxu0  ;;  %v24163_v1 = vld [vmem:[#allocation210_spill] sm:$0xff]  ;;  %v24169_v44 = vld [vmem:[#allocation212_spill] sm:$0xff]  ;;  %v11512_v37 = vld [vmem:[%s23369_s2 + $0x220] sm:$0xff] }
 0x408   : > { %4551 = vmatmul.mubr.f32.gmra.mrb[222].mxu0 %v11490_v2  ;;  %13983 = vmatprep.subr.bf16.mxu1 %v24152_v43  ;;  %v12201_v11 = vpop.f32.mrb[165].mxu0  ;;  %v24164_v9 = vpack.c.bf16 %v24162_v40, %v24163_v1  ;;  %v24166_v24 = vld [vmem:[#allocation134_spill] sm:$0xff]  ;;  %v24170_v45 = vpack.c.bf16 %v24168_v33, %v24169_v44  ;;  %v11545_v29 = vld [vmem:[%s23369_s2 + $0x328] sm:$0xff]  ;;  %v24175_v55 = vld [vmem:[#allocation219_spill] sm:$0xff] }
 0x409   : > { %13981 = vmatpush3.bf16.msra.mxu0 %v24155_v48  ;;  %4725 = vmatprep.mubr.f32.mxu0 %v11541_v15  ;;  %v19468_v28 = vadd.f32 %v12201_v11, %v12200_v61  ;;  %v24167_v50 = vpack.c.bf16 %v24165_v35, %v24166_v24  ;;  %v24171_v34 = vld [vmem:[#allocation144_spill] sm:$0xff]  ;;  %v11515_v18 = vld [vmem:[%s23369_s2 + $0x238] sm:$0xff]  ;;  %v24177_v6 = vld [vmem:[#allocation145_spill] sm:$0xff] }
 0x40a   : > { %14015 = vmatprep.subr.bf16.mxu0 %v24158_v57  ;;  %4621 = vmatmul.mubr.f32.vlgmr.msra.gmra.mrb[224].mxu1 %v11508_v0  ;;  %v24173_v63 = vpack.c.bf16 %v24171_v34, %v24172_v41  ;;  %v24174_v15 = vld [vmem:[#allocation224_spill] sm:$0xff]  ;;  %v24178_v38 = vld [vmem:[#allocation142_spill] sm:$0xff]  ;;  %v24183_v7 = vld [vmem:[#allocation153_spill] sm:$0xff] }
 0x40b   : > { %13985 = vmatpush3.bf16.msra.mxu1 %v24161_v60  ;;  %4625 = vmatprep.mubr.f32.mxu1 %v11511_v20  ;;  %v12203_v47 = vpop.f32.mrb[166].mxu0  ;;  %v24176_v36 = vpack.c.bf16 %v24174_v15, %v24175_v55  ;;  %v24179_v43 = vpack.c.bf16 %v24177_v6, %v24178_v38  ;;  %v11544_v20 = vld [vmem:[%s23369_s2 + $0x320] sm:$0xff]  ;;  %v24180_v49 = vld [vmem:[#allocation226_spill] sm:$0xff]  ;;  %v24184_v57 = vld [vmem:[#allocation148_spill] sm:$0xff] }
 0x40c   : > { %4726 = vmatmul.mubr.f32.vlgmr.msra.gmra.mrb[224].mxu0 %v11540_v31  ;;  %13987 = vmatprep.subr.bf16.mxu1 %v24164_v9  ;;  %v12204_v62 = vpop.f32.mrb[167].mxu0  ;;  %v24181_v46 = vld [vmem:[#allocation222_spill] sm:$0xff]  ;;  %v11514_v17 = vld [vmem:[%s23369_s2 + $0x230] sm:$0xff]  ;;  %v24186_v60 = vld [vmem:[#allocation232_spill] sm:$0xff] }
 0x40d   : > { %14017 = vmatpush3.bf16.msra.mxu0 %v24167_v50  ;;  %4730 = vmatprep.mubr.f32.mxu0 %v11543_v4  ;;  %v19494_v2 = vadd.f32 %v12204_v62, %v12203_v47  ;;  %v24182_v48 = vpack.c.bf16 %v24180_v49, %v24181_v46  ;;  %v11547_v31 = vld [vmem:[%s23369_s2 + $0x338] sm:$0xff]  ;;  %v24185_v4 = vpack.c.bf16 %v24183_v7, %v24184_v57  ;;  %v11517_v1 = vld [vmem:[%s23369_s2 + $0x248] sm:$0xff]  ;;  %v11546_v24 = vld [vmem:[%s23369_s2 + $0x330] sm:$0xff] }
 0x40e   : > { %14019 = vmatprep.subr.bf16.mxu0 %v24170_v45  ;;  %4626 = vmatmul.mubr.f32.gmra.mrb[226].mxu1 %v11510_v58  ;;  %v24187_v58 = vld [vmem:[#allocation228_spill] sm:$0xff]  ;;  %v24190_v47 = vld [vmem:[#allocation150_spill] sm:$0xff]  ;;  %v24195_v34 = vld [vmem:[#allocation159_spill] sm:$0xff] }
 0x40f   : > { %13989 = vmatpush3.bf16.msra.mxu1 %v24173_v63  ;;  %4630 = vmatprep.mubr.f32.mxu1 %v11513_v56  ;;  %v12206_v0 = vpop.f32.mrb[168].mxu0  ;;  %v24188_v40 = vpack.c.bf16 %v24186_v60, %v24187_v58  ;;  %v24189_v56 = vld [vmem:[#allocation154_spill] sm:$0xff]  ;;  %v11549_v44 = vld [vmem:[%s23369_s2 + $0x348] sm:$0xff]  ;;  %v24200_v38 = vld [vmem:[#allocation157_spill] sm:$0xff] }
 0x410   : > { %4731 = vmatmul.mubr.f32.gmra.mrb[226].mxu0 %v11542_v32  ;;  %13991 = vmatprep.subr.bf16.mxu1 %v24176_v36  ;;  %v12207_v61 = vpop.f32.mrb[169].mxu0  ;;  %v24191_v35 = vpack.c.bf16 %v24189_v56, %v24190_v47  ;;  %v24192_v32 = vld [vmem:[#allocation235_spill] sm:$0xff]  ;;  %v24193_v62 = vld [vmem:[#allocation230_spill] sm:$0xff]  ;;  %v24196_v41 = vld [vmem:[#allocation156_spill] sm:$0xff]  ;;  %v24198_v36 = vpack.c.bf16 %v18331_v59, %v18313_v52 }
 0x411   : > { %14021 = vmatpush3.bf16.msra.mxu0 %v24179_v43  ;;  %4735 = vmatprep.mubr.f32.mxu0 %v11545_v29  ;;  %v12026_v11 = vpop.f32.mrb[128].mxu1  ;;  %v19520_v23 = vadd.f32 %v12207_v61, %v12206_v0  ;;  %v24194_v33 = vpack.c.bf16 %v24192_v32, %v24193_v62  ;;  %v24197_v63 = vpack.c.bf16 %v24195_v34, %v24196_v41  ;;  %v24199_v6 = vld [vmem:[#allocation160_spill] sm:$0xff]  ;;  %v24202_v49 = vld [vmem:[#allocation239_spill] sm:$0xff]  ;;  %v24203_v46 = vld [vmem:[#allocation237_spill] sm:$0xff] }
 0x412   : > { %14023 = vmatprep.subr.bf16.mxu0 %v24182_v48  ;;  %4631 = vmatmul.mubr.f32.gmra.mrb[228].mxu1 %v11512_v37  ;;  %v12027_v13 = vpop.f32.mrb[129].mxu1  ;;  %v11516_v37 = vld [vmem:[%s23369_s2 + $0x240] sm:$0xff]  ;;  %v24201_v43 = vpack.c.bf16 %v24199_v6, %v24200_v38  ;;  %v24204_v52 = vpack.c.bf16 %v24202_v49, %v24203_v46  ;;  %v11551_v59 = vld [vmem:[%s23369_s2 + $0x358] sm:$0xff]  ;;  %v24209_v58 = vld [vmem:[#allocation240_spill] sm:$0xff]  ;;  %v24220_v6 = vpack.c.bf16 %v18416_v30, %v18408_v12 }
 0x413   : > { %13993 = vmatpush3.bf16.msra.mxu1 %v24185_v4  ;;  %4635 = vmatprep.mubr.f32.mxu1 %v11515_v18  ;;  %v19534_v9 = vadd.f32 %v12027_v13, %v12026_v11  ;;  %v11519_v18 = vld [vmem:[%s23369_s2 + $0x258] sm:$0xff]  ;;  %v24206_v7 = vld [vmem:[#allocation163_spill] sm:$0xff]  ;;  %v11518_v4 = vld [vmem:[%s23369_s2 + $0x250] sm:$0xff] }
 0x414   : > { %4736 = vmatmul.mubr.f32.gmra.mrb[228].mxu0 %v11544_v20  ;;  %13995 = vmatprep.subr.bf16.mxu1 %v24188_v40  ;;  %v12209_v50 = vpop.f32.mrb[170].mxu0  ;;  %v11548_v20 = vld [vmem:[%s23369_s2 + $0x340] sm:$0xff]  ;;  %v24205_v11 = vld [vmem:[#allocation166_spill] sm:$0xff] }
 0x415   : > { %14025 = vmatpush3.bf16.msra.mxu0 %v24191_v35  ;;  %4740 = vmatprep.mubr.f32.mxu0 %v11547_v31  ;;  %v12029_v45 = vpop.f32.mrb[130].mxu1  ;;  %v12210_v29 = vpop.f32.mrb[171].mxu0  ;;  %v24207_v57 = vpack.c.bf16 %v24205_v11, %v24206_v7  ;;  %v24208_v60 = vld [vmem:[#allocation242_spill] sm:$0xff]  ;;  %v24211_v47 = vld [vmem:[#allocation167_spill] sm:$0xff]  ;;  %v24212_v35 = vld [vmem:[#allocation164_spill] sm:$0xff] }
 0x416   : > { %14027 = vmatprep.subr.bf16.mxu0 %v24194_v33  ;;  %4636 = vmatmul.mubr.f32.gmra.mrb[230].mxu1 %v11514_v17  ;;  %v12030_v15 = vpop.f32.mrb[131].mxu1  ;;  %v19554_v55 = vadd.f32 %v12210_v29, %v12209_v50  ;;  %v24210_v40 = vpack.c.bf16 %v24208_v60, %v24209_v58  ;;  %v11550_v50 = vld [vmem:[%s23369_s2 + $0x350] sm:$0xff]  ;;  %v24214_v62 = vld [vmem:[#allocation243_spill] sm:$0xff]  ;;  %v11523_v38 = vld [vmem:[%s23369_s2 + $0x278] sm:$0xff] }
 0x417   : > { %13997 = vmatpush3.bf16.msra.mxu1 %v24197_v63  ;;  %4640 = vmatprep.mubr.f32.mxu1 %v11517_v1  ;;  %v19562_v0 = vadd.f32 %v12030_v15, %v12029_v45  ;;  %v11521_v1 = vld [vmem:[%s23369_s2 + $0x268] sm:$0xff]  ;;  %v24215_v33 = vld [vmem:[#allocation241_spill] sm:$0xff]  ;;  %v24217_v41 = vld [vmem:[#allocation175_spill] sm:$0xff] }
 0x418   : > { %4741 = vmatmul.mubr.f32.gmra.mrb[230].mxu0 %v11546_v24  ;;  %13999 = vmatprep.subr.bf16.mxu1 %v24198_v36  ;;  %v12212_v61 = vpop.f32.mrb[172].mxu0  ;;  %v24213_v24 = vpack.c.bf16 %v24211_v47, %v24212_v35  ;;  %v11553_v45 = vld [vmem:[%s23369_s2 + $0x368] sm:$0xff]  ;;  %v24218_v63 = vld [vmem:[#allocation170_spill] sm:$0xff]  ;;  %v11520_v15 = vld [vmem:[%s23369_s2 + $0x260] sm:$0xff] }
 0x419   : > { %14029 = vmatpush3.bf16.msra.mxu0 %v24201_v43  ;;  %4745 = vmatprep.mubr.f32.mxu0 %v11549_v44  ;;  %v12032_v48 = vpop.f32.mrb[132].mxu1  ;;  %v12213_v31 = vpop.f32.mrb[173].mxu0  ;;  %v24216_v44 = vpack.c.bf16 %v24214_v62, %v24215_v33  ;;  %v11552_v46 = vld [vmem:[%s23369_s2 + $0x360] sm:$0xff]  ;;  %v11555_v12 = vld [vmem:[%s23369_s2 + $0x378] sm:$0xff]  ;;  %v24228_v11 = vld [vmem:[#allocation181_spill] sm:$0xff] }
 0x41a   : > { %14031 = vmatprep.subr.bf16.mxu0 %v24204_v52  ;;  %4641 = vmatmul.mubr.f32.gmra.mrb[232].mxu1 %v11516_v37  ;;  %v12033_v17 = vpop.f32.mrb[133].mxu1  ;;  %v19582_v13 = vadd.f32 %v12213_v31, %v12212_v61  ;;  %v24219_v37 = vpack.c.bf16 %v24217_v41, %v24218_v63  ;;  %v24222_v61 = vld [vmem:[#allocation172_spill] sm:$0xff]  ;;  %v24224_v52 = vld [vmem:[#allocation249_spill] sm:$0xff]  ;;  %v24231_v60 = vld [vmem:[#allocation251_spill] sm:$0xff] }
 0x41b   : > { %14001 = vmatpush3.bf16.msra.mxu1 %v24207_v57  ;;  %4645 = vmatprep.mubr.f32.mxu1 %v11519_v18  ;;  %v19590_v56 = vadd.f32 %v12033_v17, %v12032_v48  ;;  %v24227_v31 = vld [vmem:[#allocation185_spill] sm:$0xff]  ;;  %v24233_v47 = vld [vmem:[#allocation187_spill] sm:$0xff]  ;;  %v11605_v62 = vld [vmem:[%s23369_s2 + $0x508] sm:$0xff] }
 0x41c   : > { %4746 = vmatmul.mubr.f32.gmra.mrb[232].mxu0 %v11548_v20  ;;  %14003 = vmatprep.subr.bf16.mxu1 %v24210_v40  ;;  %v12215_v32 = vpop.f32.mrb[174].mxu0  ;;  %v24221_v20 = vld [vmem:[#allocation177_spill] sm:$0xff]  ;;  %v24229_v7 = vpack.c.bf16 %v24227_v31, %v24228_v11  ;;  %v11573_v40 = vld [vmem:[%s23369_s2 + $0x408] sm:$0xff]  ;;  %v24234_v35 = vld [vmem:[#allocation183_spill] sm:$0xff] }
 0x41d   : > { %14033 = vmatpush3.bf16.msra.mxu0 %v24213_v24  ;;  %4750 = vmatprep.mubr.f32.mxu0 %v11551_v59  ;;  %v12035_v29 = vpop.f32.mrb[134].mxu1  ;;  %v12216_v34 = vpop.f32.mrb[175].mxu0  ;;  %v24223_v49 = vpack.c.bf16 %v24221_v20, %v24222_v61  ;;  %v24225_v59 = vld [vmem:[#allocation246_spill] sm:$0xff]  ;;  %v11522_v57 = vld [vmem:[%s23369_s2 + $0x270] sm:$0xff]  ;;  %v24235_v24 = vpack.c.bf16 %v24233_v47, %v24234_v35  ;;  %v11604_v20 = vld [vmem:[%s23369_s2 + $0x500] sm:$0xff] }
 0x41e   : > { %14035 = vmatprep.subr.bf16.mxu0 %v24216_v44  ;;  %4646 = vmatmul.mubr.f32.gmra.mrb[234].mxu1 %v11518_v4  ;;  %v12036_v36 = vpop.f32.mrb[135].mxu1  ;;  %v19610_v18 = vadd.f32 %v12216_v34, %v12215_v32  ;;  %v24226_v48 = vpack.c.bf16 %v24224_v52, %v24225_v59  ;;  %v24230_v17 = vld [vmem:[#allocation253_spill] sm:$0xff]  ;;  %v24236_v32 = vpack.c.bf16 %v18479_v39, %v18454_v19  ;;  %v24237_v44 = vld [vmem:[#allocation194_spill] sm:$0xff]  ;;  %v11572_v34 = vld [vmem:[%s23369_s2 + $0x400] sm:$0xff] }
 0x41f   : > { %14005 = vmatpush3.bf16.msra.mxu1 %v24219_v37  ;;  %4650 = vmatprep.mubr.f32.mxu1 %v11521_v1  ;;  %v19618_v43 = vadd.f32 %v12036_v36, %v12035_v29  ;;  %v24232_v58 = vpack.c.bf16 %v24230_v17, %v24231_v60  ;;  %v24240_v63 = vld [vmem:[#allocation205_spill] sm:$0xff]  ;;  %v24241_v19 = vld [vmem:[#allocation199_spill] sm:$0xff]  ;;  %v11575_v37 = vld [vmem:[%s23369_s2 + $0x418] sm:$0xff] }
 0x420   : > { %4751 = vmatmul.mubr.f32.gmra.mrb[234].mxu0 %v11550_v50  ;;  %14007 = vmatprep.subr.bf16.mxu1 %v24220_v6  ;;  %v11554_v50 = vld [vmem:[%s23369_s2 + $0x370] sm:$0xff]  ;;  %v24242_v39 = vpack.c.bf16 %v24240_v63, %v24241_v19  ;;  %v24243_v36 = vld [vmem:[#allocation198_spill] sm:$0xff]  ;;  %v11577_v17 = vld [vmem:[%s23369_s2 + $0x428] sm:$0xff] }
 0x421   : > { %14037 = vmatpush3.bf16.msra.mxu0 %v24223_v49  ;;  %4755 = vmatprep.mubr.f32.mxu0 %v11553_v45  ;;  %v12038_v30 = vpop.f32.mrb[136].mxu1  ;;  %v24238_v45 = vld [vmem:[#allocation191_spill] sm:$0xff]  ;;  %v24244_v6 = vld [vmem:[#allocation193_spill] sm:$0xff]  ;;  %v24246_v61 = vld [vmem:[#allocation206_spill] sm:$0xff] }
 0x422   : > { %14039 = vmatprep.subr.bf16.mxu0 %v24226_v48  ;;  %4651 = vmatmul.mubr.f32.gmra.mrb[236].mxu1 %v11520_v15  ;;  %v12039_v4 = vpop.f32.mrb[137].mxu1  ;;  %v24239_v29 = vpack.c.bf16 %v24237_v44, %v24238_v45  ;;  %v24247_v49 = vld [vmem:[#allocation201_spill] sm:$0xff]  ;;  %v11607_v52 = vld [vmem:[%s23369_s2 + $0x518] sm:$0xff]  ;;  %v24249_v48 = vld [vmem:[#allocation135_spill] sm:$0xff] }
 0x423   : > { %14009 = vmatpush3.bf16.msra.mxu1 %v24229_v7  ;;  %4655 = vmatprep.mubr.f32.mxu1 %v11523_v38  ;;  %v19644_v1 = vadd.f32 %v12039_v4, %v12038_v30  ;;  %v24245_v38 = vpack.c.bf16 %v24243_v36, %v24244_v6  ;;  %v11574_v31 = vld [vmem:[%s23369_s2 + $0x410] sm:$0xff]  ;;  %v24261_v44 = vld [vmem:[#allocation143_spill] sm:$0xff]  ;;  %v24265_v19 = vld [vmem:[#allocation218_spill] sm:$0xff] }
 0x424   : > { %4756 = vmatmul.mubr.f32.gmra.mrb[236].mxu0 %v11552_v46  ;;  %14011 = vmatprep.subr.bf16.mxu1 %v24232_v58  ;;  %v24248_v46 = vpack.c.bf16 %v24246_v61, %v24247_v49  ;;  %v24252_v7 = vld [vmem:[#allocation213_spill] sm:$0xff]  ;;  %v24255_v58 = vld [vmem:[#allocation138_spill] sm:$0xff]  ;;  %v24262_v45 = vld [vmem:[#allocation139_spill] sm:$0xff] }
 0x425   : > { %14041 = vmatpush3.bf16.msra.mxu0 %v24235_v24  ;;  %4760 = vmatprep.mubr.f32.mxu0 %v11555_v12  ;;  %v12041_v33 = vpop.f32.mrb[138].mxu1  ;;  %v24250_v12 = vld [vmem:[#allocation131_spill] sm:$0xff]  ;;  %v11606_v35 = vld [vmem:[%s23369_s2 + $0x510] sm:$0xff]  ;;  %v24267_v6 = vld [vmem:[#allocation146_spill] sm:$0xff] }
 0x426   : > { %14043 = vmatprep.subr.bf16.mxu0 %v24236_v32  ;;  %4656 = vmatmul.mubr.f32.gmra.mrb[238].mxu1 %v11522_v57  ;;  %v12042_v41 = vpop.f32.mrb[139].mxu1  ;;  %v24251_v30 = vpack.c.bf16 %v24249_v48, %v24250_v12  ;;  %v24253_v57 = vld [vmem:[#allocation209_spill] sm:$0xff]  ;;  %v24258_v24 = vld [vmem:[#allocation215_spill] sm:$0xff]  ;;  %v24273_v12 = vld [vmem:[#allocation152_spill] sm:$0xff] }
 0x427   : > { %14013 = vmatpush3.bf16.msra.mxu1 %v24239_v29  ;;  %4830 = vmatprep.mubr.f32.mxu1 %v11573_v40  ;;  %v19670_v15 = vadd.f32 %v12042_v41, %v12041_v33  ;;  %v24254_v4 = vpack.c.bf16 %v24252_v7, %v24253_v57  ;;  %v24256_v40 = vld [vmem:[#allocation133_spill] sm:$0xff]  ;;  %v24263_v29 = vpack.c.bf16 %v24261_v44, %v24262_v45  ;;  %v24264_v63 = vld [vmem:[#allocation223_spill] sm:$0xff]  ;;  %v11613_v44 = vld [vmem:[%s23369_s2 + $0x548] sm:$0xff] }
 0x428   : > { %4761 = vmatmul.mubr.f32.gmra.mrb[238].mxu0 %v11554_v50  ;;  %14047 = vmatprep.subr.bf16.mxu1 %v24242_v39  ;;  %v24257_v47 = vpack.c.bf16 %v24255_v58, %v24256_v40  ;;  %v24259_v50 = vld [vmem:[#allocation211_spill] sm:$0xff]  ;;  %v24266_v39 = vpack.c.bf16 %v24264_v63, %v24265_v19  ;;  %v24270_v49 = vld [vmem:[#allocation225_spill] sm:$0xff]  ;;  %v11581_v58 = vld [vmem:[%s23369_s2 + $0x448] sm:$0xff]  ;;  %v24286_v63 = vpack.c.bf16 %v18329_v22, %v18311_v10 }
 0x429   : > { %14045 = vmatpush3.bf16.msra.mxu0 %v24245_v38  ;;  %4935 = vmatprep.mubr.f32.mxu0 %v11605_v62  ;;  %v12044_v59 = vpop.f32.mrb[140].mxu1  ;;  %v24260_v32 = vpack.c.bf16 %v24258_v24, %v24259_v50  ;;  %v11609_v62 = vld [vmem:[%s23369_s2 + $0x528] sm:$0xff]  ;;  %v24268_v38 = vld [vmem:[#allocation141_spill] sm:$0xff]  ;;  %v11608_v61 = vld [vmem:[%s23369_s2 + $0x520] sm:$0xff] }
 0x42a   : > { %14079 = vmatprep.subr.bf16.mxu0 %v24248_v46  ;;  %4831 = vmatmul.mubr.f32.vlgmr.msra.gmra.mrb[240].mxu1 %v11572_v34  ;;  %v12045_v11 = vpop.f32.mrb[141].mxu1  ;;  %v11576_v34 = vld [vmem:[%s23369_s2 + $0x420] sm:$0xff]  ;;  %v24271_v46 = vld [vmem:[#allocation220_spill] sm:$0xff]  ;;  %v11610_v50 = vld [vmem:[%s23369_s2 + $0x530] sm:$0xff] }
 0x42b   : > { %14049 = vmatpush3.bf16.msra.mxu1 %v24251_v30  ;;  %4835 = vmatprep.mubr.f32.mxu1 %v11575_v37  ;;  %v19696_v60 = vadd.f32 %v12045_v11, %v12044_v59  ;;  %v11579_v37 = vld [vmem:[%s23369_s2 + $0x438] sm:$0xff]  ;;  %v24274_v30 = vld [vmem:[#allocation147_spill] sm:$0xff]  ;;  %v11578_v11 = vld [vmem:[%s23369_s2 + $0x430] sm:$0xff] }
 0x42c   : > { %4936 = vmatmul.mubr.f32.vlgmr.msra.gmra.mrb[240].mxu0 %v11604_v20  ;;  %14051 = vmatprep.subr.bf16.mxu1 %v24254_v4  ;;  %v24269_v20 = vpack.c.bf16 %v24267_v6, %v24268_v38  ;;  %v11611_v59 = vld [vmem:[%s23369_s2 + $0x538] sm:$0xff]  ;;  %v24276_v57 = vld [vmem:[#allocation231_spill] sm:$0xff]  ;;  %v24289_v6 = vld [vmem:[#allocation236_spill] sm:$0xff] }
 0x42d   : > { %14081 = vmatpush3.bf16.msra.mxu0 %v24257_v47  ;;  %4940 = vmatprep.mubr.f32.mxu0 %v11607_v52  ;;  %v12047_v33 = vpop.f32.mrb[142].mxu1  ;;  %v24272_v52 = vpack.c.bf16 %v24270_v49, %v24271_v46  ;;  %v24277_v4 = vld [vmem:[#allocation227_spill] sm:$0xff]  ;;  %v11583_v19 = vld [vmem:[%s23369_s2 + $0x458] sm:$0xff]  ;;  %v24293_v49 = vpack.c.bf16 %v18376_v8, %v18358_v42  ;;  %v11585_v46 = vld [vmem:[%s23369_s2 + $0x468] sm:$0xff] }
 0x42e   : > { %14083 = vmatprep.subr.bf16.mxu0 %v24260_v32  ;;  %4836 = vmatmul.mubr.f32.gmra.mrb[242].mxu1 %v11574_v31  ;;  %v12048_v41 = vpop.f32.mrb[143].mxu1  ;;  %v24275_v31 = vpack.c.bf16 %v24273_v12, %v24274_v30  ;;  %v24279_v47 = vld [vmem:[#allocation155_spill] sm:$0xff]  ;;  %v24282_v32 = vld [vmem:[#allocation233_spill] sm:$0xff]  ;;  %v11615_v10 = vld [vmem:[%s23369_s2 + $0x558] sm:$0xff] }
 0x42f   : > { %14053 = vmatpush3.bf16.msra.mxu1 %v24263_v29  ;;  %4840 = vmatprep.mubr.f32.mxu1 %v11577_v17  ;;  %v19722_v36 = vadd.f32 %v12048_v41, %v12047_v33  ;;  %v24278_v17 = vpack.c.bf16 %v24276_v57, %v24277_v4  ;;  %v24285_v29 = vpack.c.bf16 %v17896_v16, %v17879_v25  ;;  %v11612_v16 = vld [vmem:[%s23369_s2 + $0x540] sm:$0xff]  ;;  %v11617_v42 = vld [vmem:[%s23369_s2 + $0x568] sm:$0xff]  ;;  %v24297_v30 = vld [vmem:[#allocation169_spill] sm:$0xff] }
 0x430   : > { %4941 = vmatmul.mubr.f32.gmra.mrb[242].mxu0 %v11606_v35  ;;  %14055 = vmatprep.subr.bf16.mxu1 %v24266_v39  ;;  %v24280_v35 = vld [vmem:[#allocation149_spill] sm:$0xff]  ;;  %v24287_v25 = vpack.c.bf16 %v17909_v3, %v17884_v14  ;;  %v24296_v12 = vld [vmem:[#allocation176_spill] sm:$0xff]  ;;  %v24302_v4 = vld [vmem:[#allocation178_spill] sm:$0xff] }
 0x431   : > { %14085 = vmatpush3.bf16.msra.mxu0 %v24269_v20  ;;  %4945 = vmatprep.mubr.f32.mxu0 %v11609_v62  ;;  %v12082_v48 = vpop.f32.mrb[144].mxu1  ;;  %v24281_v24 = vpack.c.bf16 %v24279_v47, %v24280_v35  ;;  %v24283_v62 = vld [vmem:[#allocation229_spill] sm:$0xff]  ;;  %v24291_v20 = vld [vmem:[#allocation162_spill] sm:$0xff]  ;;  %v11616_v47 = vld [vmem:[%s23369_s2 + $0x560] sm:$0xff] }
 0x432   : > { %14087 = vmatprep.subr.bf16.mxu0 %v24272_v52  ;;  %4841 = vmatmul.mubr.f32.gmra.mrb[244].mxu1 %v11576_v34  ;;  %v12083_v7 = vpop.f32.mrb[145].mxu1  ;;  %v24284_v33 = vpack.c.bf16 %v24282_v32, %v24283_v62  ;;  %v11580_v34 = vld [vmem:[%s23369_s2 + $0x440] sm:$0xff]  ;;  %v11582_v3 = vld [vmem:[%s23369_s2 + $0x450] sm:$0xff]  ;;  %v24305_v35 = vld [vmem:[#allocation248_spill] sm:$0xff] }
 0x433   : > { %14057 = vmatpush3.bf16.msra.mxu1 %v24275_v31  ;;  %4845 = vmatprep.mubr.f32.mxu1 %v11579_v37  ;;  %v19748_v40 = vadd.f32 %v12083_v7, %v12082_v48  ;;  %v24288_v37 = vld [vmem:[#allocation238_spill] sm:$0xff]  ;;  %v24295_v48 = vpack.c.bf16 %v18384_v27, %v18363_v54  ;;  %v24298_v31 = vpack.c.bf16 %v24296_v12, %v24297_v30  ;;  %v24300_v54 = vld [vmem:[#allocation244_spill] sm:$0xff] }
 0x434   : > { %4946 = vmatmul.mubr.f32.gmra.mrb[244].mxu0 %v11608_v61  ;;  %14059 = vmatprep.subr.bf16.mxu1 %v24278_v17  ;;  %v24290_v38 = vpack.c.bf16 %v24288_v37, %v24289_v6  ;;  %v24292_v61 = vpack.c.bf16 %v17948_v5, %v24291_v20  ;;  %v24294_v5 = vpack.c.bf16 %v17958_v26, %v17934_v53  ;;  %v11584_v26 = vld [vmem:[%s23369_s2 + $0x460] sm:$0xff]  ;;  %v11587_v7 = vld [vmem:[%s23369_s2 + $0x478] sm:$0xff]  ;;  %v24314_v37 = vld [vmem:[#allocation188_spill] sm:$0xff] }
 0x435   : > { %14089 = vmatpush3.bf16.msra.mxu0 %v24281_v24  ;;  %4950 = vmatprep.mubr.f32.mxu0 %v11611_v59  ;;  %v12085_v45 = vpop.f32.mrb[146].mxu1  ;;  %v11614_v59 = vld [vmem:[%s23369_s2 + $0x550] sm:$0xff]  ;;  %v24303_v17 = vld [vmem:[#allocation171_spill] sm:$0xff]  ;;  %v11619_v32 = vld [vmem:[%s23369_s2 + $0x578] sm:$0xff] }
 0x436   : > { %14091 = vmatprep.subr.bf16.mxu0 %v24284_v33  ;;  %4846 = vmatmul.mubr.f32.gmra.mrb[246].mxu1 %v11578_v11  ;;  %v12086_v41 = vpop.f32.mrb[147].mxu1  ;;  %v24299_v11 = vld [vmem:[#allocation247_spill] sm:$0xff]  ;;  %v24306_v24 = vld [vmem:[#allocation245_spill] sm:$0xff]  ;;  %v24308_v33 = vld [vmem:[#allocation186_spill] sm:$0xff] }
 0x437   : > { %14061 = vmatpush3.bf16.msra.mxu1 %v24285_v29  ;;  %4850 = vmatprep.mubr.f32.mxu1 %v11581_v58  ;;  %v19774_v39 = vadd.f32 %v12086_v41, %v12085_v45  ;;  %v24301_v27 = vpack.c.bf16 %v24299_v11, %v24300_v54  ;;  %v24304_v58 = vpack.c.bf16 %v24302_v4, %v24303_v17  ;;  %v11586_v29 = vld [vmem:[%s23369_s2 + $0x470] sm:$0xff]  ;;  %v24311_v41 = vld [vmem:[#allocation254_spill] sm:$0xff]  ;;  %v24318_v20 = vld [vmem:[#allocation252_spill] sm:$0xff] }
 0x438   : > { %4951 = vmatmul.mubr.f32.gmra.mrb[246].mxu0 %v11610_v50  ;;  %14063 = vmatprep.subr.bf16.mxu1 %v24286_v63  ;;  %v24307_v50 = vpack.c.bf16 %v24305_v35, %v24306_v24  ;;  %v24312_v63 = vld [vmem:[#allocation250_spill] sm:$0xff]  ;;  %v24323_v12 = vld [vmem:[#allocation196_spill] sm:$0xff]  ;;  %v11638_v54 = vld [vmem:[%s23369_s2 + $0x610] sm:$0xff] }
 0x439   : > { %14093 = vmatpush3.bf16.msra.mxu0 %v24287_v25  ;;  %4955 = vmatprep.mubr.f32.mxu0 %v11613_v44  ;;  %v12088_v22 = vpop.f32.mrb[148].mxu1  ;;  %v24309_v44 = vld [vmem:[#allocation180_spill] sm:$0xff]  ;;  %v24315_v6 = vld [vmem:[#allocation182_spill] sm:$0xff]  ;;  %v11670_v17 = vld [vmem:[%s23369_s2 + $0x710] sm:$0xff] }
 0x43a   : > { %14095 = vmatprep.subr.bf16.mxu0 %v24290_v38  ;;  %4851 = vmatmul.mubr.f32.gmra.mrb[248].mxu1 %v11580_v34  ;;  %v12089_v14 = vpop.f32.mrb[149].mxu1  ;;  %v24310_v45 = vpack.c.bf16 %v24308_v33, %v24309_v44  ;;  %v11637_v25 = vld [vmem:[%s23369_s2 + $0x608] sm:$0xff]  ;;  %v24316_v38 = vpack.c.bf16 %v24314_v37, %v24315_v6  ;;  %v11640_v35 = vld [vmem:[%s23369_s2 + $0x620] sm:$0xff]  ;;  %v11675_v33 = vld [vmem:[%s23369_s2 + $0x738] sm:$0xff] }
 0x43b   : > { %14065 = vmatpush3.bf16.msra.mxu1 %v24292_v61  ;;  %4855 = vmatprep.mubr.f32.mxu1 %v11583_v19  ;;  %v19800_v52 = vadd.f32 %v12089_v14, %v12088_v22  ;;  %v24313_v19 = vpack.c.bf16 %v24311_v41, %v24312_v63  ;;  %v24317_v22 = vld [vmem:[#allocation255_spill] sm:$0xff]  ;;  %v24324_v30 = vld [vmem:[#allocation192_spill] sm:$0xff]  ;;  %v11674_v63 = vld [vmem:[%s23369_s2 + $0x730] sm:$0xff] }
 0x43c   : > { %4956 = vmatmul.mubr.f32.gmra.mrb[248].mxu0 %v11612_v16  ;;  %14067 = vmatprep.subr.bf16.mxu1 %v24293_v49  ;;  %v24319_v61 = vpack.c.bf16 %v24317_v22, %v24318_v20  ;;  %v24320_v49 = vld [vmem:[#allocation195_spill] sm:$0xff]  ;;  %v11679_v20 = vld [vmem:[%s23369_s2 + $0x758] sm:$0xff] }
 0x43d   : > { %14097 = vmatpush3.bf16.msra.mxu0 %v24294_v5  ;;  %4960 = vmatprep.mubr.f32.mxu0 %v11615_v10  ;;  %v12091_v8 = vpop.f32.mrb[150].mxu1  ;;  %v11618_v10 = vld [vmem:[%s23369_s2 + $0x570] sm:$0xff]  ;;  %v11644_v37 = vld [vmem:[%s23369_s2 + $0x640] sm:$0xff] }
 0x43e   : > { %14099 = vmatprep.subr.bf16.mxu0 %v24295_v48  ;;  %4856 = vmatmul.mubr.f32.gmra.mrb[250].mxu1 %v11582_v3  ;;  %v12092_v53 = vpop.f32.mrb[151].mxu1  ;;  %v11669_v3 = vld [vmem:[%s23369_s2 + $0x708] sm:$0xff]  ;;  %v11676_v22 = vld [vmem:[%s23369_s2 + $0x740] sm:$0xff] }
 0x43f   : > { %14069 = vmatpush3.bf16.msra.mxu1 %v24298_v31  ;;  %4860 = vmatprep.mubr.f32.mxu1 %v11585_v46  ;;  %v19826_v57 = vadd.f32 %v12092_v53, %v12091_v8  ;;  %v24321_v46 = vld [vmem:[#allocation190_spill] sm:$0xff]  ;;  %v24325_v31 = vpack.c.bf16 %v24323_v12, %v24324_v30 }
 0x440   : > { %4961 = vmatmul.mubr.f32.gmra.mrb[250].mxu0 %v11614_v59  ;;  %14071 = vmatprep.subr.bf16.mxu1 %v24301_v27  ;;  %v24322_v5 = vpack.c.bf16 %v24320_v49, %v24321_v46  ;;  %v11636_v59 = vld [vmem:[%s23369_s2 + $0x600] sm:$0xff]  ;;  %v11671_v53 = vld [vmem:[%s23369_s2 + $0x718] sm:$0xff]  ;;  %v11649_v49 = vld [vmem:[%s23369_s2 + $0x668] sm:$0xff] }
 0x441   : > { %14101 = vmatpush3.bf16.msra.mxu0 %v24304_v58  ;;  %4965 = vmatprep.mubr.f32.mxu0 %v11617_v42  ;;  %v12094_v62 = vpop.f32.mrb[152].mxu1  ;;  %v11639_v42 = vld [vmem:[%s23369_s2 + $0x618] sm:$0xff]  ;;  %v11673_v58 = vld [vmem:[%s23369_s2 + $0x728] sm:$0xff] }
 0x442   : > { %14103 = vmatprep.subr.bf16.mxu0 %v24307_v50  ;;  %4861 = vmatmul.mubr.f32.gmra.mrb[252].mxu1 %v11584_v26  ;;  %v12095_v34 = vpop.f32.mrb[153].mxu1  ;;  %v11668_v26 = vld [vmem:[%s23369_s2 + $0x700] sm:$0xff]  ;;  %v11643_v50 = vld [vmem:[%s23369_s2 + $0x638] sm:$0xff] }
 0x443   : > { %14073 = vmatpush3.bf16.msra.mxu1 %v24310_v45  ;;  %4865 = vmatprep.mubr.f32.mxu1 %v11587_v7  ;;  %v19852_v16 = vadd.f32 %v12095_v34, %v12094_v62  ;;  %v11641_v7 = vld [vmem:[%s23369_s2 + $0x628] sm:$0xff]  ;;  %v11672_v62 = vld [vmem:[%s23369_s2 + $0x720] sm:$0xff]  ;;  %v11642_v45 = vld [vmem:[%s23369_s2 + $0x630] sm:$0xff] }
 0x444   : > { %4966 = vmatmul.mubr.f32.gmra.mrb[252].mxu0 %v11616_v47  ;;  %14075 = vmatprep.subr.bf16.mxu1 %v24313_v19  ;;  %v11645_v34 = vld [vmem:[%s23369_s2 + $0x648] sm:$0xff]  ;;  %v11651_v30 = vld [vmem:[%s23369_s2 + $0x678] sm:$0xff] }
 0x445   : > { %14105 = vmatpush3.bf16.msra.mxu0 %v24316_v38  ;;  %4970 = vmatprep.mubr.f32.mxu0 %v11619_v32  ;;  %v12097_v14 = vpop.f32.mrb[154].mxu1  ;;  %v11677_v19 = vld [vmem:[%s23369_s2 + $0x748] sm:$0xff]  ;;  %v11647_v38 = vld [vmem:[%s23369_s2 + $0x658] sm:$0xff] }
 0x446   : > { %14107 = vmatprep.subr.bf16.mxu0 %v24319_v61  ;;  %4866 = vmatmul.mubr.f32.gmra.mrb[254].mxu1 %v11586_v29  ;;  %v12098_v48 = vpop.f32.mrb[155].mxu1 }
 0x447   : > { %14077 = vmatpush3.bf16.msra.mxu1 %v24322_v5  ;;  %5040 = vmatprep.mubr.f32.mxu1 %v11637_v25  ;;  %v19875_v8 = vadd.f32 %v12098_v48, %v12097_v14  ;;  %v11678_v5 = vld [vmem:[%s23369_s2 + $0x750] sm:$0xff] }
 0x448   : > { %4971 = vmatmul.mubr.f32.gmra.mrb[254].mxu0 %v11618_v10 }
 0x449   : > { %14109 = vmatpush3.bf16.msra.mxu0 %v24325_v31  ;;  %5145 = vmatprep.mubr.f32.mxu0 %v11669_v3  ;;  %v12100_v11 = vpop.f32.mrb[156].mxu1  ;;  %v11646_v3 = vld [vmem:[%s23369_s2 + $0x650] sm:$0xff] }
 0x44a   : > { %5041 = vmatmul.mubr.f32.vlgmr.msra.gmra.mrb[0].mxu1 %v11636_v59  ;;  %v12101_v27 = vpop.f32.mrb[157].mxu1  ;;  %v11681_v59 = vld [vmem:[%s23369_s2 + $0x768] sm:$0xff] }
 0x44b   : > { %5045 = vmatprep.mubr.f32.mxu1 %v11639_v42  ;;  %v19892_v4 = vadd.f32 %v12101_v27, %v12100_v11  ;;  %v11648_v42 = vld [vmem:[%s23369_s2 + $0x660] sm:$0xff] }
 0x44c   : > { %5146 = vmatmul.mubr.f32.vlgmr.msra.gmra.mrb[0].mxu0 %v11668_v26  ;;  %v11680_v26 = vld [vmem:[%s23369_s2 + $0x760] sm:$0xff] }
 0x44d   : > { %5150 = vmatprep.mubr.f32.mxu0 %v11671_v53  ;;  %v12103_v47 = vpop.f32.mrb[158].mxu1  ;;  %v11683_v53 = vld [vmem:[%s23369_s2 + $0x778] sm:$0xff] }
 0x44e   : > { %5046 = vmatmul.mubr.f32.gmra.mrb[2].mxu1 %v11638_v54  ;;  %v12104_v24 = vpop.f32.mrb[159].mxu1  ;;  %v11650_v54 = vld [vmem:[%s23369_s2 + $0x670] sm:$0xff] }
 0x44f   : > { %5050 = vmatprep.mubr.f32.mxu1 %v11641_v7  ;;  %v19906_v32 = vadd.f32 %v12104_v24, %v12103_v47 }
 0x450   : > { %5151 = vmatmul.mubr.f32.gmra.mrb[2].mxu0 %v11670_v17  ;;  %v11682_v17 = vld [vmem:[%s23369_s2 + $0x770] sm:$0xff] }
 0x451   : > { %5155 = vmatprep.mubr.f32.mxu0 %v11673_v58  ;;  %v12138_v44 = vpop.f32.mrb[160].mxu1 }
 0x452   : > { %5051 = vmatmul.mubr.f32.gmra.mrb[4].mxu1 %v11640_v35  ;;  %v12139_v29 = vpop.f32.mrb[161].mxu1  ;;  %v24326_v35 = vmov 0.0  }
 0x453   : > { %5055 = vmatprep.mubr.f32.mxu1 %v11643_v50  ;;  %v19920_v41 = vadd.f32 %v12139_v29, %v12138_v44 }
 0x454   : > { %5156 = vmatmul.mubr.f32.gmra.mrb[4].mxu0 %v11672_v62 }
 0x455   : > { %5160 = vmatprep.mubr.f32.mxu0 %v11675_v33  ;;  %v12141_v25 = vpop.f32.mrb[162].mxu1 }
 0x456   : > { %5056 = vmatmul.mubr.f32.gmra.mrb[6].mxu1 %v11642_v45  ;;  %v12142_v6 = vpop.f32.mrb[163].mxu1 }
 0x457   : > { %5060 = vmatprep.mubr.f32.mxu1 %v11645_v34  ;;  %v19934_v10 = vadd.f32 %v12142_v6, %v12141_v25 }
 0x458   : > { %5161 = vmatmul.mubr.f32.gmra.mrb[6].mxu0 %v11674_v63 }
 0x459   : > { %5165 = vmatprep.mubr.f32.mxu0 %v11677_v19  ;;  %v12144_v61 = vpop.f32.mrb[164].mxu1 }
 0x45a   : > { %5061 = vmatmul.mubr.f32.gmra.mrb[8].mxu1 %v11644_v37  ;;  %v12145_v14 = vpop.f32.mrb[165].mxu1 }
 0x45b   : > { %5065 = vmatprep.mubr.f32.mxu1 %v11647_v38  ;;  %v19948_v46 = vadd.f32 %v12145_v14, %v12144_v61 }
 0x45c   : > { %5166 = vmatmul.mubr.f32.gmra.mrb[8].mxu0 %v11676_v22 }
 0x45d   : > { %5170 = vmatprep.mubr.f32.mxu0 %v11679_v20  ;;  %v12147_v48 = vpop.f32.mrb[166].mxu1 }
 0x45e   : > { %5066 = vmatmul.mubr.f32.gmra.mrb[10].mxu1 %v11646_v3  ;;  %v12148_v12 = vpop.f32.mrb[167].mxu1 }
 0x45f   : > { %5070 = vmatprep.mubr.f32.mxu1 %v11649_v49  ;;  %v19962_v31 = vadd.f32 %v12148_v12, %v12147_v48 }
 0x460   : > { %5171 = vmatmul.mubr.f32.gmra.mrb[10].mxu0 %v11678_v5 }
 0x461   : > { %5175 = vmatprep.mubr.f32.mxu0 %v11681_v59  ;;  %v12150_v11 = vpop.f32.mrb[168].mxu1 }
 0x462   : > { %5071 = vmatmul.mubr.f32.gmra.mrb[12].mxu1 %v11648_v42  ;;  %v12151_v27 = vpop.f32.mrb[169].mxu1 }
 0x463   : > { %5075 = vmatprep.mubr.f32.mxu1 %v11651_v30  ;;  %v19973_v7 = vadd.f32 %v12151_v27, %v12150_v11 }
 0x464   : > { %5176 = vmatmul.mubr.f32.gmra.mrb[12].mxu0 %v11680_v26 }
 0x465   : > { %5180 = vmatprep.mubr.f32.mxu0 %v11683_v53  ;;  %v12153_v58 = vpop.f32.mrb[170].mxu1 }
 0x466   : > { %5076 = vmatmul.mubr.f32.gmra.mrb[14].mxu1 %v11650_v54  ;;  %v12154_v47 = vpop.f32.mrb[171].mxu1 }
 0x467   : > { %5556 = vmatprep.mubr.f32.mxu1 %v24326_v35  ;;  %v19979_v24 = vadd.f32 %v12154_v47, %v12153_v58 }
 0x468   : > { %5181 = vmatmul.mubr.f32.gmra.mrb[14].mxu0 %v11682_v17 }
 0x469   : > { %5669 = vmatprep.mubr.f32.mxu0 %v24326_v35  ;;  %v12156_v50 = vpop.f32.mrb[172].mxu1 }
 0x46a   : > { %v12157_v62 = vpop.f32.mrb[173].mxu1 }
 0x46b   : > { %v19982_v33 = vadd.f32 %v12157_v62, %v12156_v50 }
 0x46d   : > { %v12159_v44 = vpop.f32.mrb[174].mxu1 }
 0x46e   : > { %v12160_v45 = vpop.f32.mrb[175].mxu1 }
 0x46f   : > { %v19984_v29 = vadd.f32 %v12160_v45, %v12159_v44 }
 0x479   : > { %v12250_v34 = vpop.f32.mrb[176].mxu1 }
 0x47a   : > { %v12251_v63 = vpop.f32.mrb[177].mxu1 }
 0x47b   : > { %v19986_v19 = vadd.f32 %v12251_v63, %v12250_v34  ;;  %v12306_v25 = vpop.f32.mrb[176].mxu0 }
 0x47c   : > { %v12307_v37 = vpop.f32.mrb[177].mxu0 }
 0x47d   : > { %v12253_v6 = vpop.f32.mrb[178].mxu1  ;;  %v19988_v38 = vadd.f32 %v12307_v37, %v12306_v25 }
 0x47e   : > { %v12254_v22 = vpop.f32.mrb[179].mxu1 }
 0x47f   : > { %v19990_v20 = vadd.f32 %v12254_v22, %v12253_v6  ;;  %v12309_v61 = vpop.f32.mrb[178].mxu0 }
 0x480   : > { %v12310_v3 = vpop.f32.mrb[179].mxu0 }
 0x481   : > { %v12256_v14 = vpop.f32.mrb[180].mxu1  ;;  %v19992_v49 = vadd.f32 %v12310_v3, %v12309_v61 }
 0x482   : > { %v12257_v5 = vpop.f32.mrb[181].mxu1 }
 0x483   : > { %v19994_v59 = vadd.f32 %v12257_v5, %v12256_v14  ;;  %v12312_v48 = vpop.f32.mrb[180].mxu0 }
 0x484   : > { %v12313_v42 = vpop.f32.mrb[181].mxu0 }
 0x485   : > { %v12259_v12 = vpop.f32.mrb[182].mxu1  ;;  %v19996_v30 = vadd.f32 %v12313_v42, %v12312_v48 }
 0x486   : > { %v12260_v26 = vpop.f32.mrb[183].mxu1 }
 0x487   : > { %v19998_v53 = vadd.f32 %v12260_v26, %v12259_v12  ;;  %v12315_v11 = vpop.f32.mrb[182].mxu0 }
 0x488   : > { %v12316_v54 = vpop.f32.mrb[183].mxu0 }
 0x489   : > { %v12262_v27 = vpop.f32.mrb[184].mxu1  ;;  %v20000_v17 = vadd.f32 %v12316_v54, %v12315_v11 }
 0x48a   : > { %v12263_v58 = vpop.f32.mrb[185].mxu1 }
 0x48b   : > { %v20002_v47 = vadd.f32 %v12263_v58, %v12262_v27  ;;  %v12318_v50 = vpop.f32.mrb[184].mxu0 }
 0x48c   : > { %v12319_v62 = vpop.f32.mrb[185].mxu0 }
 0x48d   : > { %v12265_v44 = vpop.f32.mrb[186].mxu1  ;;  %v20004_v45 = vadd.f32 %v12319_v62, %v12318_v50 }
 0x48e   : > { %v12266_v34 = vpop.f32.mrb[187].mxu1 }
 0x48f   : > { %v20006_v63 = vadd.f32 %v12266_v34, %v12265_v44  ;;  %v12321_v25 = vpop.f32.mrb[186].mxu0 }
 0x490   : > { %v12322_v37 = vpop.f32.mrb[187].mxu0 }
 0x491   : > { %v12268_v6 = vpop.f32.mrb[188].mxu1  ;;  %v20008_v22 = vadd.f32 %v12322_v37, %v12321_v25 }
 0x492   : > { %v12269_v61 = vpop.f32.mrb[189].mxu1 }
 0x493   : > { %v20010_v3 = vadd.f32 %v12269_v61, %v12268_v6  ;;  %v12324_v14 = vpop.f32.mrb[188].mxu0 }
 0x494   : > { %v12325_v5 = vpop.f32.mrb[189].mxu0 }
 0x495   : > { %v12271_v48 = vpop.f32.mrb[190].mxu1  ;;  %v20012_v42 = vadd.f32 %v12325_v5, %v12324_v14 }
 0x496   : > { %v12272_v12 = vpop.f32.mrb[191].mxu1 }
 0x497   : > { %24327 = vst [vmem:[#allocation173_spill] sm:$0xff] %v20012_v42  ;;  %v20014_v26 = vadd.f32 %v12272_v12, %v12271_v48  ;;  %v12327_v11 = vpop.f32.mrb[190].mxu0 }
 0x498   : > { %v12328_v54 = vpop.f32.mrb[191].mxu0 }
 0x499   : > { %24328 = vst [vmem:[#allocation189_spill] sm:$0xff] %v20014_v26  ;;  %v20016_v27 = vadd.f32 %v12328_v54, %v12327_v11 }
 0x49b   : > { %24329 = vst [vmem:[#allocation203_spill] sm:$0xff] %v20016_v27 }
 0x49d   : > { %v12362_v58 = vpop.f32.mrb[192].mxu1 }
 0x49e   : > { %v12363_v50 = vpop.f32.mrb[193].mxu1 }
 0x49f   : > { %v20018_v62 = vadd.f32 %v12363_v50, %v12362_v58  ;;  %v12418_v44 = vpop.f32.mrb[192].mxu0 }
 0x4a0   : > { %v12419_v34 = vpop.f32.mrb[193].mxu0 }
 0x4a1   : > { %24330 = vst [vmem:[#allocation217_spill] sm:$0xff] %v20018_v62  ;;  %v12365_v25 = vpop.f32.mrb[194].mxu1  ;;  %v20020_v37 = vadd.f32 %v12419_v34, %v12418_v44 }
 0x4a2   : > { %v12366_v6 = vpop.f32.mrb[195].mxu1 }
 0x4a3   : > { %24331 = vst [vmem:[#allocation197_spill] sm:$0xff] %v20020_v37  ;;  %v20022_v61 = vadd.f32 %v12366_v6, %v12365_v25  ;;  %v12421_v14 = vpop.f32.mrb[194].mxu0 }
 0x4a4   : > { %v12422_v5 = vpop.f32.mrb[195].mxu0 }
 0x4a5   : > { %24332 = vst [vmem:[#allocation151_spill] sm:$0xff] %v20022_v61  ;;  %v12368_v48 = vpop.f32.mrb[196].mxu1  ;;  %v20024_v12 = vadd.f32 %v12422_v5, %v12421_v14 }
 0x4a6   : > { %v12369_v35 = vpop.f32.mrb[197].mxu1 }
 0x4a7   : > { %24333 = vst [vmem:[#allocation207_spill] sm:$0xff] %v20024_v12  ;;  %v20026_v11 = vadd.f32 %v12369_v35, %v12368_v48  ;;  %v12424_v54 = vpop.f32.mrb[196].mxu0 }
 0x4a8   : > { %v12425_v27 = vpop.f32.mrb[197].mxu0 }
 0x4a9   : > { %24334 = vst [vmem:[#allocation158_spill] sm:$0xff] %v20026_v11  ;;  %v12371_v58 = vpop.f32.mrb[198].mxu1  ;;  %v20028_v50 = vadd.f32 %v12425_v27, %v12424_v54 }
 0x4aa   : > { %v12372_v62 = vpop.f32.mrb[199].mxu1 }
 0x4ab   : > { %24335 = vst [vmem:[#allocation221_spill] sm:$0xff] %v20028_v50  ;;  %v20030_v26 = vadd.f32 %v12372_v62, %v12371_v58  ;;  %v12427_v44 = vpop.f32.mrb[198].mxu0 }
 0x4ac   : > { %v12428_v34 = vpop.f32.mrb[199].mxu0 }
 0x4ad   : > { %24336 = vst [vmem:[#allocation161_spill] sm:$0xff] %v20030_v26  ;;  %v12374_v25 = vpop.f32.mrb[200].mxu1  ;;  %v20032_v6 = vadd.f32 %v12428_v34, %v12427_v44 }
 0x4ae   : > { %v12375_v61 = vpop.f32.mrb[201].mxu1 }
 0x4af   : > { %24337 = vst [vmem:[#allocation234_spill] sm:$0xff] %v20032_v6  ;;  %v20034_v37 = vadd.f32 %v12375_v61, %v12374_v25  ;;  %v12430_v14 = vpop.f32.mrb[200].mxu0 }
 0x4b0   : > { %v12431_v5 = vpop.f32.mrb[201].mxu0 }
 0x4b1   : > { %24338 = vst [vmem:[#allocation165_spill] sm:$0xff] %v20034_v37  ;;  %v12377_v35 = vpop.f32.mrb[202].mxu1  ;;  %v20036_v48 = vadd.f32 %v12431_v5, %v12430_v14 }
 0x4b2   : > { %v12378_v11 = vpop.f32.mrb[203].mxu1 }
 0x4b3   : > { %24339 = vst [vmem:[#allocation168_spill] sm:$0xff] %v20036_v48  ;;  %v20038_v12 = vadd.f32 %v12378_v11, %v12377_v35  ;;  %v12433_v27 = vpop.f32.mrb[202].mxu0 }
 0x4b4   : > { %v12434_v54 = vpop.f32.mrb[203].mxu0 }
 0x4b5   : > { %24340 = vst [vmem:[#allocation174_spill] sm:$0xff] %v20038_v12  ;;  %v12380_v62 = vpop.f32.mrb[204].mxu1  ;;  %v20040_v58 = vadd.f32 %v12434_v54, %v12433_v27 }
 0x4b6   : > { %v12381_v26 = vpop.f32.mrb[205].mxu1 }
 0x4b7   : > { %24341 = vst [vmem:[#allocation179_spill] sm:$0xff] %v20040_v58  ;;  %v20042_v50 = vadd.f32 %v12381_v26, %v12380_v62  ;;  %v12436_v44 = vpop.f32.mrb[204].mxu0 }
 0x4b8   : > { %v12437_v34 = vpop.f32.mrb[205].mxu0 }
 0x4b9   : > { %24342 = vst [vmem:[#allocation184_spill] sm:$0xff] %v20042_v50  ;;  %v12383_v61 = vpop.f32.mrb[206].mxu1  ;;  %v20044_v25 = vadd.f32 %v12437_v34, %v12436_v44 }
 0x4ba   : > { %v12384_v37 = vpop.f32.mrb[207].mxu1 }
 0x4bb   : > { %24343 = vst [vmem:[#allocation72_spill] sm:$0xff] %v20044_v25  ;;  %v20046_v6 = vadd.f32 %v12384_v37, %v12383_v61  ;;  %v12439_v14 = vpop.f32.mrb[206].mxu0 }
 0x4bc   : > { %v12440_v5 = vpop.f32.mrb[207].mxu0 }
 0x4bd   : > { %24344 = vst [vmem:[#allocation68_spill] sm:$0xff] %v20046_v6  ;;  %v20048_v11 = vadd.f32 %v12440_v5, %v12439_v14  ;;  %v12474_v35 = vpop.f32.mrb[208].mxu1 }
 0x4be   : > { %v12475_v12 = vpop.f32.mrb[209].mxu1 }
 0x4bf   : > { %24345 = vst [vmem:[#allocation73_spill] sm:$0xff] %v20048_v11  ;;  %v12476_v48 = vadd.f32 %v12475_v12, %v12474_v35  ;;  %v12530_v27 = vpop.f32.mrb[208].mxu0 }
 0x4c0   : > { %v12531_v54 = vpop.f32.mrb[209].mxu0 }
 0x4c1   : > { %v4413_v26 = vadd.f32 %v12476_v48, %v19534_v9  ;;  %v12532_v62 = vadd.f32 %v12531_v54, %v12530_v27  ;;  %v12477_v50 = vpop.f32.mrb[210].mxu1 }
 0x4c2   : > { %v12478_v58 = vpop.f32.mrb[211].mxu1 }
 0x4c3   : > { %v4518_v44 = vadd.f32 %v12532_v62, %v19748_v40  ;;  %v12479_v34 = vadd.f32 %v12478_v58, %v12477_v50  ;;  %v12533_v25 = vpop.f32.mrb[210].mxu0 }
 0x4c4   : > { %v12534_v37 = vpop.f32.mrb[211].mxu0 }
 0x4c5   : > { %v20052_v61 = vadd.f32 %v4518_v44, %v4413_v26  ;;  %v4418_v14 = vadd.f32 %v12479_v34, %v19562_v0  ;;  %v12535_v5 = vadd.f32 %v12534_v37, %v12533_v25  ;;  %v12480_v11 = vpop.f32.mrb[212].mxu1 }
 0x4c6   : > { %v12481_v6 = vpop.f32.mrb[213].mxu1 }
 0x4c7   : > { %v4523_v12 = vadd.f32 %v12535_v5, %v19774_v39  ;;  %v12482_v35 = vadd.f32 %v12481_v6, %v12480_v11  ;;  %v12536_v42 = vpop.f32.mrb[212].mxu0 }
 0x4c8   : > { %v12537_v9 = vpop.f32.mrb[213].mxu0 }
 0x4c9   : > { %v20056_v48 = vadd.f32 %v4523_v12, %v4418_v14  ;;  %v4423_v27 = vadd.f32 %v12482_v35, %v19590_v56  ;;  %v12538_v40 = vadd.f32 %v12537_v9, %v12536_v42  ;;  %v12483_v50 = vpop.f32.mrb[214].mxu1 }
 0x4ca   : > { %v12484_v58 = vpop.f32.mrb[215].mxu1 }
 0x4cb   : > { %v4528_v54 = vadd.f32 %v12538_v40, %v19800_v52  ;;  %v12485_v26 = vadd.f32 %v12484_v58, %v12483_v50  ;;  %v12539_v62 = vpop.f32.mrb[214].mxu0 }
 0x4cc   : > { %v12540_v0 = vpop.f32.mrb[215].mxu0 }
 0x4cd   : > { %v20060_v25 = vadd.f32 %v4528_v54, %v4423_v27  ;;  %v4428_v44 = vadd.f32 %v12485_v26, %v19618_v43  ;;  %v12541_v39 = vadd.f32 %v12540_v0, %v12539_v62  ;;  %v12486_v6 = vpop.f32.mrb[216].mxu1 }
 0x4ce   : > { %v12487_v11 = vpop.f32.mrb[217].mxu1 }
 0x4cf   : > { %v4533_v34 = vadd.f32 %v12541_v39, %v19826_v57  ;;  %v12488_v37 = vadd.f32 %v12487_v11, %v12486_v6  ;;  %v12542_v14 = vpop.f32.mrb[216].mxu0 }
 0x4d0   : > { %v12543_v56 = vpop.f32.mrb[217].mxu0 }
 0x4d1   : > { %v20064_v42 = vadd.f32 %v4533_v34, %v4428_v44  ;;  %v4433_v5 = vadd.f32 %v12488_v37, %v19644_v1  ;;  %v12544_v52 = vadd.f32 %v12543_v56, %v12542_v14  ;;  %v12489_v12 = vpop.f32.mrb[218].mxu1 }
 0x4d2   : > { %v12490_v35 = vpop.f32.mrb[219].mxu1 }
 0x4d3   : > { %v4538_v9 = vadd.f32 %v12544_v52, %v19852_v16  ;;  %v12491_v27 = vadd.f32 %v12490_v35, %v12489_v12  ;;  %v12545_v40 = vpop.f32.mrb[218].mxu0 }
 0x4d4   : > { %v12546_v43 = vpop.f32.mrb[219].mxu0 }
 0x4d5   : > { %v20068_v50 = vadd.f32 %v4538_v9, %v4433_v5  ;;  %v4438_v58 = vadd.f32 %v12491_v27, %v19670_v15  ;;  %v12547_v57 = vadd.f32 %v12546_v43, %v12545_v40  ;;  %v12492_v54 = vpop.f32.mrb[220].mxu1 }
 0x4d6   : > { %v12493_v26 = vpop.f32.mrb[221].mxu1 }
 0x4d7   : > { %v4543_v62 = vadd.f32 %v12547_v57, %v19875_v8  ;;  %v12494_v0 = vadd.f32 %v12493_v26, %v12492_v54  ;;  %v12548_v44 = vpop.f32.mrb[220].mxu0 }
 0x4d8   : > { %v12549_v1 = vpop.f32.mrb[221].mxu0 }
 0x4d9   : > { %v20072_v39 = vadd.f32 %v4543_v62, %v4438_v58  ;;  %v4443_v6 = vadd.f32 %v12494_v0, %v19696_v60  ;;  %v12550_v16 = vadd.f32 %v12549_v1, %v12548_v44  ;;  %v12495_v11 = vpop.f32.mrb[222].mxu1 }
 0x4da   : > { %v12496_v34 = vpop.f32.mrb[223].mxu1 }
 0x4db   : > { %v4548_v37 = vadd.f32 %v12550_v16, %v19892_v4  ;;  %v12497_v14 = vadd.f32 %v12496_v34, %v12495_v11  ;;  %v12551_v56 = vpop.f32.mrb[222].mxu0 }
 0x4dc   : > { %v12552_v15 = vpop.f32.mrb[223].mxu0 }
 0x4dd   : > { %v20076_v5 = vadd.f32 %v4548_v37, %v4443_v6  ;;  %v4448_v52 = vadd.f32 %v12497_v14, %v19722_v36  ;;  %v12553_v8 = vadd.f32 %v12552_v15, %v12551_v56  ;;  %v12586_v12 = vpop.f32.mrb[224].mxu1 }
 0x4de   : > { %v12587_v35 = vpop.f32.mrb[225].mxu1 }
 0x4df   : > { %v4553_v9 = vadd.f32 %v12553_v8, %v19906_v32  ;;  %v12588_v27 = vadd.f32 %v12587_v35, %v12586_v12  ;;  %v12642_v40 = vpop.f32.mrb[224].mxu0 }
 0x4e0   : > { %v12643_v60 = vpop.f32.mrb[225].mxu0 }
 0x4e1   : > { %v20080_v43 = vadd.f32 %v4553_v9, %v4448_v52  ;;  %v4623_v58 = vadd.f32 %v12588_v27, %v19920_v41  ;;  %v12644_v4 = vadd.f32 %v12643_v60, %v12642_v40  ;;  %v12589_v57 = vpop.f32.mrb[226].mxu1 }
 0x4e2   : > { %v12590_v54 = vpop.f32.mrb[227].mxu1 }
 0x4e3   : > { %v4728_v26 = vadd.f32 %v12644_v4, %v19416_v21  ;;  %v12591_v62 = vadd.f32 %v12590_v54, %v12589_v57  ;;  %v12645_v0 = vpop.f32.mrb[226].mxu0  ;;  %v5340_v57 = vld [vmem:[%s23372_s5] sm:$0xff] }
 0x4e4   : > { %v12646_v36 = vpop.f32.mrb[227].mxu0  ;;  %v5356_v54 = vld [vmem:[%s23372_s5 + $0x80] sm:$0xff] }
 0x4e5   : > { %v5194_v44 = vadd.f32 %v4728_v26, %v4623_v58  ;;  %v4628_v1 = vadd.f32 %v12591_v62, %v19934_v10  ;;  %v12647_v6 = vadd.f32 %v12646_v36, %v12645_v0  ;;  %v12592_v32 = vpop.f32.mrb[228].mxu1  ;;  %v5357_v58 = vld [vmem:[%s23372_s5 + $0x88] sm:$0xff] }
 0x4e6   : > { %v12593_v16 = vpop.f32.mrb[229].mxu1 }
 0x4e7   : > { %v20086_v11 = vadd.f32 %v5194_v44, %v20052_v61  ;;  %v4733_v34 = vadd.f32 %v12647_v6, %v19442_v51  ;;  %v12594_v41 = vadd.f32 %v12593_v16, %v12592_v32  ;;  %v12648_v37 = vpop.f32.mrb[228].mxu0  ;;  %v5358_v6 = vld [vmem:[%s23372_s5 + $0x90] sm:$0xff]  ;;  %v5373_v32 = vld [vmem:[%s23372_s5 + $0x108] sm:$0xff] }
 0x4e8   : > { %v12649_v14 = vpop.f32.mrb[229].mxu0 }
 0x4e9   : > { %v5195_v56 = vadd.f32 %v4733_v34, %v4628_v1  ;;  %v4633_v21 = vadd.f32 %v12594_v41, %v19948_v46  ;;  %v12650_v15 = vadd.f32 %v12649_v14, %v12648_v37  ;;  %v12595_v52 = vpop.f32.mrb[230].mxu1  ;;  %v5341_v46 = vld [vmem:[%s23372_s5 + $0x8] sm:$0xff]  ;;  %v5342_v1 = vld [vmem:[%s23372_s5 + $0x10] sm:$0xff]  ;;  %v5375_v41 = vld [vmem:[%s23372_s5 + $0x118] sm:$0xff] }
 0x4ea   : > { %v12596_v8 = vpop.f32.mrb[231].mxu1  ;;  %v14110_v4 = vpack.c.bf16 %v5357_v58, %v5341_v46  ;;  %v14128_v34 = vpack.c.bf16 %v5358_v6, %v5342_v1  ;;  %v5391_v37 = vld [vmem:[%s23372_s5 + $0x198] sm:$0xff] }
 0x4eb   : > { %v20091_v12 = vadd.f32 %v5195_v56, %v20056_v48  ;;  %v4738_v10 = vadd.f32 %v12650_v15, %v19468_v28  ;;  %v12597_v35 = vadd.f32 %v12596_v8, %v12595_v52  ;;  %v12651_v9 = vpop.f32.mrb[230].mxu0  ;;  %v5343_v28 = vld [vmem:[%s23372_s5 + $0x18] sm:$0xff]  ;;  %v5372_v8 = vld [vmem:[%s23372_s5 + $0x100] sm:$0xff] }
 0x4ec   : > { %v12652_v61 = vpop.f32.mrb[231].mxu0  ;;  %14111 = vmatprep.subr.bf16.mxu1 %v14110_v4  ;;  %v5407_v4 = vld [vmem:[%s23372_s5 + $0x218] sm:$0xff] }
 0x4ed   : > { %v5196_v27 = vadd.f32 %v4738_v10, %v4633_v21  ;;  %v4638_v51 = vadd.f32 %v12597_v35, %v19962_v31  ;;  %v12653_v40 = vadd.f32 %v12652_v61, %v12651_v9  ;;  %v12598_v60 = vpop.f32.mrb[232].mxu1  ;;  %v5359_v31 = vld [vmem:[%s23372_s5 + $0x98] sm:$0xff]  ;;  %v5388_v10 = vld [vmem:[%s23372_s5 + $0x180] sm:$0xff]  ;;  %v5374_v35 = vld [vmem:[%s23372_s5 + $0x110] sm:$0xff] }
 0x4ee   : > { %v12599_v48 = vpop.f32.mrb[233].mxu1  ;;  %v14126_v44 = vpack.c.bf16 %v5359_v31, %v5343_v28  ;;  %v14116_v61 = vpack.c.bf16 %v5388_v10, %v5372_v8  ;;  %v5423_v31 = vld [vmem:[%s23372_s5 + $0x298] sm:$0xff]  ;;  %v5452_v10 = vld [vmem:[%s23372_s5 + $0x380] sm:$0xff] }
 0x4ef   : > { %v20114_v26 = vadd.f32 %v5196_v27, %v20060_v25  ;;  %v4743_v62 = vadd.f32 %v12653_v40, %v19494_v2  ;;  %v12600_v0 = vadd.f32 %v12599_v48, %v12598_v60  ;;  %v12654_v36 = vpop.f32.mrb[232].mxu0  ;;  %v14112_v25 = vpack.c.bf16 %v5356_v54, %v5340_v57  ;;  %v5389_v2 = vld [vmem:[%s23372_s5 + $0x188] sm:$0xff]  ;;  %v5390_v27 = vld [vmem:[%s23372_s5 + $0x190] sm:$0xff]  ;;  %v5404_v57 = vld [vmem:[%s23372_s5 + $0x200] sm:$0xff] }
 0x4f0   : > { %v12655_v16 = vpop.f32.mrb[233].mxu0  ;;  %14127 = vmatprep.subr.bf16.mxu0 %v14126_v44  ;;  %v14114_v52 = vpack.c.bf16 %v5389_v2, %v5373_v32  ;;  %v5421_v40 = vld [vmem:[%s23372_s5 + $0x288] sm:$0xff]  ;;  %v14132_v48 = vpack.c.bf16 %v5390_v27, %v5374_v35  ;;  %v5438_v35 = vld [vmem:[%s23372_s5 + $0x310] sm:$0xff] }
 0x4f1   : > { %v5197_v14 = vadd.f32 %v4743_v62, %v4638_v51  ;;  %v4643_v56 = vadd.f32 %v12600_v0, %v19973_v7  ;;  %v12656_v21 = vadd.f32 %v12655_v16, %v12654_v36  ;;  %v12601_v15 = vpop.f32.mrb[234].mxu1  ;;  %14113 = vmatpush1.bf16.msra.mxu1 %v14112_v25  ;;  %14129 = vmatpush1.bf16.msra.mxu0 %v14128_v34  ;;  %v5405_v51 = vld [vmem:[%s23372_s5 + $0x208] sm:$0xff]  ;;  %v5420_v62 = vld [vmem:[%s23372_s5 + $0x280] sm:$0xff]  ;;  %v5406_v0 = vld [vmem:[%s23372_s5 + $0x210] sm:$0xff] }
 0x4f2   : > { %v12602_v9 = vpop.f32.mrb[235].mxu1  ;;  %v14130_v7 = vpack.c.bf16 %v5391_v37, %v5375_v41  ;;  %14115 = vmatprep.subr.bf16.mxu1 %v14114_v52  ;;  %v14118_v54 = vpack.c.bf16 %v5421_v40, %v5405_v51  ;;  %v5422_v36 = vld [vmem:[%s23372_s5 + $0x290] sm:$0xff]  ;;  %v5437_v16 = vld [vmem:[%s23372_s5 + $0x308] sm:$0xff]  ;;  %v5439_v34 = vld [vmem:[%s23372_s5 + $0x318] sm:$0xff]  ;;  %v14120_v41 = vpack.c.bf16 %v5420_v62, %v5404_v57 }
 0x4f3   : > { %v20155_v60 = vadd.f32 %v5197_v14, %v20064_v42  ;;  %v4748_v46 = vadd.f32 %v12656_v21, %v19520_v23  ;;  %v12603_v58 = vadd.f32 %v12602_v9, %v12601_v15  ;;  %v12657_v28 = vpop.f32.mrb[234].mxu0  ;;  %v14134_v23 = vpack.c.bf16 %v5423_v31, %v5407_v4  ;;  %v5453_v25 = vld [vmem:[%s23372_s5 + $0x388] sm:$0xff]  ;;  %v5455_v14 = vld [vmem:[%s23372_s5 + $0x398] sm:$0xff]  ;;  %v5454_v9 = vld [vmem:[%s23372_s5 + $0x390] sm:$0xff] }
 0x4f4   : > { %v12658_v42 = vpop.f32.mrb[235].mxu0  ;;  %14131 = vmatprep.subr.bf16.mxu0 %v14130_v7  ;;  %v14136_v37 = vpack.c.bf16 %v5422_v36, %v5406_v0  ;;  %v14138_v7 = vpack.c.bf16 %v5455_v14, %v5439_v34  ;;  %v5363_v34 = vld [vmem:[%s23372_s5 + $0xb8] sm:$0xff] }
 0x4f5   : > { %v5198_v44 = vadd.f32 %v4748_v46, %v4643_v56  ;;  %v4648_v1 = vadd.f32 %v12603_v58, %v19979_v24  ;;  %v12659_v6 = vadd.f32 %v12658_v42, %v12657_v28  ;;  %v12604_v32 = vpop.f32.mrb[236].mxu1  ;;  %14117 = vmatpush1.bf16.msra.mxu1 %v14116_v61  ;;  %14133 = vmatpush1.bf16.msra.mxu0 %v14132_v48  ;;  %v5436_v56 = vld [vmem:[%s23372_s5 + $0x300] sm:$0xff] }
 0x4f6   : > { %v12605_v2 = vpop.f32.mrb[237].mxu1  ;;  %v14122_v24 = vpack.c.bf16 %v5453_v25, %v5437_v16  ;;  %14119 = vmatprep.subr.bf16.mxu1 %v14118_v54  ;;  %14135 = vmatprep.subr.bf16.mxu0 %v14134_v23  ;;  %v14124_v46 = vpack.c.bf16 %v5452_v10, %v5436_v56  ;;  %v14140_v58 = vpack.c.bf16 %v5454_v9, %v5438_v35 }
 0x4f7   : > { %v20193_v21 = vadd.f32 %v5198_v44, %v20068_v50  ;;  %v4753_v15 = vadd.f32 %v12659_v6, %v19554_v55  ;;  %v12606_v52 = vadd.f32 %v12605_v2, %v12604_v32  ;;  %v12660_v8 = vpop.f32.mrb[236].mxu0  ;;  %v5347_v6 = vld [vmem:[%s23372_s5 + $0x38] sm:$0xff] }
 0x4f8   : > { %v12661_v50 = vpop.f32.mrb[237].mxu0 }
 0x4f9   : > { %v5199_v61 = vadd.f32 %v4753_v15, %v4648_v1  ;;  %v4653_v55 = vadd.f32 %v12606_v52, %v19982_v33  ;;  %v12662_v27 = vadd.f32 %v12661_v50, %v12660_v8  ;;  %v12607_v51 = vpop.f32.mrb[238].mxu1  ;;  %14121 = vmatpush1.bf16.msra.mxu1 %v14120_v41  ;;  %14137 = vmatpush1.bf16.msra.mxu0 %v14136_v37  ;;  %v5345_v1 = vld [vmem:[%s23372_s5 + $0x28] sm:$0xff] }
 0x4fa   : > { %v12608_v40 = vpop.f32.mrb[239].mxu1  ;;  %14123 = vmatprep.subr.bf16.mxu1 %v14122_v24  ;;  %14139 = vmatprep.subr.bf16.mxu0 %v14138_v7  ;;  %v14158_v41 = vpack.c.bf16 %v5363_v34, %v5347_v6 }
 0x4fb   : > { %v20207_v28 = vadd.f32 %v5199_v61, %v20072_v39  ;;  %v4758_v48 = vadd.f32 %v12662_v27, %v19582_v13  ;;  %v12609_v4 = vadd.f32 %v12608_v40, %v12607_v51  ;;  %v12663_v31 = vpop.f32.mrb[238].mxu0 }
 0x4fc   : > { %v12664_v57 = vpop.f32.mrb[239].mxu0 }
 0x4fd   : > { %v5200_v42 = vadd.f32 %v4758_v48, %v4653_v55  ;;  %v4658_v33 = vadd.f32 %v12609_v4, %v19984_v29  ;;  %v12665_v54 = vadd.f32 %v12664_v57, %v12663_v31  ;;  %v12698_v23 = vpop.f32.mrb[240].mxu1  ;;  %14125 = vmatpush1.bf16.msra.mxu1 %v14124_v46  ;;  %14141 = vmatpush1.bf16.msra.mxu0 %v14140_v58  ;;  %v5361_v29 = vld [vmem:[%s23372_s5 + $0xa8] sm:$0xff] }
 0x4fe   : > { %v12699_v62 = vpop.f32.mrb[241].mxu1  ;;  %v14142_v25 = vpack.c.bf16 %v5361_v29, %v5345_v1  ;;  %14159 = vmatprep.subr.bf16.mxu0 %v14158_v41 }
 0x4ff   : > { %v20212_v0 = vadd.f32 %v5200_v42, %v20076_v5  ;;  %v4763_v39 = vadd.f32 %v12665_v54, %v19610_v18  ;;  %v12700_v36 = vadd.f32 %v12699_v62, %v12698_v23  ;;  %v12754_v13 = vpop.f32.mrb[240].mxu0 }
 0x500   : > { %v12755_v44 = vpop.f32.mrb[241].mxu0  ;;  %14143 = vmatprep.subr.bf16.mxu1 %v14142_v25 }
 0x501   : > { %v5201_v32 = vadd.f32 %v4763_v39, %v4658_v33  ;;  %v4833_v5 = vadd.f32 %v12700_v36, %v19986_v19  ;;  %v12756_v16 = vadd.f32 %v12755_v44, %v12754_v13  ;;  %v12701_v18 = vpop.f32.mrb[242].mxu1 }
 0x502   : > { %v12702_v2 = vpop.f32.mrb[243].mxu1 }
 0x503   : > { %v20229_v37 = vadd.f32 %v5201_v32, %v20080_v43  ;;  %v4938_v24 = vadd.f32 %v12756_v16, %v19988_v38  ;;  %v12703_v14 = vadd.f32 %v12702_v2, %v12701_v18  ;;  %v12757_v56 = vpop.f32.mrb[242].mxu0 }
 0x504   : > { %v12758_v15 = vpop.f32.mrb[243].mxu0 }
 0x505   : > { %v20232_v19 = vadd.f32 %v4938_v24, %v4833_v5  ;;  %v4838_v52 = vadd.f32 %v12703_v14, %v19990_v20  ;;  %v12759_v8 = vadd.f32 %v12758_v15, %v12757_v56  ;;  %v12704_v10 = vpop.f32.mrb[244].mxu1  ;;  %v24346_v14 = vld [vmem:[#allocation173_spill] sm:$0xff] }
 0x506   : > { %v12705_v35 = vpop.f32.mrb[245].mxu1 }
 0x507   : > { %v4943_v9 = vadd.f32 %v12759_v8, %v19992_v49  ;;  %v12706_v50 = vadd.f32 %v12705_v35, %v12704_v10  ;;  %v12760_v7 = vpop.f32.mrb[244].mxu0  ;;  %v24347_v10 = vld [vmem:[#allocation189_spill] sm:$0xff] }
 0x508   : > { %v12761_v43 = vpop.f32.mrb[245].mxu0 }
 0x509   : > { %v20236_v61 = vadd.f32 %v4943_v9, %v4838_v52  ;;  %v4843_v38 = vadd.f32 %v12706_v50, %v19994_v59  ;;  %v12762_v55 = vadd.f32 %v12761_v43, %v12760_v7  ;;  %v12707_v27 = vpop.f32.mrb[246].mxu1  ;;  %v24348_v7 = vld [vmem:[#allocation203_spill] sm:$0xff] }
 0x50a   : > { %v12708_v51 = vpop.f32.mrb[247].mxu1 }
 0x50b   : > { %v4948_v40 = vadd.f32 %v12762_v55, %v19996_v30  ;;  %v12709_v46 = vadd.f32 %v12708_v51, %v12707_v27  ;;  %v12763_v58 = vpop.f32.mrb[246].mxu0  ;;  %v24349_v51 = vld [vmem:[#allocation217_spill] sm:$0xff] }
 0x50c   : > { %v12764_v20 = vpop.f32.mrb[247].mxu0 }
 0x50d   : > { %v20240_v48 = vadd.f32 %v4948_v40, %v4843_v38  ;;  %v4848_v4 = vadd.f32 %v12709_v46, %v19998_v53  ;;  %v12765_v49 = vadd.f32 %v12764_v20, %v12763_v58  ;;  %v12710_v31 = vpop.f32.mrb[248].mxu1 }
 0x50e   : > { %v12711_v57 = vpop.f32.mrb[249].mxu1 }
 0x50f   : > { %v4953_v42 = vadd.f32 %v12765_v49, %v20000_v17  ;;  %v12712_v33 = vadd.f32 %v12711_v57, %v12710_v31  ;;  %v12766_v54 = vpop.f32.mrb[248].mxu0 }
 0x510   : > { %v12767_v59 = vpop.f32.mrb[249].mxu0 }
 0x511   : > { %v20244_v23 = vadd.f32 %v4953_v42, %v4848_v4  ;;  %v4853_v62 = vadd.f32 %v12712_v33, %v20002_v47  ;;  %v12768_v30 = vadd.f32 %v12767_v59, %v12766_v54  ;;  %v12713_v39 = vpop.f32.mrb[250].mxu1  ;;  %v24350_v4 = vld [vmem:[#allocation197_spill] sm:$0xff]  ;;  %v24351_v54 = vld [vmem:[#allocation151_spill] sm:$0xff] }
 0x512   : > { %v12714_v36 = vpop.f32.mrb[251].mxu1 }
 0x513   : > { %v4958_v13 = vadd.f32 %v12768_v30, %v20004_v45  ;;  %v12715_v44 = vadd.f32 %v12714_v36, %v12713_v39  ;;  %v12769_v1 = vpop.f32.mrb[250].mxu0 }
 0x514   : > { %v12770_v53 = vpop.f32.mrb[251].mxu0 }
 0x515   : > { %v20248_v29 = vadd.f32 %v4958_v13, %v4853_v62  ;;  %v4858_v6 = vadd.f32 %v12715_v44, %v20006_v63  ;;  %v12771_v17 = vadd.f32 %v12770_v53, %v12769_v1  ;;  %v12716_v32 = vpop.f32.mrb[252].mxu1  ;;  %v24352_v13 = vld [vmem:[#allocation207_spill] sm:$0xff] }
 0x516   : > { %v12717_v5 = vpop.f32.mrb[253].mxu1 }
 0x517   : > { %v4963_v16 = vadd.f32 %v12771_v17, %v20008_v22  ;;  %v12718_v18 = vadd.f32 %v12717_v5, %v12716_v32  ;;  %v12772_v25 = vpop.f32.mrb[252].mxu0  ;;  %v24353_v5 = vld [vmem:[#allocation158_spill] sm:$0xff] }
 0x518   : > { %v12773_v47 = vpop.f32.mrb[253].mxu0 }
 0x519   : > { %v20252_v34 = vadd.f32 %v4963_v16, %v4858_v6  ;;  %v4863_v2 = vadd.f32 %v12718_v18, %v20010_v3  ;;  %v12774_v45 = vadd.f32 %v12773_v47, %v12772_v25  ;;  %v12719_v41 = vpop.f32.mrb[254].mxu1 }
 0x51a   : > { %v12720_v24 = vpop.f32.mrb[255].mxu1 }
 0x51b   : > { %v4968_v56 = vadd.f32 %v12774_v45, %v24346_v14  ;;  %v12721_v15 = vadd.f32 %v12720_v24, %v12719_v41  ;;  %v12775_v52 = vpop.f32.mrb[254].mxu0  ;;  %v24354_v45 = vld [vmem:[#allocation221_spill] sm:$0xff] }
 0x51c   : > { %v12776_v63 = vpop.f32.mrb[255].mxu0 }
 0x51d   : > { %v20256_v8 = vadd.f32 %v4968_v56, %v4863_v2  ;;  %v4868_v35 = vadd.f32 %v12721_v15, %v24347_v10  ;;  %v12777_v22 = vadd.f32 %v12776_v63, %v12775_v52  ;;  %v12810_v9 = vpop.f32.mrb[0].mxu1 }
 0x51e   : > { %v12811_v50 = vpop.f32.mrb[1].mxu1 }
 0x51f   : > { %v4973_v43 = vadd.f32 %v12777_v22, %v24348_v7  ;;  %v12812_v38 = vadd.f32 %v12811_v50, %v12810_v9  ;;  %v12866_v55 = vpop.f32.mrb[0].mxu0 }
 0x520   : > { %v12867_v3 = vpop.f32.mrb[1].mxu0 }
 0x521   : > { %v20260_v27 = vadd.f32 %v4973_v43, %v4868_v35  ;;  %v5043_v40 = vadd.f32 %v12812_v38, %v24349_v51  ;;  %v12868_v46 = vadd.f32 %v12867_v3, %v12866_v55  ;;  %v12813_v58 = vpop.f32.mrb[2].mxu1  ;;  %v24355_v35 = vld [vmem:[#allocation161_spill] sm:$0xff]  ;;  %v24356_v43 = vld [vmem:[#allocation234_spill] sm:$0xff] }
 0x522   : > { %v12814_v20 = vpop.f32.mrb[3].mxu1 }
 0x523   : > { %v5148_v49 = vadd.f32 %v12868_v46, %v24350_v4  ;;  %v12815_v31 = vadd.f32 %v12814_v20, %v12813_v58  ;;  %v12869_v57 = vpop.f32.mrb[2].mxu0 }
 0x524   : > { %v12870_v42 = vpop.f32.mrb[3].mxu0 }
 0x525   : > { %v5210_v33 = vadd.f32 %v5148_v49, %v5043_v40  ;;  %v5048_v59 = vadd.f32 %v12815_v31, %v24351_v54  ;;  %v12871_v62 = vadd.f32 %v12870_v42, %v12869_v57  ;;  %v12816_v30 = vpop.f32.mrb[4].mxu1  ;;  %v24357_v57 = vld [vmem:[#allocation165_spill] sm:$0xff] }
 0x526   : > { %v12817_v39 = vpop.f32.mrb[5].mxu1 }
 0x527   : > { %v5226_v36 = vadd.f32 %v5210_v33, %v20232_v19  ;;  %v5153_v44 = vadd.f32 %v12871_v62, %v24352_v13  ;;  %v12818_v1 = vadd.f32 %v12817_v39, %v12816_v30  ;;  %v12872_v53 = vpop.f32.mrb[4].mxu0  ;;  %v24358_v62 = vld [vmem:[#allocation168_spill] sm:$0xff] }
 0x528   : > { %v12873_v6 = vpop.f32.mrb[5].mxu0 }
 0x529   : > { %v20268_v17 = vadd.f32 %v5226_v36, %v20086_v11  ;;  %v5211_v32 = vadd.f32 %v5153_v44, %v5048_v59  ;;  %v5053_v16 = vadd.f32 %v12818_v1, %v24353_v5  ;;  %v12874_v18 = vadd.f32 %v12873_v6, %v12872_v53  ;;  %v12819_v25 = vpop.f32.mrb[6].mxu1 }
 0x52a   : > { %v12820_v47 = vpop.f32.mrb[7].mxu1 }
 0x52b   : > { %v5227_v2 = vadd.f32 %v5211_v32, %v20236_v61  ;;  %v5158_v41 = vadd.f32 %v12874_v18, %v24354_v45  ;;  %v12875_v19 = vpop.f32.mrb[6].mxu0  ;;  %v5264_v24 = vmul.f32 %v20268_v17, %v20268_v17  ;;  %v12821_v14 = vadd.f32 %v12820_v47, %v12819_v25  ;;  %v24360_v45 = vld [vmem:[#allocation179_spill] sm:$0xff] }
 0x52c   : > { %v12876_v56 = vpop.f32.mrb[7].mxu0  ;;  %v5243_v10 = vsel %vm5242_vm1, %v20268_v17, 0.0 }
 0x52d   : > { %v20276_v11 = vadd.f32 %v5227_v2, %v20091_v12  ;;  %v5212_v15 = vadd.f32 %v5158_v41, %v5053_v16  ;;  %v12877_v52 = vadd.f32 %v12876_v56, %v12875_v19  ;;  %v12822_v63 = vpop.f32.mrb[8].mxu1  ;;  %v5058_v22 = vadd.f32 %v12821_v14, %v24355_v35  ;;  %v24359_v16 = vld [vmem:[#allocation174_spill] sm:$0xff] }
 0x52e   : > { %v12823_v61 = vpop.f32.mrb[9].mxu1  ;;  %v5272_v55 = vsel %vm5242_vm1, %v5264_v24, 0.0 }
 0x52f   : > { %v5244_v9 = vsel %vm5242_vm1, %v20276_v11, 0.0  ;;  %v5265_v50 = vmul.f32 %v20276_v11, %v20276_v11  ;;  %v5228_v7 = vadd.f32 %v5212_v15, %v20240_v48  ;;  %v5163_v12 = vadd.f32 %v12877_v52, %v24356_v43  ;;  %v12878_v38 = vpop.f32.mrb[8].mxu0  ;;  %v24362_v43 = vld [vmem:[#allocation72_spill] sm:$0xff] }
 0x530   : > { %v5245_v3 = vadd.f32 %v5244_v9, %v5243_v10  ;;  %v12824_v51 = vadd.f32 %v12823_v61, %v12822_v63  ;;  %v12879_v40 = vpop.f32.mrb[9].mxu0 }
 0x531   : > { %v5273_v46 = vsel %vm5242_vm1, %v5265_v50, 0.0  ;;  %v20290_v58 = vadd.f32 %v5228_v7, %v20114_v26  ;;  %v5213_v20 = vadd.f32 %v5163_v12, %v5058_v22  ;;  %v12880_v4 = vadd.f32 %v12879_v40, %v12878_v38  ;;  %v12825_v49 = vpop.f32.mrb[10].mxu1  ;;  %v24361_v22 = vld [vmem:[#allocation184_spill] sm:$0xff] }
 0x532   : > { %v5274_v31 = vadd.f32 %v5273_v46, %v5272_v55  ;;  %v5063_v42 = vadd.f32 %v12824_v51, %v24357_v57  ;;  %v12826_v48 = vpop.f32.mrb[11].mxu1 }
 0x533   : > { %v5246_v33 = vsel %vm5242_vm1, %v20290_v58, 0.0  ;;  %v5266_v54 = vmul.f32 %v20290_v58, %v20290_v58  ;;  %v5229_v59 = vadd.f32 %v5213_v20, %v20244_v23  ;;  %v5168_v30 = vadd.f32 %v12880_v4, %v24358_v62  ;;  %v12881_v39 = vpop.f32.mrb[10].mxu0 }
 0x534   : > { %v5247_v26 = vadd.f32 %v5246_v33, %v5245_v3  ;;  %v12827_v36 = vadd.f32 %v12826_v48, %v12825_v49  ;;  %v12882_v13 = vpop.f32.mrb[11].mxu0  ;;  %v24363_v49 = vld [vmem:[#allocation68_spill] sm:$0xff]  ;;  %v24364_v48 = vld [vmem:[#allocation73_spill] sm:$0xff] }
 0x535   : > { %v5275_v44 = vsel %vm5242_vm1, %v5266_v54, 0.0  ;;  %v20301_v1 = vadd.f32 %v5229_v59, %v20155_v60  ;;  %v5214_v53 = vadd.f32 %v5168_v30, %v5063_v42  ;;  %v12883_v6 = vadd.f32 %v12882_v13, %v12881_v39  ;;  %v12828_v32 = vpop.f32.mrb[12].mxu1 }
 0x536   : > { %v5276_v5 = vadd.f32 %v5275_v44, %v5274_v31  ;;  %v5068_v18 = vadd.f32 %v12827_v36, %v24359_v16  ;;  %v12829_v25 = vpop.f32.mrb[13].mxu1 }
 0x537   : > { %v5248_v23 = vsel %vm5242_vm1, %v20301_v1, 0.0  ;;  %v5267_v47 = vmul.f32 %v20301_v1, %v20301_v1  ;;  %v5230_v2 = vadd.f32 %v5214_v53, %v20248_v29  ;;  %v5173_v41 = vadd.f32 %v12883_v6, %v24360_v45  ;;  %v12884_v19 = vpop.f32.mrb[12].mxu0 }
 0x538   : > { %v5249_v60 = vadd.f32 %v5248_v23, %v5247_v26  ;;  %v12830_v24 = vadd.f32 %v12829_v25, %v12828_v32  ;;  %v12885_v14 = vpop.f32.mrb[13].mxu0 }
 0x539   : > { %v5277_v56 = vsel %vm5242_vm1, %v5267_v47, 0.0  ;;  %v20312_v15 = vadd.f32 %v5230_v2, %v20193_v21  ;;  %v5215_v52 = vadd.f32 %v5173_v41, %v5068_v18  ;;  %v12886_v63 = vadd.f32 %v12885_v14, %v12884_v19  ;;  %v12831_v10 = vpop.f32.mrb[14].mxu1 }
 0x53a   : > { %v5278_v35 = vadd.f32 %v5277_v56, %v5276_v5  ;;  %v5073_v61 = vadd.f32 %v12830_v24, %v24361_v22  ;;  %v12832_v9 = vpop.f32.mrb[15].mxu1 }
 0x53b   : > { %v5250_v29 = vsel %vm5242_vm1, %v20312_v15, 0.0  ;;  %v5268_v50 = vmul.f32 %v20312_v15, %v20312_v15  ;;  %v5231_v7 = vadd.f32 %v5215_v52, %v20252_v34  ;;  %v5178_v12 = vadd.f32 %v12886_v63, %v24362_v43  ;;  %v12887_v38 = vpop.f32.mrb[14].mxu0 }
 0x53c   : > { %v5251_v21 = vadd.f32 %v5250_v29, %v5249_v60  ;;  %v12833_v55 = vadd.f32 %v12832_v9, %v12831_v10  ;;  %v12888_v3 = vpop.f32.mrb[15].mxu0 }
 0x53d   : > { %v5279_v51 = vsel %vm5242_vm1, %v5268_v50, 0.0  ;;  %v20323_v40 = vadd.f32 %v5231_v7, %v20207_v28  ;;  %v5216_v46 = vadd.f32 %v5178_v12, %v5073_v61  ;;  %v12889_v20 = vadd.f32 %v12888_v3, %v12887_v38  ;;  %v5362_v3 = vld [vmem:[%s23372_s5 + $0xb0] sm:$0xff] }
 0x53e   : > { %v5280_v4 = vadd.f32 %v5279_v51, %v5278_v35  ;;  %v5078_v31 = vadd.f32 %v12833_v55, %v24363_v49  ;;  %v5346_v55 = vld [vmem:[%s23372_s5 + $0x30] sm:$0xff]  ;;  %v5377_v51 = vld [vmem:[%s23372_s5 + $0x128] sm:$0xff]  ;;  %v5379_v49 = vld [vmem:[%s23372_s5 + $0x138] sm:$0xff] }
 0x53f   : > { %v5252_v57 = vsel %vm5242_vm1, %v20323_v40, 0.0  ;;  %v5269_v34 = vmul.f32 %v20323_v40, %v20323_v40  ;;  %v5232_v42 = vadd.f32 %v5216_v46, %v20256_v8  ;;  %v5183_v33 = vadd.f32 %v12889_v20, %v24364_v48 }
 0x540   : > { %v5253_v54 = vadd.f32 %v5252_v57, %v5251_v21  ;;  %v14160_v48 = vpack.c.bf16 %v5362_v3, %v5346_v55 }
 0x541   : > { %v5281_v59 = vsel %vm5242_vm1, %v5269_v34, 0.0  ;;  %v5240_v28 = vadd.f32 %v5232_v42, %v20212_v0  ;;  %v5217_v62 = vadd.f32 %v5183_v33, %v5078_v31  ;;  %v5395_v31 = vld [vmem:[%s23372_s5 + $0x1b8] sm:$0xff]  ;;  %v5376_v33 = vld [vmem:[%s23372_s5 + $0x120] sm:$0xff] }
 0x542   : > { %v5282_v30 = vadd.f32 %v5281_v59, %v5280_v4  ;;  %v5393_v4 = vld [vmem:[%s23372_s5 + $0x1a8] sm:$0xff] }
 0x543   : > { %v5254_v39 = vsel %vm5242_vm1, %v5240_v28, 0.0  ;;  %v5270_v26 = vmul.f32 %v5240_v28, %v5240_v28  ;;  %v5233_v36 = vadd.f32 %v5217_v62, %v20260_v27  ;;  %v14146_v62 = vpack.c.bf16 %v5393_v4, %v5377_v51  ;;  %v5350_v4 = vld [vmem:[%s23372_s5 + $0x50] sm:$0xff] }
 0x544   : > { %v5255_v13 = vadd.f32 %v5254_v39, %v5253_v54  ;;  %v5392_v54 = vld [vmem:[%s23372_s5 + $0x1a0] sm:$0xff]  ;;  %v5378_v39 = vld [vmem:[%s23372_s5 + $0x130] sm:$0xff] }
 0x545   : > { %v5283_v44 = vsel %vm5242_vm1, %v5270_v26, 0.0  ;;  %v5241_v53 = vadd.f32 %v5233_v36, %v20229_v37  ;;  %v5394_v26 = vld [vmem:[%s23372_s5 + $0x1b0] sm:$0xff]  ;;  %v5409_v36 = vld [vmem:[%s23372_s5 + $0x228] sm:$0xff] }
 0x546   : > { %v5284_v8 = vadd.f32 %v5283_v44, %v5282_v30  ;;  %v14162_v30 = vpack.c.bf16 %v5395_v31, %v5379_v49  ;;  %v5411_v44 = vld [vmem:[%s23372_s5 + $0x238] sm:$0xff]  ;;  %v5366_v49 = vld [vmem:[%s23372_s5 + $0xd0] sm:$0xff]  ;;  %v5381_v31 = vld [vmem:[%s23372_s5 + $0x148] sm:$0xff] }
 0x547   : > { %v5256_v6 = vsel %vm5242_vm1, %v5241_v53, 0.0  ;;  %v5271_v32 = vmul.f32 %v5241_v53, %v5241_v53 }
 0x548   : > { %v5257_v5 = vadd.f32 %v5256_v6, %v5255_v13  ;;  %v5425_v13 = vld [vmem:[%s23372_s5 + $0x2a8] sm:$0xff]  ;;  %v14148_v6 = vpack.c.bf16 %v5392_v54, %v5376_v33  ;;  %v5380_v33 = vld [vmem:[%s23372_s5 + $0x140] sm:$0xff] }
 0x549   : > { %v5285_v16 = vsel %vm5242_vm1, %v5271_v32, 0.0  ;;  %v14164_v32 = vpack.c.bf16 %v5394_v26, %v5378_v39  ;;  %v5396_v54 = vld [vmem:[%s23372_s5 + $0x1c0] sm:$0xff]  ;;  %v5398_v39 = vld [vmem:[%s23372_s5 + $0x1d0] sm:$0xff]  ;;  %v5413_v26 = vld [vmem:[%s23372_s5 + $0x248] sm:$0xff] }
 0x54a   : > { %v5258_v0 = vrot.slane %v5257_v5, 4  ;;  %v5286_v18 = vadd.f32 %v5285_v16, %v5284_v8  ;;  %v24365_v8 = vmov 0.0   ;;  %v5424_v16 = vld [vmem:[%s23372_s5 + $0x2a0] sm:$0xff] }
 0x54c   : > { %v5259_v25 = vadd.f32 %v5258_v0, %v5257_v5  ;;  %v5287_v23 = vrot.slane %v5286_v18, 4  ;;  %v5408_v5 = vld [vmem:[%s23372_s5 + $0x220] sm:$0xff] }
 0x54e   : > { %v5260_v47 = vrot.slane %v5259_v25, 2  ;;  %v5288_v2 = vadd.f32 %v5287_v23, %v5286_v18 }
 0x550   : > { %v5261_v45 = vadd.f32 %v5260_v47, %v5259_v25  ;;  %v5289_v27 = vrot.slane %v5288_v2, 2  ;;  %v14150_v25 = vpack.c.bf16 %v5425_v13, %v5409_v36  ;;  %v5410_v47 = vld [vmem:[%s23372_s5 + $0x230] sm:$0xff]  ;;  %v5429_v36 = vld [vmem:[%s23372_s5 + $0x2c8] sm:$0xff]  ;;  %v5415_v13 = vld [vmem:[%s23372_s5 + $0x258] sm:$0xff] }
 0x552   : > { %v5262_v41 = vrot.slane %v5261_v45, 1  ;;  %v5290_v19 = vadd.f32 %v5289_v27, %v5288_v2  ;;  %v5426_v2 = vld [vmem:[%s23372_s5 + $0x2b0] sm:$0xff]  ;;  %v5457_v27 = vld [vmem:[%s23372_s5 + $0x3a8] sm:$0xff] }
 0x554   : > { %v5263_v60 = vadd.f32 %v5262_v41, %v5261_v45  ;;  %v5291_v24 = vrot.slane %v5290_v19, 1  ;;  %v5441_v45 = vld [vmem:[%s23372_s5 + $0x328] sm:$0xff]  ;;  %v5443_v41 = vld [vmem:[%s23372_s5 + $0x338] sm:$0xff] }
 0x556   : > { %v5292_v37 = vadd.f32 %v5291_v24, %v5290_v19  ;;  %v5293_v14 = vmul.f32 0.015625, %v5263_v60  ;;  %v5459_v19 = vld [vmem:[%s23372_s5 + $0x3b8] sm:$0xff]  ;;  %v14152_v60 = vpack.c.bf16 %v5424_v16, %v5408_v5  ;;  %v14168_v24 = vpack.c.bf16 %v5426_v2, %v5410_v47  ;;  %v5428_v5 = vld [vmem:[%s23372_s5 + $0x2c0] sm:$0xff]  ;;  %v5445_v47 = vld [vmem:[%s23372_s5 + $0x348] sm:$0xff] }
 0x557   : > { %v14182_v16 = vpack.c.bf16 %v5429_v36, %v5413_v26  ;;  %v5461_v2 = vld [vmem:[%s23372_s5 + $0x3c8] sm:$0xff]  ;;  %v5432_v26 = vld [vmem:[%s23372_s5 + $0x2e0] sm:$0xff] }
 0x558   : > { %v5294_v56 = vmul.f32 0.015625, %v5292_v37  ;;  %v5295_v52 = vmul.f32 %v5293_v14, %v5293_v14  ;;  %v5305_v63 = vsub.f32 %v5241_v53, %v5293_v14  ;;  %v5298_v10 = vsub.f32 %v20268_v17, %v5293_v14  ;;  %v5344_v17 = vld [vmem:[%s23372_s5 + $0x20] sm:$0xff]  ;;  %v5427_v53 = vld [vmem:[%s23372_s5 + $0x2b8] sm:$0xff] }
 0x559   : > { %v5299_v35 = vsub.f32 %v20276_v11, %v5293_v14  ;;  %v5300_v22 = vsub.f32 %v20290_v58, %v5293_v14  ;;  %v5301_v61 = vsub.f32 %v20301_v1, %v5293_v14  ;;  %v5302_v9 = vsub.f32 %v20312_v15, %v5293_v14  ;;  %v5360_v11 = vld [vmem:[%s23372_s5 + $0xa0] sm:$0xff] }
 0x55a   : > { %v5296_v29 = vsub.f32 %v5294_v56, %v5295_v52  ;;  %v5303_v50 = vsub.f32 %v20323_v40, %v5293_v14  ;;  %v5304_v7 = vsub.f32 %v5240_v28, %v5293_v14  ;;  %v14144_v42 = vpack.c.bf16 %v5360_v11, %v5344_v17  ;;  %v5440_v37 = vld [vmem:[%s23372_s5 + $0x320] sm:$0xff] }
 0x55b   : > { %v14166_v23 = vpack.c.bf16 %v5427_v53, %v5411_v44  ;;  %v5456_v14 = vld [vmem:[%s23372_s5 + $0x3a0] sm:$0xff]  ;;  %v5431_v44 = vld [vmem:[%s23372_s5 + $0x2d8] sm:$0xff]  ;;  %v14180_v53 = vpack.c.bf16 %v5396_v54, %v5380_v33  ;;  %v5433_v33 = vld [vmem:[%s23372_s5 + $0x2e8] sm:$0xff] }
 0x55c   : > { %v5297_v43 = vmax.f32 %v5296_v29, 0.0  ;;  %v5351_v29 = vld [vmem:[%s23372_s5 + $0x58] sm:$0xff] }
 0x55d   : > { %v5419_v54 = vld [vmem:[%s23372_s5 + $0x278] sm:$0xff] }
 0x55e   : > { %v5306_v12 = vadd.f32 1e-05, %v5297_v43 }
 0x560   : > { %15910 = vrsqrt.f32 %v5306_v12 }
 0x56a   : > { %v15911_v38 = vpop.eup %15910 }
 0x56b   : > { %v20352_v58 = vmul.f32 %v15911_v38, %v5305_v63  ;;  %v5308_v1 = vmul.f32 %v15911_v38, %v5298_v10  ;;  %v5309_v15 = vmul.f32 %v15911_v38, %v5299_v35  ;;  %v5310_v21 = vmul.f32 %v15911_v38, %v5300_v22  ;;  %v5442_v35 = vld [vmem:[%s23372_s5 + $0x330] sm:$0xff] }
 0x56c   : > { %v20363_v40 = vmul.f32 %v15911_v38, %v5301_v61  ;;  %v20365_v46 = vmul.f32 %v15911_v38, %v5302_v9  ;;  %v20367_v20 = vmul.f32 %v15911_v38, %v5303_v50  ;;  %v20378_v57 = vmul.f32 %v15911_v38, %v5304_v7  ;;  %v5458_v22 = vld [vmem:[%s23372_s5 + $0x3b0] sm:$0xff]  ;;  %v5349_v61 = vld [vmem:[%s23372_s5 + $0x48] sm:$0xff]  ;;  %v5367_v50 = vld [vmem:[%s23372_s5 + $0xd8] sm:$0xff] }
 0x56d   : > { %vm5316_vm4 = vcmp.gt.f32.partialorder %v5308_v1, 0.0  ;;  %v5324_v34 = vmul.f32 0.01, %v5308_v1  ;;  %v5325_v28 = vmul.f32 0.01, %v5309_v15  ;;  %vm5317_vm5 = vcmp.gt.f32.partialorder %v5309_v15, 0.0 }
 0x56e   : > { %v5326_v18 = vmul.f32 0.01, %v5310_v21  ;;  %vm5318_vm6 = vcmp.gt.f32.partialorder %v5310_v21, 0.0  ;;  %v5327_v52 = vmul.f32 0.01, %v20363_v40  ;;  %v14154_v63 = vpack.c.bf16 %v5457_v27, %v5441_v45  ;;  %v5365_v9 = vld [vmem:[%s23372_s5 + $0xc8] sm:$0xff] }
 0x56f   : > { %v20386_v59 = vsel %vm5316_vm4, %v5308_v1, %v5324_v34  ;;  %v20418_v0 = vsel %vm5317_vm5, %v5309_v15, %v5325_v28  ;;  %v14170_v10 = vpack.c.bf16 %v5459_v19, %v5443_v41  ;;  %vm5319_vm7 = vcmp.gt.f32.partialorder %v20363_v40, 0.0  ;;  %v5399_v34 = vld [vmem:[%s23372_s5 + $0x1d8] sm:$0xff] }
 0x570   : > { %11700 = vmatmul.mubr.msk.f32.vlgmr.msra.gmra.mrb[16].mxu1 %vm5242_vm1, %v20386_v59  ;;  %11708 = vmatmul.mubr.msk.f32.vlgmr.msra.gmra.mrb[16].mxu0 %vm5242_vm1, %v20386_v59  ;;  %v20450_v56 = vsel %vm5318_vm6, %v5310_v21, %v5326_v18  ;;  %v14156_v7 = vpack.c.bf16 %v5456_v14, %v5440_v37  ;;  %v14172_v43 = vpack.c.bf16 %v5458_v22, %v5442_v35  ;;  %v5328_v38 = vmul.f32 0.01, %v20365_v46  ;;  %v5447_v45 = vld [vmem:[%s23372_s5 + $0x358] sm:$0xff]  ;;  %v5369_v35 = vld [vmem:[%s23372_s5 + $0xe8] sm:$0xff] }
 0x571   : > { %5562 = vmatprep.mubr.f32.mxu1 %v24365_v8  ;;  %5675 = vmatprep.mubr.f32.mxu0 %v24365_v8  ;;  %v20479_v12 = vsel %vm5319_vm7, %v20363_v40, %v5327_v52  ;;  %v14174_v17 = vpack.c.bf16 %v5365_v9, %v5349_v61  ;;  %v14190_v11 = vpack.c.bf16 %v5367_v50, %v5351_v29  ;;  %vm5320_vm8 = vcmp.gt.f32.partialorder %v20365_v46, 0.0  ;;  %v5348_v40 = vld [vmem:[%s23372_s5 + $0x40] sm:$0xff]  ;;  %v5463_v27 = vld [vmem:[%s23372_s5 + $0x3d8] sm:$0xff]  ;;  %v5446_v52 = vld [vmem:[%s23372_s5 + $0x350] sm:$0xff] }
 0x572   : > { %14145 = vmatpush1.bf16.msra.mxu1 %v14144_v42  ;;  %14161 = vmatpush1.bf16.msra.mxu0 %v14160_v48  ;;  %v20490_v1 = vsel %vm5320_vm8, %v20365_v46, %v5328_v38  ;;  %v5329_v15 = vmul.f32 0.01, %v20367_v20  ;;  %vm5321_vm9 = vcmp.gt.f32.partialorder %v20367_v20, 0.0  ;;  %v5330_v55 = vmul.f32 0.01, %v20378_v57  ;;  %v5364_v46 = vld [vmem:[%s23372_s5 + $0xc0] sm:$0xff] }
 0x573   : > { %14147 = vmatprep.subr.bf16.mxu1 %v14146_v62  ;;  %14163 = vmatprep.subr.bf16.mxu0 %v14162_v30  ;;  %vm5322_vm10 = vcmp.gt.f32.partialorder %v20378_v57, 0.0  ;;  %v5331_v3 = vmul.f32 0.01, %v20352_v58  ;;  %vm5323_vm11 = vcmp.gt.f32.partialorder %v20352_v58, 0.0  ;;  %v14176_v42 = vpack.c.bf16 %v5364_v46, %v5348_v40  ;;  %v5382_v30 = vld [vmem:[%s23372_s5 + $0x150] sm:$0xff]  ;;  %v5355_v22 = vld [vmem:[%s23372_s5 + $0x78] sm:$0xff] }
 0x574   : > { %11701 = vmatmul.mubr.msk.f32.gmra.mrb[18].mxu1 %vm5242_vm1, %v20418_v0  ;;  %11709 = vmatmul.mubr.msk.f32.gmra.mrb[18].mxu0 %vm5242_vm1, %v20418_v0  ;;  %v20501_v21 = vsel %vm5321_vm9, %v20367_v20, %v5329_v15  ;;  %v20513_v51 = vsel %vm5322_vm10, %v20378_v57, %v5330_v55  ;;  %v5383_v57 = vld [vmem:[%s23372_s5 + $0x158] sm:$0xff]  ;;  %v14192_v48 = vpack.c.bf16 %v5366_v49, %v5350_v4  ;;  %v5368_v38 = vld [vmem:[%s23372_s5 + $0xe0] sm:$0xff]  ;;  %v5385_v15 = vld [vmem:[%s23372_s5 + $0x168] sm:$0xff] }
 0x575   : > { %5568 = vmatprep.mubr.f32.mxu1 %v24365_v8  ;;  %5681 = vmatprep.mubr.f32.mxu0 %v24365_v8  ;;  %v20529_v20 = vsel %vm5323_vm11, %v20352_v58, %v5331_v3  ;;  %v5397_v58 = vld [vmem:[%s23372_s5 + $0x1c8] sm:$0xff]  ;;  %v14194_v62 = vpack.c.bf16 %v5399_v34, %v5383_v57  ;;  %v14198_v18 = vpack.c.bf16 %v5431_v44, %v5415_v13  ;;  %v5371_v61 = vld [vmem:[%s23372_s5 + $0xf8] sm:$0xff]  ;;  %v5384_v49 = vld [vmem:[%s23372_s5 + $0x160] sm:$0xff] }
 0x576   : > { %14149 = vmatpush1.bf16.msra.mxu1 %v14148_v6  ;;  %14165 = vmatpush1.bf16.msra.mxu0 %v14164_v32  ;;  %v14178_v28 = vpack.c.bf16 %v5397_v58, %v5381_v31  ;;  %v14196_v6 = vpack.c.bf16 %v5398_v39, %v5382_v30  ;;  %v5412_v32 = vld [vmem:[%s23372_s5 + $0x240] sm:$0xff]  ;;  %v14186_v37 = vpack.c.bf16 %v5461_v2, %v5445_v47  ;;  %v5401_v55 = vld [vmem:[%s23372_s5 + $0x1e8] sm:$0xff]  ;;  %v5387_v3 = vld [vmem:[%s23372_s5 + $0x178] sm:$0xff] }
 0x577   : > { %14151 = vmatprep.subr.bf16.mxu1 %v14150_v25  ;;  %14167 = vmatprep.subr.bf16.mxu0 %v14166_v23  ;;  %v5414_v25 = vld [vmem:[%s23372_s5 + $0x250] sm:$0xff]  ;;  %v14184_v41 = vpack.c.bf16 %v5428_v5, %v5412_v32  ;;  %v14202_v14 = vpack.c.bf16 %v5463_v27, %v5447_v45  ;;  %v5403_v40 = vld [vmem:[%s23372_s5 + $0x1f8] sm:$0xff]  ;;  %v5400_v31 = vld [vmem:[%s23372_s5 + $0x1e0] sm:$0xff]  ;;  %v14210_v58 = vpack.c.bf16 %v5401_v55, %v5385_v15 }
 0x578   : > { %11702 = vmatmul.mubr.msk.f32.gmra.mrb[20].mxu1 %vm5242_vm1, %v20450_v56  ;;  %11710 = vmatmul.mubr.msk.f32.gmra.mrb[20].mxu0 %vm5242_vm1, %v20450_v56  ;;  %v5430_v23 = vld [vmem:[%s23372_s5 + $0x2d0] sm:$0xff]  ;;  %v14226_v57 = vpack.c.bf16 %v5403_v40, %v5387_v3  ;;  %v5416_v39 = vld [vmem:[%s23372_s5 + $0x260] sm:$0xff]  ;;  %v5465_v32 = vld [vmem:[%s23372_s5 + $0x3e8] sm:$0xff] }
 0x579   : > { %5574 = vmatprep.mubr.f32.mxu1 %v24365_v8  ;;  %5687 = vmatprep.mubr.f32.mxu0 %v24365_v8  ;;  %v14200_v19 = vpack.c.bf16 %v5430_v23, %v5414_v25  ;;  %v5386_v34 = vld [vmem:[%s23372_s5 + $0x170] sm:$0xff]  ;;  %v5451_v5 = vld [vmem:[%s23372_s5 + $0x378] sm:$0xff]  ;;  %v5448_v23 = vld [vmem:[%s23372_s5 + $0x360] sm:$0xff] }
 0x57a   : > { %14153 = vmatpush1.bf16.msra.mxu1 %v14152_v60  ;;  %14169 = vmatpush1.bf16.msra.mxu0 %v14168_v24  ;;  %v5444_v60 = vld [vmem:[%s23372_s5 + $0x340] sm:$0xff]  ;;  %v5418_v44 = vld [vmem:[%s23372_s5 + $0x270] sm:$0xff] }
 0x57b   : > { %14155 = vmatprep.subr.bf16.mxu1 %v14154_v63  ;;  %14171 = vmatprep.subr.bf16.mxu0 %v14170_v10  ;;  %v5460_v24 = vld [vmem:[%s23372_s5 + $0x3c0] sm:$0xff]  ;;  %v5462_v63 = vld [vmem:[%s23372_s5 + $0x3d0] sm:$0xff]  ;;  %v5353_v10 = vld [vmem:[%s23372_s5 + $0x68] sm:$0xff] }
 0x57c   : > { %11703 = vmatmul.mubr.msk.f32.gmra.mrb[22].mxu1 %vm5242_vm1, %v20479_v12  ;;  %11711 = vmatmul.mubr.msk.f32.gmra.mrb[22].mxu0 %vm5242_vm1, %v20479_v12  ;;  %v14188_v9 = vpack.c.bf16 %v5460_v24, %v5444_v60  ;;  %v14204_v29 = vpack.c.bf16 %v5462_v63, %v5446_v52  ;;  %v14206_v50 = vpack.c.bf16 %v5369_v35, %v5353_v10  ;;  %v5464_v45 = vld [vmem:[%s23372_s5 + $0x3e0] sm:$0xff]  ;;  %v5450_v27 = vld [vmem:[%s23372_s5 + $0x370] sm:$0xff] }
 0x57d   : > { %5580 = vmatprep.mubr.f32.mxu1 %v24365_v8  ;;  %5693 = vmatprep.mubr.f32.mxu0 %v24365_v8 }
 0x57e   : > { %14157 = vmatpush1.bf16.msra.mxu1 %v14156_v7  ;;  %14173 = vmatpush1.bf16.msra.mxu0 %v14172_v43  ;;  %v14222_v7 = vpack.c.bf16 %v5371_v61, %v5355_v22  ;;  %v5352_v43 = vld [vmem:[%s23372_s5 + $0x60] sm:$0xff] }
 0x57f   : > { %14175 = vmatprep.subr.bf16.mxu1 %v14174_v17  ;;  %14191 = vmatprep.subr.bf16.mxu0 %v14190_v11  ;;  %v5354_v17 = vld [vmem:[%s23372_s5 + $0x70] sm:$0xff]  ;;  %v14208_v46 = vpack.c.bf16 %v5368_v38, %v5352_v43 }
 0x580   : > { %11704 = vmatmul.mubr.msk.f32.gmra.mrb[24].mxu1 %vm5242_vm1, %v20490_v1  ;;  %11712 = vmatmul.mubr.msk.f32.gmra.mrb[24].mxu0 %vm5242_vm1, %v20490_v1  ;;  %v5370_v11 = vld [vmem:[%s23372_s5 + $0xf0] sm:$0xff] }
 0x581   : > { %5586 = vmatprep.mubr.f32.mxu1 %v24365_v8  ;;  %5699 = vmatprep.mubr.f32.mxu0 %v24365_v8  ;;  %v14224_v4 = vpack.c.bf16 %v5370_v11, %v5354_v17 }
 0x584   : > { %11705 = vmatmul.mubr.msk.f32.gmra.mrb[26].mxu1 %vm5242_vm1, %v20501_v21  ;;  %11713 = vmatmul.mubr.msk.f32.gmra.mrb[26].mxu0 %vm5242_vm1, %v20501_v21 }
 0x585   : > { %5592 = vmatprep.mubr.f32.mxu1 %v24365_v8  ;;  %5705 = vmatprep.mubr.f32.mxu0 %v24365_v8 }
 0x588   : > { %11706 = vmatmul.mubr.msk.f32.gmra.mrb[28].mxu1 %vm5242_vm1, %v20513_v51  ;;  %11714 = vmatmul.mubr.msk.f32.gmra.mrb[28].mxu0 %vm5242_vm1, %v20513_v51 }
 0x589   : > { %5598 = vmatprep.mubr.f32.mxu1 %v24365_v8  ;;  %5711 = vmatprep.mubr.f32.mxu0 %v24365_v8 }
 0x58c   : > { %11707 = vmatmul.mubr.msk.f32.gmra.mrb[30].mxu1 %vm5242_vm1, %v20529_v20  ;;  %11715 = vmatmul.mubr.msk.f32.gmra.mrb[30].mxu0 %vm5242_vm1, %v20529_v20 }
 0x58d   : > { %5782 = vmatprep.mubr.f32.mxu1 %v24365_v8  ;;  %5895 = vmatprep.mubr.f32.mxu0 %v24365_v8 }
 0x590   : > { %11716 = vmatmul.mubr.msk.f32.vlgmr.msra.gmra.mrb[32].mxu1 %vm5242_vm1, %v20386_v59  ;;  %11724 = vmatmul.mubr.msk.f32.vlgmr.msra.gmra.mrb[32].mxu0 %vm5242_vm1, %v20386_v59 }
 0x591   : > { %5788 = vmatprep.mubr.f32.mxu1 %v24365_v8  ;;  %5901 = vmatprep.mubr.f32.mxu0 %v24365_v8 }
 0x592   : > { %14177 = vmatpush1.bf16.msra.mxu1 %v14176_v42  ;;  %14193 = vmatpush1.bf16.msra.mxu0 %v14192_v48  ;;  %v5402_v42 = vld [vmem:[%s23372_s5 + $0x1f0] sm:$0xff]  ;;  %v5417_v48 = vld [vmem:[%s23372_s5 + $0x268] sm:$0xff] }
 0x593   : > { %14179 = vmatprep.subr.bf16.mxu1 %v14178_v28  ;;  %14195 = vmatprep.subr.bf16.mxu0 %v14194_v62  ;;  %v5435_v28 = vld [vmem:[%s23372_s5 + $0x2f8] sm:$0xff]  ;;  %v14212_v62 = vpack.c.bf16 %v5400_v31, %v5384_v49  ;;  %v14228_v30 = vpack.c.bf16 %v5402_v42, %v5386_v34  ;;  %v14214_v36 = vpack.c.bf16 %v5433_v33, %v5417_v48 }
 0x594   : > { %11717 = vmatmul.mubr.msk.f32.gmra.mrb[34].mxu1 %vm5242_vm1, %v20418_v0  ;;  %11725 = vmatmul.mubr.msk.f32.gmra.mrb[34].mxu0 %vm5242_vm1, %v20418_v0  ;;  %v14230_v13 = vpack.c.bf16 %v5435_v28, %v5419_v54 }
 0x595   : > { %5794 = vmatprep.mubr.f32.mxu1 %v24365_v8  ;;  %5907 = vmatprep.mubr.f32.mxu0 %v24365_v8 }
 0x596   : > { %14181 = vmatpush1.bf16.msra.mxu1 %v14180_v53  ;;  %14197 = vmatpush1.bf16.msra.mxu0 %v14196_v6  ;;  %v5434_v53 = vld [vmem:[%s23372_s5 + $0x2f0] sm:$0xff]  ;;  %v5449_v6 = vld [vmem:[%s23372_s5 + $0x368] sm:$0xff] }
 0x597   : > { %14183 = vmatprep.subr.bf16.mxu1 %v14182_v16  ;;  %14199 = vmatprep.subr.bf16.mxu0 %v14198_v18  ;;  %v5467_v16 = vld [vmem:[%s23372_s5 + $0x3f8] sm:$0xff]  ;;  %v14216_v18 = vpack.c.bf16 %v5432_v26, %v5416_v39  ;;  %v14232_v25 = vpack.c.bf16 %v5434_v53, %v5418_v44  ;;  %v14218_v47 = vpack.c.bf16 %v5465_v32, %v5449_v6 }
 0x598   : > { %11718 = vmatmul.mubr.msk.f32.gmra.mrb[36].mxu1 %vm5242_vm1, %v20450_v56  ;;  %11726 = vmatmul.mubr.msk.f32.gmra.mrb[36].mxu0 %vm5242_vm1, %v20450_v56  ;;  %v14234_v2 = vpack.c.bf16 %v5467_v16, %v5451_v5 }
 0x599   : > { %5800 = vmatprep.mubr.f32.mxu1 %v24365_v8  ;;  %5913 = vmatprep.mubr.f32.mxu0 %v24365_v8 }
 0x59a   : > { %14185 = vmatpush1.bf16.msra.mxu1 %v14184_v41  ;;  %14201 = vmatpush1.bf16.msra.mxu0 %v14200_v19  ;;  %v5466_v41 = vld [vmem:[%s23372_s5 + $0x3f0] sm:$0xff]  ;;  %v14220_v19 = vpack.c.bf16 %v5464_v45, %v5448_v23 }
 0x59b   : > { %14187 = vmatprep.subr.bf16.mxu1 %v14186_v37  ;;  %14203 = vmatprep.subr.bf16.mxu0 %v14202_v14  ;;  %v14236_v60 = vpack.c.bf16 %v5466_v41, %v5450_v27 }
 0x59c   : > { %11719 = vmatmul.mubr.msk.f32.gmra.mrb[38].mxu1 %vm5242_vm1, %v20479_v12  ;;  %11727 = vmatmul.mubr.msk.f32.gmra.mrb[38].mxu0 %vm5242_vm1, %v20479_v12 }
 0x59d   : > { %5806 = vmatprep.mubr.f32.mxu1 %v24365_v8  ;;  %5919 = vmatprep.mubr.f32.mxu0 %v24365_v8 }
 0x59e   : > { %14189 = vmatpush1.bf16.msra.mxu1 %v14188_v9  ;;  %14205 = vmatpush1.bf16.msra.mxu0 %v14204_v29 }
 0x59f   : > { %14207 = vmatprep.subr.bf16.mxu1 %v14206_v50  ;;  %14223 = vmatprep.subr.bf16.mxu0 %v14222_v7 }
 0x5a0   : > { %11720 = vmatmul.mubr.msk.f32.gmra.mrb[40].mxu1 %vm5242_vm1, %v20490_v1  ;;  %11728 = vmatmul.mubr.msk.f32.gmra.mrb[40].mxu0 %vm5242_vm1, %v20490_v1 }
 0x5a1   : > { %5812 = vmatprep.mubr.f32.mxu1 %v24365_v8  ;;  %5925 = vmatprep.mubr.f32.mxu0 %v24365_v8 }
 0x5a4   : > { %11721 = vmatmul.mubr.msk.f32.gmra.mrb[42].mxu1 %vm5242_vm1, %v20501_v21  ;;  %11729 = vmatmul.mubr.msk.f32.gmra.mrb[42].mxu0 %vm5242_vm1, %v20501_v21 }
 0x5a5   : > { %5818 = vmatprep.mubr.f32.mxu1 %v24365_v8  ;;  %5931 = vmatprep.mubr.f32.mxu0 %v24365_v8 }
 0x5a8   : > { %11722 = vmatmul.mubr.msk.f32.gmra.mrb[44].mxu1 %vm5242_vm1, %v20513_v51  ;;  %11730 = vmatmul.mubr.msk.f32.gmra.mrb[44].mxu0 %vm5242_vm1, %v20513_v51 }
 0x5a9   : > { %5824 = vmatprep.mubr.f32.mxu1 %v24365_v8  ;;  %5937 = vmatprep.mubr.f32.mxu0 %v24365_v8 }
 0x5ac   : > { %11723 = vmatmul.mubr.msk.f32.gmra.mrb[46].mxu1 %vm5242_vm1, %v20529_v20  ;;  %11731 = vmatmul.mubr.msk.f32.gmra.mrb[46].mxu0 %vm5242_vm1, %v20529_v20 }
 0x5ad   : > { %6008 = vmatprep.mubr.f32.mxu1 %v24365_v8  ;;  %6121 = vmatprep.mubr.f32.mxu0 %v24365_v8 }
 0x5b0   : > { %11732 = vmatmul.mubr.msk.f32.vlgmr.msra.gmra.mrb[48].mxu1 %vm5242_vm1, %v20386_v59  ;;  %11740 = vmatmul.mubr.msk.f32.vlgmr.msra.gmra.mrb[48].mxu0 %vm5242_vm1, %v20386_v59 }
 0x5b1   : > { %6014 = vmatprep.mubr.f32.mxu1 %v24365_v8  ;;  %6127 = vmatprep.mubr.f32.mxu0 %v24365_v8 }
 0x5b2   : > { %14209 = vmatpush1.bf16.msra.mxu1 %v14208_v46  ;;  %14225 = vmatpush1.bf16.msra.mxu0 %v14224_v4 }
 0x5b3   : > { %14211 = vmatprep.subr.bf16.mxu1 %v14210_v58  ;;  %14227 = vmatprep.subr.bf16.mxu0 %v14226_v57 }
 0x5b4   : > { %11733 = vmatmul.mubr.msk.f32.gmra.mrb[50].mxu1 %vm5242_vm1, %v20418_v0  ;;  %11741 = vmatmul.mubr.msk.f32.gmra.mrb[50].mxu0 %vm5242_vm1, %v20418_v0 }
 0x5b5   : > { %6020 = vmatprep.mubr.f32.mxu1 %v24365_v8  ;;  %6133 = vmatprep.mubr.f32.mxu0 %v24365_v8 }
 0x5b6   : > { %14213 = vmatpush1.bf16.msra.mxu1 %v14212_v62  ;;  %14229 = vmatpush1.bf16.msra.mxu0 %v14228_v30 }
 0x5b7   : > { %14215 = vmatprep.subr.bf16.mxu1 %v14214_v36  ;;  %14231 = vmatprep.subr.bf16.mxu0 %v14230_v13 }
 0x5b8   : > { %11734 = vmatmul.mubr.msk.f32.gmra.mrb[52].mxu1 %vm5242_vm1, %v20450_v56  ;;  %11742 = vmatmul.mubr.msk.f32.gmra.mrb[52].mxu0 %vm5242_vm1, %v20450_v56 }
 0x5b9   : > { %6026 = vmatprep.mubr.f32.mxu1 %v24365_v8  ;;  %6139 = vmatprep.mubr.f32.mxu0 %v24365_v8 }
 0x5ba   : > { %14217 = vmatpush1.bf16.msra.mxu1 %v14216_v18  ;;  %14233 = vmatpush1.bf16.msra.mxu0 %v14232_v25  ;;  %v11765_v18 = vld [vmem:[%s23371_s4 + $0x18] sm:$0xff]  ;;  %v11770_v25 = vld [vmem:[%s23371_s4 + $0x30] sm:$0xff] }
 0x5bb   : > { %14219 = vmatprep.subr.bf16.mxu1 %v14218_v47  ;;  %14235 = vmatprep.subr.bf16.mxu0 %v14234_v2 }
 0x5bc   : > { %11735 = vmatmul.mubr.msk.f32.gmra.mrb[54].mxu1 %vm5242_vm1, %v20479_v12  ;;  %11743 = vmatmul.mubr.msk.f32.gmra.mrb[54].mxu0 %vm5242_vm1, %v20479_v12 }
 0x5bd   : > { %6032 = vmatprep.mubr.f32.mxu1 %v24365_v8  ;;  %6145 = vmatprep.mubr.f32.mxu0 %v24365_v8 }
 0x5be   : > { %14221 = vmatpush1.bf16.msra.mxu1 %v14220_v19  ;;  %14237 = vmatpush1.bf16.msra.mxu0 %v14236_v60 }
 0x5c0   : > { %11736 = vmatmul.mubr.msk.f32.gmra.mrb[56].mxu1 %vm5242_vm1, %v20490_v1  ;;  %11744 = vmatmul.mubr.msk.f32.gmra.mrb[56].mxu0 %vm5242_vm1, %v20490_v1 }
 0x5c1   : > { %6038 = vmatprep.mubr.f32.mxu1 %v24365_v8  ;;  %6151 = vmatprep.mubr.f32.mxu0 %v24365_v8 }
 0x5c4   : > { %11737 = vmatmul.mubr.msk.f32.gmra.mrb[58].mxu1 %vm5242_vm1, %v20501_v21  ;;  %11745 = vmatmul.mubr.msk.f32.gmra.mrb[58].mxu0 %vm5242_vm1, %v20501_v21 }
 0x5c5   : > { %6044 = vmatprep.mubr.f32.mxu1 %v24365_v8  ;;  %6157 = vmatprep.mubr.f32.mxu0 %v24365_v8 }
 0x5c8   : > { %11738 = vmatmul.mubr.msk.f32.gmra.mrb[60].mxu1 %vm5242_vm1, %v20513_v51  ;;  %11746 = vmatmul.mubr.msk.f32.gmra.mrb[60].mxu0 %vm5242_vm1, %v20513_v51 }
 0x5c9   : > { %6050 = vmatprep.mubr.f32.mxu1 %v24365_v8  ;;  %6163 = vmatprep.mubr.f32.mxu0 %v24365_v8 }
 0x5cc   : > { %11739 = vmatmul.mubr.msk.f32.gmra.mrb[62].mxu1 %vm5242_vm1, %v20529_v20  ;;  %11747 = vmatmul.mubr.msk.f32.gmra.mrb[62].mxu0 %vm5242_vm1, %v20529_v20 }
 0x5cd   : > { %6234 = vmatprep.mubr.f32.mxu1 %v24365_v8  ;;  %6347 = vmatprep.mubr.f32.mxu0 %v24365_v8 }
 0x5d0   : > { %11748 = vmatmul.mubr.msk.f32.vlgmr.msra.gmra.mrb[64].mxu1 %vm5242_vm1, %v20386_v59  ;;  %11756 = vmatmul.mubr.msk.f32.vlgmr.msra.gmra.mrb[64].mxu0 %vm5242_vm1, %v20386_v59  ;;  %v11764_v59 = vld [vmem:[%s23371_s4 + $0x10] sm:$0xff] }
 0x5d1   : > { %6240 = vmatprep.mubr.f32.mxu1 %v24365_v8  ;;  %6353 = vmatprep.mubr.f32.mxu0 %v24365_v8 }
 0x5d4   : > { %11749 = vmatmul.mubr.msk.f32.gmra.mrb[66].mxu1 %vm5242_vm1, %v20418_v0  ;;  %11757 = vmatmul.mubr.msk.f32.gmra.mrb[66].mxu0 %vm5242_vm1, %v20418_v0 }
 0x5d5   : > { %6246 = vmatprep.mubr.f32.mxu1 %v24365_v8  ;;  %6359 = vmatprep.mubr.f32.mxu0 %v24365_v8 }
 0x5d8   : > { %11750 = vmatmul.mubr.msk.f32.gmra.mrb[68].mxu1 %vm5242_vm1, %v20450_v56  ;;  %11758 = vmatmul.mubr.msk.f32.gmra.mrb[68].mxu0 %vm5242_vm1, %v20450_v56 }
 0x5d9   : > { %6252 = vmatprep.mubr.f32.mxu1 %v24365_v8  ;;  %6365 = vmatprep.mubr.f32.mxu0 %v24365_v8 }
 0x5dc   : > { %11751 = vmatmul.mubr.msk.f32.gmra.mrb[70].mxu1 %vm5242_vm1, %v20479_v12  ;;  %11759 = vmatmul.mubr.msk.f32.gmra.mrb[70].mxu0 %vm5242_vm1, %v20479_v12 }
 0x5dd   : > { %6258 = vmatprep.mubr.f32.mxu1 %v24365_v8  ;;  %6371 = vmatprep.mubr.f32.mxu0 %v24365_v8 }
 0x5e0   : > { %11752 = vmatmul.mubr.msk.f32.gmra.mrb[72].mxu1 %vm5242_vm1, %v20490_v1  ;;  %11760 = vmatmul.mubr.msk.f32.gmra.mrb[72].mxu0 %vm5242_vm1, %v20490_v1 }
 0x5e1   : > { %6264 = vmatprep.mubr.f32.mxu1 %v24365_v8  ;;  %6377 = vmatprep.mubr.f32.mxu0 %v24365_v8 }
 0x5e4   : > { %11753 = vmatmul.mubr.msk.f32.gmra.mrb[74].mxu1 %vm5242_vm1, %v20501_v21  ;;  %11761 = vmatmul.mubr.msk.f32.gmra.mrb[74].mxu0 %vm5242_vm1, %v20501_v21 }
 0x5e5   : > { %6270 = vmatprep.mubr.f32.mxu1 %v24365_v8  ;;  %6383 = vmatprep.mubr.f32.mxu0 %v24365_v8 }
 0x5e8   : > { %11754 = vmatmul.mubr.msk.f32.gmra.mrb[76].mxu1 %vm5242_vm1, %v20513_v51  ;;  %11762 = vmatmul.mubr.msk.f32.gmra.mrb[76].mxu0 %vm5242_vm1, %v20513_v51 }
 0x5e9   : > { %6276 = vmatprep.mubr.f32.mxu1 %v24365_v8  ;;  %6389 = vmatprep.mubr.f32.mxu0 %v24365_v8 }
 0x5ec   : > { %11755 = vmatmul.mubr.msk.f32.gmra.mrb[78].mxu1 %vm5242_vm1, %v20529_v20  ;;  %11763 = vmatmul.mubr.msk.f32.gmra.mrb[78].mxu0 %vm5242_vm1, %v20529_v20 }
 0x5ed   : > { %13266 = vmatprep.mubr.msk.f32.mxu1 %vm5242_vm1, %v11764_v59  ;;  %8362 = vmatprep.mubr.f32.mxu0 %v24365_v8 }
 0x643   : > { %v5558_v0 = vpop.f32.mrb[16].mxu1  ;;  %v5671_v56 = vpop.f32.mrb[16].mxu0 }
 0x644   : > { %v5560_v12 = vpop.f32.mrb[17].mxu1  ;;  %v5673_v1 = vpop.f32.mrb[17].mxu0 }
 0x647   : > { %v5564_v21 = vpop.f32.mrb[18].mxu1  ;;  %v5677_v51 = vpop.f32.mrb[18].mxu0 }
 0x648   : > { %v20858_v24 = vpack.c.bf16 %v5564_v21, %v5558_v0  ;;  %v20860_v37 = vpack.c.bf16 %v5677_v51, %v5671_v56  ;;  %v5566_v14 = vpop.f32.mrb[19].mxu1  ;;  %v5679_v52 = vpop.f32.mrb[19].mxu0 }
 0x649   : > { %v14238_v63 = vpack.c.bf16 %v5566_v14, %v5560_v12  ;;  %v14254_v10 = vpack.c.bf16 %v5679_v52, %v5673_v1 }
 0x64b   : > { %v5570_v35 = vpop.f32.mrb[20].mxu1  ;;  %v5683_v20 = vpop.f32.mrb[20].mxu0  ;;  %14239 = vmatprep.subr.bf16.mxu1 %v14238_v63 }
 0x64c   : > { %v5572_v22 = vpop.f32.mrb[21].mxu1  ;;  %v5685_v61 = vpop.f32.mrb[21].mxu0  ;;  %14241 = vmatpush3.bf16.msra.mxu1 %v14238_v63 }
 0x64f   : > { %v5576_v9 = vpop.f32.mrb[22].mxu1  ;;  %v5689_v29 = vpop.f32.mrb[22].mxu0 }
 0x650   : > { %v20862_v50 = vpack.c.bf16 %v5576_v9, %v5570_v35  ;;  %v20864_v7 = vpack.c.bf16 %v5689_v29, %v5683_v20  ;;  %v5578_v43 = vpop.f32.mrb[23].mxu1  ;;  %v5691_v38 = vpop.f32.mrb[23].mxu0  ;;  %v11771_v29 = vld [vmem:[%s23371_s4 + $0x38] sm:$0xff] }
 0x651   : > { %v14242_v17 = vpack.c.bf16 %v5578_v43, %v5572_v22  ;;  %v14258_v11 = vpack.c.bf16 %v5691_v38, %v5685_v61  ;;  %v11776_v43 = vld [vmem:[%s23371_s4 + $0x50] sm:$0xff] }
 0x653   : > { %v5582_v15 = vpop.f32.mrb[24].mxu1  ;;  %v5695_v55 = vpop.f32.mrb[24].mxu0  ;;  %14243 = vmatprep.subr.bf16.mxu1 %v14242_v17 }
 0x654   : > { %v5584_v3 = vpop.f32.mrb[25].mxu1  ;;  %v5697_v40 = vpop.f32.mrb[25].mxu0  ;;  %14245 = vmatpush3.bf16.msra.mxu1 %v14242_v17 }
 0x657   : > { %v5588_v46 = vpop.f32.mrb[26].mxu1  ;;  %v5701_v4 = vpop.f32.mrb[26].mxu0 }
 0x658   : > { %v20866_v49 = vpack.c.bf16 %v5588_v46, %v5582_v15  ;;  %v20868_v31 = vpack.c.bf16 %v5701_v4, %v5695_v55  ;;  %v5590_v58 = vpop.f32.mrb[27].mxu1  ;;  %v5703_v57 = vpop.f32.mrb[27].mxu0 }
 0x659   : > { %v14246_v34 = vpack.c.bf16 %v5590_v58, %v5584_v3  ;;  %v14262_v42 = vpack.c.bf16 %v5703_v57, %v5697_v40 }
 0x65b   : > { %v5594_v48 = vpop.f32.mrb[28].mxu1  ;;  %v5707_v33 = vpop.f32.mrb[28].mxu0  ;;  %14247 = vmatprep.subr.bf16.mxu1 %v14246_v34 }
 0x65c   : > { %v5596_v54 = vpop.f32.mrb[29].mxu1  ;;  %v5709_v28 = vpop.f32.mrb[29].mxu0  ;;  %14249 = vmatpush3.bf16.msra.mxu1 %v14246_v34 }
 0x65f   : > { %v5600_v62 = vpop.f32.mrb[30].mxu1  ;;  %v5713_v30 = vpop.f32.mrb[30].mxu0 }
 0x660   : > { %v20870_v39 = vpack.c.bf16 %v5600_v62, %v5594_v48  ;;  %v20872_v26 = vpack.c.bf16 %v5713_v30, %v5707_v33  ;;  %v5602_v36 = vpop.f32.mrb[31].mxu1  ;;  %v5715_v13 = vpop.f32.mrb[31].mxu0 }
 0x661   : > { %v14250_v44 = vpack.c.bf16 %v5602_v36, %v5596_v54  ;;  %v14266_v53 = vpack.c.bf16 %v5715_v13, %v5709_v28 }
 0x663   : > { %v5784_v6 = vpop.f32.mrb[32].mxu1  ;;  %v5897_v32 = vpop.f32.mrb[32].mxu0  ;;  %14251 = vmatprep.subr.bf16.mxu1 %v14250_v44 }
 0x664   : > { %v5786_v5 = vpop.f32.mrb[33].mxu1  ;;  %v5899_v16 = vpop.f32.mrb[33].mxu0  ;;  %14253 = vmatpush3.bf16.msra.mxu1 %v14250_v44 }
 0x665   : > { %14255 = vmatprep.subr.bf16.mxu1 %v14254_v10 }
 0x667   : > { %v5790_v23 = vpop.f32.mrb[34].mxu1  ;;  %v5903_v47 = vpop.f32.mrb[34].mxu0  ;;  %13267 = vmatmul.mubr.msk.f32.vlgmr.msra.gmra.mrb[80].mxu1 %vm5242_vm1, %v11765_v18 }
 0x668   : > { %v20881_v2 = vpack.c.bf16 %v5790_v23, %v5784_v6  ;;  %v20883_v45 = vpack.c.bf16 %v5903_v47, %v5897_v32  ;;  %v5792_v27 = vpop.f32.mrb[35].mxu1  ;;  %v5905_v41 = vpop.f32.mrb[35].mxu0  ;;  %14257 = vmatpush3.bf16.msra.mxu1 %v14254_v10  ;;  %13285 = vmatprep.mubr.msk.f32.mxu1 %vm5242_vm1, %v11770_v25  ;;  %v11777_v32 = vld [vmem:[%s23371_s4 + $0x58] sm:$0xff] }
 0x669   : > { %v14270_v19 = vpack.c.bf16 %v5792_v27, %v5786_v5  ;;  %v20886_v60 = vpack.c.bf16 %v5905_v41, %v5899_v16  ;;  %14259 = vmatprep.subr.bf16.mxu1 %v14258_v11  ;;  %v11782_v5 = vld [vmem:[%s23371_s4 + $0x70] sm:$0xff] }
 0x66b   : > { %v5796_v59 = vpop.f32.mrb[36].mxu1  ;;  %v5909_v0 = vpop.f32.mrb[36].mxu0 }
 0x66c   : > { %v5798_v56 = vpop.f32.mrb[37].mxu1  ;;  %v5911_v12 = vpop.f32.mrb[37].mxu0  ;;  %14261 = vmatpush3.bf16.msra.mxu1 %v14258_v11 }
 0x66d   : > { %14263 = vmatprep.subr.bf16.mxu1 %v14262_v42 }
 0x66f   : > { %v5802_v1 = vpop.f32.mrb[38].mxu1  ;;  %v5915_v21 = vpop.f32.mrb[38].mxu0 }
 0x670   : > { %v20888_v51 = vpack.c.bf16 %v5802_v1, %v5796_v59  ;;  %v20890_v14 = vpack.c.bf16 %v5915_v21, %v5909_v0  ;;  %v5804_v52 = vpop.f32.mrb[39].mxu1  ;;  %v5917_v63 = vpop.f32.mrb[39].mxu0  ;;  %14265 = vmatpush3.bf16.msra.mxu1 %v14262_v42 }
 0x671   : > { %v14274_v10 = vpack.c.bf16 %v5804_v52, %v5798_v56  ;;  %v14290_v35 = vpack.c.bf16 %v5917_v63, %v5911_v12  ;;  %14267 = vmatprep.subr.bf16.mxu1 %v14266_v53 }
 0x673   : > { %v5808_v20 = vpop.f32.mrb[40].mxu1  ;;  %v5921_v22 = vpop.f32.mrb[40].mxu0 }
 0x674   : > { %v5810_v61 = vpop.f32.mrb[41].mxu1  ;;  %v5923_v9 = vpop.f32.mrb[41].mxu0  ;;  %14269 = vmatpush3.bf16.msra.mxu1 %v14266_v53 }
 0x675   : > { %14271 = vmatprep.subr.bf16.mxu1 %v14270_v19 }
 0x677   : > { %v5814_v38 = vpop.f32.mrb[42].mxu1  ;;  %v5927_v17 = vpop.f32.mrb[42].mxu0  ;;  %13286 = vmatmul.mubr.msk.f32.vlgmr.msra.gmra.mrb[80].mxu1 %vm5242_vm1, %v11771_v29 }
 0x678   : > { %v20899_v11 = vpack.c.bf16 %v5814_v38, %v5808_v20  ;;  %v20901_v15 = vpack.c.bf16 %v5927_v17, %v5921_v22  ;;  %v5816_v55 = vpop.f32.mrb[43].mxu1  ;;  %v5929_v3 = vpop.f32.mrb[43].mxu0  ;;  %14273 = vmatpush3.bf16.msra.mxu1 %v14270_v19  ;;  %13304 = vmatprep.mubr.msk.f32.mxu1 %vm5242_vm1, %v11776_v43  ;;  %v11788_v38 = vld [vmem:[%s23371_s4 + $0x90] sm:$0xff] }
 0x679   : > { %v14278_v40 = vpack.c.bf16 %v5816_v55, %v5810_v61  ;;  %v14294_v46 = vpack.c.bf16 %v5929_v3, %v5923_v9  ;;  %14275 = vmatprep.subr.bf16.mxu1 %v14274_v10 }
 0x67b   : > { %v5820_v4 = vpop.f32.mrb[44].mxu1  ;;  %v5933_v58 = vpop.f32.mrb[44].mxu0 }
 0x67c   : > { %v5822_v57 = vpop.f32.mrb[45].mxu1  ;;  %v5935_v34 = vpop.f32.mrb[45].mxu0  ;;  %14277 = vmatpush3.bf16.msra.mxu1 %v14274_v10 }
 0x67d   : > { %14279 = vmatprep.subr.bf16.mxu1 %v14278_v40 }
 0x67f   : > { %v5826_v42 = vpop.f32.mrb[46].mxu1  ;;  %v5939_v48 = vpop.f32.mrb[46].mxu0 }
 0x680   : > { %v20904_v33 = vpack.c.bf16 %v5826_v42, %v5820_v4  ;;  %v20906_v54 = vpack.c.bf16 %v5939_v48, %v5933_v58  ;;  %v5828_v28 = vpop.f32.mrb[47].mxu1  ;;  %v5941_v62 = vpop.f32.mrb[47].mxu0  ;;  %14281 = vmatpush3.bf16.msra.mxu1 %v14278_v40 }
 0x681   : > { %v14282_v30 = vpack.c.bf16 %v5828_v28, %v5822_v57  ;;  %v14298_v36 = vpack.c.bf16 %v5941_v62, %v5935_v34 }
 0x683   : > { %v6010_v13 = vpop.f32.mrb[48].mxu1  ;;  %v6123_v44 = vpop.f32.mrb[48].mxu0  ;;  %14283 = vmatprep.subr.bf16.mxu1 %v14282_v30 }
 0x684   : > { %v6012_v53 = vpop.f32.mrb[49].mxu1  ;;  %v6125_v6 = vpop.f32.mrb[49].mxu0  ;;  %14285 = vmatpush3.bf16.msra.mxu1 %v14282_v30 }
 0x685   : > { %14287 = vmatprep.subr.bf16.mxu1 %v20886_v60 }
 0x687   : > { %v6016_v16 = vpop.f32.mrb[50].mxu1  ;;  %v6129_v18 = vpop.f32.mrb[50].mxu0  ;;  %13305 = vmatmul.mubr.msk.f32.vlgmr.msra.gmra.mrb[80].mxu1 %vm5242_vm1, %v11777_v32 }
 0x688   : > { %v20916_v25 = vpack.c.bf16 %v6016_v16, %v6010_v13  ;;  %v20918_v23 = vpack.c.bf16 %v6129_v18, %v6123_v44  ;;  %v6018_v47 = vpop.f32.mrb[51].mxu1  ;;  %v6131_v27 = vpop.f32.mrb[51].mxu0  ;;  %14289 = vmatpush3.bf16.msra.mxu1 %v20886_v60  ;;  %13323 = vmatprep.mubr.msk.f32.mxu1 %vm5242_vm1, %v11782_v5 }
 0x689   : > { %v14302_v41 = vpack.c.bf16 %v6018_v47, %v6012_v53  ;;  %v20922_v19 = vpack.c.bf16 %v6131_v27, %v6125_v6  ;;  %14291 = vmatprep.subr.bf16.mxu1 %v14290_v35  ;;  %v11789_v27 = vld [vmem:[%s23371_s4 + $0x98] sm:$0xff] }
 0x68b   : > { %v6022_v59 = vpop.f32.mrb[52].mxu1  ;;  %v6135_v0 = vpop.f32.mrb[52].mxu0 }
 0x68c   : > { %v6024_v56 = vpop.f32.mrb[53].mxu1  ;;  %v6137_v12 = vpop.f32.mrb[53].mxu0  ;;  %14293 = vmatpush3.bf16.msra.mxu1 %v14290_v35  ;;  %v11783_v35 = vld [vmem:[%s23371_s4 + $0x78] sm:$0xff] }
 0x68d   : > { %14295 = vmatprep.subr.bf16.mxu1 %v14294_v46 }
 0x68f   : > { %v6028_v1 = vpop.f32.mrb[54].mxu1  ;;  %v6141_v21 = vpop.f32.mrb[54].mxu0 }
 0x690   : > { %v20924_v52 = vpack.c.bf16 %v6028_v1, %v6022_v59  ;;  %v20926_v63 = vpack.c.bf16 %v6141_v21, %v6135_v0  ;;  %v6030_v10 = vpop.f32.mrb[55].mxu1  ;;  %v6143_v60 = vpop.f32.mrb[55].mxu0  ;;  %14297 = vmatpush3.bf16.msra.mxu1 %v14294_v46 }
 0x691   : > { %v14306_v20 = vpack.c.bf16 %v6030_v10, %v6024_v56  ;;  %v14322_v22 = vpack.c.bf16 %v6143_v60, %v6137_v12  ;;  %14299 = vmatprep.subr.bf16.mxu1 %v14298_v36 }
 0x693   : > { %v6034_v61 = vpop.f32.mrb[56].mxu1  ;;  %v6147_v9 = vpop.f32.mrb[56].mxu0 }
 0x694   : > { %v6036_v29 = vpop.f32.mrb[57].mxu1  ;;  %v6149_v43 = vpop.f32.mrb[57].mxu0  ;;  %14301 = vmatpush3.bf16.msra.mxu1 %v14298_v36 }
 0x695   : > { %14303 = vmatprep.subr.bf16.mxu1 %v14302_v41 }
 0x697   : > { %v6040_v17 = vpop.f32.mrb[58].mxu1  ;;  %v6153_v55 = vpop.f32.mrb[58].mxu0  ;;  %13324 = vmatmul.mubr.msk.f32.vlgmr.msra.gmra.mrb[80].mxu1 %vm5242_vm1, %v11783_v35 }
 0x698   : > { %v20935_v3 = vpack.c.bf16 %v6040_v17, %v6034_v61  ;;  %v20937_v40 = vpack.c.bf16 %v6153_v55, %v6147_v9  ;;  %v6042_v46 = vpop.f32.mrb[59].mxu1  ;;  %v6155_v4 = vpop.f32.mrb[59].mxu0  ;;  %14305 = vmatpush3.bf16.msra.mxu1 %v14302_v41  ;;  %13342 = vmatprep.mubr.msk.f32.mxu1 %vm5242_vm1, %v11788_v38  ;;  %v11794_v41 = vld [vmem:[%s23371_s4 + $0xb0] sm:$0xff] }
 0x699   : > { %v14310_v58 = vpack.c.bf16 %v6042_v46, %v6036_v29  ;;  %v14326_v57 = vpack.c.bf16 %v6155_v4, %v6149_v43  ;;  %14307 = vmatprep.subr.bf16.mxu1 %v14306_v20 }
 0x69b   : > { %v6046_v34 = vpop.f32.mrb[60].mxu1  ;;  %v6159_v42 = vpop.f32.mrb[60].mxu0 }
 0x69c   : > { %v6048_v48 = vpop.f32.mrb[61].mxu1  ;;  %v6161_v28 = vpop.f32.mrb[61].mxu0  ;;  %14309 = vmatpush3.bf16.msra.mxu1 %v14306_v20 }
 0x69d   : > { %14311 = vmatprep.subr.bf16.mxu1 %v14310_v58 }
 0x69f   : > { %v6052_v62 = vpop.f32.mrb[62].mxu1  ;;  %v6165_v30 = vpop.f32.mrb[62].mxu0 }
 0x6a0   : > { %v20940_v36 = vpack.c.bf16 %v6052_v62, %v6046_v34  ;;  %v20942_v13 = vpack.c.bf16 %v6165_v30, %v6159_v42  ;;  %v6054_v44 = vpop.f32.mrb[63].mxu1  ;;  %v6167_v53 = vpop.f32.mrb[63].mxu0  ;;  %14313 = vmatpush3.bf16.msra.mxu1 %v14310_v58 }
 0x6a1   : > { %v14314_v6 = vpack.c.bf16 %v6054_v44, %v6048_v48  ;;  %v14330_v32 = vpack.c.bf16 %v6167_v53, %v6161_v28  ;;  %v11800_v28 = vld [vmem:[%s23371_s4 + $0xd0] sm:$0xff] }
 0x6a3   : > { %v6236_v5 = vpop.f32.mrb[64].mxu1  ;;  %v6349_v16 = vpop.f32.mrb[64].mxu0  ;;  %14315 = vmatprep.subr.bf16.mxu1 %v14314_v6 }
 0x6a4   : > { %v6238_v18 = vpop.f32.mrb[65].mxu1  ;;  %v6351_v47 = vpop.f32.mrb[65].mxu0  ;;  %14317 = vmatpush3.bf16.msra.mxu1 %v14314_v6 }
 0x6a5   : > { %14319 = vmatprep.subr.bf16.mxu1 %v20922_v19 }
 0x6a7   : > { %v6242_v59 = vpop.f32.mrb[66].mxu1  ;;  %v6355_v0 = vpop.f32.mrb[66].mxu0  ;;  %13343 = vmatmul.mubr.msk.f32.vlgmr.msra.gmra.mrb[80].mxu1 %vm5242_vm1, %v11789_v27 }
 0x6a8   : > { %v20952_v56 = vpack.c.bf16 %v6242_v59, %v6236_v5  ;;  %v20954_v12 = vpack.c.bf16 %v6355_v0, %v6349_v16  ;;  %v6244_v1 = vpop.f32.mrb[67].mxu1  ;;  %v6357_v21 = vpop.f32.mrb[67].mxu0  ;;  %14321 = vmatpush3.bf16.msra.mxu1 %v20922_v19  ;;  %13361 = vmatprep.mubr.msk.f32.mxu1 %vm5242_vm1, %v11794_v41 }
 0x6a9   : > { %v14334_v10 = vpack.c.bf16 %v6244_v1, %v6238_v18  ;;  %v14350_v60 = vpack.c.bf16 %v6357_v21, %v6351_v47  ;;  %14323 = vmatprep.subr.bf16.mxu1 %v14322_v22 }
 0x6ab   : > { %v6248_v20 = vpop.f32.mrb[68].mxu1  ;;  %v6361_v61 = vpop.f32.mrb[68].mxu0 }
 0x6ac   : > { %v6250_v9 = vpop.f32.mrb[69].mxu1  ;;  %v6363_v29 = vpop.f32.mrb[69].mxu0  ;;  %14325 = vmatpush3.bf16.msra.mxu1 %v14322_v22  ;;  %v11795_v22 = vld [vmem:[%s23371_s4 + $0xb8] sm:$0xff] }
 0x6ad   : > { %14327 = vmatprep.subr.bf16.mxu1 %v14326_v57 }
 0x6af   : > { %v6254_v43 = vpop.f32.mrb[70].mxu1  ;;  %v6367_v35 = vpop.f32.mrb[70].mxu0 }
 0x6b0   : > { %v20958_v38 = vpack.c.bf16 %v6254_v43, %v6248_v20  ;;  %v20960_v17 = vpack.c.bf16 %v6367_v35, %v6361_v61  ;;  %v6256_v55 = vpop.f32.mrb[71].mxu1  ;;  %v6369_v46 = vpop.f32.mrb[71].mxu0  ;;  %14329 = vmatpush3.bf16.msra.mxu1 %v14326_v57  ;;  %v11807_v43 = vld [vmem:[%s23371_s4 + $0xf8] sm:$0xff]  ;;  %v6396_v35 = vld [vmem:[%s23371_s4] sm:$0xff] }
 0x6b1   : > { %v14338_v19 = vpack.c.bf16 %v6256_v55, %v6250_v9  ;;  %v14354_v4 = vpack.c.bf16 %v6369_v46, %v6363_v29  ;;  %14331 = vmatprep.subr.bf16.mxu1 %v14330_v32  ;;  %v11801_v9 = vld [vmem:[%s23371_s4 + $0xd8] sm:$0xff]  ;;  %v11806_v29 = vld [vmem:[%s23371_s4 + $0xf0] sm:$0xff] }
 0x6b2   : > { %v7869_v55 = vld [vmem:[%s23374_s7 + $0x298] sm:$0xff] }
 0x6b3   : > { %v6260_v58 = vpop.f32.mrb[72].mxu1  ;;  %v6373_v34 = vpop.f32.mrb[72].mxu0 }
 0x6b4   : > { %v6262_v42 = vpop.f32.mrb[73].mxu1  ;;  %v6375_v48 = vpop.f32.mrb[73].mxu0  ;;  %14333 = vmatpush3.bf16.msra.mxu1 %v14330_v32 }
 0x6b5   : > { %14335 = vmatprep.subr.bf16.mxu1 %v14334_v10 }
 0x6b7   : > { %v6266_v62 = vpop.f32.mrb[74].mxu1  ;;  %v6379_v30 = vpop.f32.mrb[74].mxu0  ;;  %13362 = vmatmul.mubr.msk.f32.vlgmr.msra.gmra.mrb[80].mxu1 %vm5242_vm1, %v11795_v22  ;;  %v7900_v22 = vld [vmem:[%s23374_s7 + $0x390] sm:$0xff] }
 0x6b8   : > { %v20969_v57 = vpack.c.bf16 %v6266_v62, %v6260_v58  ;;  %v20971_v44 = vpack.c.bf16 %v6379_v30, %v6373_v34  ;;  %v6268_v53 = vpop.f32.mrb[75].mxu1  ;;  %v6381_v6 = vpop.f32.mrb[75].mxu0  ;;  %14337 = vmatpush3.bf16.msra.mxu1 %v14334_v10  ;;  %13380 = vmatprep.mubr.msk.f32.mxu1 %vm5242_vm1, %v11800_v28  ;;  %v7882_v58 = vld [vmem:[%s23374_s7 + $0x300] sm:$0xff]  ;;  %v7915_v62 = vld [vmem:[%s23374_s7 + $0x408] sm:$0xff] }
 0x6b9   : > { %v14342_v32 = vpack.c.bf16 %v6268_v53, %v6262_v42  ;;  %v14358_v5 = vpack.c.bf16 %v6381_v6, %v6375_v48  ;;  %14339 = vmatprep.subr.bf16.mxu1 %v14338_v19  ;;  %v7868_v48 = vld [vmem:[%s23374_s7 + $0x290] sm:$0xff]  ;;  %v7947_v30 = vld [vmem:[%s23374_s7 + $0x508] sm:$0xff]  ;;  %v7965_v53 = vld [vmem:[%s23374_s7 + $0x598] sm:$0xff] }
 0x6ba   : > { %v14788_v28 = vpack.c.bf16 %v7900_v22, %v7868_v48  ;;  %v7914_v6 = vld [vmem:[%s23374_s7 + $0x400] sm:$0xff]  ;;  %v8253_v48 = vld [vmem:[%s23374_s7 + $0xe98] sm:$0xff] }
 0x6bb   : > { %v6272_v16 = vpop.f32.mrb[76].mxu1  ;;  %v6385_v18 = vpop.f32.mrb[76].mxu0  ;;  %v8285_v22 = vld [vmem:[%s23374_s7 + $0xf98] sm:$0xff] }
 0x6bc   : > { %v6274_v47 = vpop.f32.mrb[77].mxu1  ;;  %v6387_v27 = vpop.f32.mrb[77].mxu0  ;;  %14341 = vmatpush3.bf16.msra.mxu1 %v14338_v19  ;;  %v7901_v19 = vld [vmem:[%s23374_s7 + $0x398] sm:$0xff] }
 0x6bd   : > { %14343 = vmatprep.subr.bf16.mxu1 %v14342_v32  ;;  %v14786_v34 = vpack.c.bf16 %v7901_v19, %v7869_v55  ;;  %v8170_v55 = vld [vmem:[%s23374_s7 + $0xc00] sm:$0xff]  ;;  %v8188_v19 = vld [vmem:[%s23374_s7 + $0xc90] sm:$0xff] }
 0x6bf   : > { %v6278_v41 = vpop.f32.mrb[78].mxu1  ;;  %v6391_v59 = vpop.f32.mrb[78].mxu0 }
 0x6c0   : > { %v20974_v0 = vpack.c.bf16 %v6278_v41, %v6272_v16  ;;  %v20976_v1 = vpack.c.bf16 %v6391_v59, %v6385_v18  ;;  %v6280_v21 = vpop.f32.mrb[79].mxu1  ;;  %v6393_v20 = vpop.f32.mrb[79].mxu0  ;;  %14345 = vmatpush3.bf16.msra.mxu1 %v14342_v32  ;;  %v7946_v32 = vld [vmem:[%s23374_s7 + $0x500] sm:$0xff]  ;;  %v7932_v18 = vld [vmem:[%s23374_s7 + $0x490] sm:$0xff]  ;;  %v8011_v59 = vld [vmem:[%s23374_s7 + $0x708] sm:$0xff] }
 0x6c1   : > { %v14346_v10 = vpack.c.bf16 %v6280_v21, %v6274_v47  ;;  %v14362_v61 = vpack.c.bf16 %v6393_v20, %v6387_v27  ;;  %v14504_v16 = vpack.c.bf16 %v7946_v32, %v7914_v6  ;;  %v7964_v47 = vld [vmem:[%s23374_s7 + $0x590] sm:$0xff]  ;;  %v7979_v27 = vld [vmem:[%s23374_s7 + $0x608] sm:$0xff]  ;;  %v14810_v6 = vpack.c.bf16 %v8285_v22, %v8253_v48  ;;  %v7917_v48 = vld [vmem:[%s23374_s7 + $0x418] sm:$0xff] }
 0x6c2   : > { %v14792_v41 = vpack.c.bf16 %v7964_v47, %v7932_v18  ;;  %v14506_v21 = vpack.c.bf16 %v8011_v59, %v7979_v27  ;;  %v8284_v32 = vld [vmem:[%s23374_s7 + $0xf90] sm:$0xff]  ;;  %v7809_v18 = vld [vmem:[%s23374_s7 + $0xb8] sm:$0xff] }
 0x6c3   : > { %14347 = vmatprep.subr.bf16.mxu1 %v14346_v10  ;;  %v7841_v47 = vld [vmem:[%s23374_s7 + $0x1b8] sm:$0xff] }
 0x6c4   : > { %14349 = vmatpush3.bf16.msra.mxu1 %v14346_v10  ;;  %v7978_v10 = vld [vmem:[%s23374_s7 + $0x600] sm:$0xff] }
 0x6c5   : > { %14351 = vmatprep.subr.bf16.mxu1 %v14350_v60 }
 0x6c7   : > { %13381 = vmatmul.mubr.msk.f32.vlgmr.msra.gmra.mrb[80].mxu1 %vm5242_vm1, %v11801_v9  ;;  %v7996_v9 = vld [vmem:[%s23374_s7 + $0x690] sm:$0xff] }
 0x6c8   : > { %14353 = vmatpush3.bf16.msra.mxu1 %v14350_v60  ;;  %13399 = vmatprep.mubr.msk.f32.mxu1 %vm5242_vm1, %v11806_v29  ;;  %v6397_v60 = vld [vmem:[%s23371_s4 + $0x8] sm:$0xff] }
 0x6c9   : > { %14355 = vmatprep.subr.bf16.mxu1 %v14354_v4 }
 0x6cc   : > { %14357 = vmatpush3.bf16.msra.mxu1 %v14354_v4  ;;  %v7850_v4 = vld [vmem:[%s23374_s7 + $0x200] sm:$0xff] }
 0x6cd   : > { %14359 = vmatprep.subr.bf16.mxu1 %v14358_v5  ;;  %v14500_v42 = vpack.c.bf16 %v7882_v58, %v7850_v4  ;;  %v8220_v58 = vld [vmem:[%s23374_s7 + $0xd90] sm:$0xff] }
 0x6d0   : > { %14361 = vmatpush3.bf16.msra.mxu1 %v14358_v5 }
 0x6d1   : > { %14363 = vmatprep.subr.bf16.mxu1 %v14362_v61 }
 0x6d4   : > { %14365 = vmatpush3.bf16.msra.mxu1 %v14362_v61  ;;  %v8010_v61 = vld [vmem:[%s23374_s7 + $0x700] sm:$0xff] }
 0x6d5   : > { %14367 = vmatprep.subr.bf16.mxu1 %v20858_v24  ;;  %v14508_v29 = vpack.c.bf16 %v8010_v61, %v7978_v10 }
 0x6d7   : > { %13400 = vmatmul.mubr.msk.f32.vlgmr.msra.gmra.mrb[80].mxu1 %vm5242_vm1, %v11807_v43  ;;  %v8028_v43 = vld [vmem:[%s23374_s7 + $0x790] sm:$0xff] }
 0x6d8   : > { %14369 = vmatpush3.bf16.msra.mxu1 %v20858_v24  ;;  %13418 = vmatprep.mubr.msk.f32.mxu1 %vm5242_vm1, %v6396_v35  ;;  %v11768_v24 = vld [vmem:[%s23371_s4 + $0x20] sm:$0xff]  ;;  %v8043_v35 = vld [vmem:[%s23374_s7 + $0x808] sm:$0xff] }
 0x6d9   : > { %14371 = vmatprep.subr.bf16.mxu1 %v20862_v50 }
 0x6dc   : > { %14373 = vmatpush3.bf16.msra.mxu1 %v20862_v50  ;;  %v11769_v50 = vld [vmem:[%s23371_s4 + $0x28] sm:$0xff] }
 0x6dd   : > { %14375 = vmatprep.subr.bf16.mxu1 %v20866_v49 }
 0x6e0   : > { %14377 = vmatpush3.bf16.msra.mxu1 %v20866_v49  ;;  %v11780_v49 = vld [vmem:[%s23371_s4 + $0x60] sm:$0xff] }
 0x6e1   : > { %14379 = vmatprep.subr.bf16.mxu1 %v20870_v39 }
 0x6e4   : > { %14381 = vmatpush3.bf16.msra.mxu1 %v20870_v39  ;;  %v11786_v39 = vld [vmem:[%s23371_s4 + $0x80] sm:$0xff] }
 0x6e5   : > { %14383 = vmatprep.subr.bf16.mxu1 %v20860_v37 }
 0x6e7   : > { %13419 = vmatmul.mubr.msk.f32.vlgmr.msra.gmra.mrb[80].mxu1 %vm5242_vm1, %v6397_v60  ;;  %v8075_v60 = vld [vmem:[%s23374_s7 + $0x908] sm:$0xff] }
 0x6e8   : > { %14385 = vmatpush3.bf16.msra.mxu1 %v20860_v37  ;;  %13437 = vmatprep.mubr.msk.f32.mxu1 %vm5242_vm1, %v11768_v24  ;;  %v11774_v37 = vld [vmem:[%s23371_s4 + $0x40] sm:$0xff]  ;;  %v14796_v24 = vpack.c.bf16 %v8028_v43, %v7996_v9 }
 0x6e9   : > { %14387 = vmatprep.subr.bf16.mxu1 %v20864_v7 }
 0x6ec   : > { %14389 = vmatpush3.bf16.msra.mxu1 %v20864_v7  ;;  %v11775_v7 = vld [vmem:[%s23371_s4 + $0x48] sm:$0xff] }
 0x6ed   : > { %14391 = vmatprep.subr.bf16.mxu1 %v20868_v31 }
 0x6f0   : > { %14393 = vmatpush3.bf16.msra.mxu1 %v20868_v31  ;;  %v11781_v31 = vld [vmem:[%s23371_s4 + $0x68] sm:$0xff] }
 0x6f1   : > { %14395 = vmatprep.subr.bf16.mxu1 %v20872_v26 }
 0x6f4   : > { %14397 = vmatpush3.bf16.msra.mxu1 %v20872_v26  ;;  %v11787_v26 = vld [vmem:[%s23371_s4 + $0x88] sm:$0xff] }
 0x6f5   : > { %14399 = vmatprep.subr.bf16.mxu1 %v20881_v2 }
 0x6f7   : > { %13438 = vmatmul.mubr.msk.f32.vlgmr.msra.gmra.mrb[80].mxu1 %vm5242_vm1, %v11769_v50  ;;  %v14510_v50 = vpack.c.bf16 %v8075_v60, %v8043_v35 }
 0x6f8   : > { %14401 = vmatpush3.bf16.msra.mxu1 %v20881_v2  ;;  %13456 = vmatprep.mubr.msk.f32.mxu1 %vm5242_vm1, %v11774_v37  ;;  %v11792_v2 = vld [vmem:[%s23371_s4 + $0xa0] sm:$0xff]  ;;  %v8061_v37 = vld [vmem:[%s23374_s7 + $0x898] sm:$0xff] }
 0x6f9   : > { %14403 = vmatprep.subr.bf16.mxu1 %v20888_v51 }
 0x6fc   : > { %14405 = vmatpush3.bf16.msra.mxu1 %v20888_v51  ;;  %v11798_v51 = vld [vmem:[%s23371_s4 + $0xc0] sm:$0xff] }
 0x6fd   : > { %14407 = vmatprep.subr.bf16.mxu1 %v20899_v11 }
 0x700   : > { %14409 = vmatpush3.bf16.msra.mxu1 %v20899_v11  ;;  %v11804_v11 = vld [vmem:[%s23371_s4 + $0xe0] sm:$0xff] }
 0x701   : > { %14411 = vmatprep.subr.bf16.mxu1 %v20904_v33 }
 0x704   : > { %14413 = vmatpush3.bf16.msra.mxu1 %v20904_v33  ;;  %v7787_v33 = vld [vmem:[%s23374_s7 + $0x8] sm:$0xff] }
 0x705   : > { %14415 = vmatprep.subr.bf16.mxu1 %v20883_v45 }
 0x707   : > { %13457 = vmatmul.mubr.msk.f32.vlgmr.msra.gmra.mrb[80].mxu1 %vm5242_vm1, %v11775_v7  ;;  %v8093_v7 = vld [vmem:[%s23374_s7 + $0x998] sm:$0xff] }
 0x708   : > { %14417 = vmatpush3.bf16.msra.mxu1 %v20883_v45  ;;  %13475 = vmatprep.mubr.msk.f32.mxu1 %vm5242_vm1, %v11780_v49  ;;  %v11793_v45 = vld [vmem:[%s23371_s4 + $0xa8] sm:$0xff]  ;;  %v8042_v49 = vld [vmem:[%s23374_s7 + $0x800] sm:$0xff] }
 0x709   : > { %14419 = vmatprep.subr.bf16.mxu1 %v20890_v14 }
 0x70c   : > { %14421 = vmatpush3.bf16.msra.mxu1 %v20890_v14  ;;  %v11799_v14 = vld [vmem:[%s23371_s4 + $0xc8] sm:$0xff] }
 0x70d   : > { %14423 = vmatprep.subr.bf16.mxu1 %v20901_v15 }
 0x710   : > { %14425 = vmatpush3.bf16.msra.mxu1 %v20901_v15  ;;  %v11805_v15 = vld [vmem:[%s23371_s4 + $0xe8] sm:$0xff] }
 0x711   : > { %14427 = vmatprep.subr.bf16.mxu1 %v20906_v54 }
 0x714   : > { %14429 = vmatpush3.bf16.msra.mxu1 %v20906_v54  ;;  %v7819_v54 = vld [vmem:[%s23374_s7 + $0x108] sm:$0xff] }
 0x715   : > { %14431 = vmatprep.subr.bf16.mxu1 %v20916_v25 }
 0x717   : > { %13476 = vmatmul.mubr.msk.f32.vlgmr.msra.gmra.mrb[80].mxu1 %vm5242_vm1, %v11781_v31  ;;  %v14798_v31 = vpack.c.bf16 %v8093_v7, %v8061_v37 }
 0x718   : > { %14433 = vmatpush3.bf16.msra.mxu1 %v20916_v25  ;;  %13494 = vmatprep.mubr.msk.f32.mxu1 %vm5242_vm1, %v11786_v39  ;;  %v7805_v25 = vld [vmem:[%s23374_s7 + $0x98] sm:$0xff]  ;;  %v8074_v39 = vld [vmem:[%s23374_s7 + $0x900] sm:$0xff] }
 0x719   : > { %14435 = vmatprep.subr.bf16.mxu1 %v20924_v52 }
 0x71c   : > { %14437 = vmatpush3.bf16.msra.mxu1 %v20924_v52  ;;  %v7837_v52 = vld [vmem:[%s23374_s7 + $0x198] sm:$0xff] }
 0x71d   : > { %14439 = vmatprep.subr.bf16.mxu1 %v20935_v3 }
 0x720   : > { %14441 = vmatpush3.bf16.msra.mxu1 %v20935_v3  ;;  %v7818_v3 = vld [vmem:[%s23374_s7 + $0x100] sm:$0xff] }
 0x721   : > { %14443 = vmatprep.subr.bf16.mxu1 %v20940_v36 }
 0x724   : > { %14445 = vmatpush3.bf16.msra.mxu1 %v20940_v36 }
 0x725   : > { %14447 = vmatprep.subr.bf16.mxu1 %v20918_v23 }
 0x727   : > { %13495 = vmatmul.mubr.msk.f32.vlgmr.msra.gmra.mrb[80].mxu1 %vm5242_vm1, %v11787_v26  ;;  %v8060_v26 = vld [vmem:[%s23374_s7 + $0x890] sm:$0xff] }
 0x728   : > { %14449 = vmatpush3.bf16.msra.mxu1 %v20918_v23  ;;  %13513 = vmatprep.mubr.msk.f32.mxu1 %vm5242_vm1, %v11792_v2  ;;  %v14494_v23 = vpack.c.bf16 %v7819_v54, %v7787_v33  ;;  %v8092_v2 = vld [vmem:[%s23374_s7 + $0x990] sm:$0xff] }
 0x729   : > { %14451 = vmatprep.subr.bf16.mxu1 %v20926_v63  ;;  %v14800_v33 = vpack.c.bf16 %v8092_v2, %v8060_v26 }
 0x72a   : > { %14495 = vmatprep.subr.bf16.mxu0 %v14494_v23  ;;  %v8138_v23 = vld [vmem:[%s23374_s7 + $0xb00] sm:$0xff] }
 0x72c   : > { %14453 = vmatpush3.bf16.msra.mxu1 %v20926_v63  ;;  %v7786_v63 = vld [vmem:[%s23374_s7] sm:$0xff] }
 0x72d   : > { %14455 = vmatprep.subr.bf16.mxu1 %v20937_v40  ;;  %v14496_v36 = vpack.c.bf16 %v7818_v3, %v7786_v63  ;;  %v8156_v3 = vld [vmem:[%s23374_s7 + $0xb90] sm:$0xff] }
 0x72f   : > { %14497 = vmatpush1.bf16.msra.mxu0 %v14496_v36  ;;  %v8203_v36 = vld [vmem:[%s23374_s7 + $0xd08] sm:$0xff] }
 0x730   : > { %14457 = vmatpush3.bf16.msra.mxu1 %v20937_v40  ;;  %v14782_v40 = vpack.c.bf16 %v7837_v52, %v7805_v25  ;;  %v8106_v25 = vld [vmem:[%s23374_s7 + $0xa00] sm:$0xff]  ;;  %v8124_v52 = vld [vmem:[%s23374_s7 + $0xa90] sm:$0xff] }
 0x731   : > { %14459 = vmatprep.subr.bf16.mxu1 %v20942_v13 }
 0x734   : > { %14461 = vmatpush3.bf16.msra.mxu1 %v20942_v13  ;;  %v7804_v13 = vld [vmem:[%s23374_s7 + $0x90] sm:$0xff] }
 0x735   : > { %14463 = vmatprep.subr.bf16.mxu1 %v20952_v56 }
 0x737   : > { %13514 = vmatmul.mubr.msk.f32.vlgmr.msra.gmra.mrb[80].mxu1 %vm5242_vm1, %v11793_v45  ;;  %v8107_v45 = vld [vmem:[%s23374_s7 + $0xa08] sm:$0xff] }
 0x738   : > { %14465 = vmatpush3.bf16.msra.mxu1 %v20952_v56  ;;  %13532 = vmatprep.mubr.msk.f32.mxu1 %vm5242_vm1, %v11798_v51  ;;  %v7836_v56 = vld [vmem:[%s23374_s7 + $0x190] sm:$0xff]  ;;  %v8139_v51 = vld [vmem:[%s23374_s7 + $0xb08] sm:$0xff] }
 0x739   : > { %14467 = vmatprep.subr.bf16.mxu1 %v20958_v38  ;;  %v14514_v54 = vpack.c.bf16 %v8139_v51, %v8107_v45 }
 0x73c   : > { %14469 = vmatpush3.bf16.msra.mxu1 %v20958_v38  ;;  %v7851_v38 = vld [vmem:[%s23374_s7 + $0x208] sm:$0xff] }
 0x73d   : > { %14471 = vmatprep.subr.bf16.mxu1 %v20969_v57 }
 0x740   : > { %14473 = vmatpush3.bf16.msra.mxu1 %v20969_v57  ;;  %v7933_v57 = vld [vmem:[%s23374_s7 + $0x498] sm:$0xff] }
 0x741   : > { %14475 = vmatprep.subr.bf16.mxu1 %v20974_v0  ;;  %v14790_v5 = vpack.c.bf16 %v7965_v53, %v7933_v57  ;;  %v8234_v57 = vld [vmem:[%s23374_s7 + $0xe00] sm:$0xff]  ;;  %v8252_v53 = vld [vmem:[%s23374_s7 + $0xe90] sm:$0xff] }
 0x744   : > { %14477 = vmatpush3.bf16.msra.mxu1 %v20974_v0  ;;  %v7997_v0 = vld [vmem:[%s23374_s7 + $0x698] sm:$0xff] }
 0x745   : > { %14479 = vmatprep.subr.bf16.mxu1 %v20954_v12 }
 0x747   : > { %13533 = vmatmul.mubr.msk.f32.vlgmr.msra.gmra.mrb[80].mxu1 %vm5242_vm1, %v11799_v14  ;;  %v8125_v14 = vld [vmem:[%s23374_s7 + $0xa98] sm:$0xff] }
 0x748   : > { %14481 = vmatpush3.bf16.msra.mxu1 %v20954_v12  ;;  %13551 = vmatprep.mubr.msk.f32.mxu1 %vm5242_vm1, %v11804_v11  ;;  %v14784_v12 = vpack.c.bf16 %v7836_v56, %v7804_v13  ;;  %v14512_v11 = vpack.c.bf16 %v8074_v39, %v8042_v49  ;;  %v8189_v13 = vld [vmem:[%s23374_s7 + $0xc98] sm:$0xff] }
 0x749   : > { %14483 = vmatprep.subr.bf16.mxu1 %v20960_v17  ;;  %v8221_v56 = vld [vmem:[%s23374_s7 + $0xd98] sm:$0xff] }
 0x74a   : > { %v14806_v4 = vpack.c.bf16 %v8221_v56, %v8189_v13  ;;  %v7853_v13 = vld [vmem:[%s23374_s7 + $0x218] sm:$0xff] }
 0x74b   : > { %v7885_v56 = vld [vmem:[%s23374_s7 + $0x318] sm:$0xff] }
 0x74c   : > { %14485 = vmatpush3.bf16.msra.mxu1 %v20960_v17  ;;  %v7883_v17 = vld [vmem:[%s23374_s7 + $0x308] sm:$0xff] }
 0x74d   : > { %14487 = vmatprep.subr.bf16.mxu1 %v20971_v44  ;;  %v14498_v46 = vpack.c.bf16 %v7883_v17, %v7851_v38  ;;  %v14804_v38 = vpack.c.bf16 %v8156_v3, %v8124_v52  ;;  %v7820_v52 = vld [vmem:[%s23374_s7 + $0x110] sm:$0xff] }
 0x74e   : > { %v7840_v3 = vld [vmem:[%s23374_s7 + $0x1b0] sm:$0xff] }
 0x74f   : > { %14499 = vmatprep.subr.bf16.mxu0 %v14498_v46  ;;  %v8202_v46 = vld [vmem:[%s23374_s7 + $0xd00] sm:$0xff] }
 0x750   : > { %14489 = vmatpush3.bf16.msra.mxu1 %v20971_v44  ;;  %14501 = vmatpush1.bf16.msra.mxu0 %v14500_v42  ;;  %v14502_v44 = vpack.c.bf16 %v7947_v30, %v7915_v62  ;;  %v8267_v42 = vld [vmem:[%s23374_s7 + $0xf08] sm:$0xff]  ;;  %v14808_v62 = vpack.c.bf16 %v8220_v58, %v8188_v19  ;;  %v7852_v19 = vld [vmem:[%s23374_s7 + $0x210] sm:$0xff]  ;;  %v14530_v58 = vpack.c.bf16 %v7885_v56, %v7853_v13  ;;  %v8173_v56 = vld [vmem:[%s23374_s7 + $0xc18] sm:$0xff] }
 0x751   : > { %14491 = vmatprep.subr.bf16.mxu1 %v20976_v1  ;;  %v8160_v13 = vld [vmem:[%s23374_s7 + $0xbb0] sm:$0xff] }
 0x752   : > { %14503 = vmatprep.subr.bf16.mxu0 %v14502_v44  ;;  %v8266_v44 = vld [vmem:[%s23374_s7 + $0xf00] sm:$0xff] }
 0x753   : > { %v14524_v27 = vpack.c.bf16 %v8266_v44, %v8234_v57  ;;  %v7937_v57 = vld [vmem:[%s23374_s7 + $0x4b8] sm:$0xff] }
 0x754   : > { %14493 = vmatpush3.bf16.msra.mxu1 %v20976_v1  ;;  %v8029_v1 = vld [vmem:[%s23374_s7 + $0x798] sm:$0xff]  ;;  %14505 = vmatpush1.bf16.msra.mxu0 %v14504_v16 }
 0x755   : > { %14783 = vmatprep.subr.bf16.mxu1 %v14782_v40  ;;  %v14794_v20 = vpack.c.bf16 %v8029_v1, %v7997_v0  ;;  %14507 = vmatprep.subr.bf16.mxu0 %v14506_v21  ;;  %v8171_v40 = vld [vmem:[%s23374_s7 + $0xc08] sm:$0xff]  ;;  %v7821_v16 = vld [vmem:[%s23374_s7 + $0x118] sm:$0xff]  ;;  %v14846_v0 = vpack.c.bf16 %v7841_v47, %v7809_v18  ;;  %v7936_v47 = vld [vmem:[%s23374_s7 + $0x4b0] sm:$0xff] }
 0x756   : > { %v14518_v17 = vpack.c.bf16 %v8203_v36, %v8171_v40  ;;  %v7969_v44 = vld [vmem:[%s23374_s7 + $0x5b8] sm:$0xff] }
 0x757   : > { %13552 = vmatmul.mubr.msk.f32.vlgmr.msra.gmra.mrb[80].mxu1 %vm5242_vm1, %v11805_v15  ;;  %v8157_v15 = vld [vmem:[%s23374_s7 + $0xb98] sm:$0xff]  ;;  %v14854_v18 = vpack.c.bf16 %v7969_v44, %v7937_v57 }
 0x758   : > { %9055 = vmatprep.mubr.f32.mxu1 %v24365_v8  ;;  %14785 = vmatpush1.bf16.msra.mxu1 %v14784_v12  ;;  %v14802_v63 = vpack.c.bf16 %v8157_v15, %v8125_v14  ;;  %v14516_v12 = vpack.c.bf16 %v8138_v23, %v8106_v25  ;;  %v7788_v25 = vld [vmem:[%s23374_s7 + $0x10] sm:$0xff]  ;;  %v8289_v57 = vld [vmem:[%s23374_s7 + $0xfb8] sm:$0xff] }
 0x759   : > { %14787 = vmatprep.subr.bf16.mxu1 %v14786_v34  ;;  %14509 = vmatpush1.bf16.msra.mxu0 %v14508_v29  ;;  %v8235_v34 = vld [vmem:[%s23374_s7 + $0xe08] sm:$0xff] }
 0x75a   : > { %14511 = vmatprep.subr.bf16.mxu0 %v14510_v50  ;;  %v14522_v30 = vpack.c.bf16 %v8267_v42, %v8235_v34  ;;  %v7872_v34 = vld [vmem:[%s23374_s7 + $0x2b0] sm:$0xff] }
 0x75b   : > { %v7904_v42 = vld [vmem:[%s23374_s7 + $0x3b0] sm:$0xff] }
 0x75c   : > { %14789 = vmatpush1.bf16.msra.mxu1 %v14788_v28  ;;  %v14520_v28 = vpack.c.bf16 %v8202_v46, %v8170_v55  ;;  %v14528_v55 = vpack.c.bf16 %v7820_v52, %v7788_v25  ;;  %v8108_v52 = vld [vmem:[%s23374_s7 + $0xa10] sm:$0xff] }
 0x75d   : > { %14791 = vmatprep.subr.bf16.mxu1 %v14790_v5  ;;  %14513 = vmatpush1.bf16.msra.mxu0 %v14512_v11  ;;  %v7789_v5 = vld [vmem:[%s23374_s7 + $0x18] sm:$0xff] }
 0x75e   : > { %14515 = vmatprep.subr.bf16.mxu0 %v14514_v54  ;;  %v14526_v59 = vpack.c.bf16 %v7821_v16, %v7789_v5  ;;  %v7948_v5 = vld [vmem:[%s23374_s7 + $0x510] sm:$0xff] }
 0x760   : > { %14793 = vmatpush1.bf16.msra.mxu1 %v14792_v41  ;;  %v14812_v41 = vpack.c.bf16 %v8284_v32, %v8252_v53  ;;  %v7916_v32 = vld [vmem:[%s23374_s7 + $0x410] sm:$0xff] }
 0x761   : > { %14795 = vmatprep.subr.bf16.mxu1 %v14794_v20  ;;  %14517 = vmatpush1.bf16.msra.mxu0 %v14516_v12  ;;  %v7873_v12 = vld [vmem:[%s23374_s7 + $0x2b8] sm:$0xff] }
 0x762   : > { %14519 = vmatprep.subr.bf16.mxu0 %v14518_v17 }
 0x764   : > { %14797 = vmatpush1.bf16.msra.mxu1 %v14796_v24 }
 0x765   : > { %14799 = vmatprep.subr.bf16.mxu1 %v14798_v31  ;;  %14521 = vmatpush1.bf16.msra.mxu0 %v14520_v28 }
 0x766   : > { %14523 = vmatprep.subr.bf16.mxu0 %v14522_v30  ;;  %v7949_v30 = vld [vmem:[%s23374_s7 + $0x518] sm:$0xff] }
 0x767   : > { %v14534_v16 = vpack.c.bf16 %v7949_v30, %v7917_v48  ;;  %v8224_v48 = vld [vmem:[%s23374_s7 + $0xdb0] sm:$0xff]  ;;  %v8257_v30 = vld [vmem:[%s23374_s7 + $0xeb8] sm:$0xff] }
 0x768   : > { %14801 = vmatpush1.bf16.msra.mxu1 %v14800_v33 }
 0x769   : > { %14803 = vmatprep.subr.bf16.mxu1 %v14802_v63  ;;  %14525 = vmatpush1.bf16.msra.mxu0 %v14524_v27  ;;  %v7808_v63 = vld [vmem:[%s23374_s7 + $0xb0] sm:$0xff] }
 0x76a   : > { %14527 = vmatprep.subr.bf16.mxu0 %v14526_v59  ;;  %v14848_v46 = vpack.c.bf16 %v7840_v3, %v7808_v63  ;;  %v7968_v27 = vld [vmem:[%s23374_s7 + $0x5b0] sm:$0xff] }
 0x76b   : > { %v8140_v63 = vld [vmem:[%s23374_s7 + $0xb10] sm:$0xff] }
 0x76c   : > { %14805 = vmatpush1.bf16.msra.mxu1 %v14804_v38  ;;  %v7905_v38 = vld [vmem:[%s23374_s7 + $0x3b8] sm:$0xff] }
 0x76d   : > { %14807 = vmatprep.subr.bf16.mxu1 %v14806_v4  ;;  %v7884_v4 = vld [vmem:[%s23374_s7 + $0x310] sm:$0xff] }
 0x76e   : > { %v14532_v53 = vpack.c.bf16 %v7884_v4, %v7852_v19  ;;  %v8172_v19 = vld [vmem:[%s23374_s7 + $0xc10] sm:$0xff] }
 0x76f   : > { %v8204_v4 = vld [vmem:[%s23374_s7 + $0xd10] sm:$0xff] }
 0x770   : > { %14809 = vmatpush1.bf16.msra.mxu1 %v14808_v62  ;;  %v14850_v62 = vpack.c.bf16 %v7905_v38, %v7873_v12  ;;  %v8205_v12 = vld [vmem:[%s23374_s7 + $0xd18] sm:$0xff]  ;;  %v14552_v44 = vpack.c.bf16 %v8204_v4, %v8172_v19  ;;  %v8014_v19 = vld [vmem:[%s23374_s7 + $0x720] sm:$0xff] }
 0x771   : > { %14811 = vmatprep.subr.bf16.mxu1 %v14810_v6  ;;  %v14852_v6 = vpack.c.bf16 %v7904_v42, %v7872_v34  ;;  %v8193_v38 = vld [vmem:[%s23374_s7 + $0xcb8] sm:$0xff]  ;;  %v8192_v42 = vld [vmem:[%s23374_s7 + $0xcb0] sm:$0xff] }
 0x774   : > { %14813 = vmatpush1.bf16.msra.mxu1 %v14812_v41  ;;  %v7981_v41 = vld [vmem:[%s23374_s7 + $0x618] sm:$0xff] }
 0x775   : > { %14847 = vmatprep.subr.bf16.mxu1 %v14846_v0  ;;  %v8013_v0 = vld [vmem:[%s23374_s7 + $0x718] sm:$0xff] }
 0x82a   : > { %v13553_v1 = vpop.f32.mrb[80].mxu1 }
 0x82b   : > { %v7761_v21 = vmul.f32 %v13553_v1, %v13553_v1  ;;  %v7730_v20 = vpop.f32.mrb[81].mxu1 }
 0x82c   : > { %v7753_v10 = vadd.f32 %v13553_v1, %v7730_v20  ;;  %v7760_v61 = vmul.f32 %v7730_v20, %v7730_v20 }
 0x82e   : > { %v7754_v9 = vrot.slane %v7753_v10, 4  ;;  %v7762_v29 = vadd.f32 %v7761_v21, %v7760_v61  ;;  %v8033_v21 = vld [vmem:[%s23374_s7 + $0x7b8] sm:$0xff]  ;;  %v7980_v61 = vld [vmem:[%s23374_s7 + $0x610] sm:$0xff] }
 0x830   : > { %v7755_v43 = vadd.f32 %v7754_v9, %v7753_v10  ;;  %v7763_v35 = vrot.slane %v7762_v29, 4  ;;  %v14856_v10 = vpack.c.bf16 %v7968_v27, %v7936_v47  ;;  %v8012_v9 = vld [vmem:[%s23374_s7 + $0x710] sm:$0xff]  ;;  %v7791_v27 = vld [vmem:[%s23374_s7 + $0x28] sm:$0xff] }
 0x831   : > { %v8288_v47 = vld [vmem:[%s23374_s7 + $0xfb0] sm:$0xff] }
 0x832   : > { %v7756_v60 = vrot.slane %v7755_v43, 2  ;;  %v7764_v24 = vadd.f32 %v7763_v35, %v7762_v29  ;;  %v14538_v29 = vpack.c.bf16 %v8013_v0, %v7981_v41  ;;  %v8000_v35 = vld [vmem:[%s23374_s7 + $0x6b0] sm:$0xff]  ;;  %v7823_v41 = vld [vmem:[%s23374_s7 + $0x128] sm:$0xff]  ;;  %v7813_v0 = vld [vmem:[%s23374_s7 + $0xd8] sm:$0xff] }
 0x834   : > { %v7757_v50 = vadd.f32 %v7756_v60, %v7755_v43  ;;  %v7765_v37 = vrot.slane %v7764_v24, 2  ;;  %v8032_v60 = vld [vmem:[%s23374_s7 + $0x7b0] sm:$0xff] }
 0x836   : > { %v7758_v7 = vrot.slane %v7757_v50, 1  ;;  %v7766_v49 = vadd.f32 %v7765_v37, %v7764_v24  ;;  %v8045_v24 = vld [vmem:[%s23374_s7 + $0x818] sm:$0xff] }
 0x837   : > { %v8065_v37 = vld [vmem:[%s23374_s7 + $0x8b8] sm:$0xff] }
 0x838   : > { %v7759_v31 = vadd.f32 %v7758_v7, %v7757_v50  ;;  %v7767_v39 = vrot.slane %v7766_v49, 1  ;;  %v8077_v50 = vld [vmem:[%s23374_s7 + $0x918] sm:$0xff] }
 0x839   : > { %v8097_v7 = vld [vmem:[%s23374_s7 + $0x9b8] sm:$0xff] }
 0x83a   : > { %v7768_v26 = vadd.f32 %v7767_v39, %v7766_v49  ;;  %v7769_v2 = vmul.f32 0.0625, %v7759_v31  ;;  %v14540_v49 = vpack.c.bf16 %v8012_v9, %v7980_v61  ;;  %v14860_v31 = vpack.c.bf16 %v8032_v60, %v8000_v35  ;;  %v8044_v39 = vld [vmem:[%s23374_s7 + $0x810] sm:$0xff]  ;;  %v7855_v60 = vld [vmem:[%s23374_s7 + $0x228] sm:$0xff] }
 0x83b   : > { %v14558_v61 = vpack.c.bf16 %v7823_v41, %v7791_v27  ;;  %v7844_v35 = vld [vmem:[%s23374_s7 + $0x1d0] sm:$0xff]  ;;  %v8143_v27 = vld [vmem:[%s23374_s7 + $0xb28] sm:$0xff]  ;;  %v8133_v41 = vld [vmem:[%s23374_s7 + $0xad8] sm:$0xff] }
 0x83c   : > { %v7770_v45 = vmul.f32 0.0625, %v7768_v26  ;;  %v7771_v51 = vmul.f32 %v7769_v2, %v7769_v2  ;;  %v7774_v14 = vsub.f32 %v7730_v20, %v7769_v2  ;;  %v7775_v11 = vsub.f32 %v13553_v1, %v7769_v2  ;;  %v8001_v1 = vld [vmem:[%s23374_s7 + $0x6b8] sm:$0xff]  ;;  %v8076_v26 = vld [vmem:[%s23374_s7 + $0x910] sm:$0xff] }
 0x83d   : > { %v14536_v20 = vpack.c.bf16 %v7948_v5, %v7916_v32  ;;  %v14858_v43 = vpack.c.bf16 %v8033_v21, %v8001_v1  ;;  %v14542_v2 = vpack.c.bf16 %v8077_v50, %v8045_v24  ;;  %v14544_v25 = vpack.c.bf16 %v8076_v26, %v8044_v39  ;;  %v8268_v32 = vld [vmem:[%s23374_s7 + $0xf10] sm:$0xff]  ;;  %v7845_v1 = vld [vmem:[%s23374_s7 + $0x1d8] sm:$0xff]  ;;  %v7887_v24 = vld [vmem:[%s23374_s7 + $0x328] sm:$0xff] }
 0x83e   : > { %v7772_v15 = vsub.f32 %v7770_v45, %v7771_v51  ;;  %v14862_v45 = vpack.c.bf16 %v8097_v7, %v8065_v37  ;;  %v8064_v51 = vld [vmem:[%s23374_s7 + $0x8b0] sm:$0xff]  ;;  %v14910_v9 = vpack.c.bf16 %v7845_v1, %v7813_v0  ;;  %v7877_v50 = vld [vmem:[%s23374_s7 + $0x2d8] sm:$0xff]  ;;  %v7886_v39 = vld [vmem:[%s23374_s7 + $0x320] sm:$0xff] }
 0x83f   : > { %v7909_v37 = vld [vmem:[%s23374_s7 + $0x3d8] sm:$0xff]  ;;  %v7876_v26 = vld [vmem:[%s23374_s7 + $0x2d0] sm:$0xff] }
 0x840   : > { %v7773_v33 = vmax.f32 %v7772_v15, 0.0  ;;  %v8141_v15 = vld [vmem:[%s23374_s7 + $0xb18] sm:$0xff] }
 0x841   : > { %v8165_v0 = vld [vmem:[%s23374_s7 + $0xbd8] sm:$0xff] }
 0x842   : > { %v7776_v54 = vadd.f32 1e-05, %v7773_v33  ;;  %v8129_v33 = vld [vmem:[%s23374_s7 + $0xab8] sm:$0xff] }
 0x844   : > { %15912 = vrsqrt.f32 %v7776_v54  ;;  %v8161_v54 = vld [vmem:[%s23374_s7 + $0xbb8] sm:$0xff] }
 0x84e   : > { %v15913_v23 = vpop.eup %15912 }
 0x84f   : > { %v7778_v40 = vmul.f32 %v15913_v23, %v7774_v14  ;;  %v7779_v36 = vmul.f32 %v15913_v23, %v7775_v11  ;;  %v8096_v14 = vld [vmem:[%s23374_s7 + $0x9b0] sm:$0xff]  ;;  %v8109_v11 = vld [vmem:[%s23374_s7 + $0xa18] sm:$0xff] }
 0x850   : > { %v14864_v23 = vpack.c.bf16 %v8096_v14, %v8064_v51  ;;  %v14546_v3 = vpack.c.bf16 %v8141_v15, %v8109_v11  ;;  %v14562_v51 = vpack.c.bf16 %v7887_v24, %v7855_v60  ;;  %v14914_v14 = vpack.c.bf16 %v7909_v37, %v7877_v50  ;;  %v7951_v11 = vld [vmem:[%s23374_s7 + $0x528] sm:$0xff]  ;;  %v7941_v15 = vld [vmem:[%s23374_s7 + $0x4d8] sm:$0xff] }
 0x851   : > { %vm7780_vm12 = vcmp.gt.f32.partialorder %v7778_v40, 0.0  ;;  %v7782_v17 = vmul.f32 0.01, %v7778_v40  ;;  %v7783_v22 = vmul.f32 0.01, %v7779_v36  ;;  %vm7781_vm13 = vcmp.gt.f32.partialorder %v7779_v36, 0.0 }
 0x852   : > { %v8207_v60 = vld [vmem:[%s23374_s7 + $0xd28] sm:$0xff]  ;;  %v8197_v24 = vld [vmem:[%s23374_s7 + $0xcd8] sm:$0xff] }
 0x853   : > { %v21362_v28 = vsel %vm7780_vm12, %v7778_v40, %v7782_v17  ;;  %v21392_v59 = vsel %vm7781_vm13, %v7779_v36, %v7783_v22  ;;  %v14866_v40 = vpack.c.bf16 %v8161_v54, %v8129_v33  ;;  %v8128_v36 = vld [vmem:[%s23374_s7 + $0xab0] sm:$0xff]  ;;  %v8225_v17 = vld [vmem:[%s23374_s7 + $0xdb8] sm:$0xff] }
 0x854   : > { %8363 = vmatmul.mubr.f32.vlgmr.msra.gmra.mrb[80].mxu0 %v21362_v28  ;;  %9056 = vmatmul.mubr.f32.vlgmr.msra.gmra.mrb[82].mxu1 %v21362_v28  ;;  %v14870_v34 = vpack.c.bf16 %v8225_v17, %v8193_v38  ;;  %v8237_v22 = vld [vmem:[%s23374_s7 + $0xe18] sm:$0xff] }
 0x855   : > { %14529 = vmatpush1.bf16.msra.mxu0 %v14528_v55  ;;  %14849 = vmatpush1.bf16.msra.mxu1 %v14848_v46  ;;  %v14548_v55 = vpack.c.bf16 %v8140_v63, %v8108_v52  ;;  %v14868_v46 = vpack.c.bf16 %v8160_v13, %v8128_v36  ;;  %v7973_v33 = vld [vmem:[%s23374_s7 + $0x5d8] sm:$0xff]  ;;  %v7950_v52 = vld [vmem:[%s23374_s7 + $0x520] sm:$0xff]  ;;  %v7972_v36 = vld [vmem:[%s23374_s7 + $0x5d0] sm:$0xff] }
 0x856   : > { %8368 = vmatprep.mubr.f32.mxu0 %v24365_v8  ;;  %14531 = vmatprep.subr.bf16.mxu0 %v14530_v58  ;;  %v14550_v58 = vpack.c.bf16 %v8205_v12, %v8173_v56  ;;  %v7983_v13 = vld [vmem:[%s23374_s7 + $0x628] sm:$0xff]  ;;  %v8005_v12 = vld [vmem:[%s23374_s7 + $0x6d8] sm:$0xff] }
 0x857   : > { %9061 = vmatprep.mubr.f32.mxu1 %v24365_v8  ;;  %14851 = vmatprep.subr.bf16.mxu1 %v14850_v62  ;;  %v8269_v62 = vld [vmem:[%s23374_s7 + $0xf18] sm:$0xff]  ;;  %v8015_v56 = vld [vmem:[%s23374_s7 + $0x728] sm:$0xff] }
 0x858   : > { %8369 = vmatmul.mubr.f32.gmra.mrb[82].mxu0 %v21392_v59  ;;  %9062 = vmatmul.mubr.f32.gmra.mrb[84].mxu1 %v21392_v59  ;;  %v14554_v5 = vpack.c.bf16 %v8269_v62, %v8237_v22  ;;  %v8037_v38 = vld [vmem:[%s23374_s7 + $0x7d8] sm:$0xff]  ;;  %v14570_v4 = vpack.c.bf16 %v8015_v56, %v7983_v13  ;;  %v8079_v22 = vld [vmem:[%s23374_s7 + $0x928] sm:$0xff] }
 0x859   : > { %14533 = vmatpush1.bf16.msra.mxu0 %v14532_v53  ;;  %14853 = vmatpush1.bf16.msra.mxu1 %v14852_v6  ;;  %v14872_v53 = vpack.c.bf16 %v8224_v48, %v8192_v42  ;;  %v8236_v6 = vld [vmem:[%s23374_s7 + $0xe10] sm:$0xff]  ;;  %v8047_v48 = vld [vmem:[%s23374_s7 + $0x828] sm:$0xff]  ;;  %v8069_v62 = vld [vmem:[%s23374_s7 + $0x8d8] sm:$0xff] }
 0x85a   : > { %14535 = vmatprep.subr.bf16.mxu0 %v14534_v16  ;;  %14855 = vmatprep.subr.bf16.mxu1 %v14854_v18  ;;  %v14874_v16 = vpack.c.bf16 %v8289_v57, %v8257_v30  ;;  %v8256_v18 = vld [vmem:[%s23374_s7 + $0xeb0] sm:$0xff]  ;;  %v14556_v21 = vpack.c.bf16 %v8268_v32, %v8236_v6  ;;  %v8101_v30 = vld [vmem:[%s23374_s7 + $0x9d8] sm:$0xff]  ;;  %v8078_v6 = vld [vmem:[%s23374_s7 + $0x920] sm:$0xff]  ;;  %v14574_v32 = vpack.c.bf16 %v8079_v22, %v8047_v48 }
 0x85b   : > { %8439 = vmatprep.mubr.f32.mxu0 %v24365_v8  ;;  %9209 = vmatprep.mubr.f32.mxu1 %v24365_v8  ;;  %v8036_v42 = vld [vmem:[%s23374_s7 + $0x7d0] sm:$0xff]  ;;  %v8229_v50 = vld [vmem:[%s23374_s7 + $0xdd8] sm:$0xff] }
 0x85c   : > { %v7825_v13 = vld [vmem:[%s23374_s7 + $0x138] sm:$0xff] }
 0x85d   : > { %14537 = vmatpush1.bf16.msra.mxu0 %v14536_v20  ;;  %14857 = vmatpush1.bf16.msra.mxu1 %v14856_v10  ;;  %v14876_v20 = vpack.c.bf16 %v8288_v47, %v8256_v18  ;;  %v7790_v10 = vld [vmem:[%s23374_s7 + $0x20] sm:$0xff]  ;;  %v8100_v18 = vld [vmem:[%s23374_s7 + $0x9d0] sm:$0xff]  ;;  %v8111_v47 = vld [vmem:[%s23374_s7 + $0xa28] sm:$0xff] }
 0x85e   : > { %14539 = vmatprep.subr.bf16.mxu0 %v14538_v29  ;;  %14859 = vmatprep.subr.bf16.mxu1 %v14858_v43  ;;  %v7822_v29 = vld [vmem:[%s23374_s7 + $0x120] sm:$0xff]  ;;  %v7812_v43 = vld [vmem:[%s23374_s7 + $0xd0] sm:$0xff]  ;;  %v7817_v56 = vld [vmem:[%s23374_s7 + $0xf8] sm:$0xff] }
 0x85f   : > { %v14560_v7 = vpack.c.bf16 %v7822_v29, %v7790_v10  ;;  %v8142_v10 = vld [vmem:[%s23374_s7 + $0xb20] sm:$0xff]  ;;  %v8132_v29 = vld [vmem:[%s23374_s7 + $0xad0] sm:$0xff]  ;;  %v7889_v48 = vld [vmem:[%s23374_s7 + $0x338] sm:$0xff] }
 0x860   : > { %v7881_v22 = vld [vmem:[%s23374_s7 + $0x2f8] sm:$0xff] }
 0x861   : > { %14541 = vmatpush1.bf16.msra.mxu0 %v14540_v49  ;;  %14861 = vmatpush1.bf16.msra.mxu1 %v14860_v31  ;;  %v14912_v49 = vpack.c.bf16 %v7844_v35, %v7812_v43  ;;  %v7854_v31 = vld [vmem:[%s23374_s7 + $0x220] sm:$0xff]  ;;  %v8164_v43 = vld [vmem:[%s23374_s7 + $0xbd0] sm:$0xff]  ;;  %v8175_v35 = vld [vmem:[%s23374_s7 + $0xc28] sm:$0xff] }
 0x862   : > { %14543 = vmatprep.subr.bf16.mxu0 %v14542_v2  ;;  %14863 = vmatprep.subr.bf16.mxu1 %v14862_v45  ;;  %v7908_v2 = vld [vmem:[%s23374_s7 + $0x3d0] sm:$0xff]  ;;  %v7919_v45 = vld [vmem:[%s23374_s7 + $0x428] sm:$0xff]  ;;  %v14564_v54 = vpack.c.bf16 %v7886_v39, %v7854_v31  ;;  %v8206_v31 = vld [vmem:[%s23374_s7 + $0xd20] sm:$0xff]  ;;  %v14582_v39 = vpack.c.bf16 %v8207_v60, %v8175_v35 }
 0x863   : > { %v14566_v63 = vpack.c.bf16 %v7951_v11, %v7919_v45  ;;  %v8228_v45 = vld [vmem:[%s23374_s7 + $0xdd0] sm:$0xff]  ;;  %v8261_v11 = vld [vmem:[%s23374_s7 + $0xed8] sm:$0xff] }
 0x864   : > { %v8017_v35 = vld [vmem:[%s23374_s7 + $0x738] sm:$0xff] }
 0x865   : > { %14545 = vmatpush1.bf16.msra.mxu0 %v14544_v25  ;;  %14865 = vmatpush1.bf16.msra.mxu1 %v14864_v23  ;;  %v14916_v25 = vpack.c.bf16 %v7908_v2, %v7876_v26  ;;  %v7918_v23 = vld [vmem:[%s23374_s7 + $0x420] sm:$0xff]  ;;  %v14934_v26 = vpack.c.bf16 %v8229_v50, %v8197_v24  ;;  %v8196_v2 = vld [vmem:[%s23374_s7 + $0xcd0] sm:$0xff]  ;;  %v8009_v60 = vld [vmem:[%s23374_s7 + $0x6f8] sm:$0xff] }
 0x866   : > { %14547 = vmatprep.subr.bf16.mxu0 %v14546_v3  ;;  %14867 = vmatprep.subr.bf16.mxu1 %v14866_v40  ;;  %v14918_v3 = vpack.c.bf16 %v7973_v33, %v7941_v15  ;;  %v7940_v40 = vld [vmem:[%s23374_s7 + $0x4d0] sm:$0xff]  ;;  %v14568_v17 = vpack.c.bf16 %v7950_v52, %v7918_v23  ;;  %v8293_v15 = vld [vmem:[%s23374_s7 + $0xfd8] sm:$0xff]  ;;  %v8270_v23 = vld [vmem:[%s23374_s7 + $0xf20] sm:$0xff] }
 0x867   : > { %v8041_v24 = vld [vmem:[%s23374_s7 + $0x7f8] sm:$0xff] }
 0x869   : > { %14549 = vmatpush1.bf16.msra.mxu0 %v14548_v55  ;;  %14869 = vmatpush1.bf16.msra.mxu1 %v14868_v46  ;;  %v14920_v55 = vpack.c.bf16 %v7972_v36, %v7940_v40  ;;  %v7982_v46 = vld [vmem:[%s23374_s7 + $0x620] sm:$0xff]  ;;  %v8292_v40 = vld [vmem:[%s23374_s7 + $0xfd0] sm:$0xff]  ;;  %v7793_v36 = vld [vmem:[%s23374_s7 + $0x38] sm:$0xff] }
 0x86a   : > { %14551 = vmatprep.subr.bf16.mxu0 %v14550_v58  ;;  %14871 = vmatprep.subr.bf16.mxu1 %v14870_v34  ;;  %v14922_v58 = vpack.c.bf16 %v8037_v38, %v8005_v12  ;;  %v8004_v34 = vld [vmem:[%s23374_s7 + $0x6d0] sm:$0xff]  ;;  %v14572_v57 = vpack.c.bf16 %v8014_v19, %v7982_v46  ;;  %v7849_v12 = vld [vmem:[%s23374_s7 + $0x1f8] sm:$0xff]  ;;  %v14590_v46 = vpack.c.bf16 %v7825_v13, %v7793_v36 }
 0x86b   : > { %v14974_v19 = vpack.c.bf16 %v7849_v12, %v7817_v56  ;;  %v8145_v36 = vld [vmem:[%s23374_s7 + $0xb38] sm:$0xff] }
 0x86c   : > { %v8137_v13 = vld [vmem:[%s23374_s7 + $0xaf8] sm:$0xff] }
 0x86d   : > { %14553 = vmatpush1.bf16.msra.mxu0 %v14552_v44  ;;  %14873 = vmatpush1.bf16.msra.mxu1 %v14872_v53  ;;  %v14924_v44 = vpack.c.bf16 %v8036_v42, %v8004_v34  ;;  %v8046_v53 = vld [vmem:[%s23374_s7 + $0x820] sm:$0xff]  ;;  %v7848_v34 = vld [vmem:[%s23374_s7 + $0x1f0] sm:$0xff]  ;;  %v7857_v42 = vld [vmem:[%s23374_s7 + $0x238] sm:$0xff] }
 0x86e   : > { %14555 = vmatprep.subr.bf16.mxu0 %v14554_v5  ;;  %14875 = vmatprep.subr.bf16.mxu1 %v14874_v16  ;;  %v14926_v5 = vpack.c.bf16 %v8101_v30, %v8069_v62  ;;  %v8068_v16 = vld [vmem:[%s23374_s7 + $0x8d0] sm:$0xff]  ;;  %v14576_v1 = vpack.c.bf16 %v8078_v6, %v8046_v53  ;;  %v7913_v62 = vld [vmem:[%s23374_s7 + $0x3f8] sm:$0xff] }
 0x86f   : > { %v7888_v53 = vld [vmem:[%s23374_s7 + $0x330] sm:$0xff]  ;;  %v8169_v56 = vld [vmem:[%s23374_s7 + $0xbf8] sm:$0xff] }
 0x870   : > { %v7880_v6 = vld [vmem:[%s23374_s7 + $0x2f0] sm:$0xff] }
 0x871   : > { %14557 = vmatpush1.bf16.msra.mxu0 %v14556_v21  ;;  %14877 = vmatpush1.bf16.msra.mxu1 %v14876_v20  ;;  %v14928_v21 = vpack.c.bf16 %v8100_v18, %v8068_v16  ;;  %v8110_v20 = vld [vmem:[%s23374_s7 + $0xa20] sm:$0xff]  ;;  %v14594_v16 = vpack.c.bf16 %v7889_v48, %v7857_v42  ;;  %v14978_v18 = vpack.c.bf16 %v7913_v62, %v7881_v22  ;;  %v8209_v42 = vld [vmem:[%s23374_s7 + $0xd38] sm:$0xff] }
 0x872   : > { %14559 = vmatprep.subr.bf16.mxu0 %v14558_v61  ;;  %14911 = vmatprep.subr.bf16.mxu1 %v14910_v9  ;;  %v14578_v61 = vpack.c.bf16 %v8143_v27, %v8111_v47  ;;  %v14930_v9 = vpack.c.bf16 %v8165_v0, %v8133_v41  ;;  %v14580_v37 = vpack.c.bf16 %v8142_v10, %v8110_v20  ;;  %v7953_v47 = vld [vmem:[%s23374_s7 + $0x538] sm:$0xff]  ;;  %v7952_v20 = vld [vmem:[%s23374_s7 + $0x530] sm:$0xff] }
 0x873   : > { %v7945_v27 = vld [vmem:[%s23374_s7 + $0x4f8] sm:$0xff] }
 0x874   : > { %8440 = vmatmul.mubr.f32.vlgmr.msra.gmra.mrb[84].mxu0 %v21362_v28  ;;  %9210 = vmatmul.mubr.f32.vlgmr.msra.gmra.mrb[86].mxu1 %v21362_v28  ;;  %v7977_v41 = vld [vmem:[%s23374_s7 + $0x5f8] sm:$0xff] }
 0x875   : > { %14561 = vmatpush1.bf16.msra.mxu0 %v14560_v7  ;;  %14913 = vmatpush1.bf16.msra.mxu1 %v14912_v49  ;;  %v14932_v7 = vpack.c.bf16 %v8164_v43, %v8132_v29  ;;  %v8174_v49 = vld [vmem:[%s23374_s7 + $0xc20] sm:$0xff]  ;;  %v7976_v29 = vld [vmem:[%s23374_s7 + $0x5f0] sm:$0xff]  ;;  %v7985_v43 = vld [vmem:[%s23374_s7 + $0x638] sm:$0xff] }
 0x876   : > { %8445 = vmatprep.mubr.f32.mxu0 %v24365_v8  ;;  %9215 = vmatprep.mubr.f32.mxu1 %v24365_v8  ;;  %v14584_v33 = vpack.c.bf16 %v8206_v31, %v8174_v49  ;;  %v8016_v49 = vld [vmem:[%s23374_s7 + $0x730] sm:$0xff]  ;;  %v14602_v31 = vpack.c.bf16 %v8017_v35, %v7985_v43  ;;  %v8201_v48 = vld [vmem:[%s23374_s7 + $0xcf8] sm:$0xff]  ;;  %v7827_v43 = vld [vmem:[%s23374_s7 + $0x148] sm:$0xff] }
 0x877   : > { %14563 = vmatprep.subr.bf16.mxu0 %v14562_v51  ;;  %14915 = vmatprep.subr.bf16.mxu1 %v14914_v14  ;;  %v8239_v51 = vld [vmem:[%s23374_s7 + $0xe28] sm:$0xff]  ;;  %v8233_v22 = vld [vmem:[%s23374_s7 + $0xdf8] sm:$0xff] }
 0x878   : > { %8446 = vmatmul.mubr.f32.gmra.mrb[86].mxu0 %v21392_v59  ;;  %9216 = vmatmul.mubr.f32.gmra.mrb[88].mxu1 %v21392_v59  ;;  %v8271_v14 = vld [vmem:[%s23374_s7 + $0xf28] sm:$0xff] }
 0x879   : > { %14565 = vmatpush1.bf16.msra.mxu0 %v14564_v54  ;;  %14917 = vmatpush1.bf16.msra.mxu1 %v14916_v25  ;;  %v14936_v54 = vpack.c.bf16 %v8228_v45, %v8196_v2  ;;  %v8238_v25 = vld [vmem:[%s23374_s7 + $0xe20] sm:$0xff]  ;;  %v14586_v52 = vpack.c.bf16 %v8271_v14, %v8239_v51  ;;  %v8040_v2 = vld [vmem:[%s23374_s7 + $0x7f0] sm:$0xff]  ;;  %v8049_v45 = vld [vmem:[%s23374_s7 + $0x838] sm:$0xff] }
 0x87a   : > { %14567 = vmatprep.subr.bf16.mxu0 %v14566_v63  ;;  %14919 = vmatprep.subr.bf16.mxu1 %v14918_v3  ;;  %v14938_v63 = vpack.c.bf16 %v8293_v15, %v8261_v11  ;;  %v8260_v3 = vld [vmem:[%s23374_s7 + $0xed0] sm:$0xff]  ;;  %v14588_v38 = vpack.c.bf16 %v8270_v23, %v8238_v25  ;;  %v8081_v51 = vld [vmem:[%s23374_s7 + $0x938] sm:$0xff] }
 0x87b   : > { %8516 = vmatprep.mubr.f32.mxu0 %v24365_v8  ;;  %9363 = vmatprep.mubr.f32.mxu1 %v24365_v8  ;;  %v8073_v14 = vld [vmem:[%s23374_s7 + $0x8f8] sm:$0xff]  ;;  %v8080_v25 = vld [vmem:[%s23374_s7 + $0x930] sm:$0xff]  ;;  %v14606_v23 = vpack.c.bf16 %v8081_v51, %v8049_v45  ;;  %v7923_v45 = vld [vmem:[%s23374_s7 + $0x448] sm:$0xff] }
 0x87c   : > { %v8105_v11 = vld [vmem:[%s23374_s7 + $0x9f8] sm:$0xff]  ;;  %v7955_v51 = vld [vmem:[%s23374_s7 + $0x548] sm:$0xff] }
 0x87d   : > { %14569 = vmatpush1.bf16.msra.mxu0 %v14568_v17  ;;  %14921 = vmatpush1.bf16.msra.mxu1 %v14920_v55  ;;  %v14940_v17 = vpack.c.bf16 %v8292_v40, %v8260_v3  ;;  %v7792_v55 = vld [vmem:[%s23374_s7 + $0x30] sm:$0xff]  ;;  %v8113_v40 = vld [vmem:[%s23374_s7 + $0xa38] sm:$0xff] }
 0x87e   : > { %14571 = vmatprep.subr.bf16.mxu0 %v14570_v4  ;;  %14923 = vmatprep.subr.bf16.mxu1 %v14922_v58  ;;  %v7824_v4 = vld [vmem:[%s23374_s7 + $0x130] sm:$0xff] }
 0x87f   : > { %v7816_v58 = vld [vmem:[%s23374_s7 + $0xf0] sm:$0xff]  ;;  %v14592_v30 = vpack.c.bf16 %v7824_v4, %v7792_v55 }
 0x880   : > { %v8104_v3 = vld [vmem:[%s23374_s7 + $0x9f0] sm:$0xff] }
 0x881   : > { %14573 = vmatpush1.bf16.msra.mxu0 %v14572_v57  ;;  %14925 = vmatpush1.bf16.msra.mxu1 %v14924_v44  ;;  %v14976_v57 = vpack.c.bf16 %v7848_v34, %v7816_v58  ;;  %v7856_v44 = vld [vmem:[%s23374_s7 + $0x230] sm:$0xff]  ;;  %v8177_v34 = vld [vmem:[%s23374_s7 + $0xc38] sm:$0xff] }
 0x882   : > { %14575 = vmatprep.subr.bf16.mxu0 %v14574_v32  ;;  %14927 = vmatprep.subr.bf16.mxu1 %v14926_v5  ;;  %v7912_v32 = vld [vmem:[%s23374_s7 + $0x3f0] sm:$0xff]  ;;  %v7921_v5 = vld [vmem:[%s23374_s7 + $0x438] sm:$0xff]  ;;  %v14596_v0 = vpack.c.bf16 %v7888_v53, %v7856_v44  ;;  %v14614_v53 = vpack.c.bf16 %v8209_v42, %v8177_v34  ;;  %v8179_v34 = vld [vmem:[%s23374_s7 + $0xc48] sm:$0xff] }
 0x883   : > { %v14598_v10 = vpack.c.bf16 %v7953_v47, %v7921_v5  ;;  %v8144_v55 = vld [vmem:[%s23374_s7 + $0xb30] sm:$0xff]  ;;  %v8265_v47 = vld [vmem:[%s23374_s7 + $0xef8] sm:$0xff]  ;;  %v8211_v42 = vld [vmem:[%s23374_s7 + $0xd48] sm:$0xff] }
 0x884   : > { %v8136_v4 = vld [vmem:[%s23374_s7 + $0xaf0] sm:$0xff] }
 0x885   : > { %14577 = vmatpush1.bf16.msra.mxu0 %v14576_v1  ;;  %14929 = vmatpush1.bf16.msra.mxu1 %v14928_v21  ;;  %v14980_v1 = vpack.c.bf16 %v7912_v32, %v7880_v6  ;;  %v7920_v21 = vld [vmem:[%s23374_s7 + $0x430] sm:$0xff]  ;;  %v14998_v6 = vpack.c.bf16 %v8233_v22, %v8201_v48  ;;  %v14646_v22 = vpack.c.bf16 %v8211_v42, %v8179_v34  ;;  %v7831_v34 = vld [vmem:[%s23374_s7 + $0x168] sm:$0xff] }
 0x886   : > { %14579 = vmatprep.subr.bf16.mxu0 %v14578_v61  ;;  %14931 = vmatprep.subr.bf16.mxu1 %v14930_v9  ;;  %v14982_v61 = vpack.c.bf16 %v7977_v41, %v7945_v27  ;;  %v7944_v9 = vld [vmem:[%s23374_s7 + $0x4f0] sm:$0xff]  ;;  %v14600_v50 = vpack.c.bf16 %v7952_v20, %v7920_v21  ;;  %v8297_v27 = vld [vmem:[%s23374_s7 + $0xff8] sm:$0xff] }
 0x887   : > { %v8168_v58 = vld [vmem:[%s23374_s7 + $0xbf0] sm:$0xff]  ;;  %v15002_v20 = vpack.c.bf16 %v8297_v27, %v8265_v47 }
 0x888   : > { %v8208_v44 = vld [vmem:[%s23374_s7 + $0xd30] sm:$0xff] }
 0x889   : > { %14581 = vmatpush1.bf16.msra.mxu0 %v14580_v37  ;;  %14933 = vmatpush1.bf16.msra.mxu1 %v14932_v7  ;;  %v14984_v37 = vpack.c.bf16 %v7976_v29, %v7944_v9  ;;  %v7984_v7 = vld [vmem:[%s23374_s7 + $0x630] sm:$0xff]  ;;  %v7795_v29 = vld [vmem:[%s23374_s7 + $0x48] sm:$0xff] }
 0x88a   : > { %14583 = vmatprep.subr.bf16.mxu0 %v14582_v39  ;;  %14935 = vmatprep.subr.bf16.mxu1 %v14934_v26  ;;  %v14986_v39 = vpack.c.bf16 %v8041_v24, %v8009_v60  ;;  %v8008_v26 = vld [vmem:[%s23374_s7 + $0x6f0] sm:$0xff]  ;;  %v14604_v15 = vpack.c.bf16 %v8016_v49, %v7984_v7  ;;  %v14622_v24 = vpack.c.bf16 %v7827_v43, %v7795_v29  ;;  %v7859_v7 = vld [vmem:[%s23374_s7 + $0x248] sm:$0xff]  ;;  %v7925_v29 = vld [vmem:[%s23374_s7 + $0x458] sm:$0xff] }
 0x88b   : > { %v8200_v32 = vld [vmem:[%s23374_s7 + $0xcf0] sm:$0xff]  ;;  %v7891_v49 = vld [vmem:[%s23374_s7 + $0x348] sm:$0xff]  ;;  %v7957_v43 = vld [vmem:[%s23374_s7 + $0x558] sm:$0xff] }
 0x88c   : > { %v8232_v5 = vld [vmem:[%s23374_s7 + $0xdf0] sm:$0xff] }
 0x88d   : > { %14585 = vmatpush1.bf16.msra.mxu0 %v14584_v33  ;;  %14937 = vmatpush1.bf16.msra.mxu1 %v14936_v54  ;;  %v14988_v33 = vpack.c.bf16 %v8040_v2, %v8008_v26  ;;  %v8048_v54 = vld [vmem:[%s23374_s7 + $0x830] sm:$0xff]  ;;  %v7858_v26 = vld [vmem:[%s23374_s7 + $0x240] sm:$0xff] }
 0x88e   : > { %14587 = vmatprep.subr.bf16.mxu0 %v14586_v52  ;;  %14939 = vmatprep.subr.bf16.mxu1 %v14938_v63  ;;  %v14990_v52 = vpack.c.bf16 %v8105_v11, %v8073_v14  ;;  %v8072_v63 = vld [vmem:[%s23374_s7 + $0x8f0] sm:$0xff]  ;;  %v14608_v12 = vpack.c.bf16 %v8080_v25, %v8048_v54  ;;  %v7890_v2 = vld [vmem:[%s23374_s7 + $0x340] sm:$0xff]  ;;  %v14630_v11 = vpack.c.bf16 %v7955_v51, %v7923_v45  ;;  %v7987_v54 = vld [vmem:[%s23374_s7 + $0x648] sm:$0xff] }
 0x88f   : > { %v8296_v9 = vld [vmem:[%s23374_s7 + $0xff0] sm:$0xff]  ;;  %v14628_v14 = vpack.c.bf16 %v7890_v2, %v7858_v26  ;;  %v8019_v25 = vld [vmem:[%s23374_s7 + $0x748] sm:$0xff]  ;;  %v8053_v2 = vld [vmem:[%s23374_s7 + $0x858] sm:$0xff] }
 0x890   : > { %v8020_v26 = vld [vmem:[%s23374_s7 + $0x750] sm:$0xff]  ;;  %v8085_v45 = vld [vmem:[%s23374_s7 + $0x958] sm:$0xff] }
 0x891   : > { %14589 = vmatpush1.bf16.msra.mxu0 %v14588_v38  ;;  %14941 = vmatpush1.bf16.msra.mxu1 %v14940_v17  ;;  %v14992_v38 = vpack.c.bf16 %v8104_v3, %v8072_v63  ;;  %v8112_v17 = vld [vmem:[%s23374_s7 + $0xa30] sm:$0xff]  ;;  %v7986_v63 = vld [vmem:[%s23374_s7 + $0x640] sm:$0xff] }
 0x892   : > { %14591 = vmatprep.subr.bf16.mxu0 %v14590_v46  ;;  %14975 = vmatprep.subr.bf16.mxu1 %v14974_v19  ;;  %v14610_v46 = vpack.c.bf16 %v8145_v36, %v8113_v40  ;;  %v14994_v19 = vpack.c.bf16 %v8169_v56, %v8137_v13  ;;  %v14612_v62 = vpack.c.bf16 %v8144_v55, %v8112_v17  ;;  %v8018_v3 = vld [vmem:[%s23374_s7 + $0x740] sm:$0xff]  ;;  %v8051_v40 = vld [vmem:[%s23374_s7 + $0x848] sm:$0xff] }
 0x893   : > { %v8083_v36 = vld [vmem:[%s23374_s7 + $0x948] sm:$0xff]  ;;  %v14636_v13 = vpack.c.bf16 %v8018_v3, %v7986_v63  ;;  %v8148_v63 = vld [vmem:[%s23374_s7 + $0xb50] sm:$0xff]  ;;  %v8181_v3 = vld [vmem:[%s23374_s7 + $0xc58] sm:$0xff] }
 0x894   : > { %8517 = vmatmul.mubr.f32.vlgmr.msra.gmra.mrb[88].mxu0 %v21362_v28  ;;  %9364 = vmatmul.mubr.f32.vlgmr.msra.gmra.mrb[90].mxu1 %v21362_v28  ;;  %v14638_v56 = vpack.c.bf16 %v8083_v36, %v8051_v40  ;;  %v8115_v17 = vld [vmem:[%s23374_s7 + $0xa48] sm:$0xff]  ;;  %v8213_v40 = vld [vmem:[%s23374_s7 + $0xd58] sm:$0xff] }
 0x895   : > { %14593 = vmatpush1.bf16.msra.mxu0 %v14592_v30  ;;  %14977 = vmatpush1.bf16.msra.mxu1 %v14976_v57  ;;  %v14996_v30 = vpack.c.bf16 %v8168_v58, %v8136_v4  ;;  %v8176_v57 = vld [vmem:[%s23374_s7 + $0xc30] sm:$0xff]  ;;  %v8147_v55 = vld [vmem:[%s23374_s7 + $0xb48] sm:$0xff]  ;;  %v8114_v4 = vld [vmem:[%s23374_s7 + $0xa40] sm:$0xff] }
 0x896   : > { %8522 = vmatprep.mubr.f32.mxu0 %v24365_v8  ;;  %9369 = vmatprep.mubr.f32.mxu1 %v24365_v8  ;;  %v14616_v41 = vpack.c.bf16 %v8208_v44, %v8176_v57  ;;  %v8146_v58 = vld [vmem:[%s23374_s7 + $0xb40] sm:$0xff]  ;;  %v8243_v57 = vld [vmem:[%s23374_s7 + $0xe48] sm:$0xff] }
 0x897   : > { %14595 = vmatprep.subr.bf16.mxu0 %v14594_v16  ;;  %14979 = vmatprep.subr.bf16.mxu1 %v14978_v18  ;;  %v8241_v16 = vld [vmem:[%s23374_s7 + $0xe38] sm:$0xff]  ;;  %v14644_v48 = vpack.c.bf16 %v8146_v58, %v8114_v4  ;;  %v8275_v44 = vld [vmem:[%s23374_s7 + $0xf48] sm:$0xff]  ;;  %v8276_v4 = vld [vmem:[%s23374_s7 + $0xf50] sm:$0xff] }
 0x898   : > { %8523 = vmatmul.mubr.f32.gmra.mrb[90].mxu0 %v21392_v59  ;;  %9370 = vmatmul.mubr.f32.gmra.mrb[92].mxu1 %v21392_v59  ;;  %v8273_v18 = vld [vmem:[%s23374_s7 + $0xf38] sm:$0xff]  ;;  %v7799_v58 = vld [vmem:[%s23374_s7 + $0x68] sm:$0xff] }
 0x899   : > { %14597 = vmatpush1.bf16.msra.mxu0 %v14596_v0  ;;  %14981 = vmatpush1.bf16.msra.mxu1 %v14980_v1  ;;  %v15000_v0 = vpack.c.bf16 %v8232_v5, %v8200_v32  ;;  %v8240_v1 = vld [vmem:[%s23374_s7 + $0xe30] sm:$0xff]  ;;  %v14618_v21 = vpack.c.bf16 %v8273_v18, %v8241_v16  ;;  %v8242_v32 = vld [vmem:[%s23374_s7 + $0xe40] sm:$0xff]  ;;  %v7797_v16 = vld [vmem:[%s23374_s7 + $0x58] sm:$0xff] }
 0x89a   : > { %14599 = vmatprep.subr.bf16.mxu0 %v14598_v10  ;;  %14983 = vmatprep.subr.bf16.mxu1 %v14982_v61  ;;  %v8272_v10 = vld [vmem:[%s23374_s7 + $0xf30] sm:$0xff]  ;;  %v8274_v5 = vld [vmem:[%s23374_s7 + $0xf40] sm:$0xff]  ;;  %v7829_v18 = vld [vmem:[%s23374_s7 + $0x158] sm:$0xff] }
 0x89b   : > { %8593 = vmatprep.mubr.f32.mxu0 %v24365_v8  ;;  %9517 = vmatprep.mubr.f32.mxu1 %v24365_v8  ;;  %v8264_v61 = vld [vmem:[%s23374_s7 + $0xef0] sm:$0xff]  ;;  %v14620_v35 = vpack.c.bf16 %v8272_v10, %v8240_v1  ;;  %v14652_v47 = vpack.c.bf16 %v8274_v5, %v8242_v32  ;;  %v14654_v27 = vpack.c.bf16 %v7829_v18, %v7797_v16  ;;  %v7861_v1 = vld [vmem:[%s23374_s7 + $0x258] sm:$0xff]  ;;  %v7894_v32 = vld [vmem:[%s23374_s7 + $0x360] sm:$0xff] }
 0x89c   : > { %v15004_v60 = vpack.c.bf16 %v8296_v9, %v8264_v61  ;;  %v7860_v61 = vld [vmem:[%s23374_s7 + $0x250] sm:$0xff]  ;;  %v7927_v5 = vld [vmem:[%s23374_s7 + $0x468] sm:$0xff] }
 0x89d   : > { %14601 = vmatpush1.bf16.msra.mxu0 %v14600_v50  ;;  %14985 = vmatpush1.bf16.msra.mxu1 %v14984_v37  ;;  %v7794_v50 = vld [vmem:[%s23374_s7 + $0x40] sm:$0xff]  ;;  %v7892_v9 = vld [vmem:[%s23374_s7 + $0x350] sm:$0xff]  ;;  %v7959_v16 = vld [vmem:[%s23374_s7 + $0x568] sm:$0xff] }
 0x89e   : > { %14603 = vmatprep.subr.bf16.mxu0 %v14602_v31  ;;  %14987 = vmatprep.subr.bf16.mxu1 %v14986_v39  ;;  %v7826_v37 = vld [vmem:[%s23374_s7 + $0x140] sm:$0xff]  ;;  %v14626_v39 = vpack.c.bf16 %v7891_v49, %v7859_v7  ;;  %v8021_v7 = vld [vmem:[%s23374_s7 + $0x758] sm:$0xff] }
 0x89f   : > { %v14624_v31 = vpack.c.bf16 %v7826_v37, %v7794_v50  ;;  %v7956_v50 = vld [vmem:[%s23374_s7 + $0x550] sm:$0xff]  ;;  %v7989_v37 = vld [vmem:[%s23374_s7 + $0x658] sm:$0xff] }
 0x8a1   : > { %14605 = vmatpush1.bf16.msra.mxu0 %v14604_v15  ;;  %14989 = vmatpush1.bf16.msra.mxu1 %v14988_v33  ;;  %v7922_v15 = vld [vmem:[%s23374_s7 + $0x440] sm:$0xff] }
 0x8a2   : > { %14607 = vmatprep.subr.bf16.mxu0 %v14606_v23  ;;  %14991 = vmatprep.subr.bf16.mxu1 %v14990_v52  ;;  %v7954_v33 = vld [vmem:[%s23374_s7 + $0x540] sm:$0xff]  ;;  %v14634_v52 = vpack.c.bf16 %v8019_v25, %v7987_v54  ;;  %v8149_v54 = vld [vmem:[%s23374_s7 + $0xb58] sm:$0xff] }
 0x8a3   : > { %v14632_v23 = vpack.c.bf16 %v7954_v33, %v7922_v15  ;;  %v8084_v15 = vld [vmem:[%s23374_s7 + $0x950] sm:$0xff]  ;;  %v8117_v33 = vld [vmem:[%s23374_s7 + $0xa58] sm:$0xff] }
 0x8a5   : > { %14609 = vmatpush1.bf16.msra.mxu0 %v14608_v12  ;;  %14993 = vmatpush1.bf16.msra.mxu1 %v14992_v38  ;;  %v8050_v12 = vld [vmem:[%s23374_s7 + $0x840] sm:$0xff] }
 0x8a6   : > { %14611 = vmatprep.subr.bf16.mxu0 %v14610_v46  ;;  %14995 = vmatprep.subr.bf16.mxu1 %v14994_v19  ;;  %v8082_v38 = vld [vmem:[%s23374_s7 + $0x940] sm:$0xff]  ;;  %v14642_v19 = vpack.c.bf16 %v8147_v55, %v8115_v17  ;;  %v8277_v17 = vld [vmem:[%s23374_s7 + $0xf58] sm:$0xff] }
 0x8a7   : > { %v14640_v46 = vpack.c.bf16 %v8082_v38, %v8050_v12  ;;  %v8212_v12 = vld [vmem:[%s23374_s7 + $0xd50] sm:$0xff]  ;;  %v8245_v38 = vld [vmem:[%s23374_s7 + $0xe58] sm:$0xff] }
 0x8a9   : > { %14613 = vmatpush1.bf16.msra.mxu0 %v14612_v62  ;;  %14997 = vmatpush1.bf16.msra.mxu1 %v14996_v30  ;;  %v8178_v62 = vld [vmem:[%s23374_s7 + $0xc40] sm:$0xff] }
 0x8aa   : > { %14615 = vmatprep.subr.bf16.mxu0 %v14614_v53  ;;  %14999 = vmatprep.subr.bf16.mxu1 %v14998_v6  ;;  %v8210_v30 = vld [vmem:[%s23374_s7 + $0xd40] sm:$0xff]  ;;  %v14650_v6 = vpack.c.bf16 %v8275_v44, %v8243_v57  ;;  %v7895_v57 = vld [vmem:[%s23374_s7 + $0x368] sm:$0xff] }
 0x8ab   : > { %v14648_v53 = vpack.c.bf16 %v8210_v30, %v8178_v62  ;;  %v7830_v62 = vld [vmem:[%s23374_s7 + $0x160] sm:$0xff]  ;;  %v7863_v30 = vld [vmem:[%s23374_s7 + $0x268] sm:$0xff] }
 0x8ad   : > { %14617 = vmatpush1.bf16.msra.mxu0 %v14616_v41  ;;  %15001 = vmatpush1.bf16.msra.mxu1 %v15000_v0  ;;  %v7796_v41 = vld [vmem:[%s23374_s7 + $0x50] sm:$0xff] }
 0x8ae   : > { %14619 = vmatprep.subr.bf16.mxu0 %v14618_v21  ;;  %15003 = vmatprep.subr.bf16.mxu1 %v15002_v20  ;;  %v7828_v0 = vld [vmem:[%s23374_s7 + $0x150] sm:$0xff]  ;;  %v7893_v21 = vld [vmem:[%s23374_s7 + $0x358] sm:$0xff] }
 0x8af   : > { %v14656_v20 = vpack.c.bf16 %v7828_v0, %v7796_v41  ;;  %v14658_v10 = vpack.c.bf16 %v7893_v21, %v7861_v1  ;;  %v7958_v41 = vld [vmem:[%s23374_s7 + $0x560] sm:$0xff]  ;;  %v7991_v0 = vld [vmem:[%s23374_s7 + $0x668] sm:$0xff] }
 0x8b0   : > { %v8023_v1 = vld [vmem:[%s23374_s7 + $0x768] sm:$0xff] }
 0x8b1   : > { %14621 = vmatpush1.bf16.msra.mxu0 %v14620_v35  ;;  %15005 = vmatpush1.bf16.msra.mxu1 %v15004_v60  ;;  %v14660_v35 = vpack.c.bf16 %v7892_v9, %v7860_v61  ;;  %v14662_v60 = vpack.c.bf16 %v7957_v43, %v7925_v29  ;;  %v8022_v61 = vld [vmem:[%s23374_s7 + $0x760] sm:$0xff]  ;;  %v8055_v9 = vld [vmem:[%s23374_s7 + $0x868] sm:$0xff] }
 0x8b2   : > { %14623 = vmatprep.subr.bf16.mxu0 %v14622_v24  ;;  %v7924_v24 = vld [vmem:[%s23374_s7 + $0x450] sm:$0xff]  ;;  %v8087_v29 = vld [vmem:[%s23374_s7 + $0x968] sm:$0xff] }
 0x8b3   : > { %v14664_v49 = vpack.c.bf16 %v7956_v50, %v7924_v24  ;;  %v8086_v24 = vld [vmem:[%s23374_s7 + $0x960] sm:$0xff]  ;;  %v8119_v50 = vld [vmem:[%s23374_s7 + $0xa68] sm:$0xff] }
 0x8b4   : > { %8594 = vmatmul.mubr.f32.vlgmr.msra.gmra.mrb[92].mxu0 %v21362_v28  ;;  %9518 = vmatmul.mubr.f32.vlgmr.msra.gmra.mrb[94].mxu1 %v21362_v28 }
 0x8b5   : > { %14625 = vmatpush1.bf16.msra.mxu0 %v14624_v31  ;;  %8599 = vmatprep.mubr.f32.mxu0 %v24365_v8  ;;  %v14666_v31 = vpack.c.bf16 %v8021_v7, %v7989_v37  ;;  %v8151_v37 = vld [vmem:[%s23374_s7 + $0xb68] sm:$0xff] }
 0x8b6   : > { %9523 = vmatprep.mubr.f32.mxu1 %v24365_v8  ;;  %14627 = vmatprep.subr.bf16.mxu0 %v14626_v39  ;;  %v7988_v39 = vld [vmem:[%s23374_s7 + $0x650] sm:$0xff] }
 0x8b7   : > { %v14668_v51 = vpack.c.bf16 %v8020_v26, %v7988_v39  ;;  %v8150_v39 = vld [vmem:[%s23374_s7 + $0xb60] sm:$0xff]  ;;  %v8183_v26 = vld [vmem:[%s23374_s7 + $0xc68] sm:$0xff] }
 0x8b8   : > { %8600 = vmatmul.mubr.f32.gmra.mrb[94].mxu0 %v21392_v59  ;;  %9524 = vmatmul.mubr.f32.gmra.mrb[96].mxu1 %v21392_v59 }
 0x8b9   : > { %14629 = vmatpush1.bf16.msra.mxu0 %v14628_v14  ;;  %8670 = vmatprep.mubr.f32.mxu0 %v24365_v8  ;;  %v14670_v14 = vpack.c.bf16 %v8085_v45, %v8053_v2  ;;  %v8215_v2 = vld [vmem:[%s23374_s7 + $0xd68] sm:$0xff] }
 0x8ba   : > { %14631 = vmatprep.subr.bf16.mxu0 %v14630_v11  ;;  %v8052_v11 = vld [vmem:[%s23374_s7 + $0x850] sm:$0xff] }
 0x8bb   : > { %v14672_v25 = vpack.c.bf16 %v8084_v15, %v8052_v11  ;;  %v8214_v11 = vld [vmem:[%s23374_s7 + $0xd60] sm:$0xff]  ;;  %v8247_v15 = vld [vmem:[%s23374_s7 + $0xe68] sm:$0xff] }
 0x8bd   : > { %14633 = vmatpush1.bf16.msra.mxu0 %v14632_v23  ;;  %v14674_v23 = vpack.c.bf16 %v8149_v54, %v8117_v33  ;;  %v8279_v33 = vld [vmem:[%s23374_s7 + $0xf68] sm:$0xff] }
 0x8be   : > { %14635 = vmatprep.subr.bf16.mxu0 %v14634_v52  ;;  %v8116_v52 = vld [vmem:[%s23374_s7 + $0xa50] sm:$0xff] }
 0x8bf   : > { %v14676_v36 = vpack.c.bf16 %v8148_v63, %v8116_v52  ;;  %v8278_v52 = vld [vmem:[%s23374_s7 + $0xf60] sm:$0xff]  ;;  %v7801_v63 = vld [vmem:[%s23374_s7 + $0x78] sm:$0xff] }
 0x8c1   : > { %14637 = vmatpush1.bf16.msra.mxu0 %v14636_v13  ;;  %v14678_v13 = vpack.c.bf16 %v8213_v40, %v8181_v3  ;;  %v7833_v3 = vld [vmem:[%s23374_s7 + $0x178] sm:$0xff] }
 0x8c2   : > { %14639 = vmatprep.subr.bf16.mxu0 %v14638_v56  ;;  %v8180_v56 = vld [vmem:[%s23374_s7 + $0xc50] sm:$0xff] }
 0x8c3   : > { %v14680_v55 = vpack.c.bf16 %v8212_v12, %v8180_v56  ;;  %v7832_v56 = vld [vmem:[%s23374_s7 + $0x170] sm:$0xff]  ;;  %v7865_v12 = vld [vmem:[%s23374_s7 + $0x278] sm:$0xff] }
 0x8c5   : > { %14641 = vmatpush1.bf16.msra.mxu0 %v14640_v46  ;;  %v14682_v46 = vpack.c.bf16 %v8277_v17, %v8245_v38  ;;  %v7897_v38 = vld [vmem:[%s23374_s7 + $0x378] sm:$0xff] }
 0x8c6   : > { %14643 = vmatprep.subr.bf16.mxu0 %v14642_v19  ;;  %v8244_v19 = vld [vmem:[%s23374_s7 + $0xe50] sm:$0xff] }
 0x8c7   : > { %v14684_v42 = vpack.c.bf16 %v8276_v4, %v8244_v19  ;;  %v7896_v19 = vld [vmem:[%s23374_s7 + $0x370] sm:$0xff]  ;;  %v7929_v4 = vld [vmem:[%s23374_s7 + $0x478] sm:$0xff] }
 0x8c9   : > { %14645 = vmatpush1.bf16.msra.mxu0 %v14644_v48  ;;  %v14686_v48 = vpack.c.bf16 %v7831_v34, %v7799_v58  ;;  %v7961_v58 = vld [vmem:[%s23374_s7 + $0x578] sm:$0xff] }
 0x8ca   : > { %14647 = vmatprep.subr.bf16.mxu0 %v14646_v22  ;;  %v7798_v22 = vld [vmem:[%s23374_s7 + $0x60] sm:$0xff] }
 0x8cb   : > { %v14688_v44 = vpack.c.bf16 %v7830_v62, %v7798_v22  ;;  %v7960_v22 = vld [vmem:[%s23374_s7 + $0x570] sm:$0xff]  ;;  %v7993_v62 = vld [vmem:[%s23374_s7 + $0x678] sm:$0xff] }
 0x8cd   : > { %14649 = vmatpush1.bf16.msra.mxu0 %v14648_v53  ;;  %v14690_v53 = vpack.c.bf16 %v7895_v57, %v7863_v30  ;;  %v8025_v30 = vld [vmem:[%s23374_s7 + $0x778] sm:$0xff] }
 0x8ce   : > { %14651 = vmatprep.subr.bf16.mxu0 %v14650_v6  ;;  %v7862_v6 = vld [vmem:[%s23374_s7 + $0x260] sm:$0xff] }
 0x8cf   : > { %v14692_v18 = vpack.c.bf16 %v7894_v32, %v7862_v6  ;;  %v8024_v6 = vld [vmem:[%s23374_s7 + $0x770] sm:$0xff]  ;;  %v8057_v32 = vld [vmem:[%s23374_s7 + $0x878] sm:$0xff] }
 0x8d1   : > { %14653 = vmatpush1.bf16.msra.mxu0 %v14652_v47  ;;  %v14694_v47 = vpack.c.bf16 %v7959_v16, %v7927_v5  ;;  %v8089_v5 = vld [vmem:[%s23374_s7 + $0x978] sm:$0xff] }
 0x8d2   : > { %14655 = vmatprep.subr.bf16.mxu0 %v14654_v27  ;;  %v7926_v27 = vld [vmem:[%s23374_s7 + $0x460] sm:$0xff] }
 0x8d3   : > { %v14696_v21 = vpack.c.bf16 %v7958_v41, %v7926_v27  ;;  %v8088_v27 = vld [vmem:[%s23374_s7 + $0x970] sm:$0xff]  ;;  %v8121_v41 = vld [vmem:[%s23374_s7 + $0xa78] sm:$0xff] }
 0x8d4   : > { %8671 = vmatmul.mubr.f32.vlgmr.msra.gmra.mrb[96].mxu0 %v21362_v28 }
 0x8d5   : > { %14657 = vmatpush1.bf16.msra.mxu0 %v14656_v20  ;;  %8676 = vmatprep.mubr.f32.mxu0 %v24365_v8  ;;  %v14698_v20 = vpack.c.bf16 %v8023_v1, %v7991_v0  ;;  %v8153_v0 = vld [vmem:[%s23374_s7 + $0xb78] sm:$0xff] }
 0x8d6   : > { %14659 = vmatprep.subr.bf16.mxu0 %v14658_v10  ;;  %v7990_v10 = vld [vmem:[%s23374_s7 + $0x660] sm:$0xff] }
 0x8d7   : > { %v14700_v43 = vpack.c.bf16 %v8022_v61, %v7990_v10  ;;  %v8152_v10 = vld [vmem:[%s23374_s7 + $0xb70] sm:$0xff]  ;;  %v8185_v61 = vld [vmem:[%s23374_s7 + $0xc78] sm:$0xff] }
 0x8d8   : > { %8677 = vmatmul.mubr.f32.gmra.mrb[98].mxu0 %v21392_v59 }
 0x8d9   : > { %14661 = vmatpush1.bf16.msra.mxu0 %v14660_v35  ;;  %8747 = vmatprep.mubr.f32.mxu0 %v24365_v8  ;;  %v14702_v35 = vpack.c.bf16 %v8087_v29, %v8055_v9  ;;  %v8217_v9 = vld [vmem:[%s23374_s7 + $0xd78] sm:$0xff] }
 0x8da   : > { %14663 = vmatprep.subr.bf16.mxu0 %v14662_v60  ;;  %v8054_v60 = vld [vmem:[%s23374_s7 + $0x860] sm:$0xff] }
 0x8db   : > { %v14704_v7 = vpack.c.bf16 %v8086_v24, %v8054_v60  ;;  %v8216_v60 = vld [vmem:[%s23374_s7 + $0xd70] sm:$0xff] }
 0x8dd   : > { %14665 = vmatpush1.bf16.msra.mxu0 %v14664_v49  ;;  %v14706_v49 = vpack.c.bf16 %v8151_v37, %v8119_v50  ;;  %v8249_v37 = vld [vmem:[%s23374_s7 + $0xe78] sm:$0xff] }
 0x8de   : > { %14667 = vmatprep.subr.bf16.mxu0 %v14666_v31  ;;  %v8118_v31 = vld [vmem:[%s23374_s7 + $0xa60] sm:$0xff] }
 0x8df   : > { %v14708_v45 = vpack.c.bf16 %v8150_v39, %v8118_v31 }
 0x8e1   : > { %14669 = vmatpush1.bf16.msra.mxu0 %v14668_v51  ;;  %v14710_v51 = vpack.c.bf16 %v8215_v2, %v8183_v26  ;;  %v8248_v2 = vld [vmem:[%s23374_s7 + $0xe70] sm:$0xff] }
 0x8e2   : > { %14671 = vmatprep.subr.bf16.mxu0 %v14670_v14  ;;  %v8182_v14 = vld [vmem:[%s23374_s7 + $0xc60] sm:$0xff] }
 0x8e3   : > { %v14712_v54 = vpack.c.bf16 %v8214_v11, %v8182_v14  ;;  %v7803_v11 = vld [vmem:[%s23374_s7 + $0x88] sm:$0xff] }
 0x8e5   : > { %14673 = vmatpush1.bf16.msra.mxu0 %v14672_v25  ;;  %v14714_v25 = vpack.c.bf16 %v8279_v33, %v8247_v15  ;;  %v7835_v15 = vld [vmem:[%s23374_s7 + $0x188] sm:$0xff] }
 0x8e6   : > { %14675 = vmatprep.subr.bf16.mxu0 %v14674_v23  ;;  %v8246_v23 = vld [vmem:[%s23374_s7 + $0xe60] sm:$0xff] }
 0x8e7   : > { %v14716_v40 = vpack.c.bf16 %v8278_v52, %v8246_v23 }
 0x8e9   : > { %14677 = vmatpush1.bf16.msra.mxu0 %v14676_v36  ;;  %v14718_v36 = vpack.c.bf16 %v7833_v3, %v7801_v63 }
 0x8ea   : > { %14679 = vmatprep.subr.bf16.mxu0 %v14678_v13  ;;  %v7800_v13 = vld [vmem:[%s23374_s7 + $0x70] sm:$0xff] }
 0x8eb   : > { %v14720_v17 = vpack.c.bf16 %v7832_v56, %v7800_v13  ;;  %v7834_v13 = vld [vmem:[%s23374_s7 + $0x180] sm:$0xff]  ;;  %v7867_v56 = vld [vmem:[%s23374_s7 + $0x288] sm:$0xff] }
 0x8ed   : > { %14681 = vmatpush1.bf16.msra.mxu0 %v14680_v55  ;;  %v14722_v55 = vpack.c.bf16 %v7897_v38, %v7865_v12  ;;  %v7899_v12 = vld [vmem:[%s23374_s7 + $0x388] sm:$0xff] }
 0x8ee   : > { %14683 = vmatprep.subr.bf16.mxu0 %v14682_v46  ;;  %v7864_v46 = vld [vmem:[%s23374_s7 + $0x270] sm:$0xff] }
 0x8ef   : > { %v14724_v34 = vpack.c.bf16 %v7896_v19, %v7864_v46  ;;  %v7898_v46 = vld [vmem:[%s23374_s7 + $0x380] sm:$0xff]  ;;  %v7931_v19 = vld [vmem:[%s23374_s7 + $0x488] sm:$0xff] }
 0x8f1   : > { %14685 = vmatpush1.bf16.msra.mxu0 %v14684_v42  ;;  %v14726_v42 = vpack.c.bf16 %v7961_v58, %v7929_v4  ;;  %v7963_v4 = vld [vmem:[%s23374_s7 + $0x588] sm:$0xff] }
 0x8f2   : > { %14687 = vmatprep.subr.bf16.mxu0 %v14686_v48  ;;  %v7928_v48 = vld [vmem:[%s23374_s7 + $0x470] sm:$0xff] }
 0x8f3   : > { %v14728_v57 = vpack.c.bf16 %v7960_v22, %v7928_v48  ;;  %v7962_v48 = vld [vmem:[%s23374_s7 + $0x580] sm:$0xff]  ;;  %v7995_v22 = vld [vmem:[%s23374_s7 + $0x688] sm:$0xff] }
 0x8f4   : > { %8748 = vmatmul.mubr.f32.vlgmr.msra.gmra.mrb[100].mxu0 %v21362_v28 }
 0x8f5   : > { %14689 = vmatpush1.bf16.msra.mxu0 %v14688_v44  ;;  %8753 = vmatprep.mubr.f32.mxu0 %v24365_v8  ;;  %v14730_v44 = vpack.c.bf16 %v8025_v30, %v7993_v62  ;;  %v8027_v62 = vld [vmem:[%s23374_s7 + $0x788] sm:$0xff] }
 0x8f6   : > { %14691 = vmatprep.subr.bf16.mxu0 %v14690_v53  ;;  %v7992_v53 = vld [vmem:[%s23374_s7 + $0x670] sm:$0xff] }
 0x8f7   : > { %v14732_v16 = vpack.c.bf16 %v8024_v6, %v7992_v53  ;;  %v8026_v53 = vld [vmem:[%s23374_s7 + $0x780] sm:$0xff]  ;;  %v8059_v6 = vld [vmem:[%s23374_s7 + $0x888] sm:$0xff] }
 0x8f8   : > { %8754 = vmatmul.mubr.f32.gmra.mrb[102].mxu0 %v21392_v59 }
 0x8f9   : > { %14693 = vmatpush1.bf16.msra.mxu0 %v14692_v18  ;;  %8824 = vmatprep.mubr.f32.mxu0 %v24365_v8  ;;  %v14734_v18 = vpack.c.bf16 %v8089_v5, %v8057_v32  ;;  %v8091_v32 = vld [vmem:[%s23374_s7 + $0x988] sm:$0xff] }
 0x8fa   : > { %14695 = vmatprep.subr.bf16.mxu0 %v14694_v47  ;;  %v8056_v47 = vld [vmem:[%s23374_s7 + $0x870] sm:$0xff] }
 0x8fb   : > { %v14736_v1 = vpack.c.bf16 %v8088_v27, %v8056_v47  ;;  %v8090_v47 = vld [vmem:[%s23374_s7 + $0x980] sm:$0xff]  ;;  %v8123_v27 = vld [vmem:[%s23374_s7 + $0xa88] sm:$0xff] }
 0x8fd   : > { %14697 = vmatpush1.bf16.msra.mxu0 %v14696_v21  ;;  %v14738_v21 = vpack.c.bf16 %v8153_v0, %v8121_v41  ;;  %v8155_v41 = vld [vmem:[%s23374_s7 + $0xb88] sm:$0xff] }
 0x8fe   : > { %14699 = vmatprep.subr.bf16.mxu0 %v14698_v20  ;;  %v8120_v20 = vld [vmem:[%s23374_s7 + $0xa70] sm:$0xff] }
 0x8ff   : > { %v14740_v29 = vpack.c.bf16 %v8152_v10, %v8120_v20  ;;  %v8154_v20 = vld [vmem:[%s23374_s7 + $0xb80] sm:$0xff]  ;;  %v8187_v10 = vld [vmem:[%s23374_s7 + $0xc88] sm:$0xff] }
 0x901   : > { %14701 = vmatpush1.bf16.msra.mxu0 %v14700_v43  ;;  %v14742_v43 = vpack.c.bf16 %v8217_v9, %v8185_v61  ;;  %v8219_v61 = vld [vmem:[%s23374_s7 + $0xd88] sm:$0xff] }
 0x902   : > { %14703 = vmatprep.subr.bf16.mxu0 %v14702_v35  ;;  %v8184_v35 = vld [vmem:[%s23374_s7 + $0xc70] sm:$0xff] }
 0x903   : > { %v14744_v39 = vpack.c.bf16 %v8216_v60, %v8184_v35  ;;  %v8218_v35 = vld [vmem:[%s23374_s7 + $0xd80] sm:$0xff] }
 0x905   : > { %14705 = vmatpush1.bf16.msra.mxu0 %v14704_v7  ;;  %v8281_v7 = vld [vmem:[%s23374_s7 + $0xf78] sm:$0xff] }
 0x906   : > { %14707 = vmatprep.subr.bf16.mxu0 %v14706_v49  ;;  %v14746_v26 = vpack.c.bf16 %v8281_v7, %v8249_v37  ;;  %v8251_v7 = vld [vmem:[%s23374_s7 + $0xe88] sm:$0xff] }
 0x909   : > { %14709 = vmatpush1.bf16.msra.mxu0 %v14708_v45  ;;  %v8280_v45 = vld [vmem:[%s23374_s7 + $0xf70] sm:$0xff] }
 0x90a   : > { %14711 = vmatprep.subr.bf16.mxu0 %v14710_v51  ;;  %v14748_v3 = vpack.c.bf16 %v8280_v45, %v8248_v2 }
 0x90d   : > { %14713 = vmatpush1.bf16.msra.mxu0 %v14712_v54 }
 0x90e   : > { %14715 = vmatprep.subr.bf16.mxu0 %v14714_v25 }
 0x911   : > { %14717 = vmatpush1.bf16.msra.mxu0 %v14716_v40  ;;  %v14750_v40 = vpack.c.bf16 %v7835_v15, %v7803_v11  ;;  %v8250_v15 = vld [vmem:[%s23374_s7 + $0xe80] sm:$0xff] }
 0x912   : > { %14719 = vmatprep.subr.bf16.mxu0 %v14718_v36  ;;  %v7802_v36 = vld [vmem:[%s23374_s7 + $0x80] sm:$0xff] }
 0x913   : > { %v14752_v38 = vpack.c.bf16 %v7834_v13, %v7802_v36  ;;  %v7807_v13 = vld [vmem:[%s23374_s7 + $0xa8] sm:$0xff] }
 0x914   : > { %8825 = vmatmul.mubr.f32.vlgmr.msra.gmra.mrb[104].mxu0 %v21362_v28 }
 0x915   : > { %14721 = vmatpush1.bf16.msra.mxu0 %v14720_v17  ;;  %8830 = vmatprep.mubr.f32.mxu0 %v24365_v8  ;;  %v14754_v17 = vpack.c.bf16 %v7899_v12, %v7867_v56  ;;  %v7839_v56 = vld [vmem:[%s23374_s7 + $0x1a8] sm:$0xff] }
 0x916   : > { %14723 = vmatprep.subr.bf16.mxu0 %v14722_v55  ;;  %v7866_v55 = vld [vmem:[%s23374_s7 + $0x280] sm:$0xff] }
 0x917   : > { %v14756_v58 = vpack.c.bf16 %v7898_v46, %v7866_v55 }
 0x918   : > { %8831 = vmatmul.mubr.f32.gmra.mrb[106].mxu0 %v21392_v59 }
 0x919   : > { %14725 = vmatpush1.bf16.msra.mxu0 %v14724_v34  ;;  %8901 = vmatprep.mubr.f32.mxu0 %v24365_v8  ;;  %v14758_v34 = vpack.c.bf16 %v7963_v4, %v7931_v19 }
 0x91a   : > { %14727 = vmatprep.subr.bf16.mxu0 %v14726_v42  ;;  %v7930_v42 = vld [vmem:[%s23374_s7 + $0x480] sm:$0xff] }
 0x91b   : > { %v14760_v30 = vpack.c.bf16 %v7962_v48, %v7930_v42  ;;  %v7838_v42 = vld [vmem:[%s23374_s7 + $0x1a0] sm:$0xff]  ;;  %v7871_v48 = vld [vmem:[%s23374_s7 + $0x2a8] sm:$0xff] }
 0x91d   : > { %14729 = vmatpush1.bf16.msra.mxu0 %v14728_v57  ;;  %v14762_v57 = vpack.c.bf16 %v8027_v62, %v7995_v22  ;;  %v7903_v22 = vld [vmem:[%s23374_s7 + $0x3a8] sm:$0xff] }
 0x91e   : > { %14731 = vmatprep.subr.bf16.mxu0 %v14730_v44  ;;  %v7994_v44 = vld [vmem:[%s23374_s7 + $0x680] sm:$0xff] }
 0x91f   : > { %v14764_v5 = vpack.c.bf16 %v8026_v53, %v7994_v44  ;;  %v7902_v44 = vld [vmem:[%s23374_s7 + $0x3a0] sm:$0xff]  ;;  %v7935_v53 = vld [vmem:[%s23374_s7 + $0x4a8] sm:$0xff] }
 0x921   : > { %14733 = vmatpush1.bf16.msra.mxu0 %v14732_v16  ;;  %v14766_v16 = vpack.c.bf16 %v8091_v32, %v8059_v6  ;;  %v7967_v6 = vld [vmem:[%s23374_s7 + $0x5a8] sm:$0xff] }
 0x922   : > { %14735 = vmatprep.subr.bf16.mxu0 %v14734_v18  ;;  %v8058_v18 = vld [vmem:[%s23374_s7 + $0x880] sm:$0xff] }
 0x923   : > { %v14768_v0 = vpack.c.bf16 %v8090_v47, %v8058_v18  ;;  %v7966_v18 = vld [vmem:[%s23374_s7 + $0x5a0] sm:$0xff]  ;;  %v7999_v47 = vld [vmem:[%s23374_s7 + $0x6a8] sm:$0xff] }
 0x925   : > { %14737 = vmatpush1.bf16.msra.mxu0 %v14736_v1  ;;  %v14770_v1 = vpack.c.bf16 %v8155_v41, %v8123_v27  ;;  %v8031_v27 = vld [vmem:[%s23374_s7 + $0x7a8] sm:$0xff] }
 0x926   : > { %14739 = vmatprep.subr.bf16.mxu0 %v14738_v21  ;;  %v8122_v21 = vld [vmem:[%s23374_s7 + $0xa80] sm:$0xff] }
 0x927   : > { %v22307_v24 = vpop.f32.mrb[80].mxu0  ;;  %v22309_v50 = vpop.f32.mrb[82].mxu1  ;;  %v14772_v9 = vpack.c.bf16 %v8154_v20, %v8122_v21  ;;  %v8030_v21 = vld [vmem:[%s23374_s7 + $0x7a0] sm:$0xff]  ;;  %v8063_v20 = vld [vmem:[%s23374_s7 + $0x8a8] sm:$0xff] }
 0x928   : > { %v22317_v49 = vpop.f32.mrb[81].mxu0  ;;  %v22319_v31 = vpop.f32.mrb[83].mxu1 }
 0x929   : > { %14741 = vmatpush1.bf16.msra.mxu0 %v14740_v29  ;;  %v14774_v29 = vpack.c.bf16 %v8219_v61, %v8187_v10  ;;  %v8095_v10 = vld [vmem:[%s23374_s7 + $0x9a8] sm:$0xff] }
 0x92a   : > { %14743 = vmatprep.subr.bf16.mxu0 %v14742_v43  ;;  %v8186_v43 = vld [vmem:[%s23374_s7 + $0xc80] sm:$0xff] }
 0x92b   : > { %v22327_v51 = vpop.f32.mrb[82].mxu0  ;;  %v22329_v14 = vpop.f32.mrb[84].mxu1  ;;  %v14776_v45 = vpack.c.bf16 %v8218_v35, %v8186_v43  ;;  %v8094_v43 = vld [vmem:[%s23374_s7 + $0x9a0] sm:$0xff]  ;;  %v8127_v35 = vld [vmem:[%s23374_s7 + $0xaa8] sm:$0xff] }
 0x92c   : > { %v15040_v33 = vpack.c.bf16 %v22327_v51, %v22307_v24  ;;  %v15024_v54 = vpack.c.bf16 %v22329_v14, %v22309_v50  ;;  %v22341_v25 = vpop.f32.mrb[83].mxu0  ;;  %v22343_v23 = vpop.f32.mrb[85].mxu1  ;;  %v11841_v50 = vld [vmem:[%s23373_s6 + $0x2c] sm:$0xf]  ;;  %v11828_v24 = vld [vmem:[%s23373_s6 + $0x8] sm:$0xf] }
 0x92d   : > { %v15038_v52 = vpack.c.bf16 %v22341_v25, %v22317_v49  ;;  %14745 = vmatpush1.bf16.msra.mxu0 %v14744_v39  ;;  %v15022_v63 = vpack.c.bf16 %v22343_v23, %v22319_v31  ;;  %v8283_v39 = vld [vmem:[%s23374_s7 + $0xf88] sm:$0xff]  ;;  %v9530_v49 = vld [vmem:[%s23373_s6] sm:$0xf] }
 0x92e   : > { %14747 = vmatprep.subr.bf16.mxu0 %v14746_v26  ;;  %v14778_v11 = vpack.c.bf16 %v8283_v39, %v8251_v7  ;;  %v8159_v7 = vld [vmem:[%s23374_s7 + $0xba8] sm:$0xff] }
 0x931   : > { %14749 = vmatpush1.bf16.msra.mxu0 %v14748_v3  ;;  %v8282_v3 = vld [vmem:[%s23374_s7 + $0xf80] sm:$0xff] }
 0x932   : > { %14751 = vmatprep.subr.bf16.mxu0 %v14750_v40  ;;  %v14780_v4 = vpack.c.bf16 %v8282_v3, %v8250_v15  ;;  %v8158_v15 = vld [vmem:[%s23374_s7 + $0xba0] sm:$0xff]  ;;  %v8191_v3 = vld [vmem:[%s23374_s7 + $0xca8] sm:$0xff] }
 0x934   : > { %8902 = vmatmul.mubr.f32.vlgmr.msra.gmra.mrb[108].mxu0 %v21362_v28 }
 0x935   : > { %14753 = vmatpush1.bf16.msra.mxu0 %v14752_v38  ;;  %8907 = vmatprep.mubr.f32.mxu0 %v24365_v8 }
 0x936   : > { %14755 = vmatprep.subr.bf16.mxu0 %v14754_v17 }
 0x938   : > { %8908 = vmatmul.mubr.f32.gmra.mrb[110].mxu0 %v21392_v59 }
 0x939   : > { %14757 = vmatpush1.bf16.msra.mxu0 %v14756_v58  ;;  %8978 = vmatprep.mubr.f32.mxu0 %v24365_v8  ;;  %v14814_v58 = vpack.c.bf16 %v7839_v56, %v7807_v13  ;;  %v8223_v13 = vld [vmem:[%s23374_s7 + $0xda8] sm:$0xff] }
 0x93a   : > { %14759 = vmatprep.subr.bf16.mxu0 %v14758_v34  ;;  %v7806_v34 = vld [vmem:[%s23374_s7 + $0xa0] sm:$0xff] }
 0x93b   : > { %v14816_v62 = vpack.c.bf16 %v7838_v42, %v7806_v34  ;;  %v8222_v34 = vld [vmem:[%s23374_s7 + $0xda0] sm:$0xff] }
 0x93d   : > { %14761 = vmatpush1.bf16.msra.mxu0 %v14760_v30  ;;  %v14818_v30 = vpack.c.bf16 %v7903_v22, %v7871_v48  ;;  %v8255_v22 = vld [vmem:[%s23374_s7 + $0xea8] sm:$0xff] }
 0x93e   : > { %14763 = vmatprep.subr.bf16.mxu0 %v14762_v57  ;;  %v7870_v57 = vld [vmem:[%s23374_s7 + $0x2a0] sm:$0xff] }
 0x93f   : > { %v14820_v32 = vpack.c.bf16 %v7902_v44, %v7870_v57 }
 0x941   : > { %14765 = vmatpush1.bf16.msra.mxu0 %v14764_v5  ;;  %v14822_v5 = vpack.c.bf16 %v7967_v6, %v7935_v53  ;;  %v8254_v6 = vld [vmem:[%s23374_s7 + $0xea0] sm:$0xff] }
 0x942   : > { %14767 = vmatprep.subr.bf16.mxu0 %v14766_v16  ;;  %v7934_v16 = vld [vmem:[%s23374_s7 + $0x4a0] sm:$0xff] }
 0x943   : > { %v14824_v41 = vpack.c.bf16 %v7966_v18, %v7934_v16  ;;  %v7811_v18 = vld [vmem:[%s23374_s7 + $0xc8] sm:$0xff] }
 0x945   : > { %14769 = vmatpush1.bf16.msra.mxu0 %v14768_v0  ;;  %v14826_v0 = vpack.c.bf16 %v8031_v27, %v7999_v47  ;;  %v7843_v47 = vld [vmem:[%s23374_s7 + $0x1c8] sm:$0xff] }
 0x946   : > { %14771 = vmatprep.subr.bf16.mxu0 %v14770_v1  ;;  %v7998_v1 = vld [vmem:[%s23374_s7 + $0x6a0] sm:$0xff] }
 0x947   : > { %v22431_v60 = vpop.f32.mrb[84].mxu0  ;;  %v22433_v37 = vpop.f32.mrb[86].mxu1  ;;  %v14828_v61 = vpack.c.bf16 %v8030_v21, %v7998_v1 }
 0x948   : > { %v22441_v26 = vpop.f32.mrb[85].mxu0  ;;  %v22443_v2 = vpop.f32.mrb[87].mxu1 }
 0x949   : > { %14773 = vmatpush1.bf16.msra.mxu0 %v14772_v9  ;;  %v14830_v9 = vpack.c.bf16 %v8095_v10, %v8063_v20 }
 0x94a   : > { %14775 = vmatprep.subr.bf16.mxu0 %v14774_v29  ;;  %v8062_v29 = vld [vmem:[%s23374_s7 + $0x8a0] sm:$0xff] }
 0x94b   : > { %v22451_v40 = vpop.f32.mrb[86].mxu0  ;;  %v22453_v36 = vpop.f32.mrb[88].mxu1  ;;  %v14832_v39 = vpack.c.bf16 %v8094_v43, %v8062_v29  ;;  %v7842_v29 = vld [vmem:[%s23374_s7 + $0x1c0] sm:$0xff]  ;;  %v7875_v43 = vld [vmem:[%s23374_s7 + $0x2c8] sm:$0xff] }
 0x94c   : > { %v15008_v12 = vpack.c.bf16 %v22451_v40, %v22431_v60  ;;  %v15028_v38 = vpack.c.bf16 %v22453_v36, %v22433_v37  ;;  %v22465_v17 = vpop.f32.mrb[87].mxu0  ;;  %v22467_v55 = vpop.f32.mrb[89].mxu1  ;;  %v11847_v36 = vld [vmem:[%s23373_s6 + $0x3c] sm:$0xf] }
 0x94d   : > { %v15006_v46 = vpack.c.bf16 %v22465_v17, %v22441_v26  ;;  %v15026_v19 = vpack.c.bf16 %v22467_v55, %v22443_v2  ;;  %14777 = vmatpush1.bf16.msra.mxu0 %v14776_v45  ;;  %v14834_v45 = vpack.c.bf16 %v8159_v7, %v8127_v35  ;;  %v7907_v35 = vld [vmem:[%s23374_s7 + $0x3c8] sm:$0xff]  ;;  %v11826_v26 = vld [vmem:[%s23373_s6 + $0x4] sm:$0xf] }
 0x94e   : > { %14779 = vmatprep.subr.bf16.mxu0 %v14778_v11  ;;  %v8126_v11 = vld [vmem:[%s23374_s7 + $0xaa0] sm:$0xff] }
 0x94f   : > { %v14836_v56 = vpack.c.bf16 %v8158_v15, %v8126_v11  ;;  %v7906_v11 = vld [vmem:[%s23374_s7 + $0x3c0] sm:$0xff]  ;;  %v7939_v15 = vld [vmem:[%s23374_s7 + $0x4c8] sm:$0xff] }
 0x951   : > { %14781 = vmatpush1.bf16.msra.mxu0 %v14780_v4  ;;  %v14838_v4 = vpack.c.bf16 %v8223_v13, %v8191_v3  ;;  %v7971_v3 = vld [vmem:[%s23374_s7 + $0x5c8] sm:$0xff] }
 0x952   : > { %14815 = vmatprep.subr.bf16.mxu0 %v14814_v58  ;;  %v8190_v58 = vld [vmem:[%s23374_s7 + $0xca0] sm:$0xff] }
 0x953   : > { %v14840_v44 = vpack.c.bf16 %v8222_v34, %v8190_v58  ;;  %v7970_v58 = vld [vmem:[%s23374_s7 + $0x5c0] sm:$0xff]  ;;  %v8003_v34 = vld [vmem:[%s23374_s7 + $0x6c8] sm:$0xff] }
 0x954   : > { %8979 = vmatmul.mubr.f32.vlgmr.msra.gmra.mrb[112].mxu0 %v21362_v28 }
 0x955   : > { %14817 = vmatpush1.bf16.msra.mxu0 %v14816_v62  ;;  %8984 = vmatprep.mubr.f32.mxu0 %v24365_v8  ;;  %v8287_v62 = vld [vmem:[%s23374_s7 + $0xfa8] sm:$0xff] }
 0x956   : > { %14819 = vmatprep.subr.bf16.mxu0 %v14818_v30  ;;  %v14842_v53 = vpack.c.bf16 %v8287_v62, %v8255_v22  ;;  %v8035_v22 = vld [vmem:[%s23374_s7 + $0x7c8] sm:$0xff] }
 0x958   : > { %8985 = vmatmul.mubr.f32.gmra.mrb[114].mxu0 %v21392_v59 }
 0x959   : > { %14821 = vmatpush1.bf16.msra.mxu0 %v14820_v32  ;;  %9132 = vmatprep.mubr.f32.mxu0 %v24365_v8  ;;  %v8286_v32 = vld [vmem:[%s23374_s7 + $0xfa0] sm:$0xff] }
 0x95a   : > { %14823 = vmatprep.subr.bf16.mxu0 %v14822_v5  ;;  %v14844_v10 = vpack.c.bf16 %v8286_v32, %v8254_v6  ;;  %v8034_v6 = vld [vmem:[%s23374_s7 + $0x7c0] sm:$0xff]  ;;  %v8067_v32 = vld [vmem:[%s23374_s7 + $0x8c8] sm:$0xff] }
 0x95d   : > { %14825 = vmatpush1.bf16.msra.mxu0 %v14824_v41 }
 0x95e   : > { %14827 = vmatprep.subr.bf16.mxu0 %v14826_v0 }
 0x961   : > { %14829 = vmatpush1.bf16.msra.mxu0 %v14828_v61  ;;  %v14878_v61 = vpack.c.bf16 %v7843_v47, %v7811_v18  ;;  %v8099_v18 = vld [vmem:[%s23374_s7 + $0x9c8] sm:$0xff] }
 0x962   : > { %14831 = vmatprep.subr.bf16.mxu0 %v14830_v9  ;;  %v7810_v9 = vld [vmem:[%s23374_s7 + $0xc0] sm:$0xff] }
 0x963   : > { %v14880_v7 = vpack.c.bf16 %v7842_v29, %v7810_v9  ;;  %v8098_v9 = vld [vmem:[%s23374_s7 + $0x9c0] sm:$0xff]  ;;  %v8131_v29 = vld [vmem:[%s23374_s7 + $0xac8] sm:$0xff] }
 0x965   : > { %14833 = vmatpush1.bf16.msra.mxu0 %v14832_v39  ;;  %v14882_v39 = vpack.c.bf16 %v7907_v35, %v7875_v43  ;;  %v8163_v43 = vld [vmem:[%s23374_s7 + $0xbc8] sm:$0xff] }
 0x966   : > { %14835 = vmatprep.subr.bf16.mxu0 %v14834_v45  ;;  %v7874_v45 = vld [vmem:[%s23374_s7 + $0x2c0] sm:$0xff] }
 0x967   : > { %v22555_v42 = vpop.f32.mrb[88].mxu0  ;;  %v22557_v48 = vpop.f32.mrb[90].mxu1  ;;  %v14884_v13 = vpack.c.bf16 %v7906_v11, %v7874_v45  ;;  %v8162_v45 = vld [vmem:[%s23374_s7 + $0xbc0] sm:$0xff]  ;;  %v8195_v11 = vld [vmem:[%s23374_s7 + $0xcc8] sm:$0xff] }
 0x968   : > { %v22565_v30 = vpop.f32.mrb[89].mxu0  ;;  %v22567_v57 = vpop.f32.mrb[91].mxu1 }
 0x969   : > { %14837 = vmatpush1.bf16.msra.mxu0 %v14836_v56  ;;  %v14886_v56 = vpack.c.bf16 %v7971_v3, %v7939_v15  ;;  %v8227_v15 = vld [vmem:[%s23374_s7 + $0xdc8] sm:$0xff] }
 0x96a   : > { %14839 = vmatprep.subr.bf16.mxu0 %v14838_v4  ;;  %v7938_v4 = vld [vmem:[%s23374_s7 + $0x4c0] sm:$0xff] }
 0x96b   : > { %v22575_v5 = vpop.f32.mrb[90].mxu0  ;;  %v22577_v16 = vpop.f32.mrb[92].mxu1  ;;  %v14888_v62 = vpack.c.bf16 %v7970_v58, %v7938_v4  ;;  %v8226_v4 = vld [vmem:[%s23374_s7 + $0xdc0] sm:$0xff] }
 0x96c   : > { %v15032_v41 = vpack.c.bf16 %v22577_v16, %v22557_v48  ;;  %v22589_v0 = vpop.f32.mrb[91].mxu0  ;;  %v22591_v1 = vpop.f32.mrb[93].mxu1  ;;  %v24367_v25 = vpack.c.bf16 %v22575_v5, %v22555_v42  ;;  %v11840_v5 = vld [vmem:[%s23373_s6 + $0x28] sm:$0xf] }
 0x96d   : > { %v15030_v20 = vpack.c.bf16 %v22591_v1, %v22567_v57  ;;  %14841 = vmatpush1.bf16.msra.mxu0 %v14840_v44  ;;  %v14890_v44 = vpack.c.bf16 %v8035_v22, %v8003_v34  ;;  %v8259_v22 = vld [vmem:[%s23374_s7 + $0xec8] sm:$0xff]  ;;  %v11837_v57 = vld [vmem:[%s23373_s6 + $0x20] sm:$0xf] }
 0x96e   : > { %14843 = vmatprep.subr.bf16.mxu0 %v14842_v53  ;;  %v8002_v53 = vld [vmem:[%s23374_s7 + $0x6c0] sm:$0xff] }
 0x96f   : > { %v14892_v47 = vpack.c.bf16 %v8034_v6, %v8002_v53 }
 0x971   : > { %14845 = vmatpush1.bf16.msra.mxu0 %v14844_v10  ;;  %v14894_v10 = vpack.c.bf16 %v8099_v18, %v8067_v32  ;;  %v8258_v18 = vld [vmem:[%s23374_s7 + $0xec0] sm:$0xff] }
 0x972   : > { %14879 = vmatprep.subr.bf16.mxu0 %v14878_v61  ;;  %v8066_v61 = vld [vmem:[%s23374_s7 + $0x8c0] sm:$0xff] }
 0x973   : > { %v14896_v35 = vpack.c.bf16 %v8098_v9, %v8066_v61  ;;  %v7815_v9 = vld [vmem:[%s23374_s7 + $0xe8] sm:$0xff] }
 0x974   : > { %9133 = vmatmul.mubr.f32.vlgmr.msra.gmra.mrb[116].mxu0 %v21362_v28 }
 0x975   : > { %14881 = vmatpush1.bf16.msra.mxu0 %v14880_v7  ;;  %9138 = vmatprep.mubr.f32.mxu0 %v24365_v8  ;;  %v14898_v7 = vpack.c.bf16 %v8163_v43, %v8131_v29  ;;  %v7847_v29 = vld [vmem:[%s23374_s7 + $0x1e8] sm:$0xff] }
 0x976   : > { %14883 = vmatprep.subr.bf16.mxu0 %v14882_v39  ;;  %v8130_v39 = vld [vmem:[%s23374_s7 + $0xac0] sm:$0xff] }
 0x977   : > { %v14900_v3 = vpack.c.bf16 %v8162_v45, %v8130_v39 }
 0x978   : > { %9139 = vmatmul.mubr.f32.gmra.mrb[118].mxu0 %v21392_v59 }
 0x979   : > { %14885 = vmatpush1.bf16.msra.mxu0 %v14884_v13  ;;  %9286 = vmatprep.mubr.f32.mxu0 %v24365_v8  ;;  %v14902_v13 = vpack.c.bf16 %v8227_v15, %v8195_v11 }
 0x97a   : > { %14887 = vmatprep.subr.bf16.mxu0 %v14886_v56  ;;  %v8194_v56 = vld [vmem:[%s23374_s7 + $0xcc0] sm:$0xff] }
 0x97b   : > { %v14904_v6 = vpack.c.bf16 %v8226_v4, %v8194_v56  ;;  %v7846_v56 = vld [vmem:[%s23374_s7 + $0x1e0] sm:$0xff]  ;;  %v7879_v4 = vld [vmem:[%s23374_s7 + $0x2e8] sm:$0xff] }
 0x97d   : > { %14889 = vmatpush1.bf16.msra.mxu0 %v14888_v62  ;;  %v8291_v62 = vld [vmem:[%s23374_s7 + $0xfc8] sm:$0xff] }
 0x97e   : > { %14891 = vmatprep.subr.bf16.mxu0 %v14890_v44  ;;  %v14906_v32 = vpack.c.bf16 %v8291_v62, %v8259_v22  ;;  %v7911_v22 = vld [vmem:[%s23374_s7 + $0x3e8] sm:$0xff] }
 0x981   : > { %14893 = vmatpush1.bf16.msra.mxu0 %v14892_v47  ;;  %v8290_v47 = vld [vmem:[%s23374_s7 + $0xfc0] sm:$0xff] }
 0x982   : > { %14895 = vmatprep.subr.bf16.mxu0 %v14894_v10  ;;  %v14908_v15 = vpack.c.bf16 %v8290_v47, %v8258_v18  ;;  %v7910_v18 = vld [vmem:[%s23374_s7 + $0x3e0] sm:$0xff]  ;;  %v7943_v47 = vld [vmem:[%s23374_s7 + $0x4e8] sm:$0xff] }
 0x985   : > { %14897 = vmatpush1.bf16.msra.mxu0 %v14896_v35 }
 0x986   : > { %14899 = vmatprep.subr.bf16.mxu0 %v14898_v7 }
 0x987   : > { %v22679_v58 = vpop.f32.mrb[92].mxu0  ;;  %v22681_v34 = vpop.f32.mrb[94].mxu1 }
 0x988   : > { %v22689_v44 = vpop.f32.mrb[93].mxu0  ;;  %v22691_v53 = vpop.f32.mrb[95].mxu1 }
 0x989   : > { %14901 = vmatpush1.bf16.msra.mxu0 %v14900_v3  ;;  %v14942_v3 = vpack.c.bf16 %v7847_v29, %v7815_v9  ;;  %v7975_v9 = vld [vmem:[%s23374_s7 + $0x5e8] sm:$0xff] }
 0x98a   : > { %14903 = vmatprep.subr.bf16.mxu0 %v14902_v13  ;;  %v7814_v13 = vld [vmem:[%s23374_s7 + $0xe0] sm:$0xff] }
 0x98b   : > { %v22699_v10 = vpop.f32.mrb[94].mxu0  ;;  %v22701_v61 = vpop.f32.mrb[96].mxu1  ;;  %v14944_v62 = vpack.c.bf16 %v7846_v56, %v7814_v13  ;;  %v7974_v13 = vld [vmem:[%s23374_s7 + $0x5e0] sm:$0xff]  ;;  %v8007_v56 = vld [vmem:[%s23374_s7 + $0x6e8] sm:$0xff] }
 0x98c   : > { %v15012_v43 = vpack.c.bf16 %v22699_v10, %v22679_v58  ;;  %v15036_v35 = vpack.c.bf16 %v22701_v61, %v22681_v34  ;;  %v22713_v7 = vpop.f32.mrb[95].mxu0  ;;  %v22715_v39 = vpop.f32.mrb[97].mxu1  ;;  %v11832_v58 = vld [vmem:[%s23373_s6 + $0x14] sm:$0xf] }
 0x98d   : > { %v15010_v45 = vpack.c.bf16 %v22713_v7, %v22689_v44  ;;  %v15034_v11 = vpack.c.bf16 %v22715_v39, %v22691_v53  ;;  %14905 = vmatpush1.bf16.msra.mxu0 %v14904_v6  ;;  %v14946_v6 = vpack.c.bf16 %v7911_v22, %v7879_v4  ;;  %v8039_v4 = vld [vmem:[%s23374_s7 + $0x7e8] sm:$0xff] }
 0x98e   : > { %14907 = vmatprep.subr.bf16.mxu0 %v14906_v32  ;;  %v7878_v32 = vld [vmem:[%s23374_s7 + $0x2e0] sm:$0xff] }
 0x98f   : > { %v14948_v29 = vpack.c.bf16 %v7910_v18, %v7878_v32  ;;  %v8038_v32 = vld [vmem:[%s23374_s7 + $0x7e0] sm:$0xff]  ;;  %v8071_v18 = vld [vmem:[%s23374_s7 + $0x8e8] sm:$0xff] }
 0x991   : > { %14909 = vmatpush1.bf16.msra.mxu0 %v14908_v15  ;;  %v14950_v15 = vpack.c.bf16 %v7975_v9, %v7943_v47  ;;  %v8103_v47 = vld [vmem:[%s23374_s7 + $0x9e8] sm:$0xff] }
 0x992   : > { %14943 = vmatprep.subr.bf16.mxu0 %v14942_v3  ;;  %v7942_v3 = vld [vmem:[%s23374_s7 + $0x4e0] sm:$0xff] }
 0x993   : > { %v14952_v22 = vpack.c.bf16 %v7974_v13, %v7942_v3  ;;  %v8102_v3 = vld [vmem:[%s23374_s7 + $0x9e0] sm:$0xff]  ;;  %v8135_v13 = vld [vmem:[%s23374_s7 + $0xae8] sm:$0xff] }
 0x994   : > { %9287 = vmatmul.mubr.f32.vlgmr.msra.gmra.mrb[120].mxu0 %v21362_v28 }
 0x995   : > { %14945 = vmatpush1.bf16.msra.mxu0 %v14944_v62  ;;  %9292 = vmatprep.mubr.f32.mxu0 %v24365_v8  ;;  %v14954_v62 = vpack.c.bf16 %v8039_v4, %v8007_v56  ;;  %v8167_v56 = vld [vmem:[%s23374_s7 + $0xbe8] sm:$0xff] }
 0x996   : > { %14947 = vmatprep.subr.bf16.mxu0 %v14946_v6  ;;  %v8006_v6 = vld [vmem:[%s23374_s7 + $0x6e0] sm:$0xff] }
 0x997   : > { %v14956_v9 = vpack.c.bf16 %v8038_v32, %v8006_v6  ;;  %v8166_v6 = vld [vmem:[%s23374_s7 + $0xbe0] sm:$0xff]  ;;  %v8199_v32 = vld [vmem:[%s23374_s7 + $0xce8] sm:$0xff] }
 0x998   : > { %9293 = vmatmul.mubr.f32.gmra.mrb[122].mxu0 %v21392_v59 }
 0x999   : > { %14949 = vmatpush1.bf16.msra.mxu0 %v14948_v29  ;;  %9440 = vmatprep.mubr.f32.mxu0 %v24365_v8  ;;  %v14958_v29 = vpack.c.bf16 %v8103_v47, %v8071_v18  ;;  %v8231_v18 = vld [vmem:[%s23374_s7 + $0xde8] sm:$0xff] }
 0x99a   : > { %14951 = vmatprep.subr.bf16.mxu0 %v14950_v15  ;;  %v8070_v15 = vld [vmem:[%s23374_s7 + $0x8e0] sm:$0xff] }
 0x99b   : > { %v14960_v4 = vpack.c.bf16 %v8102_v3, %v8070_v15  ;;  %v8230_v15 = vld [vmem:[%s23374_s7 + $0xde0] sm:$0xff] }
 0x99d   : > { %14953 = vmatpush1.bf16.msra.mxu0 %v14952_v22  ;;  %v14962_v22 = vpack.c.bf16 %v8167_v56, %v8135_v13  ;;  %v8263_v13 = vld [vmem:[%s23374_s7 + $0xee8] sm:$0xff] }
 0x99e   : > { %14955 = vmatprep.subr.bf16.mxu0 %v14954_v62  ;;  %v8134_v62 = vld [vmem:[%s23374_s7 + $0xae0] sm:$0xff]  ;;  %v8295_v56 = vld [vmem:[%s23374_s7 + $0xfe8] sm:$0xff] }
 0x99f   : > { %v14964_v47 = vpack.c.bf16 %v8166_v6, %v8134_v62  ;;  %v14970_v62 = vpack.c.bf16 %v8295_v56, %v8263_v13  ;;  %v8262_v6 = vld [vmem:[%s23374_s7 + $0xee0] sm:$0xff] }
 0x9a1   : > { %14957 = vmatpush1.bf16.msra.mxu0 %v14956_v9  ;;  %v14966_v9 = vpack.c.bf16 %v8231_v18, %v8199_v32  ;;  %v8294_v32 = vld [vmem:[%s23374_s7 + $0xfe0] sm:$0xff] }
 0x9a2   : > { %14959 = vmatprep.subr.bf16.mxu0 %v14958_v29  ;;  %v8198_v29 = vld [vmem:[%s23374_s7 + $0xce0] sm:$0xff] }
 0x9a5   : > { %14961 = vmatpush1.bf16.msra.mxu0 %v14960_v4 }
 0x9a6   : > { %14963 = vmatprep.subr.bf16.mxu0 %v14962_v22  ;;  %v14968_v22 = vpack.c.bf16 %v8230_v15, %v8198_v29 }
 0x9a7   : > { %v22803_v3 = vpop.f32.mrb[96].mxu0 }
 0x9a8   : > { %v22811_v4 = vpop.f32.mrb[97].mxu0 }
 0x9a9   : > { %14965 = vmatpush1.bf16.msra.mxu0 %v14964_v47 }
 0x9aa   : > { %14967 = vmatprep.subr.bf16.mxu0 %v14966_v9  ;;  %v14972_v9 = vpack.c.bf16 %v8294_v32, %v8262_v6  ;;  %v11835_v32 = vld [vmem:[%s23373_s6 + $0x1c] sm:$0xf] }
 0x9ab   : > { %v22819_v18 = vpop.f32.mrb[98].mxu0 }
 0x9ac   : > { %v15048_v27 = vpack.c.bf16 %v22819_v18, %v22803_v3  ;;  %v22823_v21 = vpop.f32.mrb[99].mxu0  ;;  %v11846_v3 = vld [vmem:[%s23373_s6 + $0x38] sm:$0xf] }
 0x9ad   : > { %v15046_v47 = vpack.c.bf16 %v22823_v21, %v22811_v4  ;;  %14969 = vmatpush1.bf16.msra.mxu0 %v14968_v22  ;;  %v10831_v4 = vld [vmem:[%s23375_s8 + $0x80] sm:$0xff] }
 0x9ae   : > { %14971 = vmatprep.subr.bf16.mxu0 %v14970_v62 }
 0x9b1   : > { %14973 = vmatpush1.bf16.msra.mxu0 %v14972_v9  ;;  %v11838_v9 = vld [vmem:[%s23373_s6 + $0x24] sm:$0xf] }
 0x9b2   : > { %15007 = vmatprep.subr.bf16.mxu0 %v15006_v46 }
 0x9b4   : > { %9441 = vmatmul.mubr.f32.vlgmr.msra.gmra.mrb[124].mxu0 %v21362_v28  ;;  %v11829_v28 = vld [vmem:[%s23373_s6 + $0xc] sm:$0xf] }
 0x9b5   : > { %15009 = vmatpush1.bf16.msra.mxu0 %v15008_v12  ;;  %9446 = vmatprep.mubr.f32.mxu0 %v24365_v8 }
 0x9b6   : > { %15011 = vmatprep.subr.bf16.mxu0 %v15010_v45 }
 0x9b8   : > { %9447 = vmatmul.mubr.f32.gmra.mrb[126].mxu0 %v21392_v59 }
 0x9b9   : > { %9601 = vmatprep.mubr.f32.mxu0 %v24365_v8 }
 0x9bc   : > { %11827 = vmatmul.mubr.msk.f32.vlgmr.msra.gmra.mrb[128].mxu0 %vm9533_vm14, %v11826_v26  ;;  %v11874_v26 = vld [vmem:[%s23375_s8 + $0x188] sm:$0xff] }
 0x9bd   : > { %15013 = vmatpush1.bf16.msra.mxu0 %v15012_v43  ;;  %9679 = vmatprep.mubr.f32.mxu0 %v24365_v8 }
 0x9c4   : > { %11830 = vmatmul.mubr.msk.f32.vlgmr.msra.gmra.mrb[128].mxu0 %vm9533_vm14, %v11829_v28  ;;  %v10815_v28 = vld [vmem:[%s23375_s8] sm:$0xff] }
 0x9c5   : > { %9757 = vmatprep.mubr.f32.mxu0 %v24365_v8 }
 0x9c7   : > { %v8749_v59 = vpop.f32.mrb[100].mxu0 }
 0x9c8   : > { %v8751_v60 = vpop.f32.mrb[101].mxu0 }
 0x9cb   : > { %v8755_v40 = vpop.f32.mrb[102].mxu0 }
 0x9cc   : > { %v15016_v12 = vpack.c.bf16 %v8755_v40, %v8749_v59  ;;  %v8757_v17 = vpop.f32.mrb[103].mxu0  ;;  %v11857_v40 = vld [vmem:[%s23375_s8 + $0x100] sm:$0xff] }
 0x9cd   : > { %v15014_v46 = vpack.c.bf16 %v8757_v17, %v8751_v60  ;;  %v10816_v60 = vld [vmem:[%s23375_s8 + $0x8] sm:$0xff] }
 0x9ce   : > { %v15136_v17 = vpack.c.bf16 %v10816_v60, %v10815_v28  ;;  %v11868_v28 = vld [vmem:[%s23375_s8 + $0x158] sm:$0xff]  ;;  %v10844_v60 = vld [vmem:[%s23375_s8 + $0xe8] sm:$0xff] }
 0x9cf   : > { %15015 = vmatprep.subr.bf16.mxu0 %v15014_v46 }
 0x9d0   : > { %15017 = vmatpush1.bf16.msra.mxu0 %v15016_v12  ;;  %v11858_v12 = vld [vmem:[%s23375_s8 + $0x108] sm:$0xff] }
 0x9d1   : > { %v15072_v46 = vpack.c.bf16 %v11858_v12, %v11857_v40  ;;  %v11885_v40 = vld [vmem:[%s23375_s8 + $0x1e0] sm:$0xff]  ;;  %v11886_v12 = vld [vmem:[%s23375_s8 + $0x1e8] sm:$0xff] }
 0x9d3   : > { %11833 = vmatmul.mubr.msk.f32.vlgmr.msra.gmra.mrb[128].mxu0 %vm9533_vm14, %v11832_v58  ;;  %v10833_v58 = vld [vmem:[%s23375_s8 + $0x90] sm:$0xff] }
 0x9d4   : > { %9835 = vmatprep.mubr.f32.mxu0 %v24365_v8 }
 0x9e7   : > { %v8826_v44 = vpop.f32.mrb[104].mxu0 }
 0x9e8   : > { %v8828_v10 = vpop.f32.mrb[105].mxu0 }
 0x9eb   : > { %v8832_v43 = vpop.f32.mrb[106].mxu0 }
 0x9ec   : > { %v15052_v7 = vpack.c.bf16 %v8832_v43, %v8826_v44  ;;  %v8834_v45 = vpop.f32.mrb[107].mxu0  ;;  %v10834_v44 = vld [vmem:[%s23375_s8 + $0x98] sm:$0xff] }
 0x9ed   : > { %v15050_v29 = vpack.c.bf16 %v8834_v45, %v8828_v10  ;;  %v11875_v10 = vld [vmem:[%s23375_s8 + $0x190] sm:$0xff]  ;;  %v15138_v43 = vpack.c.bf16 %v10834_v44, %v10833_v58  ;;  %v10827_v58 = vld [vmem:[%s23375_s8 + $0x60] sm:$0xff]  ;;  %v10828_v44 = vld [vmem:[%s23375_s8 + $0x68] sm:$0xff] }
 0x9ee   : > { %v10817_v45 = vld [vmem:[%s23375_s8 + $0x10] sm:$0xff] }
 0xa07   : > { %v8903_v15 = vpop.f32.mrb[108].mxu0 }
 0xa08   : > { %v8905_v13 = vpop.f32.mrb[109].mxu0 }
 0xa0b   : > { %v8909_v56 = vpop.f32.mrb[110].mxu0 }
 0xa0c   : > { %v15020_v22 = vpack.c.bf16 %v8909_v56, %v8903_v15  ;;  %v8911_v62 = vpop.f32.mrb[111].mxu0  ;;  %v11859_v56 = vld [vmem:[%s23375_s8 + $0x110] sm:$0xff] }
 0xa0d   : > { %v15018_v6 = vpack.c.bf16 %v8911_v62, %v8905_v13  ;;  %v10835_v62 = vld [vmem:[%s23375_s8 + $0xa0] sm:$0xff] }
 0xa0f   : > { %15019 = vmatprep.subr.bf16.mxu0 %v15018_v6 }
 0xa10   : > { %15021 = vmatpush1.bf16.msra.mxu0 %v15020_v22  ;;  %v11860_v22 = vld [vmem:[%s23375_s8 + $0x118] sm:$0xff] }
 0xa11   : > { %15023 = vmatprep.subr.bf16.mxu0 %v15022_v63  ;;  %v15076_v6 = vpack.c.bf16 %v11860_v22, %v11859_v56  ;;  %v11888_v56 = vld [vmem:[%s23375_s8 + $0x1f8] sm:$0xff]  ;;  %v15160_v22 = vpack.c.bf16 %v10828_v44, %v10827_v58 }
 0xa13   : > { %11836 = vmatmul.mubr.msk.f32.vlgmr.msra.gmra.mrb[128].mxu0 %vm9533_vm14, %v11835_v32  ;;  %v10836_v32 = vld [vmem:[%s23375_s8 + $0xa8] sm:$0xff] }
 0xa14   : > { %15025 = vmatpush1.bf16.msra.mxu0 %v15024_v54  ;;  %9913 = vmatprep.mubr.f32.mxu0 %v24365_v8  ;;  %v11844_v54 = vld [vmem:[%s23373_s6 + $0x34] sm:$0xf] }
 0xa15   : > { %15027 = vmatprep.subr.bf16.mxu0 %v15026_v19 }
 0xa1b   : > { %11839 = vmatmul.mubr.msk.f32.vlgmr.msra.gmra.mrb[128].mxu0 %vm9533_vm14, %v11838_v9  ;;  %v11877_v9 = vld [vmem:[%s23375_s8 + $0x1a0] sm:$0xff] }
 0xa1c   : > { %15029 = vmatpush1.bf16.msra.mxu0 %v15028_v38  ;;  %9991 = vmatprep.mubr.f32.mxu0 %v24365_v8  ;;  %v24366_v38 = vpack.c.bf16 %v22589_v0, %v22565_v30  ;;  %v11834_v30 = vld [vmem:[%s23373_s6 + $0x18] sm:$0xf] }
 0xa1d   : > { %15031 = vmatprep.subr.bf16.mxu0 %v15030_v20  ;;  %v11843_v20 = vld [vmem:[%s23373_s6 + $0x30] sm:$0xf] }
 0xa23   : > { %11842 = vmatmul.mubr.msk.f32.vlgmr.msra.gmra.mrb[128].mxu0 %vm9533_vm14, %v11841_v50  ;;  %v11878_v50 = vld [vmem:[%s23375_s8 + $0x1a8] sm:$0xff] }
 0xa24   : > { %15033 = vmatpush1.bf16.msra.mxu0 %v15032_v41  ;;  %10069 = vmatprep.mubr.f32.mxu0 %v24365_v8 }
 0xa25   : > { %15035 = vmatprep.subr.bf16.mxu0 %v15034_v11 }
 0xa27   : > { %v8980_v31 = vpop.f32.mrb[112].mxu0 }
 0xa28   : > { %v8982_v14 = vpop.f32.mrb[113].mxu0 }
 0xa2b   : > { %v8986_v23 = vpop.f32.mrb[114].mxu0  ;;  %11845 = vmatmul.mubr.msk.f32.vlgmr.msra.gmra.mrb[128].mxu0 %vm9533_vm14, %v11844_v54  ;;  %v10819_v54 = vld [vmem:[%s23375_s8 + $0x20] sm:$0xff] }
 0xa2c   : > { %v15056_v63 = vpack.c.bf16 %v8986_v23, %v8980_v31  ;;  %15037 = vmatpush1.bf16.msra.mxu0 %v15036_v35  ;;  %v8988_v37 = vpop.f32.mrb[115].mxu0  ;;  %10147 = vmatprep.mubr.f32.mxu0 %v24365_v8  ;;  %v15142_v31 = vpack.c.bf16 %v10836_v32, %v10835_v62  ;;  %v10820_v23 = vld [vmem:[%s23375_s8 + $0x28] sm:$0xff] }
 0xa2d   : > { %v15054_v2 = vpack.c.bf16 %v8988_v37, %v8982_v14  ;;  %15039 = vmatprep.subr.bf16.mxu0 %v15038_v52  ;;  %v11831_v52 = vld [vmem:[%s23373_s6 + $0x10] sm:$0xf]  ;;  %v15078_v14 = vpack.c.bf16 %v11878_v50, %v11877_v9  ;;  %v11862_v37 = vld [vmem:[%s23375_s8 + $0x128] sm:$0xff]  ;;  %v10830_v50 = vld [vmem:[%s23375_s8 + $0x78] sm:$0xff] }
 0xa33   : > { %11848 = vmatmul.mubr.msk.f32.vlgmr.msra.gmra.mrb[128].mxu0 %vm9533_vm14, %v11847_v36  ;;  %v10838_v36 = vld [vmem:[%s23375_s8 + $0xb8] sm:$0xff] }
 0xa34   : > { %15041 = vmatpush1.bf16.msra.mxu0 %v15040_v33  ;;  %10221 = vmatprep.mubr.f32.mxu0 %v24365_v8 }
 0xa35   : > { %15043 = vmatprep.subr.bf16.mxu0 %v24366_v38  ;;  %v15144_v38 = vpack.c.bf16 %v10820_v23, %v10819_v54  ;;  %v11937_v54 = vld [vmem:[%s23375_s8 + $0x380] sm:$0xff]  ;;  %v11938_v23 = vld [vmem:[%s23375_s8 + $0x388] sm:$0xff] }
 0xa3b   : > { %11849 = vmatmul.mubr.msk.f32.vlgmr.msra.gmra.mrb[128].mxu0 %vm9533_vm14, %v9530_v49 }
 0xa3c   : > { %15045 = vmatpush1.bf16.msra.mxu0 %v24367_v25  ;;  %10295 = vmatprep.mubr.f32.mxu0 %v24365_v8  ;;  %v11879_v25 = vld [vmem:[%s23375_s8 + $0x1b0] sm:$0xff] }
 0xa3d   : > { %15047 = vmatprep.subr.bf16.mxu0 %v15046_v47  ;;  %v11873_v47 = vld [vmem:[%s23375_s8 + $0x180] sm:$0xff] }
 0xa3e   : > { %v15070_v59 = vpack.c.bf16 %v11874_v26, %v11873_v47  ;;  %v11867_v26 = vld [vmem:[%s23375_s8 + $0x150] sm:$0xff] }
 0xa40   : > { %15071 = vmatprep.subr.bf16.mxu1 %v15070_v59  ;;  %v10843_v59 = vld [vmem:[%s23375_s8 + $0xe0] sm:$0xff] }
 0xa41   : > { %15073 = vmatpush3.bf16.msra.mxu1 %v15072_v46  ;;  %v15092_v46 = vpack.c.bf16 %v11868_v28, %v11867_v26 }
 0xa43   : > { %11850 = vmatmul.mubr.msk.f32.vlgmr.msra.gmra.mrb[128].mxu0 %vm9533_vm14, %v11828_v24  ;;  %v11880_v24 = vld [vmem:[%s23375_s8 + $0x1b8] sm:$0xff] }
 0xa44   : > { %15049 = vmatpush1.bf16.msra.mxu0 %v15048_v27  ;;  %10369 = vmatprep.mubr.f32.mxu0 %v24365_v8 }
 0xa45   : > { %15051 = vmatprep.subr.bf16.mxu0 %v15050_v29  ;;  %v10818_v29 = vld [vmem:[%s23375_s8 + $0x18] sm:$0xff] }
 0xa46   : > { %v15140_v13 = vpack.c.bf16 %v10818_v29, %v10817_v45  ;;  %v11870_v45 = vld [vmem:[%s23375_s8 + $0x168] sm:$0xff]  ;;  %v10845_v29 = vld [vmem:[%s23375_s8 + $0xf0] sm:$0xff] }
 0xa47   : > { %v9134_v51 = vpop.f32.mrb[116].mxu0 }
 0xa48   : > { %v9136_v33 = vpop.f32.mrb[117].mxu0 }
 0xa4b   : > { %v9140_v55 = vpop.f32.mrb[118].mxu0  ;;  %11851 = vmatmul.mubr.msk.f32.vlgmr.msra.gmra.mrb[128].mxu0 %vm9533_vm14, %v11831_v52  ;;  %v15082_v52 = vpack.c.bf16 %v11880_v24, %v11879_v25 }
 0xa4c   : > { %v15060_v19 = vpack.c.bf16 %v9140_v55, %v9134_v51  ;;  %15053 = vmatpush1.bf16.msra.mxu0 %v15052_v7  ;;  %v9142_v42 = vpop.f32.mrb[119].mxu0  ;;  %10443 = vmatprep.mubr.f32.mxu0 %v24365_v8  ;;  %v11876_v7 = vld [vmem:[%s23375_s8 + $0x198] sm:$0xff]  ;;  %v10821_v51 = vld [vmem:[%s23375_s8 + $0x30] sm:$0xff] }
 0xa4d   : > { %v15058_v48 = vpack.c.bf16 %v9142_v42, %v9136_v33  ;;  %15055 = vmatprep.subr.bf16.mxu0 %v15054_v2  ;;  %v15074_v15 = vpack.c.bf16 %v11876_v7, %v11875_v10  ;;  %v10837_v2 = vld [vmem:[%s23375_s8 + $0xb0] sm:$0xff]  ;;  %v10822_v55 = vld [vmem:[%s23375_s8 + $0x38] sm:$0xff]  ;;  %v15158_v10 = vpack.c.bf16 %v10844_v60, %v10843_v59  ;;  %v11869_v7 = vld [vmem:[%s23375_s8 + $0x160] sm:$0xff] }
 0xa4e   : > { %v15146_v33 = vpack.c.bf16 %v10838_v36, %v10837_v2  ;;  %v11864_v42 = vld [vmem:[%s23375_s8 + $0x138] sm:$0xff]  ;;  %v15096_v62 = vpack.c.bf16 %v11870_v45, %v11869_v7  ;;  %v15102_v2 = vpack.c.bf16 %v11938_v23, %v11937_v54 }
 0xa4f   : > { %15075 = vmatprep.subr.bf16.mxu1 %v15074_v15  ;;  %v10846_v15 = vld [vmem:[%s23375_s8 + $0xf8] sm:$0xff] }
 0xa50   : > { %15077 = vmatpush3.bf16.msra.mxu1 %v15076_v6  ;;  %v10829_v6 = vld [vmem:[%s23375_s8 + $0x70] sm:$0xff]  ;;  %v15162_v32 = vpack.c.bf16 %v10846_v15, %v10845_v29 }
 0xa51   : > { %15079 = vmatprep.subr.bf16.mxu1 %v15078_v14  ;;  %v11872_v14 = vld [vmem:[%s23375_s8 + $0x178] sm:$0xff] }
 0xa53   : > { %11852 = vmatmul.mubr.msk.f32.vlgmr.msra.gmra.mrb[128].mxu0 %vm9533_vm14, %v11834_v30  ;;  %v10840_v30 = vld [vmem:[%s23375_s8 + $0xc8] sm:$0xff] }
 0xa54   : > { %15057 = vmatpush1.bf16.msra.mxu0 %v15056_v63  ;;  %10517 = vmatprep.mubr.f32.mxu0 %v24365_v8  ;;  %v11861_v63 = vld [vmem:[%s23375_s8 + $0x120] sm:$0xff] }
 0xa55   : > { %15059 = vmatprep.subr.bf16.mxu0 %v15058_v48  ;;  %v15080_v49 = vpack.c.bf16 %v11862_v37, %v11861_v63  ;;  %v10839_v48 = vld [vmem:[%s23375_s8 + $0xc0] sm:$0xff]  ;;  %v15164_v63 = vpack.c.bf16 %v10830_v50, %v10829_v6  ;;  %v11922_v6 = vld [vmem:[%s23375_s8 + $0x308] sm:$0xff]  ;;  %v11940_v50 = vld [vmem:[%s23375_s8 + $0x398] sm:$0xff] }
 0xa57   : > { %15081 = vmatpush3.bf16.msra.mxu1 %v15080_v49 }
 0xa58   : > { %15083 = vmatprep.subr.bf16.mxu1 %v15082_v52 }
 0xa5b   : > { %11853 = vmatmul.mubr.msk.f32.vlgmr.msra.gmra.mrb[128].mxu0 %vm9533_vm14, %v11837_v57  ;;  %v11881_v57 = vld [vmem:[%s23375_s8 + $0x1c0] sm:$0xff] }
 0xa5c   : > { %15061 = vmatpush1.bf16.msra.mxu0 %v15060_v19  ;;  %10591 = vmatprep.mubr.f32.mxu0 %v24365_v8  ;;  %v11863_v19 = vld [vmem:[%s23375_s8 + $0x130] sm:$0xff] }
 0xa63   : > { %11854 = vmatmul.mubr.msk.f32.vlgmr.msra.gmra.mrb[128].mxu0 %vm9533_vm14, %v11840_v5  ;;  %v11882_v5 = vld [vmem:[%s23375_s8 + $0x1c8] sm:$0xff] }
 0xa64   : > { %10665 = vmatprep.mubr.f32.mxu0 %v24365_v8 }
 0xa67   : > { %v9288_v16 = vpop.f32.mrb[120].mxu0 }
 0xa68   : > { %v9290_v27 = vpop.f32.mrb[121].mxu0 }
 0xa6b   : > { %v9294_v41 = vpop.f32.mrb[122].mxu0 }
 0xa6c   : > { %v15064_v0 = vpack.c.bf16 %v9294_v41, %v9288_v16  ;;  %v9296_v1 = vpop.f32.mrb[123].mxu0  ;;  %v15148_v16 = vpack.c.bf16 %v10822_v55, %v10821_v51  ;;  %v10823_v41 = vld [vmem:[%s23375_s8 + $0x40] sm:$0xff] }
 0xa6d   : > { %v15062_v21 = vpack.c.bf16 %v9296_v1, %v9290_v27  ;;  %v15084_v27 = vpack.c.bf16 %v11864_v42, %v11863_v19  ;;  %v15150_v1 = vpack.c.bf16 %v10840_v30, %v10839_v48 }
 0xa6f   : > { %15063 = vmatprep.subr.bf16.mxu0 %v15062_v21  ;;  %v15086_v21 = vpack.c.bf16 %v11882_v5, %v11881_v57  ;;  %15085 = vmatpush3.bf16.msra.mxu1 %v15084_v27 }
 0xa70   : > { %15065 = vmatpush1.bf16.msra.mxu0 %v15064_v0  ;;  %v10824_v0 = vld [vmem:[%s23375_s8 + $0x48] sm:$0xff] }
 0xa71   : > { %15087 = vmatprep.subr.bf16.mxu1 %v15086_v21 }
 0xa73   : > { %11855 = vmatmul.mubr.msk.f32.vlgmr.msra.gmra.mrb[128].mxu0 %vm9533_vm14, %v11843_v20  ;;  %v11865_v20 = vld [vmem:[%s23375_s8 + $0x140] sm:$0xff] }
 0xa74   : > { %10739 = vmatprep.mubr.f32.mxu0 %v24365_v8  ;;  %v10832_v8 = vld [vmem:[%s23375_s8 + $0x88] sm:$0xff] }
 0xa75   : > { %v15134_v18 = vpack.c.bf16 %v10832_v8, %v10831_v4  ;;  %v10825_v4 = vld [vmem:[%s23375_s8 + $0x50] sm:$0xff]  ;;  %v10826_v8 = vld [vmem:[%s23375_s8 + $0x58] sm:$0xff] }
 0xa87   : > { %v9442_v34 = vpop.f32.mrb[124].mxu0 }
 0xa88   : > { %v9444_v53 = vpop.f32.mrb[125].mxu0 }
 0xa8b   : > { %v9448_v61 = vpop.f32.mrb[126].mxu0 }
 0xa8c   : > { %v15068_v35 = vpack.c.bf16 %v9448_v61, %v9442_v34  ;;  %v9450_v39 = vpop.f32.mrb[127].mxu0  ;;  %v11866_v34 = vld [vmem:[%s23375_s8 + $0x148] sm:$0xff]  ;;  %v10842_v61 = vld [vmem:[%s23375_s8 + $0xd8] sm:$0xff] }
 0xa8d   : > { %v15066_v11 = vpack.c.bf16 %v9450_v39, %v9444_v53  ;;  %v10841_v53 = vld [vmem:[%s23375_s8 + $0xd0] sm:$0xff]  ;;  %v11884_v39 = vld [vmem:[%s23375_s8 + $0x1d8] sm:$0xff] }
 0xa8f   : > { %15067 = vmatprep.subr.bf16.mxu0 %v15066_v11  ;;  %v15152_v11 = vpack.c.bf16 %v10824_v0, %v10823_v41 }
 0xa90   : > { %15069 = vmatpush1.bf16.msra.mxu0 %v15068_v35  ;;  %v11883_v35 = vld [vmem:[%s23375_s8 + $0x1d0] sm:$0xff] }
 0xa91   : > { %15135 = vmatprep.subr.bf16.mxu0 %v15134_v18  ;;  %v15154_v18 = vpack.c.bf16 %v10842_v61, %v10841_v53  ;;  %v15090_v47 = vpack.c.bf16 %v11884_v39, %v11883_v35 }
 0xa93   : > { %11856 = vmatmul.mubr.msk.f32.vlgmr.msra.gmra.mrb[128].mxu0 %vm9533_vm14, %v11846_v3  ;;  %v15088_v3 = vpack.c.bf16 %v11866_v34, %v11865_v20 }
 0xa94   : > { %15137 = vmatpush3.bf16.msra.mxu0 %v15136_v17  ;;  %v15156_v17 = vpack.c.bf16 %v10826_v8, %v10825_v4 }
 0xa95   : > { %15139 = vmatprep.subr.bf16.mxu0 %v15138_v43  ;;  %15089 = vmatpush3.bf16.msra.mxu1 %v15088_v3  ;;  %v15094_v43 = vpack.c.bf16 %v11886_v12, %v11885_v40 }
 0xa96   : > { %15091 = vmatprep.subr.bf16.mxu1 %v15090_v47 }
 0xa98   : > { %15141 = vmatpush3.bf16.msra.mxu0 %v15140_v13  ;;  %v11887_v13 = vld [vmem:[%s23375_s8 + $0x1f0] sm:$0xff] }
 0xa99   : > { %15143 = vmatprep.subr.bf16.mxu0 %v15142_v31  ;;  %15093 = vmatpush3.bf16.msra.mxu1 %v15092_v46  ;;  %v15098_v9 = vpack.c.bf16 %v11888_v56, %v11887_v13  ;;  %v11871_v31 = vld [vmem:[%s23375_s8 + $0x170] sm:$0xff] }
 0xa9a   : > { %15095 = vmatprep.subr.bf16.mxu1 %v15094_v43  ;;  %v15100_v37 = vpack.c.bf16 %v11872_v14, %v11871_v31 }
 0xa9c   : > { %15145 = vmatpush3.bf16.msra.mxu0 %v15144_v38 }
 0xa9d   : > { %15147 = vmatprep.subr.bf16.mxu0 %v15146_v33  ;;  %15097 = vmatpush3.bf16.msra.mxu1 %v15096_v62  ;;  %v11921_v62 = vld [vmem:[%s23375_s8 + $0x300] sm:$0xff] }
 0xa9e   : > { %15099 = vmatprep.subr.bf16.mxu1 %v15098_v9  ;;  %v11939_v9 = vld [vmem:[%s23375_s8 + $0x390] sm:$0xff]  ;;  %v15104_v54 = vpack.c.bf16 %v11922_v6, %v11921_v62  ;;  %v11910_v62 = vld [vmem:[%s23375_s8 + $0x2a8] sm:$0xff] }
 0xaa0   : > { %15149 = vmatpush3.bf16.msra.mxu0 %v15148_v16 }
 0xaa1   : > { %15151 = vmatprep.subr.bf16.mxu0 %v15150_v1  ;;  %15101 = vmatpush3.bf16.msra.mxu1 %v15100_v37  ;;  %v11923_v37 = vld [vmem:[%s23375_s8 + $0x310] sm:$0xff] }
 0xaa2   : > { %15103 = vmatprep.subr.bf16.mxu1 %v15102_v2  ;;  %v11924_v2 = vld [vmem:[%s23375_s8 + $0x318] sm:$0xff] }
 0xaa4   : > { %15153 = vmatpush3.bf16.msra.mxu0 %v15152_v11 }
 0xaa5   : > { %15155 = vmatprep.subr.bf16.mxu0 %v15154_v18 }
 0xaa8   : > { %15157 = vmatpush3.bf16.msra.mxu0 %v15156_v17 }
 0xaa9   : > { %15159 = vmatprep.subr.bf16.mxu0 %v15158_v10 }
 0xaac   : > { %15161 = vmatpush3.bf16.msra.mxu0 %v15160_v22 }
 0xaad   : > { %15163 = vmatprep.subr.bf16.mxu0 %v15162_v32 }
 0xab0   : > { %15165 = vmatpush3.bf16.msra.mxu0 %v15164_v63  ;;  %v15106_v63 = vpack.c.bf16 %v11940_v50, %v11939_v9  ;;  %v11893_v50 = vld [vmem:[%s23375_s8 + $0x220] sm:$0xff] }
 0xb66   : > { %v10741_v36 = vpop.f32.mrb[128].mxu0 }
 0xb67   : > { %v10761_v38 = vsel %vm10760_vm15, %v10741_v36, 0.0  ;;  %v10775_v49 = vmul.f32 %v10741_v36, %v10741_v36  ;;  %v10743_v25 = vpop.f32.mrb[129].mxu0 }
 0xb68   : > { %v10762_v24 = vrot.slane %v10761_v38, 4  ;;  %v10768_v51 = vsel %vm10760_vm15, %v10743_v25, 0.0  ;;  %v10776_v33 = vmul.f32 %v10743_v25, %v10743_v25 }
 0xb69   : > { %v10777_v52 = vsel %vm10760_vm15, %v10775_v49, 0.0  ;;  %v10769_v55 = vrot.slane %v10768_v51, 4  ;;  %v11942_v49 = vld [vmem:[%s23375_s8 + $0x3a8] sm:$0xff] }
 0xb6a   : > { %v10763_v19 = vadd.f32 %v10762_v24, %v10761_v38  ;;  %v10778_v42 = vrot.slane %v10777_v52, 4  ;;  %v10784_v48 = vsel %vm10760_vm15, %v10776_v33, 0.0  ;;  %v11941_v38 = vld [vmem:[%s23375_s8 + $0x3a0] sm:$0xff]  ;;  %v11926_v33 = vld [vmem:[%s23375_s8 + $0x328] sm:$0xff] }
 0xb6b   : > { %v10770_v30 = vadd.f32 %v10769_v55, %v10768_v51  ;;  %v10785_v57 = vrot.slane %v10784_v48, 4  ;;  %v15110_v24 = vpack.c.bf16 %v11942_v49, %v11941_v38  ;;  %v11925_v51 = vld [vmem:[%s23375_s8 + $0x320] sm:$0xff]  ;;  %v11944_v55 = vld [vmem:[%s23375_s8 + $0x3b8] sm:$0xff]  ;;  %v11914_v38 = vld [vmem:[%s23375_s8 + $0x2c8] sm:$0xff] }
 0xb6c   : > { %v10764_v5 = vrot.slane %v10763_v19, 2  ;;  %v10779_v16 = vadd.f32 %v10778_v42, %v10777_v52  ;;  %v11943_v52 = vld [vmem:[%s23375_s8 + $0x3b0] sm:$0xff] }
 0xb6d   : > { %v10771_v27 = vrot.slane %v10770_v30, 2  ;;  %v10786_v41 = vadd.f32 %v10785_v57, %v10784_v48  ;;  %v15114_v42 = vpack.c.bf16 %v11944_v55, %v11943_v52  ;;  %v11927_v48 = vld [vmem:[%s23375_s8 + $0x330] sm:$0xff]  ;;  %v11945_v57 = vld [vmem:[%s23375_s8 + $0x3c0] sm:$0xff]  ;;  %v11916_v52 = vld [vmem:[%s23375_s8 + $0x2d8] sm:$0xff] }
 0xb6e   : > { %v10765_v0 = vadd.f32 %v10764_v5, %v10763_v19  ;;  %v10780_v1 = vrot.slane %v10779_v16, 2  ;;  %v15112_v19 = vpack.c.bf16 %v11926_v33, %v11925_v51  ;;  %v11946_v5 = vld [vmem:[%s23375_s8 + $0x3c8] sm:$0xff]  ;;  %v11915_v33 = vld [vmem:[%s23375_s8 + $0x2d0] sm:$0xff] }
 0xb6f   : > { %v10772_v21 = vadd.f32 %v10771_v27, %v10770_v30  ;;  %v10787_v20 = vrot.slane %v10786_v41, 2  ;;  %v11928_v30 = vld [vmem:[%s23375_s8 + $0x338] sm:$0xff]  ;;  %v15118_v27 = vpack.c.bf16 %v11946_v5, %v11945_v57  ;;  %v11898_v51 = vld [vmem:[%s23375_s8 + $0x248] sm:$0xff] }
 0xb70   : > { %v10766_v34 = vrot.slane %v10765_v0, 1  ;;  %v10781_v53 = vadd.f32 %v10780_v1, %v10779_v16  ;;  %v15116_v16 = vpack.c.bf16 %v11928_v30, %v11927_v48  ;;  %v11947_v1 = vld [vmem:[%s23375_s8 + $0x3d0] sm:$0xff]  ;;  %v11900_v48 = vld [vmem:[%s23375_s8 + $0x258] sm:$0xff]  ;;  %v11917_v30 = vld [vmem:[%s23375_s8 + $0x2e0] sm:$0xff] }
 0xb71   : > { %v10773_v61 = vrot.slane %v10772_v21, 1  ;;  %v10788_v35 = vadd.f32 %v10787_v20, %v10786_v41  ;;  %v11929_v41 = vld [vmem:[%s23375_s8 + $0x340] sm:$0xff]  ;;  %v11918_v57 = vld [vmem:[%s23375_s8 + $0x2e8] sm:$0xff] }
 0xb72   : > { %v10767_v39 = vadd.f32 %v10766_v34, %v10765_v0  ;;  %v10782_v11 = vrot.slane %v10781_v53, 1  ;;  %v11930_v0 = vld [vmem:[%s23375_s8 + $0x348] sm:$0xff] }
 0xb73   : > { %v10774_v3 = vadd.f32 %v10773_v61, %v10772_v21  ;;  %v10789_v4 = vrot.slane %v10788_v35, 1  ;;  %v11948_v21 = vld [vmem:[%s23375_s8 + $0x3d8] sm:$0xff]  ;;  %v15120_v20 = vpack.c.bf16 %v11930_v0, %v11929_v41  ;;  %v11902_v41 = vld [vmem:[%s23375_s8 + $0x268] sm:$0xff]  ;;  %v11919_v0 = vld [vmem:[%s23375_s8 + $0x2f0] sm:$0xff] }
 0xb74   : > { %v10783_v8 = vadd.f32 %v10782_v11, %v10781_v53  ;;  %v10791_v18 = vmul.f32 0.25, %v10767_v39  ;;  %v15122_v34 = vpack.c.bf16 %v11948_v21, %v11947_v1  ;;  %v11931_v53 = vld [vmem:[%s23375_s8 + $0x350] sm:$0xff]  ;;  %v11932_v61 = vld [vmem:[%s23375_s8 + $0x358] sm:$0xff]  ;;  %v11950_v39 = vld [vmem:[%s23375_s8 + $0x3e8] sm:$0xff] }
 0xb75   : > { %v10790_v47 = vadd.f32 %v10789_v4, %v10788_v35  ;;  %v10792_v26 = vmul.f32 0.25, %v10774_v3  ;;  %v11949_v35 = vld [vmem:[%s23375_s8 + $0x3e0] sm:$0xff]  ;;  %v15124_v11 = vpack.c.bf16 %v11932_v61, %v11931_v53  ;;  %v11920_v1 = vld [vmem:[%s23375_s8 + $0x2f8] sm:$0xff] }
 0xb76   : > { %v10793_v28 = vmul.f32 0.25, %v10783_v8  ;;  %v10795_v59 = vmul.f32 %v10791_v18, %v10791_v18  ;;  %v10801_v43 = vsub.f32 %v10741_v36, %v10791_v18  ;;  %v15126_v3 = vpack.c.bf16 %v11950_v39, %v11949_v35  ;;  %v11933_v4 = vld [vmem:[%s23375_s8 + $0x360] sm:$0xff]  ;;  %v11934_v8 = vld [vmem:[%s23375_s8 + $0x368] sm:$0xff]  ;;  %v11951_v18 = vld [vmem:[%s23375_s8 + $0x3f0] sm:$0xff] }
 0xb77   : > { %v10794_v60 = vmul.f32 0.25, %v10790_v47  ;;  %v10796_v40 = vmul.f32 %v10792_v26, %v10792_v26  ;;  %v10802_v45 = vsub.f32 %v10743_v25, %v10792_v26  ;;  %v15108_v25 = vpack.c.bf16 %v11924_v2, %v11923_v37  ;;  %v11952_v47 = vld [vmem:[%s23375_s8 + $0x3f8] sm:$0xff]  ;;  %v11895_v37 = vld [vmem:[%s23375_s8 + $0x230] sm:$0xff] }
 0xb78   : > { %v10797_v12 = vsub.f32 %v10793_v28, %v10795_v59  ;;  %v15128_v26 = vpack.c.bf16 %v11934_v8, %v11933_v4  ;;  %v15130_v28 = vpack.c.bf16 %v11952_v47, %v11951_v18  ;;  %v11935_v59 = vld [vmem:[%s23375_s8 + $0x370] sm:$0xff]  ;;  %v11896_v2 = vld [vmem:[%s23375_s8 + $0x238] sm:$0xff] }
 0xb79   : > { %v10798_v17 = vsub.f32 %v10794_v60, %v10796_v40  ;;  %v11936_v60 = vld [vmem:[%s23375_s8 + $0x378] sm:$0xff]  ;;  %v11905_v40 = vld [vmem:[%s23375_s8 + $0x280] sm:$0xff]  ;;  %v15180_v49 = vpack.c.bf16 %v11896_v2, %v11895_v37 }
 0xb7a   : > { %v10799_v46 = vmax.f32 %v10797_v12, 0.0  ;;  %v11906_v12 = vld [vmem:[%s23375_s8 + $0x288] sm:$0xff]  ;;  %v11904_v53 = vld [vmem:[%s23375_s8 + $0x278] sm:$0xff] }
 0xb7b   : > { %v10800_v58 = vmax.f32 %v10798_v17, 0.0  ;;  %v15132_v17 = vpack.c.bf16 %v11936_v60, %v11935_v59 }
 0xb7c   : > { %v10803_v44 = vadd.f32 1e-05, %v10799_v46  ;;  %v15166_v46 = vpack.c.bf16 %v11906_v12, %v11905_v40 }
 0xb7d   : > { %v10804_v10 = vadd.f32 1e-05, %v10800_v58  ;;  %v11889_v58 = vld [vmem:[%s23375_s8 + $0x200] sm:$0xff] }
 0xb7e   : > { %15914 = vrsqrt.f32 %v10803_v44  ;;  %v11890_v44 = vld [vmem:[%s23375_s8 + $0x208] sm:$0xff] }
 0xb7f   : > { %15916 = vrsqrt.f32 %v10804_v10  ;;  %v11907_v10 = vld [vmem:[%s23375_s8 + $0x290] sm:$0xff] }
 0xb88   : > { %v15915_v7 = vpop.eup %15914 }
 0xb89   : > { %v15917_v29 = vpop.eup %15916  ;;  %v10807_v15 = vmul.f32 %v15915_v7, %v10801_v43  ;;  %v11908_v43 = vld [vmem:[%s23375_s8 + $0x298] sm:$0xff]  ;;  %v15168_v7 = vpack.c.bf16 %v11890_v44, %v11889_v58 }
 0xb8a   : > { %v10808_v13 = vmul.f32 %v15917_v29, %v10802_v45  ;;  %v15170_v29 = vpack.c.bf16 %v11908_v43, %v11907_v10 }
 0xb8b   : > { %vm10809_vm0 = vcmp.gt.f32.partialorder %v10807_v15, 0.0  ;;  %v10811_v56 = vmul.f32 0.01, %v10807_v15 }
 0xb8c   : > { %vm10810_vm2 = vcmp.gt.f32.partialorder %v10808_v13, 0.0  ;;  %v10812_v22 = vmul.f32 0.01, %v10808_v13 }
 0xb8d   : > { %v23168_v32 = vsel %vm10809_vm0, %v10807_v15, %v10811_v56  ;;  %v11891_v15 = vld [vmem:[%s23375_s8 + $0x210] sm:$0xff] }
 0xb8e   : > { %v23176_v31 = vsel %vm10810_vm2, %v10808_v13, %v10812_v22  ;;  %v10882_v23 = vrot.slane %v23168_v32, 1  ;;  %v11022_v45 = vrot.slane %v23168_v32, 3  ;;  %v11892_v13 = vld [vmem:[%s23375_s8 + $0x218] sm:$0xff]  ;;  %v11909_v22 = vld [vmem:[%s23375_s8 + $0x2a0] sm:$0xff]  ;;  %v11166_v35 = vrot.slane %v23168_v32, 2 }
 0xb8f   : > { %11160 = vmatprep.mubr.f32.mxu0 %v23176_v31  ;;  %v10883_v14 = vrot.slane %v23176_v31, 1  ;;  %v11023_v36 = vrot.slane %v23176_v31, 3  ;;  %v11167_v56 = vrot.slane %v23176_v31, 2  ;;  %v15172_v6 = vpack.c.bf16 %v11892_v13, %v11891_v15  ;;  %v11894_v31 = vld [vmem:[%s23375_s8 + $0x228] sm:$0xff] }
 0xb90   : > { %11161 = vmatmul.mubr.f32.vlgmr.msra.gmra.mrb[130].mxu0 %v23168_v32  ;;  %v15174_v9 = vpack.c.bf16 %v11910_v62, %v11909_v22 }
 0xb91   : > { %10950 = vmatprep.mubr.f32.mxu1 %v10883_v14  ;;  %v11911_v14 = vld [vmem:[%s23375_s8 + $0x2b0] sm:$0xff] }
 0xb92   : > { %10951 = vmatmul.mubr.f32.vlgmr.msra.gmra.mrb[98].mxu1 %v10882_v23  ;;  %v15176_v23 = vpack.c.bf16 %v11894_v31, %v11893_v50 }
 0xb93   : > { %15105 = vmatpush3.bf16.msra.mxu1 %v15104_v54  ;;  %11090 = vmatprep.mubr.f32.mxu1 %v11023_v36  ;;  %v11912_v54 = vld [vmem:[%s23375_s8 + $0x2b8] sm:$0xff]  ;;  %v11913_v36 = vld [vmem:[%s23375_s8 + $0x2c0] sm:$0xff] }
 0xb94   : > { %15107 = vmatprep.subr.bf16.mxu1 %v15106_v63  ;;  %v15178_v63 = vpack.c.bf16 %v11912_v54, %v11911_v14 }
 0xb97   : > { %15109 = vmatpush3.bf16.msra.mxu1 %v15108_v25  ;;  %v15182_v25 = vpack.c.bf16 %v11914_v38, %v11913_v36 }
 0xb98   : > { %15111 = vmatprep.subr.bf16.mxu1 %v15110_v24  ;;  %v11897_v24 = vld [vmem:[%s23375_s8 + $0x240] sm:$0xff] }
 0xb99   : > { %v15184_v55 = vpack.c.bf16 %v11898_v51, %v11897_v24 }
 0xb9b   : > { %15113 = vmatpush3.bf16.msra.mxu1 %v15112_v19  ;;  %v15186_v19 = vpack.c.bf16 %v11916_v52, %v11915_v33 }
 0xb9c   : > { %15115 = vmatprep.subr.bf16.mxu1 %v15114_v42  ;;  %v11899_v42 = vld [vmem:[%s23375_s8 + $0x250] sm:$0xff] }
 0xb9d   : > { %v15188_v5 = vpack.c.bf16 %v11900_v48, %v11899_v42 }
 0xb9f   : > { %15117 = vmatpush3.bf16.msra.mxu1 %v15116_v16  ;;  %v15190_v16 = vpack.c.bf16 %v11918_v57, %v11917_v30 }
 0xba0   : > { %15119 = vmatprep.subr.bf16.mxu1 %v15118_v27  ;;  %v11901_v27 = vld [vmem:[%s23375_s8 + $0x260] sm:$0xff] }
 0xba1   : > { %v15192_v21 = vpack.c.bf16 %v11902_v41, %v11901_v27 }
 0xba3   : > { %15121 = vmatpush3.bf16.msra.mxu1 %v15120_v20  ;;  %v15194_v20 = vpack.c.bf16 %v11920_v1, %v11919_v0 }
 0xba4   : > { %15123 = vmatprep.subr.bf16.mxu1 %v15122_v34  ;;  %v11903_v34 = vld [vmem:[%s23375_s8 + $0x270] sm:$0xff] }
 0xba5   : > { %v15196_v61 = vpack.c.bf16 %v11904_v53, %v11903_v34 }
 0xba7   : > { %15125 = vmatpush3.bf16.msra.mxu1 %v15124_v11 }
 0xba8   : > { %15127 = vmatprep.subr.bf16.mxu1 %v15126_v3 }
 0xbab   : > { %15129 = vmatpush3.bf16.msra.mxu1 %v15128_v26 }
 0xbac   : > { %15131 = vmatprep.subr.bf16.mxu1 %v15130_v28 }
 0xbaf   : > { %15133 = vmatpush3.bf16.msra.mxu1 %v15132_v17 }
 0xbb0   : > { %15167 = vmatprep.subr.bf16.mxu1 %v15166_v46  ;;  %v11242_v46 = vstv %s11241_s21 }
 0xbb2   : > { %11091 = vmatmul.mubr.f32.vlgmr.msra.gmra.mrb[100].mxu1 %v11022_v45 }
 0xbb3   : > { %15169 = vmatpush3.bf16.msra.mxu1 %v15168_v7  ;;  %11234 = vmatprep.mubr.f32.mxu1 %v11167_v56 }
 0xbb4   : > { %15171 = vmatprep.subr.bf16.mxu1 %v15170_v29 }
 0xbb7   : > { %15173 = vmatpush3.bf16.msra.mxu1 %v15172_v6 }
 0xbb8   : > { %15175 = vmatprep.subr.bf16.mxu1 %v15174_v9 }
 0xbbb   : > { %15177 = vmatpush3.bf16.msra.mxu1 %v15176_v23 }
 0xbbc   : > { %15179 = vmatprep.subr.bf16.mxu1 %v15178_v63 }
 0xbbf   : > { %15181 = vmatpush3.bf16.msra.mxu1 %v15180_v49 }
 0xbc0   : > { %15183 = vmatprep.subr.bf16.mxu1 %v15182_v25 }
 0xbc3   : > { %15185 = vmatpush3.bf16.msra.mxu1 %v15184_v55 }
 0xbc4   : > { %15187 = vmatprep.subr.bf16.mxu1 %v15186_v19 }
 0xbc7   : > { %15189 = vmatpush3.bf16.msra.mxu1 %v15188_v5 }
 0xbc8   : > { %15191 = vmatprep.subr.bf16.mxu1 %v15190_v16 }
 0xbcb   : > { %15193 = vmatpush3.bf16.msra.mxu1 %v15192_v21 }
 0xbcc   : > { %15195 = vmatprep.subr.bf16.mxu1 %v15194_v20 }
 0xbcf   : > { %15197 = vmatpush3.bf16.msra.mxu1 %v15196_v61 }
 0xbd2   : > { %11235 = vmatmul.mubr.f32.vlgmr.msra.gmra.mrb[102].mxu1 %v11166_v35 }
 0xc63   : > { %v13152_v39 = vpop.f32.mrb[130].mxu0 }
 0xc64   : > { %v13153_v11 = vpop.f32.mrb[131].mxu0 }
 0xc65   : > { %v13154_v3 = vadd.f32 %v13153_v11, %v13152_v39  ;;  %v13082_v4 = vpop.f32.mrb[98].mxu1 }
 0xc66   : > { %v13083_v8 = vpop.f32.mrb[99].mxu1 }
 0xc67   : > { %v13084_v18 = vadd.f32 %v13083_v8, %v13082_v4 }
 0xc69   : > { %v11163_v47 = vadd.f32 %v13154_v3, %v13084_v18 }
 0xc85   : > { %v13117_v26 = vpop.f32.mrb[100].mxu1 }
 0xc86   : > { %v13118_v28 = vpop.f32.mrb[101].mxu1 }
 0xc87   : > { %v13119_v59 = vadd.f32 %v13118_v28, %v13117_v26 }
 0xca5   : > { %v13187_v60 = vpop.f32.mrb[102].mxu1 }
 0xca6   : > { %v13188_v40 = vpop.f32.mrb[103].mxu1 }
 0xca7   : > { %v13189_v12 = vadd.f32 %v13188_v40, %v13187_v60 }
 0xca9   : > { %v11237_v17 = vadd.f32 %v13189_v12, %v13119_v59 }
 0xcab   : > { %v11240_v58 = vadd.f32 %v11237_v17, %v11163_v47 }
 0xcad   : > { %v11243_v32 = vadd.f32 %v11242_v46, %v11240_v58 }
 0xcaf   : > { %11245 = vst.msk [vmem:[%s356_s24] sm:$0x1] %vm11244_vm3, %v11243_v32 }
 0xcb0 PF: > { %s21_s15 = sadd.s32 1, %s15924_s15  }
 0xcb1   : > { %p18_p4 = scmp.ge.s32.totalorder %s21_s15, 4  }
 0xcb3   :  { %20 = sbr.rel (!%p18_p4) target bundleno = 2 (0x2), region = 138 }

</bundles_post_ra>
